<compile_context>
chip_gen: v7x
topology: tpu7x:2x2x1
jax: 0.10.0
libtpu: 0.0.40
codegen_flags: <defaults>
</compile_context>

<pallas_src>
import functools

import numpy as np
import jax
import jax.numpy as jnp
from jax.experimental import pallas as pl
from jax.experimental.pallas import tpu as pltpu

_C = 128    # descriptor / 'C3' channels (fixed by the module: Conv2d(128, 256, ...))
_CM = 256   # regress hidden channels
_NEG = float(np.finfo(np.float32).min)


# ----------------------- structure constants (host-side, cached) -----------------------

@functools.lru_cache(maxsize=None)
def _bilinear_matrix(out_size, in_size):
    """1-D interpolation matrix matching F.interpolate(mode='bilinear', align_corners=False)."""
    A = np.zeros((out_size, in_size), np.float32)
    scale = in_size / out_size
    for i in range(out_size):
        src = max((i + 0.5) * scale - 0.5, 0.0)
        i0 = min(int(np.floor(src)), in_size - 1)
        i1 = min(i0 + 1, in_size - 1)
        lam = src - i0
        A[i, i0] += 1.0 - lam
        A[i, i1] += lam
    return A


def _probe_copy_kernel(x_ref, o_ref):
    o_ref[...] = x_ref[...]


@functools.lru_cache(maxsize=None)
def _single_buffering_supported():
    """Probe (eagerly, once) whether pl.Buffered(1) is accepted as a BlockSpec pipeline_mode."""
    try:
        spec = pl.BlockSpec((8, 128), lambda i: (0, 0), pipeline_mode=pl.Buffered(1))
        out = pl.pallas_call(
            _probe_copy_kernel,
            out_shape=jax.ShapeDtypeStruct((8, 128), jnp.float32),
            grid=(1,),
            in_specs=[spec],
            out_specs=pl.BlockSpec((8, 128), lambda i: (0, 0)),
        )(jnp.zeros((8, 128), jnp.float32))
        jax.block_until_ready(out)
        return True
    except Exception:      # noqa: BLE001 - any construction/lowering/compile failure
        return False


# ------------------------------------ fused kernel ------------------------------------

def _make_fused_kernel(h, w):
    hp, wp = h // 2, w // 2
    hw, hwp = h * w, hp * wp

    def shift_rows(z, s, n):
        # out[p] = z[(p + s) mod n]; callers mask rows where p + s leaves the image.
        return z if s == 0 else pltpu.roll(z, (-s) % n, 0)

    def row_col(n, gw):
        row = jax.lax.broadcasted_iota(jnp.int32, (n, 1), 0)
        if (gw & (gw - 1)) == 0:                       # power-of-two fast path
            col = jnp.bitwise_and(row, gw - 1)
        else:
            col = jax.lax.rem(row, gw)
        return row, col

    def regress(x, gh, gw, w1, b1, w2c, b2, w3, b3):
        """Conv1x1(128->256)+ReLU + Conv3x3(256->128, pad 1)+ReLU + Conv1x1(128->128)
        on an (n, 128) activation laid out row-major as a (gh, gw) image."""
        n = gh * gw
        row, col = row_col(n, gw)
        y1 = jnp.dot(x.astype(jnp.bfloat16), w1, preferred_element_type=jnp.float32) + b1
        y1 = jnp.maximum(y1, 0.0)                       # keep f32: rolls stay 32-bit wide
        acc = None
        for t, dh in enumerate((-1, 0, 1)):
            if dh == 0:
                y1d = y1
            else:
                y1d = shift_rows(y1, dh * gw, n)
                valid_h = (row >= gw) if dh == -1 else (row < n - gw)
                y1d = jnp.where(valid_h, y1d, 0.0)
            # one (256, 3*128) matmul per dh group; only dw = +-1 chunks get rolled/masked.
            z = jnp.dot(y1d.astype(jnp.bfloat16), w2c[:, t * 3 * _C:(t + 1) * 3 * _C],
                        preferred_element_type=jnp.float32)        # (n, 384) f32
            for u, dw in enumerate((-1, 0, 1)):
                c = z[:, u * _C:(u + 1) * _C]
                if dw != 0:
                    c = shift_rows(c, dw, n)
                    valid_w = (col > 0) if dw == -1 else (col < gw - 1)
                    c = jnp.where(valid_w, c, 0.0)
                acc = c if acc is None else acc + c
        y2 = jnp.maximum(acc + b2, 0.0).astype(jnp.bfloat16)
        return jnp.dot(y2, w3, preferred_element_type=jnp.float32) + b3

    def kernel(x_ref, s_ref, w1_ref, b1_ref, w2c_ref, b2_ref, w3_ref, b3_ref,
               selw_ref, aw_ref, o_ref):
        x = x_ref[0]                                   # (hw, 128) bf16 'C3' features
        wts = (w1_ref[...], b1_ref[...], w2c_ref[...], b2_ref[...], w3_ref[...], b3_ref[...])

        # ---- descs = regress(C3) ----
        descs = regress(x, h, w, *wts)                 # (hw, 128) f32

        # ---- max_pool2d(C3, kernel=3, stride=2, padding=1) ----
        # separable 3-max: 2 column rolls, then per pooled row max of 3 image rows,
        # stride-2 column selection via a tiny (wp, w) 0/1 matmul (no dense (hwp,hw) constant).
        _, col = row_col(hw, w)
        xf = x.astype(jnp.float32)
        mrow = jnp.maximum(xf, jnp.where(col > 0, shift_rows(xf, -1, hw), _NEG))
        mrow = jnp.maximum(mrow, jnp.where(col < w - 1, shift_rows(xf, 1, hw), _NEG))
        selw = selw_ref[...]                            # (wp, w) bf16 0/1
        parts = []
        for i in range(hp):
            r = 2 * i
            blk = mrow[r * w:(r + 1) * w, :]
            if r - 1 >= 0:
                blk = jnp.maximum(blk, mrow[(r - 1) * w:r * w, :])
            if r + 1 <= h - 1:
                blk = jnp.maximum(blk, mrow[(r + 1) * w:(r + 2) * w, :])
            parts.append(jnp.dot(selw, blk.astype(jnp.bfloat16),
                                 preferred_element_type=jnp.float32))
        pooled = jnp.concatenate(parts, axis=0)        # (hwp, 128) f32

        # ---- down_descs = bilinear_x2(regress(pooled)), separable (no kron matrix) ----
        down = regress(pooled, hp, wp, *wts)           # (hwp, 128) f32
        aw = aw_ref[...]                               # (w, wp) bf16 column-interp matrix
        uw = [jnp.dot(aw, down[i * wp:(i + 1) * wp, :].astype(jnp.bfloat16),
                      preferred_element_type=jnp.float32) for i in range(hp)]
        pieces = []
        for i in range(hp):
            prev_blk = uw[i - 1] if i > 0 else uw[i]
            next_blk = uw[i + 1] if i < hp - 1 else uw[i]
            pieces.append(0.75 * uw[i] + 0.25 * prev_blk)   # output row 2*i
            pieces.append(0.75 * uw[i] + 0.25 * next_blk)   # output row 2*i + 1
        down_descs = jnp.concatenate(pieces, axis=0)   # (hw, 128) f32

        # ---- scale-aware blend + F.normalize(p=2, dim=channel) ----
        s = s_ref[0]                                   # (hw, 1) f32
        wgt = jnp.minimum(s, 2.0) - 1.0                # clamp(s, max=2) - 1
        dd = wgt * down_descs + (1.0 - wgt) * descs
        blended = jnp.where(s > 1.0, dd, descs)
        inv = jax.lax.rsqrt(
            jnp.maximum(jnp.sum(blended * blended, axis=-1, keepdims=True), 1e-24))
        o_ref[0] = blended * inv

    return kernel


def desc_extractor_pallas(feats3, scales_lr, params, h, w):
    """feats3: (B, h*w, 128), scales_lr: (B, h*w, 1) f32 -> (B, h*w, 128) f32 descriptors."""
    B = feats3.shape[0]
    hw = h * w
    hp, wp = h // 2, w // 2
    assert h % 2 == 0 and w % 2 == 0, "max_pool2d(3, 2, 1) path assumes even feature maps"
    assert hw % 8 == 0 and (hp * wp) % 8 == 0, "flattened spatial dims must be sublane aligned"

    selw = np.zeros((wp, w), np.float32)               # stride-2 column selection (tiny)
    selw[np.arange(wp), 2 * np.arange(wp)] = 1.0

    consts = [
        params["W1"].astype(jnp.bfloat16),                                       # (128, 256)
        params["b1"].astype(jnp.float32),                                        # (1, 256)
        jnp.transpose(params["W2"], (1, 0, 2)).reshape(_CM, 9 * _C).astype(jnp.bfloat16),
        params["b2"].astype(jnp.float32),                                        # (1, 128)
        params["W3"].astype(jnp.bfloat16),                                       # (128, 128)
        params["b3"].astype(jnp.float32),                                        # (1, 128)
        jnp.asarray(selw, jnp.bfloat16),                                         # (wp, w)
        jnp.asarray(_bilinear_matrix(w, wp), jnp.bfloat16),                      # (w, wp)
    ]

    single_buf = _single_buffering_supported()

    def _const_spec(a):
        nd = a.ndim
        idx = lambda b, nd=nd: (0,) * nd
        if single_buf:   # grid-invariant blocks: no double buffering needed
            return pl.BlockSpec(a.shape, idx, pipeline_mode=pl.Buffered(1))
        return pl.BlockSpec(a.shape, idx)

    in_specs = [
        pl.BlockSpec((1, hw, _C), lambda b: (b, 0, 0)),      # feats3 (per image, bf16)
        pl.BlockSpec((1, hw, 1), lambda b: (b, 0, 0)),       # downsampled scales
    ] + [_const_spec(a) for a in consts]

    flops = (2 * B * (hw + hp * wp) * (_C * _CM + _CM * 9 * _C + _C * _C)
             + 2 * B * hp * wp * w * _C        # pooling column-selection matmuls
             + 2 * B * hp * w * wp * _C)       # separable upsample matmuls
    bytes_accessed = (B * (hw * _C * 2 + hw * 4 + hw * _C * 4)
                      + sum(int(np.prod(a.shape)) * a.dtype.itemsize for a in consts))
    cost = pl.CostEstimate(flops=int(flops), transcendentals=int(B * hw),
                           bytes_accessed=int(bytes_accessed))

    return pl.pallas_call(
        _make_fused_kernel(h, w),
        out_shape=jax.ShapeDtypeStruct((B, hw, _C), jnp.float32),
        grid_spec=pltpu.PrefetchScalarGridSpec(
            num_scalar_prefetch=0,
            grid=(B,),
            in_specs=in_specs,
            out_specs=pl.BlockSpec((1, hw, _C), lambda b: (b, 0, 0)),
        ),
        compiler_params=pltpu.CompilerParams(
            dimension_semantics=("parallel",),
            vmem_limit_bytes=48 * 1024 * 1024,
        ),
        cost_estimate=cost,
    )(feats3.astype(jnp.bfloat16), scales_lr.astype(jnp.float32), *consts)


# ------------------------------------ forward pass ------------------------------------

def _backbone_stub(images, params):
    # TODO(synk): build_backbone(cfg) is external/unspecified; stand-in is a deterministic
    # 4x4 patch linear embedding + ReLU producing the 128-channel 'C3' map (stride 4).
    B, _, H, W = images.shape
    assert H % 8 == 0 and W % 8 == 0
    h, w = H // 4, W // 4
    x = jnp.transpose(images, (0, 2, 3, 1))
    patches = x.reshape(B, h, 4, w, 4, 3).transpose(0, 1, 3, 2, 4, 5).reshape(B, h * w, 48)
    feats3 = jax.nn.relu(patches @ params["Wp"] + params["bp"])
    return feats3, h, w


def _downsample_scales(scales, h, w):
    # F.interpolate(scales, (h, w), mode='bilinear') -- tiny; plain XLA (separable matmuls).
    B, _, H, W = scales.shape
    ah = jnp.asarray(_bilinear_matrix(h, H))
    aw = jnp.asarray(_bilinear_matrix(w, W))
    return jnp.einsum('hH,bHW,wW->bhw', ah, scales[:, 0], aw).reshape(B, h * w, 1)


def desc_extractor_forward(images, scales, params):
    """images: (B,3,H,W), scales: (B,1,H,W) -> L2-normalized descriptors (B,128,H//4,W//4)."""
    B = images.shape[0]
    feats3, h, w = _backbone_stub(images, params)
    scales_lr = _downsample_scales(scales, h, w)
    out = desc_extractor_pallas(feats3, scales_lr, params, h, w)             # (B, hw, 128)
    return jnp.transpose(out.reshape(B, h, w, _C), (0, 3, 1, 2))             # NCHW


# -------------------------- pure-JAX reference (for validation) --------------------------

def reference_forward(images, scales, params):
    """Independent plain-JAX implementation mirroring the kernel's bf16-input/f32-accum math."""
    feats3, h, w = _backbone_stub(images, params)
    scales_lr = _downsample_scales(scales, h, w)
    B = feats3.shape[0]
    hp, wp = h // 2, w // 2
    bf = jnp.bfloat16
    x_bf = feats3.astype(bf).reshape(B, h, w, _C)
    w1 = params["W1"].astype(bf)
    w2 = params["W2"].astype(bf)                        # (9, 256, 128)
    w3 = params["W3"].astype(bf)
    b1, b2, b3 = params["b1"][0], params["b2"][0], params["b3"][0]

    def regress(ximg):
        gh, gw = ximg.shape[1], ximg.shape[2]
        y1 = jnp.einsum('bhwc,cd->bhwd', ximg.astype(bf), w1,
                        preferred_element_type=jnp.float32) + b1
        y1 = jnp.maximum(y1, 0.0).astype(bf)
        y1p = jnp.pad(y1, ((0, 0), (1, 1), (1, 1), (0, 0)))
        acc = jnp.zeros((B, gh, gw, _C), jnp.float32)
        for k in range(9):
            kh, kw = k // 3, k % 3
            acc = acc + jnp.einsum('bhwc,cd->bhwd', y1p[:, kh:kh + gh, kw:kw + gw, :],
                                   w2[k], preferred_element_type=jnp.float32)
        y2 = jnp.maximum(acc + b2, 0.0).astype(bf)
        return jnp.einsum('bhwc,cd->bhwd', y2, w3, preferred_element_type=jnp.float32) + b3

    descs = regress(x_bf)                                                     # (B,h,w,128)

    xf = x_bf.astype(jnp.float32)
    xp = jnp.pad(xf, ((0, 0), (1, 1), (1, 1), (0, 0)), constant_values=-jnp.inf)
    m = xf
    for k in range(9):
        kh, kw = k // 3, k % 3
        m = jnp.maximum(m, xp[:, kh:kh + h, kw:kw + w, :])
    pooled = m[:, ::2, ::2, :]                                 # max_pool2d(3, stride 2, pad 1)

    down = regress(pooled)                                                    # (B,hp,wp,128)
    aw = jnp.asarray(_bilinear_matrix(w, wp), bf)                             # (w, wp)
    uw = jnp.einsum('Jj,bijc->biJc', aw, down.astype(bf),
                    preferred_element_type=jnp.float32)                       # (B,hp,w,128)
    up_sh = jnp.concatenate([uw[:, :1], uw[:, :-1]], axis=1)
    dn_sh = jnp.concatenate([uw[:, 1:], uw[:, -1:]], axis=1)
    even = 0.75 * uw + 0.25 * up_sh
    odd = 0.75 * uw + 0.25 * dn_sh
    down_descs = jnp.stack([even, odd], axis=2).reshape(B, h, w, _C)

    s = scales_lr.reshape(B, h, w, 1)
    wgt = jnp.minimum(s, 2.0) - 1.0
    dd = wgt * down_descs + (1.0 - wgt) * descs
    blended = jnp.where(s > 1.0, dd, descs)
    inv = jax.lax.rsqrt(jnp.maximum(jnp.sum(blended * blended, -1, keepdims=True), 1e-24))
    return jnp.transpose(blended * inv, (0, 3, 1, 2))


# ---------------------------------------- setup ----------------------------------------

def init_params(key):
    ks = jax.random.split(key, 8)
    return {
        # stand-in backbone patch embed: 4x4x3 patch -> 128 channels
        "Wp": 0.15 * jax.random.normal(ks[0], (48, _C), jnp.float32),
        "bp": 0.01 * jax.random.normal(ks[1], (_C,), jnp.float32),
        # regress head: Conv1x1(128->256), Conv3x3(256->128, pad=1), Conv1x1(128->128)
        "W1": 0.08 * jax.random.normal(ks[2], (_C, _CM), jnp.float32),
        "b1": 0.01 * jax.random.normal(ks[3], (1, _CM), jnp.float32),
        "W2": 0.05 * jax.random.normal(ks[4], (3, 3, _CM, _C), jnp.float32).reshape(9, _CM, _C),
        "b2": 0.01 * jax.random.normal(ks[5], (1, _C), jnp.float32),
        "W3": 0.08 * jax.random.normal(ks[6], (_C, _C), jnp.float32),
        "b3": 0.01 * jax.random.normal(ks[7], (1, _C), jnp.float32),
    }


if __name__ == "__main__":
    B, H, W = 2, 64, 64                               # feature map 16x16, hw=256 (small)
    k_img, k_sc = jax.random.split(jax.random.PRNGKey(0))
    images = jax.random.normal(k_img, (B, 3, H, W), jnp.float32)
    # pixel scale ratios around 1 (some > 1, some < 1), as in the reference usage
    scales = 0.5 + 1.5 * jax.random.uniform(k_sc, (B, 1, H, W), jnp.float32)
    params = init_params(jax.random.PRNGKey(1))

    out = jax.block_until_ready(jax.jit(desc_extractor_forward)(images, scales, params))

    assert out.shape == (B, _C, H // 4, W // 4), out.shape
    assert out.dtype == jnp.float32
    assert bool(jnp.all(jnp.isfinite(out)))

    # Correctness check against an independent pure-JAX implementation
    # (validates the grouped conv taps, separable max-pool + stride-2 selection,
    #  separable bilinear upsample, blend and L2-normalize).
    ref = jax.block_until_ready(jax.jit(reference_forward)(images, scales, params))
    err = float(jnp.max(jnp.abs(out - ref)))
    assert err < 2e-3, f"Pallas kernel mismatch vs reference: max abs err = {err}"

    print("KERNEL_OK")
</pallas_src>

<mosaic_0001>
module attributes {stable_mosaic.version = 11 : i64} {
  func.func @kernel(%arg0: i32, %arg1: memref<1x256x128xbf16, #tpu.memory_space<vmem>>, %arg2: memref<1x256x1xf32, #tpu.memory_space<vmem>>, %arg3: memref<128x256xbf16, #tpu.memory_space<vmem>>, %arg4: memref<1x256xf32, #tpu.memory_space<vmem>>, %arg5: memref<256x1152xbf16, #tpu.memory_space<vmem>>, %arg6: memref<1x128xf32, #tpu.memory_space<vmem>>, %arg7: memref<128x128xbf16, #tpu.memory_space<vmem>>, %arg8: memref<1x128xf32, #tpu.memory_space<vmem>>, %arg9: memref<8x16xbf16, #tpu.memory_space<vmem>>, %arg10: memref<16x8xbf16, #tpu.memory_space<vmem>>, %arg11: memref<1x256x128xf32, #tpu.memory_space<vmem>>) attributes {dimension_semantics = [#tpu.dimension_semantics<parallel>], iteration_bounds = array<i64: 2>, scalar_prefetch = 0 : i64, scratch_operands = 0 : i64, tpu.core_type = #tpu.core_type<tc>, window_params = [{transform_indices = @transform_0, window_bounds = array<i64: 1, 256, 128>}, {transform_indices = @transform_1, window_bounds = array<i64: 1, 256, 1>}, {pipeline_mode = #tpu.pipeline_mode<synchronous>, transform_indices = @transform_2, window_bounds = array<i64: 128, 256>}, {pipeline_mode = #tpu.pipeline_mode<synchronous>, transform_indices = @transform_3, window_bounds = array<i64: 1, 256>}, {pipeline_mode = #tpu.pipeline_mode<synchronous>, transform_indices = @transform_4, window_bounds = array<i64: 256, 1152>}, {pipeline_mode = #tpu.pipeline_mode<synchronous>, transform_indices = @transform_5, window_bounds = array<i64: 1, 128>}, {pipeline_mode = #tpu.pipeline_mode<synchronous>, transform_indices = @transform_6, window_bounds = array<i64: 128, 128>}, {pipeline_mode = #tpu.pipeline_mode<synchronous>, transform_indices = @transform_7, window_bounds = array<i64: 1, 128>}, {pipeline_mode = #tpu.pipeline_mode<synchronous>, transform_indices = @transform_8, window_bounds = array<i64: 8, 16>}, {pipeline_mode = #tpu.pipeline_mode<synchronous>, transform_indices = @transform_9, window_bounds = array<i64: 16, 8>}, {transform_indices = @transform_10, window_bounds = array<i64: 1, 256, 128>}]} {
    %c0 = arith.constant 0 : index
    %c0_0 = arith.constant 0 : index
    %c0_1 = arith.constant 0 : index
    %0 = vector.load %arg1[%c0, %c0_0, %c0_1] : memref<1x256x128xbf16, #tpu.memory_space<vmem>>, vector<1x256x128xbf16>
    %1 = vector.shape_cast %0 : vector<1x256x128xbf16> to vector<256x128xbf16>
    %c0_2 = arith.constant 0 : index
    %c0_3 = arith.constant 0 : index
    %2 = vector.load %arg3[%c0_2, %c0_3] : memref<128x256xbf16, #tpu.memory_space<vmem>>, vector<128x256xbf16>
    %c0_4 = arith.constant 0 : index
    %c0_5 = arith.constant 0 : index
    %3 = vector.load %arg4[%c0_4, %c0_5] : memref<1x256xf32, #tpu.memory_space<vmem>>, vector<1x256xf32>
    %c0_6 = arith.constant 0 : index
    %c0_7 = arith.constant 0 : index
    %4 = vector.load %arg5[%c0_6, %c0_7] : memref<256x1152xbf16, #tpu.memory_space<vmem>>, vector<256x1152xbf16>
    %c0_8 = arith.constant 0 : index
    %c0_9 = arith.constant 0 : index
    %5 = vector.load %arg6[%c0_8, %c0_9] : memref<1x128xf32, #tpu.memory_space<vmem>>, vector<1x128xf32>
    %c0_10 = arith.constant 0 : index
    %c0_11 = arith.constant 0 : index
    %6 = vector.load %arg7[%c0_10, %c0_11] : memref<128x128xbf16, #tpu.memory_space<vmem>>, vector<128x128xbf16>
    %c0_12 = arith.constant 0 : index
    %c0_13 = arith.constant 0 : index
    %7 = vector.load %arg8[%c0_12, %c0_13] : memref<1x128xf32, #tpu.memory_space<vmem>>, vector<1x128xf32>
    %8 = tpu.iota {dimensions = array<i32: 0>} : vector<256x1xi32>
    %c15_i32 = arith.constant 15 : i32
    %9 = vector.broadcast %c15_i32 : i32 to vector<256x1xi32>
    %10 = arith.andi %8, %9 : vector<256x1xi32>
    %cst = arith.constant dense<0.000000e+00> : vector<256x256xf32>
    %11 = tpu.matmul %1, %2, %cst {dimension_numbers = #tpu.dot_dimension_numbers<[1], [0], [0], [1], [0, 0, 1, 1], [], []>} : vector<256x128xbf16>, vector<128x256xbf16>, vector<256x256xf32> -> vector<256x256xf32>
    %12 = vector.broadcast %3 : vector<1x256xf32> to vector<256x256xf32>
    %13 = arith.addf %11, %12 : vector<256x256xf32>
    %cst_14 = arith.constant 0.000000e+00 : f32
    %14 = vector.broadcast %cst_14 : f32 to vector<256x256xf32>
    %15 = arith.maximumf %13, %14 : vector<256x256xf32>
    %c16_i32 = arith.constant 16 : i32
    %16 = tpu.dynamic_rotate %15 by %c16_i32 dim 0 : vector<256x256xf32>, i32 -> vector<256x256xf32>
    %c16_i32_15 = arith.constant 16 : i32
    %17 = vector.broadcast %c16_i32_15 : i32 to vector<256x1xi32>
    %18 = arith.cmpi sge, %8, %17 : vector<256x1xi32>
    %cst_16 = arith.constant 0.000000e+00 : f32
    %19 = vector.shape_cast %18 : vector<256x1xi1> to vector<256x1xi1>
    %20 = vector.broadcast %19 : vector<256x1xi1> to vector<256x256xi1>
    %21 = vector.broadcast %cst_16 : f32 to vector<256x256xf32>
    %22 = arith.select %20, %16, %21 : vector<256x256xi1>, vector<256x256xf32>
    %23 = arith.truncf %22 : vector<256x256xf32> to vector<256x256xbf16>
    %24 = vector.extract_strided_slice %4 {offsets = [0, 0], sizes = [256, 384], strides = [1, 1]} : vector<256x1152xbf16> to vector<256x384xbf16>
    %cst_17 = arith.constant dense<0.000000e+00> : vector<256x384xf32>
    %25 = tpu.matmul %23, %24, %cst_17 {dimension_numbers = #tpu.dot_dimension_numbers<[1], [0], [0], [1], [0, 0, 1, 1], [], []>} : vector<256x256xbf16>, vector<256x384xbf16>, vector<256x384xf32> -> vector<256x384xf32>
    %26 = vector.extract_strided_slice %25 {offsets = [0, 0], sizes = [256, 128], strides = [1, 1]} : vector<256x384xf32> to vector<256x128xf32>
    %c1_i32 = arith.constant 1 : i32
    %27 = tpu.dynamic_rotate %26 by %c1_i32 dim 0 : vector<256x128xf32>, i32 -> vector<256x128xf32>
    %c0_i32 = arith.constant 0 : i32
    %28 = vector.broadcast %c0_i32 : i32 to vector<256x1xi32>
    %29 = arith.cmpi sgt, %10, %28 : vector<256x1xi32>
    %cst_18 = arith.constant 0.000000e+00 : f32
    %30 = vector.shape_cast %29 : vector<256x1xi1> to vector<256x1xi1>
    %31 = vector.broadcast %30 : vector<256x1xi1> to vector<256x128xi1>
    %32 = vector.broadcast %cst_18 : f32 to vector<256x128xf32>
    %33 = arith.select %31, %27, %32 : vector<256x128xi1>, vector<256x128xf32>
    %34 = vector.extract_strided_slice %25 {offsets = [0, 128], sizes = [256, 128], strides = [1, 1]} : vector<256x384xf32> to vector<256x128xf32>
    %35 = arith.addf %33, %34 : vector<256x128xf32>
    %36 = vector.extract_strided_slice %25 {offsets = [0, 256], sizes = [256, 128], strides = [1, 1]} : vector<256x384xf32> to vector<256x128xf32>
    %c255_i32 = arith.constant 255 : i32
    %37 = tpu.dynamic_rotate %36 by %c255_i32 dim 0 : vector<256x128xf32>, i32 -> vector<256x128xf32>
    %c15_i32_19 = arith.constant 15 : i32
    %38 = vector.broadcast %c15_i32_19 : i32 to vector<256x1xi32>
    %39 = arith.cmpi slt, %10, %38 : vector<256x1xi32>
    %cst_20 = arith.constant 0.000000e+00 : f32
    %40 = vector.shape_cast %39 : vector<256x1xi1> to vector<256x1xi1>
    %41 = vector.broadcast %40 : vector<256x1xi1> to vector<256x128xi1>
    %42 = vector.broadcast %cst_20 : f32 to vector<256x128xf32>
    %43 = arith.select %41, %37, %42 : vector<256x128xi1>, vector<256x128xf32>
    %44 = arith.addf %35, %43 : vector<256x128xf32>
    %45 = arith.truncf %15 : vector<256x256xf32> to vector<256x256xbf16>
    %46 = vector.extract_strided_slice %4 {offsets = [0, 384], sizes = [256, 384], strides = [1, 1]} : vector<256x1152xbf16> to vector<256x384xbf16>
    %cst_21 = arith.constant dense<0.000000e+00> : vector<256x384xf32>
    %47 = tpu.matmul %45, %46, %cst_21 {dimension_numbers = #tpu.dot_dimension_numbers<[1], [0], [0], [1], [0, 0, 1, 1], [], []>} : vector<256x256xbf16>, vector<256x384xbf16>, vector<256x384xf32> -> vector<256x384xf32>
    %48 = vector.extract_strided_slice %47 {offsets = [0, 0], sizes = [256, 128], strides = [1, 1]} : vector<256x384xf32> to vector<256x128xf32>
    %c1_i32_22 = arith.constant 1 : i32
    %49 = tpu.dynamic_rotate %48 by %c1_i32_22 dim 0 : vector<256x128xf32>, i32 -> vector<256x128xf32>
    %c0_i32_23 = arith.constant 0 : i32
    %50 = vector.broadcast %c0_i32_23 : i32 to vector<256x1xi32>
    %51 = arith.cmpi sgt, %10, %50 : vector<256x1xi32>
    %cst_24 = arith.constant 0.000000e+00 : f32
    %52 = vector.shape_cast %51 : vector<256x1xi1> to vector<256x1xi1>
    %53 = vector.broadcast %52 : vector<256x1xi1> to vector<256x128xi1>
    %54 = vector.broadcast %cst_24 : f32 to vector<256x128xf32>
    %55 = arith.select %53, %49, %54 : vector<256x128xi1>, vector<256x128xf32>
    %56 = arith.addf %44, %55 : vector<256x128xf32>
    %57 = vector.extract_strided_slice %47 {offsets = [0, 128], sizes = [256, 128], strides = [1, 1]} : vector<256x384xf32> to vector<256x128xf32>
    %58 = arith.addf %56, %57 : vector<256x128xf32>
    %59 = vector.extract_strided_slice %47 {offsets = [0, 256], sizes = [256, 128], strides = [1, 1]} : vector<256x384xf32> to vector<256x128xf32>
    %c255_i32_25 = arith.constant 255 : i32
    %60 = tpu.dynamic_rotate %59 by %c255_i32_25 dim 0 : vector<256x128xf32>, i32 -> vector<256x128xf32>
    %c15_i32_26 = arith.constant 15 : i32
    %61 = vector.broadcast %c15_i32_26 : i32 to vector<256x1xi32>
    %62 = arith.cmpi slt, %10, %61 : vector<256x1xi32>
    %cst_27 = arith.constant 0.000000e+00 : f32
    %63 = vector.shape_cast %62 : vector<256x1xi1> to vector<256x1xi1>
    %64 = vector.broadcast %63 : vector<256x1xi1> to vector<256x128xi1>
    %65 = vector.broadcast %cst_27 : f32 to vector<256x128xf32>
    %66 = arith.select %64, %60, %65 : vector<256x128xi1>, vector<256x128xf32>
    %67 = arith.addf %58, %66 : vector<256x128xf32>
    %c240_i32 = arith.constant 240 : i32
    %68 = tpu.dynamic_rotate %15 by %c240_i32 dim 0 : vector<256x256xf32>, i32 -> vector<256x256xf32>
    %c240_i32_28 = arith.constant 240 : i32
    %69 = vector.broadcast %c240_i32_28 : i32 to vector<256x1xi32>
    %70 = arith.cmpi slt, %8, %69 : vector<256x1xi32>
    %cst_29 = arith.constant 0.000000e+00 : f32
    %71 = vector.shape_cast %70 : vector<256x1xi1> to vector<256x1xi1>
    %72 = vector.broadcast %71 : vector<256x1xi1> to vector<256x256xi1>
    %73 = vector.broadcast %cst_29 : f32 to vector<256x256xf32>
    %74 = arith.select %72, %68, %73 : vector<256x256xi1>, vector<256x256xf32>
    %75 = arith.truncf %74 : vector<256x256xf32> to vector<256x256xbf16>
    %76 = vector.extract_strided_slice %4 {offsets = [0, 768], sizes = [256, 384], strides = [1, 1]} : vector<256x1152xbf16> to vector<256x384xbf16>
    %cst_30 = arith.constant dense<0.000000e+00> : vector<256x384xf32>
    %77 = tpu.matmul %75, %76, %cst_30 {dimension_numbers = #tpu.dot_dimension_numbers<[1], [0], [0], [1], [0, 0, 1, 1], [], []>} : vector<256x256xbf16>, vector<256x384xbf16>, vector<256x384xf32> -> vector<256x384xf32>
    %78 = vector.extract_strided_slice %77 {offsets = [0, 0], sizes = [256, 128], strides = [1, 1]} : vector<256x384xf32> to vector<256x128xf32>
    %c1_i32_31 = arith.constant 1 : i32
    %79 = tpu.dynamic_rotate %78 by %c1_i32_31 dim 0 : vector<256x128xf32>, i32 -> vector<256x128xf32>
    %c0_i32_32 = arith.constant 0 : i32
    %80 = vector.broadcast %c0_i32_32 : i32 to vector<256x1xi32>
    %81 = arith.cmpi sgt, %10, %80 : vector<256x1xi32>
    %cst_33 = arith.constant 0.000000e+00 : f32
    %82 = vector.shape_cast %81 : vector<256x1xi1> to vector<256x1xi1>
    %83 = vector.broadcast %82 : vector<256x1xi1> to vector<256x128xi1>
    %84 = vector.broadcast %cst_33 : f32 to vector<256x128xf32>
    %85 = arith.select %83, %79, %84 : vector<256x128xi1>, vector<256x128xf32>
    %86 = arith.addf %67, %85 : vector<256x128xf32>
    %87 = vector.extract_strided_slice %77 {offsets = [0, 128], sizes = [256, 128], strides = [1, 1]} : vector<256x384xf32> to vector<256x128xf32>
    %88 = arith.addf %86, %87 : vector<256x128xf32>
    %89 = vector.extract_strided_slice %77 {offsets = [0, 256], sizes = [256, 128], strides = [1, 1]} : vector<256x384xf32> to vector<256x128xf32>
    %c255_i32_34 = arith.constant 255 : i32
    %90 = tpu.dynamic_rotate %89 by %c255_i32_34 dim 0 : vector<256x128xf32>, i32 -> vector<256x128xf32>
    %c15_i32_35 = arith.constant 15 : i32
    %91 = vector.broadcast %c15_i32_35 : i32 to vector<256x1xi32>
    %92 = arith.cmpi slt, %10, %91 : vector<256x1xi32>
    %cst_36 = arith.constant 0.000000e+00 : f32
    %93 = vector.shape_cast %92 : vector<256x1xi1> to vector<256x1xi1>
    %94 = vector.broadcast %93 : vector<256x1xi1> to vector<256x128xi1>
    %95 = vector.broadcast %cst_36 : f32 to vector<256x128xf32>
    %96 = arith.select %94, %90, %95 : vector<256x128xi1>, vector<256x128xf32>
    %97 = arith.addf %88, %96 : vector<256x128xf32>
    %98 = vector.broadcast %5 : vector<1x128xf32> to vector<256x128xf32>
    %99 = arith.addf %97, %98 : vector<256x128xf32>
    %cst_37 = arith.constant 0.000000e+00 : f32
    %100 = vector.broadcast %cst_37 : f32 to vector<256x128xf32>
    %101 = arith.maximumf %99, %100 : vector<256x128xf32>
    %102 = arith.truncf %101 : vector<256x128xf32> to vector<256x128xbf16>
    %cst_38 = arith.constant dense<0.000000e+00> : vector<256x128xf32>
    %103 = tpu.matmul %102, %6, %cst_38 {dimension_numbers = #tpu.dot_dimension_numbers<[1], [0], [0], [1], [0, 0, 1, 1], [], []>} : vector<256x128xbf16>, vector<128x128xbf16>, vector<256x128xf32> -> vector<256x128xf32>
    %104 = vector.broadcast %7 : vector<1x128xf32> to vector<256x128xf32>
    %105 = arith.addf %103, %104 : vector<256x128xf32>
    %106 = tpu.iota {dimensions = array<i32: 0>} : vector<256x1xi32>
    %c15_i32_39 = arith.constant 15 : i32
    %107 = vector.broadcast %c15_i32_39 : i32 to vector<256x1xi32>
    %108 = arith.andi %106, %107 : vector<256x1xi32>
    %109 = arith.extf %1 : vector<256x128xbf16> to vector<256x128xf32>
    %c0_i32_40 = arith.constant 0 : i32
    %110 = vector.broadcast %c0_i32_40 : i32 to vector<256x1xi32>
    %111 = arith.cmpi sgt, %108, %110 : vector<256x1xi32>
    %c1_i32_41 = arith.constant 1 : i32
    %112 = tpu.dynamic_rotate %109 by %c1_i32_41 dim 0 : vector<256x128xf32>, i32 -> vector<256x128xf32>
    %cst_42 = arith.constant -3.40282347E+38 : f32
    %113 = vector.shape_cast %111 : vector<256x1xi1> to vector<256x1xi1>
    %114 = vector.broadcast %113 : vector<256x1xi1> to vector<256x128xi1>
    %115 = vector.broadcast %cst_42 : f32 to vector<256x128xf32>
    %116 = arith.select %114, %112, %115 : vector<256x128xi1>, vector<256x128xf32>
    %117 = arith.maximumf %109, %116 : vector<256x128xf32>
    %c15_i32_43 = arith.constant 15 : i32
    %118 = vector.broadcast %c15_i32_43 : i32 to vector<256x1xi32>
    %119 = arith.cmpi slt, %108, %118 : vector<256x1xi32>
    %c255_i32_44 = arith.constant 255 : i32
    %120 = tpu.dynamic_rotate %109 by %c255_i32_44 dim 0 : vector<256x128xf32>, i32 -> vector<256x128xf32>
    %cst_45 = arith.constant -3.40282347E+38 : f32
    %121 = vector.shape_cast %119 : vector<256x1xi1> to vector<256x1xi1>
    %122 = vector.broadcast %121 : vector<256x1xi1> to vector<256x128xi1>
    %123 = vector.broadcast %cst_45 : f32 to vector<256x128xf32>
    %124 = arith.select %122, %120, %123 : vector<256x128xi1>, vector<256x128xf32>
    %125 = arith.maximumf %117, %124 : vector<256x128xf32>
    %c0_46 = arith.constant 0 : index
    %c0_47 = arith.constant 0 : index
    %126 = vector.load %arg9[%c0_46, %c0_47] : memref<8x16xbf16, #tpu.memory_space<vmem>>, vector<8x16xbf16>
    %127 = vector.extract_strided_slice %125 {offsets = [0, 0], sizes = [16, 128], strides = [1, 1]} : vector<256x128xf32> to vector<16x128xf32>
    %128 = vector.extract_strided_slice %125 {offsets = [16, 0], sizes = [16, 128], strides = [1, 1]} : vector<256x128xf32> to vector<16x128xf32>
    %129 = arith.maximumf %127, %128 : vector<16x128xf32>
    %130 = arith.truncf %129 : vector<16x128xf32> to vector<16x128xbf16>
    %cst_48 = arith.constant dense<0.000000e+00> : vector<8x128xf32>
    %131 = tpu.matmul %126, %130, %cst_48 {dimension_numbers = #tpu.dot_dimension_numbers<[1], [0], [0], [1], [0, 0, 1, 1], [], []>} : vector<8x16xbf16>, vector<16x128xbf16>, vector<8x128xf32> -> vector<8x128xf32>
    %132 = vector.extract_strided_slice %125 {offsets = [32, 0], sizes = [16, 128], strides = [1, 1]} : vector<256x128xf32> to vector<16x128xf32>
    %133 = vector.extract_strided_slice %125 {offsets = [16, 0], sizes = [16, 128], strides = [1, 1]} : vector<256x128xf32> to vector<16x128xf32>
    %134 = arith.maximumf %132, %133 : vector<16x128xf32>
    %135 = vector.extract_strided_slice %125 {offsets = [48, 0], sizes = [16, 128], strides = [1, 1]} : vector<256x128xf32> to vector<16x128xf32>
    %136 = arith.maximumf %134, %135 : vector<16x128xf32>
    %137 = arith.truncf %136 : vector<16x128xf32> to vector<16x128xbf16>
    %cst_49 = arith.constant dense<0.000000e+00> : vector<8x128xf32>
    %138 = tpu.matmul %126, %137, %cst_49 {dimension_numbers = #tpu.dot_dimension_numbers<[1], [0], [0], [1], [0, 0, 1, 1], [], []>} : vector<8x16xbf16>, vector<16x128xbf16>, vector<8x128xf32> -> vector<8x128xf32>
    %139 = vector.extract_strided_slice %125 {offsets = [64, 0], sizes = [16, 128], strides = [1, 1]} : vector<256x128xf32> to vector<16x128xf32>
    %140 = vector.extract_strided_slice %125 {offsets = [48, 0], sizes = [16, 128], strides = [1, 1]} : vector<256x128xf32> to vector<16x128xf32>
    %141 = arith.maximumf %139, %140 : vector<16x128xf32>
    %142 = vector.extract_strided_slice %125 {offsets = [80, 0], sizes = [16, 128], strides = [1, 1]} : vector<256x128xf32> to vector<16x128xf32>
    %143 = arith.maximumf %141, %142 : vector<16x128xf32>
    %144 = arith.truncf %143 : vector<16x128xf32> to vector<16x128xbf16>
    %cst_50 = arith.constant dense<0.000000e+00> : vector<8x128xf32>
    %145 = tpu.matmul %126, %144, %cst_50 {dimension_numbers = #tpu.dot_dimension_numbers<[1], [0], [0], [1], [0, 0, 1, 1], [], []>} : vector<8x16xbf16>, vector<16x128xbf16>, vector<8x128xf32> -> vector<8x128xf32>
    %146 = vector.extract_strided_slice %125 {offsets = [96, 0], sizes = [16, 128], strides = [1, 1]} : vector<256x128xf32> to vector<16x128xf32>
    %147 = vector.extract_strided_slice %125 {offsets = [80, 0], sizes = [16, 128], strides = [1, 1]} : vector<256x128xf32> to vector<16x128xf32>
    %148 = arith.maximumf %146, %147 : vector<16x128xf32>
    %149 = vector.extract_strided_slice %125 {offsets = [112, 0], sizes = [16, 128], strides = [1, 1]} : vector<256x128xf32> to vector<16x128xf32>
    %150 = arith.maximumf %148, %149 : vector<16x128xf32>
    %151 = arith.truncf %150 : vector<16x128xf32> to vector<16x128xbf16>
    %cst_51 = arith.constant dense<0.000000e+00> : vector<8x128xf32>
    %152 = tpu.matmul %126, %151, %cst_51 {dimension_numbers = #tpu.dot_dimension_numbers<[1], [0], [0], [1], [0, 0, 1, 1], [], []>} : vector<8x16xbf16>, vector<16x128xbf16>, vector<8x128xf32> -> vector<8x128xf32>
    %153 = vector.extract_strided_slice %125 {offsets = [128, 0], sizes = [16, 128], strides = [1, 1]} : vector<256x128xf32> to vector<16x128xf32>
    %154 = vector.extract_strided_slice %125 {offsets = [112, 0], sizes = [16, 128], strides = [1, 1]} : vector<256x128xf32> to vector<16x128xf32>
    %155 = arith.maximumf %153, %154 : vector<16x128xf32>
    %156 = vector.extract_strided_slice %125 {offsets = [144, 0], sizes = [16, 128], strides = [1, 1]} : vector<256x128xf32> to vector<16x128xf32>
    %157 = arith.maximumf %155, %156 : vector<16x128xf32>
    %158 = arith.truncf %157 : vector<16x128xf32> to vector<16x128xbf16>
    %cst_52 = arith.constant dense<0.000000e+00> : vector<8x128xf32>
    %159 = tpu.matmul %126, %158, %cst_52 {dimension_numbers = #tpu.dot_dimension_numbers<[1], [0], [0], [1], [0, 0, 1, 1], [], []>} : vector<8x16xbf16>, vector<16x128xbf16>, vector<8x128xf32> -> vector<8x128xf32>
    %160 = vector.extract_strided_slice %125 {offsets = [160, 0], sizes = [16, 128], strides = [1, 1]} : vector<256x128xf32> to vector<16x128xf32>
    %161 = vector.extract_strided_slice %125 {offsets = [144, 0], sizes = [16, 128], strides = [1, 1]} : vector<256x128xf32> to vector<16x128xf32>
    %162 = arith.maximumf %160, %161 : vector<16x128xf32>
    %163 = vector.extract_strided_slice %125 {offsets = [176, 0], sizes = [16, 128], strides = [1, 1]} : vector<256x128xf32> to vector<16x128xf32>
    %164 = arith.maximumf %162, %163 : vector<16x128xf32>
    %165 = arith.truncf %164 : vector<16x128xf32> to vector<16x128xbf16>
    %cst_53 = arith.constant dense<0.000000e+00> : vector<8x128xf32>
    %166 = tpu.matmul %126, %165, %cst_53 {dimension_numbers = #tpu.dot_dimension_numbers<[1], [0], [0], [1], [0, 0, 1, 1], [], []>} : vector<8x16xbf16>, vector<16x128xbf16>, vector<8x128xf32> -> vector<8x128xf32>
    %167 = vector.extract_strided_slice %125 {offsets = [192, 0], sizes = [16, 128], strides = [1, 1]} : vector<256x128xf32> to vector<16x128xf32>
    %168 = vector.extract_strided_slice %125 {offsets = [176, 0], sizes = [16, 128], strides = [1, 1]} : vector<256x128xf32> to vector<16x128xf32>
    %169 = arith.maximumf %167, %168 : vector<16x128xf32>
    %170 = vector.extract_strided_slice %125 {offsets = [208, 0], sizes = [16, 128], strides = [1, 1]} : vector<256x128xf32> to vector<16x128xf32>
    %171 = arith.maximumf %169, %170 : vector<16x128xf32>
    %172 = arith.truncf %171 : vector<16x128xf32> to vector<16x128xbf16>
    %cst_54 = arith.constant dense<0.000000e+00> : vector<8x128xf32>
    %173 = tpu.matmul %126, %172, %cst_54 {dimension_numbers = #tpu.dot_dimension_numbers<[1], [0], [0], [1], [0, 0, 1, 1], [], []>} : vector<8x16xbf16>, vector<16x128xbf16>, vector<8x128xf32> -> vector<8x128xf32>
    %174 = vector.extract_strided_slice %125 {offsets = [224, 0], sizes = [16, 128], strides = [1, 1]} : vector<256x128xf32> to vector<16x128xf32>
    %175 = vector.extract_strided_slice %125 {offsets = [208, 0], sizes = [16, 128], strides = [1, 1]} : vector<256x128xf32> to vector<16x128xf32>
    %176 = arith.maximumf %174, %175 : vector<16x128xf32>
    %177 = vector.extract_strided_slice %125 {offsets = [240, 0], sizes = [16, 128], strides = [1, 1]} : vector<256x128xf32> to vector<16x128xf32>
    %178 = arith.maximumf %176, %177 : vector<16x128xf32>
    %179 = arith.truncf %178 : vector<16x128xf32> to vector<16x128xbf16>
    %cst_55 = arith.constant dense<0.000000e+00> : vector<8x128xf32>
    %180 = tpu.matmul %126, %179, %cst_55 {dimension_numbers = #tpu.dot_dimension_numbers<[1], [0], [0], [1], [0, 0, 1, 1], [], []>} : vector<8x16xbf16>, vector<16x128xbf16>, vector<8x128xf32> -> vector<8x128xf32>
    %181 = tpu.concatenate %131, %138, %145, %152, %159, %166, %173, %180 in 0 : vector<8x128xf32>, vector<8x128xf32>, vector<8x128xf32>, vector<8x128xf32>, vector<8x128xf32>, vector<8x128xf32>, vector<8x128xf32>, vector<8x128xf32> -> vector<64x128xf32>
    %182 = tpu.iota {dimensions = array<i32: 0>} : vector<64x1xi32>
    %c7_i32 = arith.constant 7 : i32
    %183 = vector.broadcast %c7_i32 : i32 to vector<64x1xi32>
    %184 = arith.andi %182, %183 : vector<64x1xi32>
    %185 = arith.truncf %181 : vector<64x128xf32> to vector<64x128xbf16>
    %cst_56 = arith.constant dense<0.000000e+00> : vector<64x256xf32>
    %186 = tpu.matmul %185, %2, %cst_56 {dimension_numbers = #tpu.dot_dimension_numbers<[1], [0], [0], [1], [0, 0, 1, 1], [], []>} : vector<64x128xbf16>, vector<128x256xbf16>, vector<64x256xf32> -> vector<64x256xf32>
    %187 = vector.broadcast %3 : vector<1x256xf32> to vector<64x256xf32>
    %188 = arith.addf %186, %187 : vector<64x256xf32>
    %cst_57 = arith.constant 0.000000e+00 : f32
    %189 = vector.broadcast %cst_57 : f32 to vector<64x256xf32>
    %190 = arith.maximumf %188, %189 : vector<64x256xf32>
    %c8_i32 = arith.constant 8 : i32
    %191 = tpu.dynamic_rotate %190 by %c8_i32 dim 0 : vector<64x256xf32>, i32 -> vector<64x256xf32>
    %c8_i32_58 = arith.constant 8 : i32
    %192 = vector.broadcast %c8_i32_58 : i32 to vector<64x1xi32>
    %193 = arith.cmpi sge, %182, %192 : vector<64x1xi32>
    %cst_59 = arith.constant 0.000000e+00 : f32
    %194 = vector.shape_cast %193 : vector<64x1xi1> to vector<64x1xi1>
    %195 = vector.broadcast %194 : vector<64x1xi1> to vector<64x256xi1>
    %196 = vector.broadcast %cst_59 : f32 to vector<64x256xf32>
    %197 = arith.select %195, %191, %196 : vector<64x256xi1>, vector<64x256xf32>
    %198 = arith.truncf %197 : vector<64x256xf32> to vector<64x256xbf16>
    %199 = vector.extract_strided_slice %4 {offsets = [0, 0], sizes = [256, 384], strides = [1, 1]} : vector<256x1152xbf16> to vector<256x384xbf16>
    %cst_60 = arith.constant dense<0.000000e+00> : vector<64x384xf32>
    %200 = tpu.matmul %198, %199, %cst_60 {dimension_numbers = #tpu.dot_dimension_numbers<[1], [0], [0], [1], [0, 0, 1, 1], [], []>} : vector<64x256xbf16>, vector<256x384xbf16>, vector<64x384xf32> -> vector<64x384xf32>
    %201 = vector.extract_strided_slice %200 {offsets = [0, 0], sizes = [64, 128], strides = [1, 1]} : vector<64x384xf32> to vector<64x128xf32>
    %c1_i32_61 = arith.constant 1 : i32
    %202 = tpu.dynamic_rotate %201 by %c1_i32_61 dim 0 : vector<64x128xf32>, i32 -> vector<64x128xf32>
    %c0_i32_62 = arith.constant 0 : i32
    %203 = vector.broadcast %c0_i32_62 : i32 to vector<64x1xi32>
    %204 = arith.cmpi sgt, %184, %203 : vector<64x1xi32>
    %cst_63 = arith.constant 0.000000e+00 : f32
    %205 = vector.shape_cast %204 : vector<64x1xi1> to vector<64x1xi1>
    %206 = vector.broadcast %205 : vector<64x1xi1> to vector<64x128xi1>
    %207 = vector.broadcast %cst_63 : f32 to vector<64x128xf32>
    %208 = arith.select %206, %202, %207 : vector<64x128xi1>, vector<64x128xf32>
    %209 = vector.extract_strided_slice %200 {offsets = [0, 128], sizes = [64, 128], strides = [1, 1]} : vector<64x384xf32> to vector<64x128xf32>
    %210 = arith.addf %208, %209 : vector<64x128xf32>
    %211 = vector.extract_strided_slice %200 {offsets = [0, 256], sizes = [64, 128], strides = [1, 1]} : vector<64x384xf32> to vector<64x128xf32>
    %c63_i32 = arith.constant 63 : i32
    %212 = tpu.dynamic_rotate %211 by %c63_i32 dim 0 : vector<64x128xf32>, i32 -> vector<64x128xf32>
    %c7_i32_64 = arith.constant 7 : i32
    %213 = vector.broadcast %c7_i32_64 : i32 to vector<64x1xi32>
    %214 = arith.cmpi slt, %184, %213 : vector<64x1xi32>
    %cst_65 = arith.constant 0.000000e+00 : f32
    %215 = vector.shape_cast %214 : vector<64x1xi1> to vector<64x1xi1>
    %216 = vector.broadcast %215 : vector<64x1xi1> to vector<64x128xi1>
    %217 = vector.broadcast %cst_65 : f32 to vector<64x128xf32>
    %218 = arith.select %216, %212, %217 : vector<64x128xi1>, vector<64x128xf32>
    %219 = arith.addf %210, %218 : vector<64x128xf32>
    %220 = arith.truncf %190 : vector<64x256xf32> to vector<64x256xbf16>
    %221 = vector.extract_strided_slice %4 {offsets = [0, 384], sizes = [256, 384], strides = [1, 1]} : vector<256x1152xbf16> to vector<256x384xbf16>
    %cst_66 = arith.constant dense<0.000000e+00> : vector<64x384xf32>
    %222 = tpu.matmul %220, %221, %cst_66 {dimension_numbers = #tpu.dot_dimension_numbers<[1], [0], [0], [1], [0, 0, 1, 1], [], []>} : vector<64x256xbf16>, vector<256x384xbf16>, vector<64x384xf32> -> vector<64x384xf32>
    %223 = vector.extract_strided_slice %222 {offsets = [0, 0], sizes = [64, 128], strides = [1, 1]} : vector<64x384xf32> to vector<64x128xf32>
    %c1_i32_67 = arith.constant 1 : i32
    %224 = tpu.dynamic_rotate %223 by %c1_i32_67 dim 0 : vector<64x128xf32>, i32 -> vector<64x128xf32>
    %c0_i32_68 = arith.constant 0 : i32
    %225 = vector.broadcast %c0_i32_68 : i32 to vector<64x1xi32>
    %226 = arith.cmpi sgt, %184, %225 : vector<64x1xi32>
    %cst_69 = arith.constant 0.000000e+00 : f32
    %227 = vector.shape_cast %226 : vector<64x1xi1> to vector<64x1xi1>
    %228 = vector.broadcast %227 : vector<64x1xi1> to vector<64x128xi1>
    %229 = vector.broadcast %cst_69 : f32 to vector<64x128xf32>
    %230 = arith.select %228, %224, %229 : vector<64x128xi1>, vector<64x128xf32>
    %231 = arith.addf %219, %230 : vector<64x128xf32>
    %232 = vector.extract_strided_slice %222 {offsets = [0, 128], sizes = [64, 128], strides = [1, 1]} : vector<64x384xf32> to vector<64x128xf32>
    %233 = arith.addf %231, %232 : vector<64x128xf32>
    %234 = vector.extract_strided_slice %222 {offsets = [0, 256], sizes = [64, 128], strides = [1, 1]} : vector<64x384xf32> to vector<64x128xf32>
    %c63_i32_70 = arith.constant 63 : i32
    %235 = tpu.dynamic_rotate %234 by %c63_i32_70 dim 0 : vector<64x128xf32>, i32 -> vector<64x128xf32>
    %c7_i32_71 = arith.constant 7 : i32
    %236 = vector.broadcast %c7_i32_71 : i32 to vector<64x1xi32>
    %237 = arith.cmpi slt, %184, %236 : vector<64x1xi32>
    %cst_72 = arith.constant 0.000000e+00 : f32
    %238 = vector.shape_cast %237 : vector<64x1xi1> to vector<64x1xi1>
    %239 = vector.broadcast %238 : vector<64x1xi1> to vector<64x128xi1>
    %240 = vector.broadcast %cst_72 : f32 to vector<64x128xf32>
    %241 = arith.select %239, %235, %240 : vector<64x128xi1>, vector<64x128xf32>
    %242 = arith.addf %233, %241 : vector<64x128xf32>
    %c56_i32 = arith.constant 56 : i32
    %243 = tpu.dynamic_rotate %190 by %c56_i32 dim 0 : vector<64x256xf32>, i32 -> vector<64x256xf32>
    %c56_i32_73 = arith.constant 56 : i32
    %244 = vector.broadcast %c56_i32_73 : i32 to vector<64x1xi32>
    %245 = arith.cmpi slt, %182, %244 : vector<64x1xi32>
    %cst_74 = arith.constant 0.000000e+00 : f32
    %246 = vector.shape_cast %245 : vector<64x1xi1> to vector<64x1xi1>
    %247 = vector.broadcast %246 : vector<64x1xi1> to vector<64x256xi1>
    %248 = vector.broadcast %cst_74 : f32 to vector<64x256xf32>
    %249 = arith.select %247, %243, %248 : vector<64x256xi1>, vector<64x256xf32>
    %250 = arith.truncf %249 : vector<64x256xf32> to vector<64x256xbf16>
    %251 = vector.extract_strided_slice %4 {offsets = [0, 768], sizes = [256, 384], strides = [1, 1]} : vector<256x1152xbf16> to vector<256x384xbf16>
    %cst_75 = arith.constant dense<0.000000e+00> : vector<64x384xf32>
    %252 = tpu.matmul %250, %251, %cst_75 {dimension_numbers = #tpu.dot_dimension_numbers<[1], [0], [0], [1], [0, 0, 1, 1], [], []>} : vector<64x256xbf16>, vector<256x384xbf16>, vector<64x384xf32> -> vector<64x384xf32>
    %253 = vector.extract_strided_slice %252 {offsets = [0, 0], sizes = [64, 128], strides = [1, 1]} : vector<64x384xf32> to vector<64x128xf32>
    %c1_i32_76 = arith.constant 1 : i32
    %254 = tpu.dynamic_rotate %253 by %c1_i32_76 dim 0 : vector<64x128xf32>, i32 -> vector<64x128xf32>
    %c0_i32_77 = arith.constant 0 : i32
    %255 = vector.broadcast %c0_i32_77 : i32 to vector<64x1xi32>
    %256 = arith.cmpi sgt, %184, %255 : vector<64x1xi32>
    %cst_78 = arith.constant 0.000000e+00 : f32
    %257 = vector.shape_cast %256 : vector<64x1xi1> to vector<64x1xi1>
    %258 = vector.broadcast %257 : vector<64x1xi1> to vector<64x128xi1>
    %259 = vector.broadcast %cst_78 : f32 to vector<64x128xf32>
    %260 = arith.select %258, %254, %259 : vector<64x128xi1>, vector<64x128xf32>
    %261 = arith.addf %242, %260 : vector<64x128xf32>
    %262 = vector.extract_strided_slice %252 {offsets = [0, 128], sizes = [64, 128], strides = [1, 1]} : vector<64x384xf32> to vector<64x128xf32>
    %263 = arith.addf %261, %262 : vector<64x128xf32>
    %264 = vector.extract_strided_slice %252 {offsets = [0, 256], sizes = [64, 128], strides = [1, 1]} : vector<64x384xf32> to vector<64x128xf32>
    %c63_i32_79 = arith.constant 63 : i32
    %265 = tpu.dynamic_rotate %264 by %c63_i32_79 dim 0 : vector<64x128xf32>, i32 -> vector<64x128xf32>
    %c7_i32_80 = arith.constant 7 : i32
    %266 = vector.broadcast %c7_i32_80 : i32 to vector<64x1xi32>
    %267 = arith.cmpi slt, %184, %266 : vector<64x1xi32>
    %cst_81 = arith.constant 0.000000e+00 : f32
    %268 = vector.shape_cast %267 : vector<64x1xi1> to vector<64x1xi1>
    %269 = vector.broadcast %268 : vector<64x1xi1> to vector<64x128xi1>
    %270 = vector.broadcast %cst_81 : f32 to vector<64x128xf32>
    %271 = arith.select %269, %265, %270 : vector<64x128xi1>, vector<64x128xf32>
    %272 = arith.addf %263, %271 : vector<64x128xf32>
    %273 = vector.broadcast %5 : vector<1x128xf32> to vector<64x128xf32>
    %274 = arith.addf %272, %273 : vector<64x128xf32>
    %cst_82 = arith.constant 0.000000e+00 : f32
    %275 = vector.broadcast %cst_82 : f32 to vector<64x128xf32>
    %276 = arith.maximumf %274, %275 : vector<64x128xf32>
    %277 = arith.truncf %276 : vector<64x128xf32> to vector<64x128xbf16>
    %cst_83 = arith.constant dense<0.000000e+00> : vector<64x128xf32>
    %278 = tpu.matmul %277, %6, %cst_83 {dimension_numbers = #tpu.dot_dimension_numbers<[1], [0], [0], [1], [0, 0, 1, 1], [], []>} : vector<64x128xbf16>, vector<128x128xbf16>, vector<64x128xf32> -> vector<64x128xf32>
    %279 = vector.broadcast %7 : vector<1x128xf32> to vector<64x128xf32>
    %280 = arith.addf %278, %279 : vector<64x128xf32>
    %c0_84 = arith.constant 0 : index
    %c0_85 = arith.constant 0 : index
    %281 = vector.load %arg10[%c0_84, %c0_85] : memref<16x8xbf16, #tpu.memory_space<vmem>>, vector<16x8xbf16>
    %282 = vector.extract_strided_slice %280 {offsets = [0, 0], sizes = [8, 128], strides = [1, 1]} : vector<64x128xf32> to vector<8x128xf32>
    %283 = arith.truncf %282 : vector<8x128xf32> to vector<8x128xbf16>
    %cst_86 = arith.constant dense<0.000000e+00> : vector<16x128xf32>
    %284 = tpu.matmul %281, %283, %cst_86 {dimension_numbers = #tpu.dot_dimension_numbers<[1], [0], [0], [1], [0, 0, 1, 1], [], []>} : vector<16x8xbf16>, vector<8x128xbf16>, vector<16x128xf32> -> vector<16x128xf32>
    %285 = vector.extract_strided_slice %280 {offsets = [8, 0], sizes = [8, 128], strides = [1, 1]} : vector<64x128xf32> to vector<8x128xf32>
    %286 = arith.truncf %285 : vector<8x128xf32> to vector<8x128xbf16>
    %cst_87 = arith.constant dense<0.000000e+00> : vector<16x128xf32>
    %287 = tpu.matmul %281, %286, %cst_87 {dimension_numbers = #tpu.dot_dimension_numbers<[1], [0], [0], [1], [0, 0, 1, 1], [], []>} : vector<16x8xbf16>, vector<8x128xbf16>, vector<16x128xf32> -> vector<16x128xf32>
    %288 = vector.extract_strided_slice %280 {offsets = [16, 0], sizes = [8, 128], strides = [1, 1]} : vector<64x128xf32> to vector<8x128xf32>
    %289 = arith.truncf %288 : vector<8x128xf32> to vector<8x128xbf16>
    %cst_88 = arith.constant dense<0.000000e+00> : vector<16x128xf32>
    %290 = tpu.matmul %281, %289, %cst_88 {dimension_numbers = #tpu.dot_dimension_numbers<[1], [0], [0], [1], [0, 0, 1, 1], [], []>} : vector<16x8xbf16>, vector<8x128xbf16>, vector<16x128xf32> -> vector<16x128xf32>
    %291 = vector.extract_strided_slice %280 {offsets = [24, 0], sizes = [8, 128], strides = [1, 1]} : vector<64x128xf32> to vector<8x128xf32>
    %292 = arith.truncf %291 : vector<8x128xf32> to vector<8x128xbf16>
    %cst_89 = arith.constant dense<0.000000e+00> : vector<16x128xf32>
    %293 = tpu.matmul %281, %292, %cst_89 {dimension_numbers = #tpu.dot_dimension_numbers<[1], [0], [0], [1], [0, 0, 1, 1], [], []>} : vector<16x8xbf16>, vector<8x128xbf16>, vector<16x128xf32> -> vector<16x128xf32>
    %294 = vector.extract_strided_slice %280 {offsets = [32, 0], sizes = [8, 128], strides = [1, 1]} : vector<64x128xf32> to vector<8x128xf32>
    %295 = arith.truncf %294 : vector<8x128xf32> to vector<8x128xbf16>
    %cst_90 = arith.constant dense<0.000000e+00> : vector<16x128xf32>
    %296 = tpu.matmul %281, %295, %cst_90 {dimension_numbers = #tpu.dot_dimension_numbers<[1], [0], [0], [1], [0, 0, 1, 1], [], []>} : vector<16x8xbf16>, vector<8x128xbf16>, vector<16x128xf32> -> vector<16x128xf32>
    %297 = vector.extract_strided_slice %280 {offsets = [40, 0], sizes = [8, 128], strides = [1, 1]} : vector<64x128xf32> to vector<8x128xf32>
    %298 = arith.truncf %297 : vector<8x128xf32> to vector<8x128xbf16>
    %cst_91 = arith.constant dense<0.000000e+00> : vector<16x128xf32>
    %299 = tpu.matmul %281, %298, %cst_91 {dimension_numbers = #tpu.dot_dimension_numbers<[1], [0], [0], [1], [0, 0, 1, 1], [], []>} : vector<16x8xbf16>, vector<8x128xbf16>, vector<16x128xf32> -> vector<16x128xf32>
    %300 = vector.extract_strided_slice %280 {offsets = [48, 0], sizes = [8, 128], strides = [1, 1]} : vector<64x128xf32> to vector<8x128xf32>
    %301 = arith.truncf %300 : vector<8x128xf32> to vector<8x128xbf16>
    %cst_92 = arith.constant dense<0.000000e+00> : vector<16x128xf32>
    %302 = tpu.matmul %281, %301, %cst_92 {dimension_numbers = #tpu.dot_dimension_numbers<[1], [0], [0], [1], [0, 0, 1, 1], [], []>} : vector<16x8xbf16>, vector<8x128xbf16>, vector<16x128xf32> -> vector<16x128xf32>
    %303 = vector.extract_strided_slice %280 {offsets = [56, 0], sizes = [8, 128], strides = [1, 1]} : vector<64x128xf32> to vector<8x128xf32>
    %304 = arith.truncf %303 : vector<8x128xf32> to vector<8x128xbf16>
    %cst_93 = arith.constant dense<0.000000e+00> : vector<16x128xf32>
    %305 = tpu.matmul %281, %304, %cst_93 {dimension_numbers = #tpu.dot_dimension_numbers<[1], [0], [0], [1], [0, 0, 1, 1], [], []>} : vector<16x8xbf16>, vector<8x128xbf16>, vector<16x128xf32> -> vector<16x128xf32>
    %cst_94 = arith.constant 7.500000e-01 : f32
    %306 = vector.broadcast %cst_94 : f32 to vector<16x128xf32>
    %307 = arith.mulf %306, %284 : vector<16x128xf32>
    %cst_95 = arith.constant 2.500000e-01 : f32
    %308 = vector.broadcast %cst_95 : f32 to vector<16x128xf32>
    %309 = arith.mulf %308, %284 : vector<16x128xf32>
    %310 = arith.addf %307, %309 : vector<16x128xf32>
    %cst_96 = arith.constant 7.500000e-01 : f32
    %311 = vector.broadcast %cst_96 : f32 to vector<16x128xf32>
    %312 = arith.mulf %311, %284 : vector<16x128xf32>
    %cst_97 = arith.constant 2.500000e-01 : f32
    %313 = vector.broadcast %cst_97 : f32 to vector<16x128xf32>
    %314 = arith.mulf %313, %287 : vector<16x128xf32>
    %315 = arith.addf %312, %314 : vector<16x128xf32>
    %cst_98 = arith.constant 7.500000e-01 : f32
    %316 = vector.broadcast %cst_98 : f32 to vector<16x128xf32>
    %317 = arith.mulf %316, %287 : vector<16x128xf32>
    %cst_99 = arith.constant 2.500000e-01 : f32
    %318 = vector.broadcast %cst_99 : f32 to vector<16x128xf32>
    %319 = arith.mulf %318, %284 : vector<16x128xf32>
    %320 = arith.addf %317, %319 : vector<16x128xf32>
    %cst_100 = arith.constant 7.500000e-01 : f32
    %321 = vector.broadcast %cst_100 : f32 to vector<16x128xf32>
    %322 = arith.mulf %321, %287 : vector<16x128xf32>
    %cst_101 = arith.constant 2.500000e-01 : f32
    %323 = vector.broadcast %cst_101 : f32 to vector<16x128xf32>
    %324 = arith.mulf %323, %290 : vector<16x128xf32>
    %325 = arith.addf %322, %324 : vector<16x128xf32>
    %cst_102 = arith.constant 7.500000e-01 : f32
    %326 = vector.broadcast %cst_102 : f32 to vector<16x128xf32>
    %327 = arith.mulf %326, %290 : vector<16x128xf32>
    %cst_103 = arith.constant 2.500000e-01 : f32
    %328 = vector.broadcast %cst_103 : f32 to vector<16x128xf32>
    %329 = arith.mulf %328, %287 : vector<16x128xf32>
    %330 = arith.addf %327, %329 : vector<16x128xf32>
    %cst_104 = arith.constant 7.500000e-01 : f32
    %331 = vector.broadcast %cst_104 : f32 to vector<16x128xf32>
    %332 = arith.mulf %331, %290 : vector<16x128xf32>
    %cst_105 = arith.constant 2.500000e-01 : f32
    %333 = vector.broadcast %cst_105 : f32 to vector<16x128xf32>
    %334 = arith.mulf %333, %293 : vector<16x128xf32>
    %335 = arith.addf %332, %334 : vector<16x128xf32>
    %cst_106 = arith.constant 7.500000e-01 : f32
    %336 = vector.broadcast %cst_106 : f32 to vector<16x128xf32>
    %337 = arith.mulf %336, %293 : vector<16x128xf32>
    %cst_107 = arith.constant 2.500000e-01 : f32
    %338 = vector.broadcast %cst_107 : f32 to vector<16x128xf32>
    %339 = arith.mulf %338, %290 : vector<16x128xf32>
    %340 = arith.addf %337, %339 : vector<16x128xf32>
    %cst_108 = arith.constant 7.500000e-01 : f32
    %341 = vector.broadcast %cst_108 : f32 to vector<16x128xf32>
    %342 = arith.mulf %341, %293 : vector<16x128xf32>
    %cst_109 = arith.constant 2.500000e-01 : f32
    %343 = vector.broadcast %cst_109 : f32 to vector<16x128xf32>
    %344 = arith.mulf %343, %296 : vector<16x128xf32>
    %345 = arith.addf %342, %344 : vector<16x128xf32>
    %cst_110 = arith.constant 7.500000e-01 : f32
    %346 = vector.broadcast %cst_110 : f32 to vector<16x128xf32>
    %347 = arith.mulf %346, %296 : vector<16x128xf32>
    %cst_111 = arith.constant 2.500000e-01 : f32
    %348 = vector.broadcast %cst_111 : f32 to vector<16x128xf32>
    %349 = arith.mulf %348, %293 : vector<16x128xf32>
    %350 = arith.addf %347, %349 : vector<16x128xf32>
    %cst_112 = arith.constant 7.500000e-01 : f32
    %351 = vector.broadcast %cst_112 : f32 to vector<16x128xf32>
    %352 = arith.mulf %351, %296 : vector<16x128xf32>
    %cst_113 = arith.constant 2.500000e-01 : f32
    %353 = vector.broadcast %cst_113 : f32 to vector<16x128xf32>
    %354 = arith.mulf %353, %299 : vector<16x128xf32>
    %355 = arith.addf %352, %354 : vector<16x128xf32>
    %cst_114 = arith.constant 7.500000e-01 : f32
    %356 = vector.broadcast %cst_114 : f32 to vector<16x128xf32>
    %357 = arith.mulf %356, %299 : vector<16x128xf32>
    %cst_115 = arith.constant 2.500000e-01 : f32
    %358 = vector.broadcast %cst_115 : f32 to vector<16x128xf32>
    %359 = arith.mulf %358, %296 : vector<16x128xf32>
    %360 = arith.addf %357, %359 : vector<16x128xf32>
    %cst_116 = arith.constant 7.500000e-01 : f32
    %361 = vector.broadcast %cst_116 : f32 to vector<16x128xf32>
    %362 = arith.mulf %361, %299 : vector<16x128xf32>
    %cst_117 = arith.constant 2.500000e-01 : f32
    %363 = vector.broadcast %cst_117 : f32 to vector<16x128xf32>
    %364 = arith.mulf %363, %302 : vector<16x128xf32>
    %365 = arith.addf %362, %364 : vector<16x128xf32>
    %cst_118 = arith.constant 7.500000e-01 : f32
    %366 = vector.broadcast %cst_118 : f32 to vector<16x128xf32>
    %367 = arith.mulf %366, %302 : vector<16x128xf32>
    %cst_119 = arith.constant 2.500000e-01 : f32
    %368 = vector.broadcast %cst_119 : f32 to vector<16x128xf32>
    %369 = arith.mulf %368, %299 : vector<16x128xf32>
    %370 = arith.addf %367, %369 : vector<16x128xf32>
    %cst_120 = arith.constant 7.500000e-01 : f32
    %371 = vector.broadcast %cst_120 : f32 to vector<16x128xf32>
    %372 = arith.mulf %371, %302 : vector<16x128xf32>
    %cst_121 = arith.constant 2.500000e-01 : f32
    %373 = vector.broadcast %cst_121 : f32 to vector<16x128xf32>
    %374 = arith.mulf %373, %305 : vector<16x128xf32>
    %375 = arith.addf %372, %374 : vector<16x128xf32>
    %cst_122 = arith.constant 7.500000e-01 : f32
    %376 = vector.broadcast %cst_122 : f32 to vector<16x128xf32>
    %377 = arith.mulf %376, %305 : vector<16x128xf32>
    %cst_123 = arith.constant 2.500000e-01 : f32
    %378 = vector.broadcast %cst_123 : f32 to vector<16x128xf32>
    %379 = arith.mulf %378, %302 : vector<16x128xf32>
    %380 = arith.addf %377, %379 : vector<16x128xf32>
    %cst_124 = arith.constant 7.500000e-01 : f32
    %381 = vector.broadcast %cst_124 : f32 to vector<16x128xf32>
    %382 = arith.mulf %381, %305 : vector<16x128xf32>
    %cst_125 = arith.constant 2.500000e-01 : f32
    %383 = vector.broadcast %cst_125 : f32 to vector<16x128xf32>
    %384 = arith.mulf %383, %305 : vector<16x128xf32>
    %385 = arith.addf %382, %384 : vector<16x128xf32>
    %386 = tpu.concatenate %310, %315, %320, %325, %330, %335, %340, %345, %350, %355, %360, %365, %370, %375, %380, %385 in 0 : vector<16x128xf32>, vector<16x128xf32>, vector<16x128xf32>, vector<16x128xf32>, vector<16x128xf32>, vector<16x128xf32>, vector<16x128xf32>, vector<16x128xf32>, vector<16x128xf32>, vector<16x128xf32>, vector<16x128xf32>, vector<16x128xf32>, vector<16x128xf32>, vector<16x128xf32>, vector<16x128xf32>, vector<16x128xf32> -> vector<256x128xf32>
    %c0_126 = arith.constant 0 : index
    %c0_127 = arith.constant 0 : index
    %c0_128 = arith.constant 0 : index
    %387 = vector.load %arg2[%c0_126, %c0_127, %c0_128] : memref<1x256x1xf32, #tpu.memory_space<vmem>>, vector<1x256x1xf32>
    %388 = vector.shape_cast %387 : vector<1x256x1xf32> to vector<256x1xf32>
    %cst_129 = arith.constant 2.000000e+00 : f32
    %389 = vector.broadcast %cst_129 : f32 to vector<256x1xf32>
    %390 = arith.minimumf %388, %389 : vector<256x1xf32>
    %cst_130 = arith.constant 1.000000e+00 : f32
    %391 = vector.broadcast %cst_130 : f32 to vector<256x1xf32>
    %392 = arith.subf %390, %391 : vector<256x1xf32>
    %393 = vector.broadcast %392 : vector<256x1xf32> to vector<256x128xf32>
    %394 = arith.mulf %393, %386 : vector<256x128xf32>
    %cst_131 = arith.constant 1.000000e+00 : f32
    %395 = vector.broadcast %cst_131 : f32 to vector<256x1xf32>
    %396 = arith.subf %395, %392 : vector<256x1xf32>
    %397 = vector.broadcast %396 : vector<256x1xf32> to vector<256x128xf32>
    %398 = arith.mulf %397, %105 : vector<256x128xf32>
    %399 = arith.addf %394, %398 : vector<256x128xf32>
    %cst_132 = arith.constant 1.000000e+00 : f32
    %400 = vector.broadcast %cst_132 : f32 to vector<256x1xf32>
    %401 = arith.cmpf ogt, %388, %400 : vector<256x1xf32>
    %402 = vector.shape_cast %401 : vector<256x1xi1> to vector<256x1xi1>
    %403 = vector.broadcast %402 : vector<256x1xi1> to vector<256x128xi1>
    %404 = arith.select %403, %399, %105 : vector<256x128xi1>, vector<256x128xf32>
    %405 = arith.mulf %404, %404 : vector<256x128xf32>
    %cst_133 = arith.constant dense<0.000000e+00> : vector<256xf32>
    %406 = vector.multi_reduction <add>, %405, %cst_133 [1] : vector<256x128xf32> to vector<256xf32>
    %407 = vector.shape_cast %406 : vector<256xf32> to vector<256x1xf32>
    %cst_134 = arith.constant 1.000000e-24 : f32
    %408 = vector.broadcast %cst_134 : f32 to vector<256x1xf32>
    %409 = arith.maximumf %407, %408 : vector<256x1xf32>
    %410 = math.rsqrt %409 : vector<256x1xf32>
    %411 = vector.broadcast %410 : vector<256x1xf32> to vector<256x128xf32>
    %412 = arith.mulf %404, %411 : vector<256x128xf32>
    %c0_135 = arith.constant 0 : index
    %c0_136 = arith.constant 0 : index
    %c0_137 = arith.constant 0 : index
    %413 = vector.load %arg11[%c0_135, %c0_136, %c0_137] : memref<1x256x128xf32, #tpu.memory_space<vmem>>, vector<1x256x128xf32>
    %414 = vector.shape_cast %413 : vector<1x256x128xf32> to vector<256x128xf32>
    %415 = vector.shape_cast %412 : vector<256x128xf32> to vector<1x256x128xf32>
    tpu.vector_store %arg11[%c0_135, %c0_136, %c0_137], %415 {strides = array<i32>} : memref<1x256x128xf32, #tpu.memory_space<vmem>>, vector<1x256x128xf32>,
    return
  }
  func.func @transform_0(%arg0: i32) -> (i32, i32, i32) {
    %c0_i32 = arith.constant 0 : i32
    %c0_i32_0 = arith.constant 0 : i32
    %c0_i32_1 = arith.constant 0 : i32
    return %arg0, %c0_i32, %c0_i32_0 : i32, i32, i32
  }
  func.func @transform_1(%arg0: i32) -> (i32, i32, i32) {
    %c0_i32 = arith.constant 0 : i32
    %c0_i32_0 = arith.constant 0 : i32
    %c0_i32_1 = arith.constant 0 : i32
    return %arg0, %c0_i32, %c0_i32_0 : i32, i32, i32
  }
  func.func @transform_2(%arg0: i32) -> (i32, i32) {
    %c0_i32 = arith.constant 0 : i32
    %c0_i32_0 = arith.constant 0 : i32
    %c0_i32_1 = arith.constant 0 : i32
    return %c0_i32, %c0_i32_0 : i32, i32
  }
  func.func @transform_3(%arg0: i32) -> (i32, i32) {
    %c0_i32 = arith.constant 0 : i32
    %c0_i32_0 = arith.constant 0 : i32
    %c0_i32_1 = arith.constant 0 : i32
    return %c0_i32, %c0_i32_0 : i32, i32
  }
  func.func @transform_4(%arg0: i32) -> (i32, i32) {
    %c0_i32 = arith.constant 0 : i32
    %c0_i32_0 = arith.constant 0 : i32
    %c0_i32_1 = arith.constant 0 : i32
    return %c0_i32, %c0_i32_0 : i32, i32
  }
  func.func @transform_5(%arg0: i32) -> (i32, i32) {
    %c0_i32 = arith.constant 0 : i32
    %c0_i32_0 = arith.constant 0 : i32
    %c0_i32_1 = arith.constant 0 : i32
    return %c0_i32, %c0_i32_0 : i32, i32
  }
  func.func @transform_6(%arg0: i32) -> (i32, i32) {
    %c0_i32 = arith.constant 0 : i32
    %c0_i32_0 = arith.constant 0 : i32
    %c0_i32_1 = arith.constant 0 : i32
    return %c0_i32, %c0_i32_0 : i32, i32
  }
  func.func @transform_7(%arg0: i32) -> (i32, i32) {
    %c0_i32 = arith.constant 0 : i32
    %c0_i32_0 = arith.constant 0 : i32
    %c0_i32_1 = arith.constant 0 : i32
    return %c0_i32, %c0_i32_0 : i32, i32
  }
  func.func @transform_8(%arg0: i32) -> (i32, i32) {
    %c0_i32 = arith.constant 0 : i32
    %c0_i32_0 = arith.constant 0 : i32
    %c0_i32_1 = arith.constant 0 : i32
    return %c0_i32, %c0_i32_0 : i32, i32
  }
  func.func @transform_9(%arg0: i32) -> (i32, i32) {
    %c0_i32 = arith.constant 0 : i32
    %c0_i32_0 = arith.constant 0 : i32
    %c0_i32_1 = arith.constant 0 : i32
    return %c0_i32, %c0_i32_0 : i32, i32
  }
  func.func @transform_10(%arg0: i32) -> (i32, i32, i32) {
    %c0_i32 = arith.constant 0 : i32
    %c0_i32_0 = arith.constant 0 : i32
    %c0_i32_1 = arith.constant 0 : i32
    return %arg0, %c0_i32, %c0_i32_0 : i32, i32, i32
  }
}

</mosaic_0001>

<bundles_post_ra>
// kernel: desc_extractor_forward.1
= control target key start
LH: loop header
LB: loop body
LE: loop exit
PB: predicated region body
PF: predicated region fallthrough
CT: control target
= control target key end

     0   :  { %15 = vsyncpa [#allocation3], 0  ;;  %s14791_s0 = inlined_call_operand.vmem [shape: bf16[2,256,128], index: 0, kind: input, shape index: {}]   ;;  %s14792_s1 = inlined_call_operand.vmem [shape: f32[2,256,1], index: 1, kind: input, shape index: {}]   ;;  %s14793_s2 = inlined_call_operand.vmem [shape: bf16[128,256], index: 2, kind: input, shape index: {}]   ;;  %s14794_s3 = inlined_call_operand.vmem [shape: f32[1,256], index: 3, kind: input, shape index: {}]   ;;  %s14795_s4 = inlined_call_operand.vmem [shape: bf16[256,1152], index: 4, kind: input, shape index: {}]   ;;  %s14796_s5 = inlined_call_operand.vmem [shape: f32[1,128], index: 5, kind: input, shape index: {}]   ;;  %s14797_s6 = inlined_call_operand.vmem [shape: bf16[128,128], index: 6, kind: input, shape index: {}]   ;;  %s14798_s7 = inlined_call_operand.vmem [shape: f32[1,128], index: 7, kind: input, shape index: {}]   ;;  %s14799_s8 = inlined_call_operand.vmem [shape: bf16[8,16], index: 8, kind: input, shape index: {}]   ;;  %s14800_s9 = inlined_call_operand.vmem [shape: bf16[16,8], index: 9, kind: input, shape index: {}]   ;;  %s14801_s10 = inlined_call_operand.hbm [shape: f32[2,256,128], index: 10, kind: output, shape index: {}]  }
   0x1   :  { %17 = vsyncpa [#allocation3 + $0x1], 0  ;;  %s9459_s13 = smov 0   ;;  %s9461_s14 = smov 0  }
   0x2   :  { %s9463_s15 = smov 0   ;;  %s9465_s16 = smov 0  }
   0x3 LB: > { %15171 = sst [smem:[#allocation5_spill]] %s9391_s15  ;;  %s9480_s17 = sadd.s32 4294967295, %s9395_s16   ;;  %s9395_s16 = sphi %s9465_s16, %s16312_s16   ;;  %s9391_s15 = sphi %s9463_s15, %s16309_s15   ;;  %s9387_s14 = sphi %s9461_s14, %s16311_s14   ;;  %s9383_s13 = sphi %s9459_s13, %s16310_s13  }
   0x4   : > { %s7783_s18 = sadd.s32 4294967294, %s9395_s16   ;;  %s9484_s19 = sadd.s32 1, %s9395_s16  }
   0x5   : > { %s250_s20 = sadd.s32 1, %s9391_s15  ;;  %s247_s21 = ssub.s32 %s9395_s16, %s9484_s19 }
   0x6   : > { %p260_p0 = scmp.ne.s32.totalorder %s9391_s15, %s9387_s14  ;;  %p248_p1 = scmp.eq.s32.totalorder %s247_s21, 0 }
   0x7   : > { %p261_p2 = scmp.eq.s32.totalorder %s9480_s17, 1  ;;  %p266_p3 = scmp.ne.s32.totalorder %s9387_s14, %s9383_s13 }
   0x8   : > { %p267_p4 = scmp.eq.s32.totalorder %s7783_s18, 1  ;;  %p7786_p7 = scmp.ge.s32.totalorder %s9395_s16, 1 }
   0x9   : > { %s9495_s22 = scalar_select %p248_p1, %s9391_s15, %s250_s20  }
   0xa   : > { %p9497_p5 = por %p261_p2, %p260_p0  ;;  %p9501_p6 = por %p267_p4, %p266_p3 }
   0xb   : > { %15172 = sst [smem:[#allocation6_spill]] %s9495_s22  ;;  %p325_p8 = scmp.lt.s32.totalorder %s9395_s16, 3 }
   0xd   : > { %p326_p9 = pnand %p7786_p7, %p325_p8 }
   0xf   : > { %329 = sbr.rel (%p326_p9) target bundleno = 2466 (0x9a2), region = 60 }
  0x16   : > { %v8774_v0 = vld [vmem:[%s14793_s2 + $0x4] ss:$8 sps:$4 sm:$0xff]   ;;  %v8776_v1 = vld [vmem:[%s14793_s2] ss:$8 sps:$4 sm:$0xff]   ;;  %v14803_v2 = vmov 0   ;;  %p368_p10 = scmp.lt.s32.totalorder %s9480_s17, 1  ;;  %v606_v17 = vlaneseq }
  0x17   : > { %890 = vmatprep.mubr.bf16.mxu0 %v14803_v2  ;;  %8772 = vset.pattern.permute.xlu0 %v14803_v2  ;;  %v8777_v3 = vld [vmem:[%s14793_s2 + $0x14] ss:$8 sps:$4 sm:$0xff]   ;;  %v8779_v4 = vld [vmem:[%s14793_s2 + $0x10] ss:$8 sps:$4 sm:$0xff]   ;;  %v8780_v5 = vld [vmem:[%s14793_s2 + $0x24] ss:$8 sps:$4 sm:$0xff]  }
  0x18   : > { %858 = vmatprep.subr.bf16.mxu0 %v8774_v0  ;;  %8773 = vset.pattern.permute.xlu1 %v14803_v2  ;;  %v8782_v6 = vld [vmem:[%s14793_s2 + $0x20] ss:$8 sps:$4 sm:$0xff]   ;;  %v8783_v7 = vld [vmem:[%s14793_s2 + $0x34] ss:$8 sps:$4 sm:$0xff]   ;;  %v8785_v8 = vld [vmem:[%s14793_s2 + $0x30] ss:$8 sps:$4 sm:$0xff]  }
  0x19   : > { %859 = vmatpush1.bf16.msra.mxu0 %v8776_v1  ;;  %v8786_v9 = vld [vmem:[%s14793_s2 + $0x44] ss:$8 sps:$4 sm:$0xff]   ;;  %s9539_s12 = scalar_select %p368_p10, %s9480_s17, 1  ;;  %v8788_v10 = vld [vmem:[%s14793_s2 + $0x40] ss:$8 sps:$4 sm:$0xff]   ;;  %v9589_v25 = vshrl.u32 %v606_v17, 7 }
  0x1a   : > { %860 = vmatprep.subr.bf16.mxu0 %v8777_v3  ;;  %v8789_v11 = vld [vmem:[%s14793_s2 + $0x54] ss:$8 sps:$4 sm:$0xff]   ;;  %v8791_v12 = vld [vmem:[%s14793_s2 + $0x50] ss:$8 sps:$4 sm:$0xff]   ;;  %v8813_v13 = vld [vmem:[%s14795_s4 + $0x4] ss:$36 sps:$4 sm:$0xff]  }
  0x1b   : > { %s8032_s26 = sshll.u32 %s9539_s12, 7  ;;  %v8815_v14 = vld [vmem:[%s14795_s4] ss:$36 sps:$4 sm:$0xff]   ;;  %v8816_v15 = vld [vmem:[%s14795_s4 + $0x4c] ss:$36 sps:$4 sm:$0xff]   ;;  %1563 = vmatprep.subr.bf16.mxu1 %v8813_v13  ;;  %vm14922_vm0 = vcmp.lt.s32.totalorder %v9589_v25, 1 }
  0x1c   : > { %s9557_s18 = scalar_lea.vmem %s14791_s0, %s8032_s26  ;;  %v8792_v16 = vld [vmem:[%s14793_s2 + $0x64] ss:$8 sps:$4 sm:$0xff]   ;;  %1564 = vmatpush1.bf16.msra.mxu1 %v8815_v14  ;;  %v8819_v20 = vld [vmem:[%s14795_s4 + $0x94] ss:$36 sps:$4 sm:$0xff]   ;;  %v8794_v21 = vld [vmem:[%s14793_s2 + $0x60] ss:$8 sps:$4 sm:$0xff]  }
  0x1d   : > { %861 = vmatpush1.bf16.msra.mxu0 %v8779_v4  ;;  %v9569_v18 = vld [vmem:[%s9557_s18 + $0x30] sm:$0xff]   ;;  %v8818_v19 = vld [vmem:[%s14795_s4 + $0x48] ss:$36 sps:$4 sm:$0xff]   ;;  %1565 = vmatprep.subr.bf16.mxu1 %v8816_v15  ;;  %v8822_v30 = vld [vmem:[%s14795_s4 + $0xdc] ss:$36 sps:$4 sm:$0xff]   ;;  %v14809_v53 = vmov 0.0|0.0  }
  0x1e   : > { %862 = vmatprep.subr.bf16.mxu0 %v8780_v5  ;;  %v9581_v22 = vunpack.c.l.bf16 %v9569_v18  ;;  %v9584_v23 = vunpack.c.h.bf16 %v9569_v18  ;;  %v8795_v24 = vld [vmem:[%s14793_s2 + $0x74] ss:$8 sps:$4 sm:$0xff]   ;;  %v8797_v29 = vld [vmem:[%s14793_s2 + $0x70] ss:$8 sps:$4 sm:$0xff]   ;;  %v379_v31 = vld [vmem:[%s9557_s18] sm:$0xff]   ;;  %1595 = vmatprep.mubr.bf16.mxu1 %v14809_v53  ;;  %vm14927_vm3 = vcmp.lt.s32.totalorder %v9589_v25, 7 }
  0x1f   : > { %v8821_v28 = vld [vmem:[%s14795_s4 + $0x90] ss:$36 sps:$4 sm:$0xff]   ;;  %v8834_v34 = vld [vmem:[%s14795_s4 + $0x248] ss:$36 sps:$4 sm:$0xff]   ;;  %v8824_v35 = vld [vmem:[%s14795_s4 + $0xd8] ss:$36 sps:$4 sm:$0xff]  }
  0x20   : > { %15175 = vst [vmem:[#allocation7_spill] sm:$0xff] %v9581_v22  ;;  %15176 = vst [vmem:[#allocation8_spill] sm:$0xff] %v9584_v23  ;;  %v14814_v26 = vrot.slane %v9581_v22, 7  ;;  %v14806_v27 = vrot.slane %v9584_v23, 7  ;;  %1566 = vmatpush1.bf16.msra.mxu1 %v8818_v19  ;;  %v8825_v36 = vld [vmem:[%s14795_s4 + $0x124] ss:$36 sps:$4 sm:$0xff]  }
  0x21   : > { %863 = vmatpush1.bf16.msra.mxu0 %v8782_v6  ;;  %1567 = vmatprep.subr.bf16.mxu1 %v8819_v20  ;;  %v8839_v37 = vld [vmem:[%s14795_s4 + $0x8] ss:$36 sps:$4 sm:$0xff]   ;;  %v8827_v38 = vld [vmem:[%s14795_s4 + $0x120] ss:$36 sps:$4 sm:$0xff]   ;;  %v8851_v42 = vld [vmem:[%s14795_s4 + $0x290] ss:$36 sps:$4 sm:$0xff]  }
  0x22   : > { %864 = vmatprep.subr.bf16.mxu0 %v8783_v7  ;;  %v9610_v32 = vsel %vm14922_vm0, %v14814_v26, %v14806_v27  ;;  %v8828_v39 = vld [vmem:[%s14795_s4 + $0x16c] ss:$36 sps:$4 sm:$0xff]   ;;  %v8831_v43 = vld [vmem:[%s14795_s4 + $0x1b4] ss:$36 sps:$4 sm:$0xff]   ;;  %v8837_v47 = vld [vmem:[%s14795_s4 + $0x1fc] ss:$36 sps:$4 sm:$0xff]  }
  0x23   : > { %15177 = vst [vmem:[#allocation9_spill] sm:$0xff] %v9610_v32  ;;  %v381_v40 = vld [vmem:[%s9557_s18 + $0x8] sm:$0xff]   ;;  %v8854_v44 = vld [vmem:[%s14795_s4 + $0x50] ss:$36 sps:$4 sm:$0xff]   ;;  %v8859_v46 = vld [vmem:[%s14795_s4 + $0x2d8] ss:$36 sps:$4 sm:$0xff]  }
  0x24   : > { %1568 = vmatpush1.bf16.msra.mxu1 %v8821_v28  ;;  %v8830_v41 = vld [vmem:[%s14795_s4 + $0x168] ss:$36 sps:$4 sm:$0xff]   ;;  %v8833_v45 = vld [vmem:[%s14795_s4 + $0x1b0] ss:$36 sps:$4 sm:$0xff]   ;;  %v8862_v49 = vld [vmem:[%s14795_s4 + $0x98] ss:$36 sps:$4 sm:$0xff]  }
  0x25   : > { %865 = vmatpush1.bf16.msra.mxu0 %v8785_v8  ;;  %1569 = vmatprep.subr.bf16.mxu1 %v8822_v30  ;;  %v383_v48 = vld [vmem:[%s9557_s18 + $0x10] sm:$0xff]   ;;  %v8841_v50 = vld [vmem:[%s14795_s4 + $0x1f8] ss:$36 sps:$4 sm:$0xff]   ;;  %v8867_v51 = vld [vmem:[%s14795_s4 + $0x320] ss:$36 sps:$4 sm:$0xff]   ;;  %s8033_s28 = sshll.u32 %s9539_s12, 8 }
  0x26   : > { %866 = vmatprep.subr.bf16.mxu0 %v8786_v9  ;;  %v8842_v52 = vld [vmem:[%s14795_s4 + $0x244] ss:$36 sps:$4 sm:$0xff]   ;;  %v8845_v56 = vld [vmem:[%s14795_s4 + $0x28c] ss:$36 sps:$4 sm:$0xff]   ;;  %v385_v59 = vld [vmem:[%s9557_s18 + $0x18] sm:$0xff]   ;;  %s11850_s15 = scalar_lea.vmem %s14792_s1, %s8033_s28  ;;  %s365_s28 = sand.u32 1, %s9387_s14  }
  0x27   : > { %v8870_v54 = vld [vmem:[%s14795_s4 + $0xe0] ss:$36 sps:$4 sm:$0xff]   ;;  %v8875_v57 = vld [vmem:[%s14795_s4 + $0x368] ss:$36 sps:$4 sm:$0xff]   ;;  %v8848_v61 = vld [vmem:[%s14795_s4 + $0x2d4] ss:$36 sps:$4 sm:$0xff]  }
  0x28   : > { %1570 = vmatpush1.bf16.msra.mxu1 %v8824_v35  ;;  %v8844_v55 = vld [vmem:[%s14795_s4 + $0x240] ss:$36 sps:$4 sm:$0xff]   ;;  %v8878_v58 = vld [vmem:[%s14795_s4 + $0x128] ss:$36 sps:$4 sm:$0xff]   ;;  %v8883_v62 = vld [vmem:[%s14795_s4 + $0x3b0] ss:$36 sps:$4 sm:$0xff]  }
  0x29   : > { %867 = vmatpush1.bf16.msra.mxu0 %v8788_v10  ;;  %1571 = vmatprep.subr.bf16.mxu1 %v8825_v36  ;;  %v8847_v60 = vld [vmem:[%s14795_s4 + $0x288] ss:$36 sps:$4 sm:$0xff]   ;;  %v8886_v63 = vld [vmem:[%s14795_s4 + $0x170] ss:$36 sps:$4 sm:$0xff]   ;;  %v9700_v0 = vld [vmem:[%s9557_s18 + $0x78] sm:$0xff]   ;;  %s7787_s22 = sshll.u32 %s365_s28, 8 }
  0x2a   : > { %868 = vmatprep.subr.bf16.mxu0 %v8789_v11  ;;  %v9703_v1 = vunpack.c.l.bf16 %v9700_v0  ;;  %v9706_v3 = vunpack.c.h.bf16 %v9700_v0  ;;  %v387_v4 = vld [vmem:[%s9557_s18 + $0x20] sm:$0xff]   ;;  %v8850_v5 = vld [vmem:[%s14795_s4 + $0x2d0] ss:$36 sps:$4 sm:$0xff]   ;;  %v8892_v6 = vld [vmem:[%s14795_s4 + $0x3f8] ss:$36 sps:$4 sm:$0xff]   ;;  %s14674_s26 = scalar_lea.vmem [#allocation2], %s7787_s22 }
  0x2b   : > { %v8856_v7 = vld [vmem:[%s14795_s4 + $0x31c] ss:$36 sps:$4 sm:$0xff]   ;;  %v8864_v13 = vld [vmem:[%s14795_s4 + $0x364] ss:$36 sps:$4 sm:$0xff]   ;;  %v8872_v17 = vld [vmem:[%s14795_s4 + $0x3ac] ss:$36 sps:$4 sm:$0xff]  }
  0x2c   : > { %1572 = vmatpush1.bf16.msra.mxu1 %v8827_v38  ;;  %15178 = vst [vmem:[#allocation10_spill] sm:$0xff] %v9703_v1  ;;  %15179 = vst [vmem:[#allocation11_spill] sm:$0xff] %v9706_v3  ;;  %v14813_v8 = vrot.slane %v9703_v1, 7  ;;  %v14805_v9 = vrot.slane %v9706_v3, 7  ;;  %v8895_v10 = vld [vmem:[%s14795_s4 + $0x1b8] ss:$36 sps:$4 sm:$0xff]  }
  0x2d   : > { %869 = vmatpush1.bf16.msra.mxu0 %v8791_v12  ;;  %1573 = vmatprep.subr.bf16.mxu1 %v8828_v39  ;;  %v8897_v11 = vld [vmem:[%s14795_s4 + $0x440] ss:$36 sps:$4 sm:$0xff]   ;;  %v8858_v12 = vld [vmem:[%s14795_s4 + $0x318] ss:$36 sps:$4 sm:$0xff]   ;;  %v389_v19 = vld [vmem:[%s9557_s18 + $0x28] sm:$0xff]   ;;  %s8034_s12 = sshll.u32 %s9480_s17, 12 }
  0x2e   : > { %870 = vmatprep.subr.bf16.mxu0 %v8792_v16  ;;  %v9739_v14 = vsel %vm14922_vm0, %v14813_v8, %v14805_v9  ;;  %v8866_v16 = vld [vmem:[%s14795_s4 + $0x360] ss:$36 sps:$4 sm:$0xff]   ;;  %v8874_v20 = vld [vmem:[%s14795_s4 + $0x3a8] ss:$36 sps:$4 sm:$0xff]   ;;  %v393_v30 = vld [vmem:[%s9557_s18 + $0x38] sm:$0xff]   ;;  %s14742_s11 = scalar_lea.hbm %s14801_s10, %s8034_s12  ;;  %s14750_s20 = scalar_lea.sflag [#allocation3], %s365_s28 }
  0x2f   : > { %15180 = vst [vmem:[#allocation12_spill] sm:$0xff] %v9739_v14  ;;  %v8888_v28 = vld [vmem:[%s14795_s4 + $0x43c] ss:$36 sps:$4 sm:$0xff]   ;;  %v399_v35 = vld [vmem:[%s9557_s18 + $0x50] sm:$0xff]   ;;  %v405_v38 = vld [vmem:[%s9557_s18 + $0x68] sm:$0xff]  }
  0x30   : > { %1574 = vmatpush1.bf16.msra.mxu1 %v8830_v41  ;;  %v8900_v36 = vld [vmem:[%s14795_s4 + $0x200] ss:$36 sps:$4 sm:$0xff]   ;;  %v407_v39 = vld [vmem:[%s9557_s18 + $0x70] sm:$0xff]  }
  0x31   : > { %871 = vmatpush1.bf16.msra.mxu0 %v8794_v21  ;;  %1575 = vmatprep.subr.bf16.mxu1 %v8831_v43  ;;  %v8880_v21 = vld [vmem:[%s14795_s4 + $0x3f4] ss:$36 sps:$4 sm:$0xff]   ;;  %v8905_v41 = vld [vmem:[%s14795_s4 + $0xc] ss:$36 sps:$4 sm:$0xff]  }
  0x32   : > { %872 = vmatprep.subr.bf16.mxu0 %v8795_v24  ;;  %v8882_v24 = vld [vmem:[%s14795_s4 + $0x3f0] ss:$36 sps:$4 sm:$0xff]  }
  0x33   : > { %v8909_v43 = vld [vmem:[%s14795_s4 + $0x54] ss:$36 sps:$4 sm:$0xff]  }
  0x34   : > { %1576 = vmatpush1.bf16.msra.mxu1 %v8833_v45  ;;  %v8913_v45 = vld [vmem:[%s14795_s4 + $0x9c] ss:$36 sps:$4 sm:$0xff]  }
  0x35   : > { %873 = vmatpush1.bf16.msra.mxu0 %v8797_v29  ;;  %1577 = vmatprep.subr.bf16.mxu1 %v8837_v47  ;;  %v8891_v29 = vld [vmem:[%s14795_s4 + $0x438] ss:$36 sps:$4 sm:$0xff]   ;;  %v8917_v47 = vld [vmem:[%s14795_s4 + $0xe4] ss:$36 sps:$4 sm:$0xff]  }
  0x36   : > { %8035 = vmatprep.subr.bf16.mxu0 %v8834_v34  ;;  %v397_v34 = vld [vmem:[%s9557_s18 + $0x48] sm:$0xff]  }
  0x38   : > { %891 = vmatmul.mubr.bf16.vlgmr.msra.gmra.mrb[0].mxu0 %v379_v31  ;;  %1578 = vmatpush1.bf16.msra.mxu1 %v8841_v50  ;;  %v395_v31 = vld [vmem:[%s9557_s18 + $0x40] sm:$0xff]   ;;  %v8922_v50 = vld [vmem:[%s14795_s4 + $0x178] ss:$36 sps:$4 sm:$0xff]  }
  0x39   : > { %900 = vmatprep.mubr.bf16.mxu0 %v14803_v2  ;;  %8036 = vmatpush3.bf16.msra.mxu0 %v8839_v37  ;;  %v403_v37 = vld [vmem:[%s9557_s18 + $0x60] sm:$0xff]  }
  0x3a   : > { %8037 = vmatprep.subr.bf16.mxu0 %v8851_v42  ;;  %1579 = vmatprep.subr.bf16.mxu1 %v8842_v52  ;;  %v8906_v42 = vld [vmem:[%s14795_s4 + $0x58] ss:$36 sps:$4 sm:$0xff]   ;;  %v8926_v52 = vld [vmem:[%s14795_s4 + $0x1c0] ss:$36 sps:$4 sm:$0xff]  }
  0x3c   : > { %1580 = vmatpush1.bf16.msra.mxu1 %v8844_v55  ;;  %v8930_v55 = vld [vmem:[%s14795_s4 + $0x208] ss:$36 sps:$4 sm:$0xff]  }
  0x3d   : > { %8038 = vmatpush3.bf16.msra.mxu0 %v8854_v44  ;;  %1581 = vmatprep.subr.bf16.mxu1 %v8845_v56  ;;  %v8910_v44 = vld [vmem:[%s14795_s4 + $0xa0] ss:$36 sps:$4 sm:$0xff]   ;;  %v8904_v56 = vld [vmem:[%s14795_s4 + $0x14] ss:$36 sps:$4 sm:$0xff]  }
  0x3e   : > { %8039 = vmatprep.subr.bf16.mxu0 %v8859_v46  ;;  %v8914_v46 = vld [vmem:[%s14795_s4 + $0xe8] ss:$36 sps:$4 sm:$0xff]  }
  0x40   : > { %901 = vmatmul.mubr.bf16.gmra.mrb[4].mxu0 %v381_v40  ;;  %1582 = vmatpush1.bf16.msra.mxu1 %v8847_v60  ;;  %v8902_v40 = vld [vmem:[%s14795_s4 + $0x10] ss:$36 sps:$4 sm:$0xff]  }
  0x41   : > { %910 = vmatprep.mubr.bf16.mxu0 %v14803_v2  ;;  %8040 = vmatpush3.bf16.msra.mxu0 %v8862_v49  ;;  %v8921_v49 = vld [vmem:[%s14795_s4 + $0x12c] ss:$36 sps:$4 sm:$0xff]  }
  0x42   : > { %8041 = vmatprep.subr.bf16.mxu0 %v8867_v51  ;;  %1583 = vmatprep.subr.bf16.mxu1 %v8848_v61  ;;  %v8925_v51 = vld [vmem:[%s14795_s4 + $0x174] ss:$36 sps:$4 sm:$0xff]  }
  0x43   : > { %v8936_v60 = vld [vmem:[%s14795_s4 + $0x250] ss:$36 sps:$4 sm:$0xff]  }
  0x44   : > { %1584 = vmatpush1.bf16.msra.mxu1 %v8850_v5  ;;  %v8853_v61 = vld [vmem:[%s14795_s4 + $0x294] ss:$36 sps:$4 sm:$0xff]   ;;  %v8912_v5 = vld [vmem:[%s14795_s4 + $0xa4] ss:$36 sps:$4 sm:$0xff]  }
  0x45   : > { %8042 = vmatpush3.bf16.msra.mxu0 %v8870_v54  ;;  %1585 = vmatprep.subr.bf16.mxu1 %v8856_v7  ;;  %v8929_v54 = vld [vmem:[%s14795_s4 + $0x1bc] ss:$36 sps:$4 sm:$0xff]   ;;  %v8942_v7 = vld [vmem:[%s14795_s4 + $0x2e4] ss:$36 sps:$4 sm:$0xff]  }
  0x46   : > { %8043 = vmatprep.subr.bf16.mxu0 %v8875_v57  ;;  %v8933_v57 = vld [vmem:[%s14795_s4 + $0x204] ss:$36 sps:$4 sm:$0xff]  }
  0x48   : > { %911 = vmatmul.mubr.bf16.gmra.mrb[8].mxu0 %v383_v48  ;;  %1586 = vmatpush1.bf16.msra.mxu1 %v8858_v12  ;;  %v8918_v48 = vld [vmem:[%s14795_s4 + $0x130] ss:$36 sps:$4 sm:$0xff]   ;;  %v8943_v12 = vld [vmem:[%s14795_s4 + $0x328] ss:$36 sps:$4 sm:$0xff]  }
  0x49   : > { %920 = vmatprep.mubr.bf16.mxu0 %v14803_v2  ;;  %8044 = vmatpush3.bf16.msra.mxu0 %v8878_v58  ;;  %v8934_v58 = vld [vmem:[%s14795_s4 + $0x254] ss:$36 sps:$4 sm:$0xff]  }
  0x4a   : > { %8045 = vmatprep.subr.bf16.mxu0 %v8883_v62  ;;  %1587 = vmatprep.subr.bf16.mxu1 %v8864_v13  ;;  %v8908_v62 = vld [vmem:[%s14795_s4 + $0x5c] ss:$36 sps:$4 sm:$0xff]   ;;  %v8945_v13 = vld [vmem:[%s14795_s4 + $0x32c] ss:$36 sps:$4 sm:$0xff]  }
  0x4c   : > { %1588 = vmatpush1.bf16.msra.mxu1 %v8866_v16  ;;  %v8877_v16 = vld [vmem:[%s14795_s4 + $0x36c] ss:$36 sps:$4 sm:$0xff]  }
  0x4d   : > { %8046 = vmatpush3.bf16.msra.mxu0 %v8886_v63  ;;  %1589 = vmatprep.subr.bf16.mxu1 %v8872_v17  ;;  %v8937_v63 = vld [vmem:[%s14795_s4 + $0x298] ss:$36 sps:$4 sm:$0xff]  }
  0x4e   : > { %8047 = vmatprep.subr.bf16.mxu0 %v8892_v6  ;;  %v8940_v6 = vld [vmem:[%s14795_s4 + $0x2e0] ss:$36 sps:$4 sm:$0xff]   ;;  %v8920_v17 = vld [vmem:[%s14795_s4 + $0x134] ss:$36 sps:$4 sm:$0xff]  }
  0x50   : > { %921 = vmatmul.mubr.bf16.gmra.mrb[12].mxu0 %v385_v59  ;;  %1590 = vmatpush1.bf16.msra.mxu1 %v8874_v20  ;;  %v8836_v59 = vld [vmem:[%s14795_s4 + $0x24c] ss:$36 sps:$4 sm:$0xff]   ;;  %v8948_v20 = vld [vmem:[%s14795_s4 + $0x374] ss:$36 sps:$4 sm:$0xff]  }
  0x51   : > { %930 = vmatprep.mubr.bf16.mxu0 %v14803_v2  ;;  %8048 = vmatpush3.bf16.msra.mxu0 %v8895_v10  ;;  %v8869_v10 = vld [vmem:[%s14795_s4 + $0x324] ss:$36 sps:$4 sm:$0xff]  }
  0x52   : > { %8049 = vmatprep.subr.bf16.mxu0 %v8897_v11  ;;  %1591 = vmatprep.subr.bf16.mxu1 %v8880_v21  ;;  %v8916_v11 = vld [vmem:[%s14795_s4 + $0xec] ss:$36 sps:$4 sm:$0xff]   ;;  %v8885_v21 = vld [vmem:[%s14795_s4 + $0x3b4] ss:$36 sps:$4 sm:$0xff]  }
  0x54   : > { %1592 = vmatpush1.bf16.msra.mxu1 %v8882_v24  ;;  %v8924_v24 = vld [vmem:[%s14795_s4 + $0x17c] ss:$36 sps:$4 sm:$0xff]  }
  0x55   : > { %1593 = vmatprep.subr.bf16.mxu1 %v8888_v28  ;;  %8050 = vmatpush3.bf16.msra.mxu0 %v8900_v36  ;;  %v8949_v28 = vld [vmem:[%s14795_s4 + $0x3b8] ss:$36 sps:$4 sm:$0xff]   ;;  %v427_v36 = vld [vmem:[%s14794_s3] sm:$0x3] }
  0x56   : > { %8147 = vmatprep.subr.bf16.mxu0 %v8934_v58 }
  0x58   : > { %931 = vmatmul.mubr.bf16.gmra.mrb[16].mxu0 %v387_v4  ;;  %1594 = vmatpush1.bf16.msra.mxu1 %v8891_v29  ;;  %v8861_v4 = vld [vmem:[%s14795_s4 + $0x2dc] ss:$36 sps:$4 sm:$0xff]  }
  0x59   : > { %940 = vmatprep.mubr.bf16.mxu0 %v14803_v2  ;;  %2623 = vmatprep.subr.bf16.mxu1 %v8902_v40  ;;  %v8951_v29 = vld [vmem:[%s14795_s4 + $0x3bc] ss:$36 sps:$4 sm:$0xff]   ;;  %v8955_v40 = vld [vmem:[%s14795_s4 + $0x448] ss:$36 sps:$4 sm:$0xff]  }
  0x5b   : > { %1596 = vmatmul.mubr.bf16.vlgmr.msra.gmra.mrb[0].mxu1 %v14809_v53 }
  0x5c   : > { %2624 = vmatpush1.bf16.msra.mxu1 %v8905_v41  ;;  %v8957_v41 = vld [vmem:[%s14795_s4 + $0x44c] ss:$36 sps:$4 sm:$0xff]  }
  0x5d   : > { %2625 = vmatprep.subr.bf16.mxu1 %v8906_v42 }
  0x60   : > { %941 = vmatmul.mubr.bf16.gmra.mrb[20].mxu0 %v389_v19  ;;  %2626 = vmatpush1.bf16.msra.mxu1 %v8909_v43  ;;  %v8946_v19 = vld [vmem:[%s14795_s4 + $0x370] ss:$36 sps:$4 sm:$0xff]  }
  0x61   : > { %950 = vmatprep.mubr.bf16.mxu0 %v14803_v2  ;;  %2627 = vmatprep.subr.bf16.mxu1 %v8910_v44 }
  0x64   : > { %2628 = vmatpush1.bf16.msra.mxu1 %v8913_v45 }
  0x65   : > { %2629 = vmatprep.subr.bf16.mxu1 %v8914_v46 }
  0x68   : > { %951 = vmatmul.mubr.bf16.gmra.mrb[24].mxu0 %v9569_v18  ;;  %v401_v18 = vld [vmem:[%s9557_s18 + $0x58] sm:$0xff]   ;;  %2630 = vmatpush1.bf16.msra.mxu1 %v8917_v47 }
  0x69   : > { %960 = vmatprep.mubr.bf16.mxu0 %v14803_v2  ;;  %2631 = vmatprep.subr.bf16.mxu1 %v8918_v48 }
  0x6c   : > { %2632 = vmatpush1.bf16.msra.mxu1 %v8921_v49 }
  0x6d   : > { %2633 = vmatprep.subr.bf16.mxu1 %v8922_v50 }
  0x70   : > { %961 = vmatmul.mubr.bf16.gmra.mrb[28].mxu0 %v393_v30  ;;  %2634 = vmatpush1.bf16.msra.mxu1 %v8925_v51  ;;  %v8894_v30 = vld [vmem:[%s14795_s4 + $0x3fc] ss:$36 sps:$4 sm:$0xff]  }
  0x71   : > { %970 = vmatprep.mubr.bf16.mxu0 %v14803_v2  ;;  %2635 = vmatprep.subr.bf16.mxu1 %v8926_v52 }
  0x74   : > { %2636 = vmatpush1.bf16.msra.mxu1 %v8929_v54 }
  0x75   : > { %2637 = vmatprep.subr.bf16.mxu1 %v8930_v55 }
  0x78   : > { %971 = vmatmul.mubr.bf16.gmra.mrb[32].mxu0 %v395_v31  ;;  %2638 = vmatpush1.bf16.msra.mxu1 %v8933_v57  ;;  %v8928_v31 = vld [vmem:[%s14795_s4 + $0x1c4] ss:$36 sps:$4 sm:$0xff]  }
  0x79   : > { %980 = vmatprep.mubr.bf16.mxu0 %v14803_v2  ;;  %2639 = vmatprep.subr.bf16.mxu1 %v8936_v60 }
  0x7c   : > { %2640 = vmatpush1.bf16.msra.mxu1 %v8836_v59 }
  0x7d   : > { %2641 = vmatprep.subr.bf16.mxu1 %v8937_v63 }
  0x80   : > { %981 = vmatmul.mubr.bf16.gmra.mrb[36].mxu0 %v397_v34  ;;  %2642 = vmatpush1.bf16.msra.mxu1 %v8853_v61  ;;  %v674_v34 = vsub.s32 0, %v9589_v25 }
  0x81   : > { %990 = vmatprep.mubr.bf16.mxu0 %v14803_v2  ;;  %2643 = vmatprep.subr.bf16.mxu1 %v8940_v6 }
  0x82   : > { %v9941_v42 = vrot.slane %v427_v36, %v674_v34 }
  0x84   : > { %2644 = vmatpush1.bf16.msra.mxu1 %v8861_v4  ;;  %15181 = vst [vmem:[#allocation13_spill] sm:$0xff] %v9941_v42 }
  0x85   : > { %2645 = vmatprep.subr.bf16.mxu1 %v8943_v12 }
  0x88   : > { %991 = vmatmul.mubr.bf16.gmra.mrb[40].mxu0 %v399_v35  ;;  %2646 = vmatpush1.bf16.msra.mxu1 %v8869_v10  ;;  %v8952_v35 = vld [vmem:[%s14795_s4 + $0x400] ss:$36 sps:$4 sm:$0xff]  }
  0x89   : > { %1000 = vmatprep.mubr.bf16.mxu0 %v14803_v2  ;;  %2647 = vmatprep.subr.bf16.mxu1 %v8946_v19 }
  0x8c   : > { %2648 = vmatpush1.bf16.msra.mxu1 %v8877_v16 }
  0x8d   : > { %2649 = vmatprep.subr.bf16.mxu1 %v8949_v28 }
  0x90   : > { %1001 = vmatmul.mubr.bf16.gmra.mrb[44].mxu0 %v401_v18  ;;  %2650 = vmatpush1.bf16.msra.mxu1 %v8885_v21  ;;  %v8954_v18 = vld [vmem:[%s14795_s4 + $0x404] ss:$36 sps:$4 sm:$0xff]  }
  0x91   : > { %1010 = vmatprep.mubr.bf16.mxu0 %v14803_v2  ;;  %2651 = vmatprep.subr.bf16.mxu1 %v8952_v35 }
  0x94   : > { %2652 = vmatpush1.bf16.msra.mxu1 %v8894_v30 }
  0x95   : > { %2653 = vmatprep.subr.bf16.mxu1 %v8955_v40 }
  0x98   : > { %1011 = vmatmul.mubr.bf16.gmra.mrb[48].mxu0 %v403_v37  ;;  %v678_v37 = vsub.s32 1, %v9589_v25 }
  0x99   : > { %1020 = vmatprep.mubr.bf16.mxu0 %v14803_v2 }
  0x9a   : > { %v9943_v43 = vrot.slane %v427_v36, %v678_v37 }
  0x9c   : > { %15182 = vst [vmem:[#allocation14_spill] sm:$0xff] %v9943_v43 }
  0xa0   : > { %1021 = vmatmul.mubr.bf16.gmra.mrb[52].mxu0 %v405_v38  ;;  %v8899_v38 = vld [vmem:[%s14795_s4 + $0x444] ss:$36 sps:$4 sm:$0xff]  }
  0xa1   : > { %1030 = vmatprep.mubr.bf16.mxu0 %v14803_v2  ;;  %2654 = vmatpush1.bf16.msra.mxu1 %v8899_v38 }
  0xa8   : > { %1031 = vmatmul.mubr.bf16.gmra.mrb[56].mxu0 %v407_v39  ;;  %v8932_v39 = vld [vmem:[%s14795_s4 + $0x20c] ss:$36 sps:$4 sm:$0xff]  }
  0xa9   : > { %1040 = vmatprep.mubr.bf16.mxu0 %v14803_v2 }
  0xb0   : > { %1041 = vmatmul.mubr.bf16.gmra.mrb[60].mxu0 %v9700_v0  ;;  %v8939_v0 = vld [vmem:[%s14795_s4 + $0x29c] ss:$36 sps:$4 sm:$0xff]  }
  0xb1   : > { %1788 = vmatprep.mubr.bf16.mxu0 %v14809_v53 }
  0xb8   : > { %1789 = vmatmul.mubr.bf16.vlgmr.msra.gmra.mrb[64].mxu0 %v14809_v53 }
  0xb9   : > { %8148 = vmatpush3.bf16.msra.mxu0 %v8904_v56 }
  0xba   : > { %8149 = vmatprep.subr.bf16.mxu0 %v8939_v0 }
  0xbd   : > { %8150 = vmatpush3.bf16.msra.mxu0 %v8908_v62 }
  0xbe   : > { %8151 = vmatprep.subr.bf16.mxu0 %v8942_v7 }
  0xc1   : > { %8152 = vmatpush3.bf16.msra.mxu0 %v8912_v5 }
  0xc2   : > { %8153 = vmatprep.subr.bf16.mxu0 %v8945_v13 }
  0xc5   : > { %8154 = vmatpush3.bf16.msra.mxu0 %v8916_v11 }
  0xc6   : > { %8155 = vmatprep.subr.bf16.mxu0 %v8948_v20 }
  0xc9   : > { %8156 = vmatpush3.bf16.msra.mxu0 %v8920_v17 }
  0xca   : > { %8157 = vmatprep.subr.bf16.mxu0 %v8951_v29 }
  0xcd   : > { %8158 = vmatpush3.bf16.msra.mxu0 %v8924_v24 }
  0xce   : > { %8159 = vmatprep.subr.bf16.mxu0 %v8954_v18 }
  0xd1   : > { %8160 = vmatpush3.bf16.msra.mxu0 %v8928_v31 }
  0xd2   : > { %8161 = vmatprep.subr.bf16.mxu0 %v8957_v41 }
  0xd5   : > { %8162 = vmatpush3.bf16.msra.mxu0 %v8932_v39 }
 0x10b   : > { %v892_v44 = vpop.f32.mrb[0].mxu0 }
 0x10c   : > { %v893_v45 = vadd.f32 %v892_v44, %v9941_v42  ;;  %v894_v46 = vpop.f32.mrb[1].mxu0 }
 0x10d   : > { %v895_v47 = vadd.f32 %v894_v46, %v9943_v43  ;;  %v896_v48 = vpop.f32.mrb[2].mxu0 }
 0x10e   : > { %v897_v49 = vadd.f32 %v896_v48, %v9941_v42  ;;  %v898_v50 = vpop.f32.mrb[3].mxu0  ;;  %v1051_v52 = vmax.f32 %v893_v45, 0.0 }
 0x10f   : > { %v899_v51 = vadd.f32 %v898_v50, %v9943_v43  ;;  %v1052_v55 = vmax.f32 %v895_v47, 0.0  ;;  %v8960_v47 = vld [vmem:[%s14795_s4 + $0x1c] ss:$36 sps:$4 sm:$0xff]  }
 0x110   : > { %v1053_v54 = vmax.f32 %v897_v49, 0.0  ;;  %3713 = vmatprep.subr.bf16.mxu1 %v8960_v47 }
 0x111   : > { %v1054_v56 = vmax.f32 %v899_v51, 0.0 }
 0x112   : > { %v9949_v57 = vpack.c.bf16 %v1053_v54, %v1051_v52 }
 0x113   : > { %v9951_v58 = vpack.c.bf16 %v1054_v56, %v1052_v55  ;;  %v902_v59 = vpop.f32.mrb[4].mxu0 }
 0x114   : > { %v903_v60 = vadd.f32 %v902_v59, %v9941_v42  ;;  %v904_v61 = vpop.f32.mrb[5].mxu0 }
 0x115   : > { %v905_v62 = vadd.f32 %v904_v61, %v9943_v43  ;;  %v906_v63 = vpop.f32.mrb[6].mxu0  ;;  %1605 = vmatprep.mubr.bf16.mxu1 %v9951_v58  ;;  %1796 = vmatprep.mubr.bf16.mxu0 %v9951_v58 }
 0x116   : > { %v907_v0 = vadd.f32 %v906_v63, %v9941_v42  ;;  %v908_v4 = vpop.f32.mrb[7].mxu0  ;;  %1606 = vmatmul.mubr.bf16.gmra.mrb[4].mxu1 %v9949_v57  ;;  %1797 = vmatmul.mubr.bf16.gmra.mrb[68].mxu0 %v9949_v57  ;;  %v1055_v6 = vmax.f32 %v903_v60, 0.0 }
 0x117   : > { %v909_v5 = vadd.f32 %v908_v4, %v9943_v43  ;;  %v1056_v10 = vmax.f32 %v905_v62, 0.0 }
 0x118   : > { %v1057_v7 = vmax.f32 %v907_v0, 0.0 }
 0x119   : > { %v1058_v11 = vmax.f32 %v909_v5, 0.0 }
 0x11a   : > { %v9961_v12 = vpack.c.bf16 %v1057_v7, %v1055_v6 }
 0x11b   : > { %v9963_v13 = vpack.c.bf16 %v1058_v11, %v1056_v10  ;;  %v912_v16 = vpop.f32.mrb[8].mxu0 }
 0x11c   : > { %v913_v17 = vadd.f32 %v912_v16, %v9941_v42  ;;  %v914_v19 = vpop.f32.mrb[9].mxu0 }
 0x11d   : > { %v915_v20 = vadd.f32 %v914_v19, %v9943_v43  ;;  %v916_v21 = vpop.f32.mrb[10].mxu0  ;;  %1615 = vmatprep.mubr.bf16.mxu1 %v9963_v13  ;;  %1804 = vmatprep.mubr.bf16.mxu0 %v9963_v13 }
 0x11e   : > { %v917_v24 = vadd.f32 %v916_v21, %v9941_v42  ;;  %v918_v28 = vpop.f32.mrb[11].mxu0  ;;  %1616 = vmatmul.mubr.bf16.gmra.mrb[8].mxu1 %v9961_v12  ;;  %1805 = vmatmul.mubr.bf16.gmra.mrb[72].mxu0 %v9961_v12  ;;  %v1059_v30 = vmax.f32 %v913_v17, 0.0 }
 0x11f   : > { %v919_v29 = vadd.f32 %v918_v28, %v9943_v43  ;;  %v1060_v34 = vmax.f32 %v915_v20, 0.0 }
 0x120   : > { %v1061_v31 = vmax.f32 %v917_v24, 0.0 }
 0x121   : > { %v1062_v35 = vmax.f32 %v919_v29, 0.0 }
 0x122   : > { %v9973_v18 = vpack.c.bf16 %v1061_v31, %v1059_v30 }
 0x123   : > { %v9975_v36 = vpack.c.bf16 %v1062_v35, %v1060_v34  ;;  %v922_v37 = vpop.f32.mrb[12].mxu0 }
 0x124   : > { %v923_v38 = vadd.f32 %v922_v37, %v9941_v42  ;;  %v924_v39 = vpop.f32.mrb[13].mxu0 }
 0x125   : > { %v925_v40 = vadd.f32 %v924_v39, %v9943_v43  ;;  %v926_v41 = vpop.f32.mrb[14].mxu0  ;;  %1625 = vmatprep.mubr.bf16.mxu1 %v9975_v36  ;;  %1812 = vmatprep.mubr.bf16.mxu0 %v9975_v36 }
 0x126   : > { %v927_v44 = vadd.f32 %v926_v41, %v9941_v42  ;;  %v928_v45 = vpop.f32.mrb[15].mxu0  ;;  %1626 = vmatmul.mubr.bf16.gmra.mrb[12].mxu1 %v9973_v18  ;;  %1813 = vmatmul.mubr.bf16.gmra.mrb[76].mxu0 %v9973_v18  ;;  %v1063_v48 = vmax.f32 %v923_v38, 0.0 }
 0x127   : > { %v929_v46 = vadd.f32 %v928_v45, %v9943_v43  ;;  %v1064_v50 = vmax.f32 %v925_v40, 0.0 }
 0x128   : > { %v1065_v49 = vmax.f32 %v927_v44, 0.0 }
 0x129   : > { %v1066_v51 = vmax.f32 %v929_v46, 0.0 }
 0x12a   : > { %v9988_v52 = vpack.c.bf16 %v1065_v49, %v1063_v48 }
 0x12b   : > { %v9990_v54 = vpack.c.bf16 %v1066_v51, %v1064_v50  ;;  %v932_v55 = vpop.f32.mrb[16].mxu0 }
 0x12c   : > { %v933_v56 = vadd.f32 %v932_v55, %v9941_v42  ;;  %v934_v59 = vpop.f32.mrb[17].mxu0 }
 0x12d   : > { %v935_v60 = vadd.f32 %v934_v59, %v9943_v43  ;;  %v936_v61 = vpop.f32.mrb[18].mxu0  ;;  %1635 = vmatprep.mubr.bf16.mxu1 %v9990_v54  ;;  %1820 = vmatprep.mubr.bf16.mxu0 %v9990_v54 }
 0x12e   : > { %v937_v62 = vadd.f32 %v936_v61, %v9941_v42  ;;  %v938_v63 = vpop.f32.mrb[19].mxu0  ;;  %1636 = vmatmul.mubr.bf16.gmra.mrb[16].mxu1 %v9988_v52  ;;  %1821 = vmatmul.mubr.bf16.gmra.mrb[80].mxu0 %v9988_v52  ;;  %v1067_v4 = vmax.f32 %v933_v56, 0.0 }
 0x12f   : > { %v939_v0 = vadd.f32 %v938_v63, %v9943_v43  ;;  %v1068_v6 = vmax.f32 %v935_v60, 0.0 }
 0x130   : > { %v1069_v5 = vmax.f32 %v937_v62, 0.0 }
 0x131   : > { %v1070_v7 = vmax.f32 %v939_v0, 0.0 }
 0x132   : > { %v10000_v10 = vpack.c.bf16 %v1069_v5, %v1067_v4 }
 0x133   : > { %v10002_v11 = vpack.c.bf16 %v1070_v7, %v1068_v6  ;;  %v942_v16 = vpop.f32.mrb[20].mxu0 }
 0x134   : > { %v943_v17 = vadd.f32 %v942_v16, %v9941_v42  ;;  %v944_v19 = vpop.f32.mrb[21].mxu0 }
 0x135   : > { %v945_v20 = vadd.f32 %v944_v19, %v9943_v43  ;;  %v946_v21 = vpop.f32.mrb[22].mxu0  ;;  %1645 = vmatprep.mubr.bf16.mxu1 %v10002_v11  ;;  %1828 = vmatprep.mubr.bf16.mxu0 %v10002_v11 }
 0x136   : > { %v947_v24 = vadd.f32 %v946_v21, %v9941_v42  ;;  %v948_v28 = vpop.f32.mrb[23].mxu0  ;;  %1646 = vmatmul.mubr.bf16.gmra.mrb[20].mxu1 %v10000_v10  ;;  %1829 = vmatmul.mubr.bf16.gmra.mrb[84].mxu0 %v10000_v10  ;;  %v1071_v30 = vmax.f32 %v943_v17, 0.0 }
 0x137   : > { %v949_v29 = vadd.f32 %v948_v28, %v9943_v43  ;;  %v1072_v34 = vmax.f32 %v945_v20, 0.0 }
 0x138   : > { %v1073_v31 = vmax.f32 %v947_v24, 0.0 }
 0x139   : > { %v1074_v35 = vmax.f32 %v949_v29, 0.0 }
 0x13a   : > { %v10012_v37 = vpack.c.bf16 %v1073_v31, %v1071_v30 }
 0x13b   : > { %v10014_v38 = vpack.c.bf16 %v1074_v35, %v1072_v34  ;;  %v952_v39 = vpop.f32.mrb[24].mxu0 }
 0x13c   : > { %v953_v40 = vadd.f32 %v952_v39, %v9941_v42  ;;  %v954_v41 = vpop.f32.mrb[25].mxu0 }
 0x13d   : > { %v955_v44 = vadd.f32 %v954_v41, %v9943_v43  ;;  %v956_v45 = vpop.f32.mrb[26].mxu0  ;;  %1655 = vmatprep.mubr.bf16.mxu1 %v10014_v38  ;;  %1836 = vmatprep.mubr.bf16.mxu0 %v10014_v38 }
 0x13e   : > { %v957_v46 = vadd.f32 %v956_v45, %v9941_v42  ;;  %v958_v47 = vpop.f32.mrb[27].mxu0  ;;  %1656 = vmatmul.mubr.bf16.gmra.mrb[24].mxu1 %v10012_v37  ;;  %1837 = vmatmul.mubr.bf16.gmra.mrb[88].mxu0 %v10012_v37  ;;  %v1075_v49 = vmax.f32 %v953_v40, 0.0 }
 0x13f   : > { %v959_v48 = vadd.f32 %v958_v47, %v9943_v43  ;;  %v1076_v51 = vmax.f32 %v955_v44, 0.0 }
 0x140   : > { %v1077_v50 = vmax.f32 %v957_v46, 0.0 }
 0x141   : > { %v1078_v55 = vmax.f32 %v959_v48, 0.0 }
 0x142   : > { %v10024_v56 = vpack.c.bf16 %v1077_v50, %v1075_v49 }
 0x143   : > { %v10026_v59 = vpack.c.bf16 %v1078_v55, %v1076_v51  ;;  %v962_v60 = vpop.f32.mrb[28].mxu0 }
 0x144   : > { %v963_v61 = vadd.f32 %v962_v60, %v9941_v42  ;;  %v964_v62 = vpop.f32.mrb[29].mxu0 }
 0x145   : > { %v965_v63 = vadd.f32 %v964_v62, %v9943_v43  ;;  %v966_v0 = vpop.f32.mrb[30].mxu0  ;;  %1665 = vmatprep.mubr.bf16.mxu1 %v10026_v59  ;;  %1844 = vmatprep.mubr.bf16.mxu0 %v10026_v59 }
 0x146   : > { %v967_v4 = vadd.f32 %v966_v0, %v9941_v42  ;;  %v968_v5 = vpop.f32.mrb[31].mxu0  ;;  %1666 = vmatmul.mubr.bf16.gmra.mrb[28].mxu1 %v10024_v56  ;;  %1845 = vmatmul.mubr.bf16.gmra.mrb[92].mxu0 %v10024_v56  ;;  %v1079_v7 = vmax.f32 %v963_v61, 0.0 }
 0x147   : > { %v969_v6 = vadd.f32 %v968_v5, %v9943_v43  ;;  %v1080_v17 = vmax.f32 %v965_v63, 0.0  ;;  %v10060_v63 = vpop.f32.mrb[0].mxu1 }
 0x148   : > { %v1081_v16 = vmax.f32 %v967_v4, 0.0  ;;  %15183 = vst [vmem:[#allocation15_spill] sm:$0xff] %v10060_v63  ;;  %v10062_v5 = vpop.f32.mrb[1].mxu1 }
 0x149   : > { %v1082_v19 = vmax.f32 %v969_v6, 0.0  ;;  %15184 = vst [vmem:[#allocation16_spill] sm:$0xff] %v10062_v5 }
 0x14a   : > { %v10036_v20 = vpack.c.bf16 %v1081_v16, %v1079_v7  ;;  %v10064_v16 = vpop.f32.mrb[2].mxu1 }
 0x14b   : > { %v10038_v21 = vpack.c.bf16 %v1082_v19, %v1080_v17  ;;  %v972_v24 = vpop.f32.mrb[32].mxu0 }
 0x14c   : > { %v973_v28 = vadd.f32 %v972_v24, %v9941_v42  ;;  %v974_v29 = vpop.f32.mrb[33].mxu0 }
 0x14d   : > { %v975_v30 = vadd.f32 %v974_v29, %v9943_v43  ;;  %v976_v31 = vpop.f32.mrb[34].mxu0  ;;  %1675 = vmatprep.mubr.bf16.mxu1 %v10038_v21  ;;  %1852 = vmatprep.mubr.bf16.mxu0 %v10038_v21  ;;  %v14812_v29 = vrot.slane %v10064_v16, 7 }
 0x14e   : > { %v977_v34 = vadd.f32 %v976_v31, %v9941_v42  ;;  %v978_v35 = vpop.f32.mrb[35].mxu0  ;;  %1676 = vmatmul.mubr.bf16.gmra.mrb[32].mxu1 %v10036_v20  ;;  %1853 = vmatmul.mubr.bf16.gmra.mrb[96].mxu0 %v10036_v20  ;;  %v1083_v40 = vmax.f32 %v973_v28, 0.0  ;;  %v14811_v28 = vrot.slane %v10060_v63, 7 }
 0x14f   : > { %v979_v39 = vadd.f32 %v978_v35, %v9943_v43  ;;  %v1084_v44 = vmax.f32 %v975_v30, 0.0 }
 0x150   : > { %v1085_v41 = vmax.f32 %v977_v34, 0.0 }
 0x151   : > { %v1086_v45 = vmax.f32 %v979_v39, 0.0 }
 0x152   : > { %v10048_v46 = vpack.c.bf16 %v1085_v41, %v1083_v40 }
 0x153   : > { %v10050_v47 = vpack.c.bf16 %v1086_v45, %v1084_v44  ;;  %v982_v48 = vpop.f32.mrb[36].mxu0  ;;  %v1603_v44 = vpop.f32.mrb[3].mxu1  ;;  %v1980_v45 = vsel %vm14922_vm0, %v14811_v28, %v14812_v29 }
 0x154   : > { %v983_v49 = vadd.f32 %v982_v48, %v9941_v42  ;;  %v984_v50 = vpop.f32.mrb[37].mxu0 }
 0x155   : > { %v985_v51 = vadd.f32 %v984_v50, %v9943_v43  ;;  %v986_v55 = vpop.f32.mrb[38].mxu0  ;;  %1685 = vmatprep.mubr.bf16.mxu1 %v10050_v47  ;;  %1860 = vmatprep.mubr.bf16.mxu0 %v10050_v47  ;;  %v10086_v50 = vadd.f32 %v1980_v45, %v1603_v44 }
 0x156   : > { %v987_v60 = vadd.f32 %v986_v55, %v9941_v42  ;;  %v988_v61 = vpop.f32.mrb[39].mxu0  ;;  %1686 = vmatmul.mubr.bf16.gmra.mrb[36].mxu1 %v10048_v46  ;;  %1861 = vmatmul.mubr.bf16.gmra.mrb[100].mxu0 %v10048_v46  ;;  %v1087_v0 = vmax.f32 %v983_v49, 0.0 }
 0x157   : > { %v989_v62 = vadd.f32 %v988_v61, %v9943_v43  ;;  %v1088_v6 = vmax.f32 %v985_v51, 0.0  ;;  %v8982_v51 = vld [vmem:[%s14795_s4 + $0x260] ss:$36 sps:$4 sm:$0xff]  }
 0x158   : > { %v1089_v4 = vmax.f32 %v987_v60, 0.0  ;;  %8259 = vmatprep.subr.bf16.mxu0 %v8982_v51 }
 0x159   : > { %v1090_v7 = vmax.f32 %v989_v62, 0.0 }
 0x15a   : > { %v10066_v17 = vpack.c.bf16 %v1089_v4, %v1087_v0 }
 0x15b   : > { %v10068_v19 = vpack.c.bf16 %v1090_v7, %v1088_v6  ;;  %v992_v24 = vpop.f32.mrb[40].mxu0 }
 0x15c   : > { %v993_v30 = vadd.f32 %v992_v24, %v9941_v42  ;;  %v994_v31 = vpop.f32.mrb[41].mxu0 }
 0x15d   : > { %v995_v34 = vadd.f32 %v994_v31, %v9943_v43  ;;  %v996_v35 = vpop.f32.mrb[42].mxu0  ;;  %1695 = vmatprep.mubr.bf16.mxu1 %v10068_v19  ;;  %1868 = vmatprep.mubr.bf16.mxu0 %v10068_v19 }
 0x15e   : > { %v997_v39 = vadd.f32 %v996_v35, %v9941_v42  ;;  %v998_v40 = vpop.f32.mrb[43].mxu0  ;;  %1696 = vmatmul.mubr.bf16.gmra.mrb[40].mxu1 %v10066_v17  ;;  %1869 = vmatmul.mubr.bf16.gmra.mrb[104].mxu0 %v10066_v17  ;;  %v1091_v48 = vmax.f32 %v993_v30, 0.0  ;;  %v9111_v30 = vld [vmem:[%s9557_s18] sm:$0xff]  }
 0x15f   : > { %v999_v41 = vadd.f32 %v998_v40, %v9943_v43  ;;  %v1092_v55 = vmax.f32 %v995_v34, 0.0  ;;  %v10100_v31 = vunpack.c.h.bf16 %v9111_v30  ;;  %v9112_v34 = vld [vmem:[%s9557_s18 + $0x8] sm:$0xff]  }
 0x160   : > { %v1093_v49 = vmax.f32 %v997_v39, 0.0  ;;  %v10103_v35 = vunpack.c.l.bf16 %v9112_v34 }
 0x161   : > { %v1094_v60 = vmax.f32 %v999_v41, 0.0  ;;  %15186 = vst [vmem:[#allocation18_spill] sm:$0xff] %v10100_v31  ;;  %v14808_v51 = vrot.slane %v10100_v31, 7  ;;  %v9122_v31 = vld [vmem:[%s9557_s18 + $0x68] sm:$0xff]  }
 0x162   : > { %v10091_v61 = vpack.c.bf16 %v1093_v49, %v1091_v48  ;;  %15187 = vst [vmem:[#allocation19_spill] sm:$0xff] %v10103_v35 }
 0x163   : > { %v10093_v62 = vpack.c.bf16 %v1094_v60, %v1092_v55  ;;  %v1002_v0 = vpop.f32.mrb[44].mxu0  ;;  %v14807_v55 = vrot.slane %v10103_v35, 7 }
 0x164   : > { %15185 = vst [vmem:[#allocation17_spill] sm:$0xff] %v10091_v61  ;;  %v1003_v4 = vadd.f32 %v1002_v0, %v9941_v42  ;;  %v1004_v6 = vpop.f32.mrb[45].mxu0 }
 0x165   : > { %v1005_v7 = vadd.f32 %v1004_v6, %v9943_v43  ;;  %v1006_v24 = vpop.f32.mrb[46].mxu0  ;;  %1705 = vmatprep.mubr.bf16.mxu1 %v10093_v62  ;;  %1876 = vmatprep.mubr.bf16.mxu0 %v10093_v62 }
 0x166   : > { %v1007_v39 = vadd.f32 %v1006_v24, %v9941_v42  ;;  %v1008_v40 = vpop.f32.mrb[47].mxu0  ;;  %1706 = vmatmul.mubr.bf16.gmra.mrb[44].mxu1 %v10091_v61  ;;  %1877 = vmatmul.mubr.bf16.gmra.mrb[108].mxu0 %v10091_v61  ;;  %v1095_v44 = vmax.f32 %v1003_v4, 0.0 }
 0x167   : > { %v1009_v41 = vadd.f32 %v1008_v40, %v9943_v43  ;;  %v1096_v48 = vmax.f32 %v1005_v7, 0.0 }
 0x168   : > { %v1097_v45 = vmax.f32 %v1007_v39, 0.0  ;;  %v10128_v39 = vsel %vm14922_vm0, %v14808_v51, %v14807_v55 }
 0x169   : > { %v1098_v49 = vmax.f32 %v1009_v41, 0.0  ;;  %15190 = vst [vmem:[#allocation22_spill] sm:$0xff] %v10128_v39  ;;  %v10130_v41 = vunpack.c.h.bf16 %v9112_v34 }
 0x16a   : > { %v10111_v60 = vpack.c.bf16 %v1097_v45, %v1095_v44  ;;  %v9113_v45 = vld [vmem:[%s9557_s18 + $0x10] sm:$0xff]  }
 0x16b   : > { %v10113_v0 = vpack.c.bf16 %v1098_v49, %v1096_v48  ;;  %v1012_v6 = vpop.f32.mrb[48].mxu0  ;;  %15191 = vst [vmem:[#allocation23_spill] sm:$0xff] %v10130_v41  ;;  %v10134_v48 = vunpack.c.l.bf16 %v9113_v45  ;;  %v14818_v55 = vrot.slane %v10130_v41, 7  ;;  %v10147_v51 = vunpack.c.h.bf16 %v9113_v45 }
 0x16c   : > { %15188 = vst [vmem:[#allocation20_spill] sm:$0xff] %v10111_v60  ;;  %v1013_v24 = vadd.f32 %v1012_v6, %v9941_v42  ;;  %v1014_v30 = vpop.f32.mrb[49].mxu0  ;;  %v15197_v45 = vmov 0 }
 0x16d   : > { %15189 = vst [vmem:[#allocation21_spill] sm:$0xff] %v10113_v0  ;;  %v1015_v2 = vadd.f32 %v1014_v30, %v9943_v43  ;;  %v1016_v40 = vpop.f32.mrb[50].mxu0  ;;  %1715 = vmatprep.mubr.bf16.mxu1 %v10113_v0  ;;  %1884 = vmatprep.mubr.bf16.mxu0 %v10113_v0  ;;  %15192 = vst [vmem:[#allocation24_spill] sm:$0xff] %v10134_v48  ;;  %v10137_v30 = vadd.s32 32, %v9589_v25  ;;  %v14817_v33 = vrot.slane %v10134_v48, 7  ;;  %v14824_v26 = vrot.slane %v10147_v51, 7 }
 0x16e   : > { %v1017_v4 = vadd.f32 %v1016_v40, %v9941_v42  ;;  %v1018_v7 = vpop.f32.mrb[51].mxu0  ;;  %1716 = vmatmul.mubr.bf16.gmra.mrb[48].mxu1 %v10111_v60  ;;  %1885 = vmatmul.mubr.bf16.gmra.mrb[112].mxu0 %v10111_v60  ;;  %v1099_v49 = vmax.f32 %v1013_v24, 0.0  ;;  %15195 = vst [vmem:[#allocation27_spill] sm:$0xff] %v10147_v51 }
 0x16f   : > { %v1019_v44 = vadd.f32 %v1018_v7, %v9943_v43  ;;  %15193 = vst [vmem:[#allocation25_spill] sm:$0xff] %v10137_v30  ;;  %v1100_v40 = vmax.f32 %v1015_v2, 0.0  ;;  %v643_v34 = vand.u32 15, %v10137_v30 }
 0x170   : > { %v1101_v6 = vmax.f32 %v1017_v4, 0.0 }
 0x171   : > { %v1102_v15 = vmax.f32 %v1019_v44, 0.0  ;;  %v9114_v44 = vld [vmem:[%s9557_s18 + $0x18] sm:$0xff]   ;;  %vm10158_vm1 = vcmp.gt.s32.totalorder %v643_v34, 0 }
 0x172   : > { %v10140_v9 = vpack.c.bf16 %v1101_v6, %v1099_v49  ;;  %v10153_v49 = vunpack.c.l.bf16 %v9114_v44  ;;  %v15198_v45 = vsel %vm10158_vm1, 4294967295, %v15197_v45 }
 0x173   : > { %v10143_v27 = vpack.c.bf16 %v1102_v15, %v1100_v40  ;;  %v1022_v7 = vpop.f32.mrb[52].mxu0  ;;  %15199 = vst [vmem:[#allocation29_spill] sm:$0xff] %v15198_v45  ;;  %v4747_v40 = vsel %vm14922_vm0, %v14818_v55, %v14817_v33 }
 0x174   : > { %v1023_v24 = vadd.f32 %v1022_v7, %v9941_v42  ;;  %v1024_v4 = vpop.f32.mrb[53].mxu0  ;;  %15196 = vst [vmem:[#allocation28_spill] sm:$0xff] %v10153_v49  ;;  %v14823_v30 = vrot.slane %v10153_v49, 7 }
 0x175   : > { %15194 = vst [vmem:[#allocation26_spill] sm:$0xff] %v10143_v27  ;;  %v1025_v53 = vadd.f32 %v1024_v4, %v9943_v43  ;;  %v1026_v2 = vpop.f32.mrb[54].mxu0  ;;  %1725 = vmatprep.mubr.bf16.mxu1 %v10143_v27  ;;  %1892 = vmatprep.mubr.bf16.mxu0 %v10143_v27  ;;  %v4756_v4 = vsel %vm10158_vm1, %v4747_v40, -3.4028235e+38 }
 0x176   : > { %v1027_v15 = vadd.f32 %v1026_v2, %v9941_v42  ;;  %v1028_v6 = vpop.f32.mrb[55].mxu0  ;;  %1726 = vmatmul.mubr.bf16.gmra.mrb[52].mxu1 %v10140_v9  ;;  %1893 = vmatmul.mubr.bf16.gmra.mrb[116].mxu0 %v10140_v9  ;;  %v1103_v2 = vmax.f32 %v1023_v24, 0.0  ;;  %v10172_v29 = vmax.f32 %v10134_v48, %v4756_v4 }
 0x177   : > { %v1029_v7 = vadd.f32 %v1028_v6, %v9943_v43  ;;  %v1104_v34 = vmax.f32 %v1025_v53, 0.0 }
 0x178   : > { %v1105_v28 = vmax.f32 %v1027_v15, 0.0  ;;  %15200 = vst [vmem:[#allocation30_spill] sm:$0xff] %v10172_v29 }
 0x179   : > { %v1106_v8 = vmax.f32 %v1029_v7, 0.0 }
 0x17a   : > { %v10176_v14 = vpack.c.bf16 %v1105_v28, %v1103_v2  ;;  %v10195_v28 = vunpack.c.h.bf16 %v9114_v44  ;;  %v9115_v2 = vld [vmem:[%s9557_s18 + $0x20] sm:$0xff]  }
 0x17b   : > { %v10178_v33 = vpack.c.bf16 %v1106_v8, %v1104_v34  ;;  %v1032_v6 = vpop.f32.mrb[56].mxu0  ;;  %v10193_v8 = vsel %vm14922_vm0, %v14824_v26, %v14823_v30  ;;  %v10199_v34 = vunpack.c.l.bf16 %v9115_v2  ;;  %v10209_v48 = vunpack.c.h.bf16 %v9115_v2 }
 0x17c   : > { %v1033_v55 = vadd.f32 %v1032_v6, %v9941_v42  ;;  %v1034_v40 = vpop.f32.mrb[57].mxu0  ;;  %15202 = vst [vmem:[#allocation32_spill] sm:$0xff] %v10193_v8  ;;  %15203 = vst [vmem:[#allocation33_spill] sm:$0xff] %v10195_v28  ;;  %v15208_v2 = vmov 0 }
 0x17d   : > { %15201 = vst [vmem:[#allocation31_spill] sm:$0xff] %v10178_v33  ;;  %v1035_v24 = vadd.f32 %v1034_v40, %v9943_v43  ;;  %v1036_v15 = vpop.f32.mrb[58].mxu0  ;;  %1735 = vmatprep.mubr.bf16.mxu1 %v10178_v33  ;;  %1900 = vmatprep.mubr.bf16.mxu0 %v10178_v33  ;;  %15204 = vst [vmem:[#allocation34_spill] sm:$0xff] %v10199_v34  ;;  %v14834_v39 = vrot.slane %v10199_v34, 7 }
 0x17e   : > { %v1037_v53 = vadd.f32 %v1036_v15, %v9941_v42  ;;  %v1038_v7 = vpop.f32.mrb[59].mxu0  ;;  %1736 = vmatmul.mubr.bf16.gmra.mrb[56].mxu1 %v10176_v14  ;;  %1901 = vmatmul.mubr.bf16.gmra.mrb[120].mxu0 %v10176_v14  ;;  %v1107_v6 = vmax.f32 %v1033_v55, 0.0  ;;  %v615_v15 = vadd.s32 64, %v9589_v25  ;;  %15206 = vst [vmem:[#allocation36_spill] sm:$0xff] %v10209_v48  ;;  %v9116_v55 = vld [vmem:[%s9557_s18 + $0x28] sm:$0xff]  }
 0x17f   : > { %v1039_v4 = vadd.f32 %v1038_v7, %v9943_v43  ;;  %v1108_v32 = vmax.f32 %v1035_v24, 0.0  ;;  %v14835_v7 = vrot.slane %v10195_v28, 7 }
 0x180   : > { %v1109_v40 = vmax.f32 %v1037_v53, 0.0  ;;  %v647_v30 = vand.u32 15, %v615_v15  ;;  %v10212_v53 = vunpack.c.l.bf16 %v9116_v55 }
 0x181   : > { %v1110_v29 = vmax.f32 %v1039_v4, 0.0 }
 0x182   : > { %v10203_v3 = vpack.c.bf16 %v1109_v40, %v1107_v6  ;;  %15207 = vst [vmem:[#allocation37_spill] sm:$0xff] %v10212_v53  ;;  %vm10220_vm2 = vcmp.gt.s32.totalorder %v647_v30, 0  ;;  %v14836_v28 = vrot.slane %v10212_v53, 7 }
 0x183   : > { %v10205_v26 = vpack.c.bf16 %v1110_v29, %v1108_v32  ;;  %v1042_v44 = vpop.f32.mrb[60].mxu0  ;;  %v15209_v2 = vsel %vm10220_vm2, 4294967295, %v15208_v2 }
 0x184   : > { %v1043_v8 = vadd.f32 %v1042_v44, %v9941_v42  ;;  %v1044_v23 = vpop.f32.mrb[61].mxu0  ;;  %15210 = vst [vmem:[#allocation38_spill] sm:$0xff] %v15209_v2 }
 0x185   : > { %15205 = vst [vmem:[#allocation35_spill] sm:$0xff] %v10205_v26  ;;  %1745 = vmatprep.mubr.bf16.mxu1 %v10205_v26  ;;  %1908 = vmatprep.mubr.bf16.mxu0 %v10205_v26  ;;  %v1045_v24 = vadd.f32 %v1044_v23, %v9943_v43  ;;  %v1046_v4 = vpop.f32.mrb[62].mxu0  ;;  %v4743_v23 = vsel %vm14922_vm0, %v14835_v7, %v14834_v39 }
 0x186   : > { %1746 = vmatmul.mubr.bf16.gmra.mrb[60].mxu1 %v10203_v3  ;;  %1909 = vmatmul.mubr.bf16.gmra.mrb[124].mxu0 %v10203_v3  ;;  %v1111_v32 = vmax.f32 %v1043_v8, 0.0  ;;  %v1047_v29 = vadd.f32 %v1046_v4, %v9941_v42  ;;  %v1048_v6 = vpop.f32.mrb[63].mxu0  ;;  %v4760_v30 = vsel %vm10220_vm2, %v4743_v23, -3.4028235e+38  ;;  %v14837_v42 = vrot.slane %v10209_v48, 7 }
 0x187   : > { %2655 = vmatprep.mubr.bf16.mxu1 %v9951_v58  ;;  %2848 = vmatprep.mubr.bf16.mxu0 %v9951_v58  ;;  %v1112_v40 = vmax.f32 %v1045_v24, 0.0  ;;  %v1049_v8 = vadd.f32 %v1048_v6, %v9943_v43  ;;  %v10236_v44 = vmax.f32 %v10199_v34, %v4760_v30  ;;  %v8958_v24 = vld [vmem:[%s14795_s4 + $0x18] ss:$36 sps:$4 sm:$0xff]   ;;  %v8963_v23 = vld [vmem:[%s14795_s4 + $0x64] ss:$36 sps:$4 sm:$0xff]  }
 0x188   : > { %v1113_v15 = vmax.f32 %v1047_v29, 0.0  ;;  %v8983_v29 = vld [vmem:[%s14795_s4 + $0x20] ss:$36 sps:$4 sm:$0xff]   ;;  %v8969_v43 = vld [vmem:[%s14795_s4 + $0xf4] ss:$36 sps:$4 sm:$0xff]  }
 0x189   : > { %15211 = vst [vmem:[#allocation39_spill] sm:$0xff] %v10236_v44  ;;  %v1114_v4 = vmax.f32 %v1049_v8, 0.0  ;;  %v623_v44 = vadd.s32 128, %v9589_v25 }
 0x18a   : > { %v10240_v39 = vpack.c.bf16 %v1113_v15, %v1111_v32  ;;  %v10266_v15 = vsel %vm14922_vm0, %v14837_v42, %v14836_v28  ;;  %v8991_v28 = vld [vmem:[%s14795_s4 + $0x68] ss:$36 sps:$4 sm:$0xff]   ;;  %v619_v42 = vadd.s32 96, %v9589_v25 }
 0x18b   : > { %v10242_v7 = vpack.c.bf16 %v1114_v4, %v1112_v40  ;;  %v8051_v58 = vpop.f32.mrb[64].mxu0  ;;  %v8990_v40 = vld [vmem:[%s14795_s4 + $0x2a8] ss:$36 sps:$4 sm:$0xff]   ;;  %15213 = vst [vmem:[#allocation41_spill] sm:$0xff] %v10266_v15 }
 0x18c   : > { %v8052_v6 = vpop.f32.mrb[65].mxu0  ;;  %v8978_v15 = vld [vmem:[%s14795_s4 + $0x1cc] ss:$36 sps:$4 sm:$0xff]  }
 0x18d   : > { %v10253_v8 = vadd.f32 %v8052_v6, %v8051_v58  ;;  %v8054_v32 = vpop.f32.mrb[66].mxu0  ;;  %v10273_v6 = vunpack.c.h.bf16 %v9116_v55 }
 0x18e   : > { %2656 = vmatmul.mubr.bf16.vlgmr.msra.gmra.mrb[64].mxu1 %v9949_v57  ;;  %2849 = vmatmul.mubr.bf16.vlgmr.msra.gmra.mrb[128].mxu0 %v9949_v57  ;;  %v8055_v30 = vpop.f32.mrb[67].mxu0  ;;  %v8961_v57 = vld [vmem:[%s14795_s4 + $0x60] ss:$36 sps:$4 sm:$0xff]  }
 0x18f   : > { %15212 = vst [vmem:[#allocation40_spill] sm:$0xff] %v10253_v8  ;;  %2665 = vmatprep.mubr.bf16.mxu1 %v9963_v13  ;;  %2856 = vmatprep.mubr.bf16.mxu0 %v9963_v13  ;;  %v14840_v4 = vrot.slane %v10253_v8, 1  ;;  %v10271_v58 = vadd.f32 %v8055_v30, %v8054_v32  ;;  %15214 = vst [vmem:[#allocation42_spill] sm:$0xff] %v10273_v6  ;;  %v8966_v32 = vld [vmem:[%s14795_s4 + $0xac] ss:$36 sps:$4 sm:$0xff]   ;;  %v14842_v30 = vrot.slane %v10273_v6, 7 }
 0x190   : > { %3714 = vmatpush1.bf16.msra.mxu1 %v8958_v24  ;;  %8260 = vmatpush3.bf16.msra.mxu0 %v8983_v29  ;;  %v8995_v24 = vld [vmem:[%s14795_s4 + $0x2f0] ss:$36 sps:$4 sm:$0xff]   ;;  %v651_v29 = vand.u32 15, %v619_v42 }
 0x191   : > { %3715 = vmatprep.subr.bf16.mxu1 %v8963_v23  ;;  %v14841_v55 = vrot.slane %v10271_v58, 1  ;;  %8261 = vmatprep.subr.bf16.mxu0 %v8990_v40  ;;  %v8964_v40 = vld [vmem:[%s14795_s4 + $0xa8] ss:$36 sps:$4 sm:$0xff]   ;;  %v8996_v42 = vld [vmem:[%s14795_s4 + $0xb0] ss:$36 sps:$4 sm:$0xff]  }
 0x192   : > { %vm10313_vm4 = vcmp.gt.s32.totalorder %v651_v29, 0  ;;  %v8967_v29 = vld [vmem:[%s14795_s4 + $0xf0] ss:$36 sps:$4 sm:$0xff]  }
 0x193   : > { %v10296_v23 = vsel %vm14927_vm3, %v14840_v4, %v14841_v55  ;;  %v9000_v4 = vld [vmem:[%s14795_s4 + $0x338] ss:$36 sps:$4 sm:$0xff]   ;;  %v9016_v6 = vld [vmem:[%s14795_s4 + $0x1d0] ss:$36 sps:$4 sm:$0xff]  }
 0x194   : > { %15215 = vst [vmem:[#allocation43_spill] sm:$0xff] %v10296_v23  ;;  %3716 = vmatpush1.bf16.msra.mxu1 %v8961_v57  ;;  %8262 = vmatpush3.bf16.msra.mxu0 %v8991_v28  ;;  %v15216_v28 = vmov 0  ;;  %v15219_v57 = vrot.slane %v9581_v22, 7  ;;  %v9001_v55 = vld [vmem:[%s14795_s4 + $0xf8] ss:$36 sps:$4 sm:$0xff]   ;;  %v10500_v23 = vunpack.c.l.bf16 %v9122_v31 }
 0x195   : > { %3717 = vmatprep.subr.bf16.mxu1 %v8966_v32  ;;  %8263 = vmatprep.subr.bf16.mxu0 %v8995_v24  ;;  %v15217_v28 = vsel %vm10313_vm4, 4294967295, %v15216_v28 }
 0x196   : > { %2666 = vmatmul.mubr.bf16.gmra.mrb[68].mxu1 %v9961_v12  ;;  %2857 = vmatmul.mubr.bf16.gmra.mrb[132].mxu0 %v9961_v12  ;;  %15218 = vst [vmem:[#allocation44_spill] sm:$0xff] %v15217_v28  ;;  %v4739_v32 = vsel %vm14922_vm0, %v14842_v30, %v15219_v57  ;;  %v8972_v30 = vld [vmem:[%s14795_s4 + $0x13c] ss:$36 sps:$4 sm:$0xff]   ;;  %15235 = vst [vmem:[#allocation56_spill] sm:$0xff] %v10500_v23 }
 0x197   : > { %2675 = vmatprep.mubr.bf16.mxu1 %v9975_v36  ;;  %2864 = vmatprep.mubr.bf16.mxu0 %v9975_v36  ;;  %v4764_v24 = vsel %vm10313_vm4, %v4739_v32, -3.4028235e+38  ;;  %v9010_v32 = vld [vmem:[%s14795_s4 + $0x3c8] ss:$36 sps:$4 sm:$0xff]  }
 0x198   : > { %3718 = vmatpush1.bf16.msra.mxu1 %v8964_v40  ;;  %8264 = vmatpush3.bf16.msra.mxu0 %v8996_v42  ;;  %v10334_v57 = vmax.f32 %v9581_v22, %v4764_v24  ;;  %v9005_v40 = vld [vmem:[%s14795_s4 + $0x380] ss:$36 sps:$4 sm:$0xff]   ;;  %v8970_v42 = vld [vmem:[%s14795_s4 + $0x138] ss:$36 sps:$4 sm:$0xff]   ;;  %v9119_v22 = vld [vmem:[%s9557_s18 + $0x48] sm:$0xff]  }
 0x199   : > { %3719 = vmatprep.subr.bf16.mxu1 %v8969_v43  ;;  %8265 = vmatprep.subr.bf16.mxu0 %v9000_v4  ;;  %v9006_v43 = vld [vmem:[%s14795_s4 + $0x140] ss:$36 sps:$4 sm:$0xff]  }
 0x19a   : > { %15220 = vst [vmem:[#allocation45_spill] sm:$0xff] %v10334_v57  ;;  %v8975_v4 = vld [vmem:[%s14795_s4 + $0x184] ss:$36 sps:$4 sm:$0xff]  }
 0x19b   : > { %v9117_v24 = vld [vmem:[%s9557_s18 + $0x40] sm:$0xff]   ;;  %v9011_v57 = vld [vmem:[%s14795_s4 + $0x188] ss:$36 sps:$4 sm:$0xff]  }
 0x19c   : > { %3720 = vmatpush1.bf16.msra.mxu1 %v8967_v29  ;;  %8266 = vmatpush3.bf16.msra.mxu0 %v9001_v55  ;;  %v10355_v29 = vunpack.c.l.bf16 %v9117_v24  ;;  %v9118_v55 = vld [vmem:[%s9557_s18 + $0x38] sm:$0xff]  }
 0x19d   : > { %3721 = vmatprep.subr.bf16.mxu1 %v8972_v30  ;;  %8267 = vmatprep.subr.bf16.mxu0 %v9005_v40  ;;  %v10362_v30 = vunpack.c.h.bf16 %v9118_v55  ;;  %v8973_v40 = vld [vmem:[%s14795_s4 + $0x180] ss:$36 sps:$4 sm:$0xff]   ;;  %v10394_v55 = vunpack.c.l.bf16 %v9119_v22 }
 0x19e   : > { %15221 = vst [vmem:[#allocation46_spill] sm:$0xff] %v10355_v29  ;;  %2676 = vmatmul.mubr.bf16.gmra.mrb[72].mxu1 %v9973_v18  ;;  %2865 = vmatmul.mubr.bf16.gmra.mrb[136].mxu0 %v9973_v18 }
 0x19f   : > { %2685 = vmatprep.mubr.bf16.mxu1 %v9990_v54  ;;  %2872 = vmatprep.mubr.bf16.mxu0 %v9990_v54  ;;  %15222 = vst [vmem:[#allocation47_spill] sm:$0xff] %v10362_v30  ;;  %15224 = vst [vmem:[#allocation49_spill] sm:$0xff] %v10394_v55 }
 0x1a0   : > { %3722 = vmatpush1.bf16.msra.mxu1 %v8970_v42  ;;  %8268 = vmatpush3.bf16.msra.mxu0 %v9006_v43  ;;  %v9015_v42 = vld [vmem:[%s14795_s4 + $0x410] ss:$36 sps:$4 sm:$0xff]   ;;  %v655_v43 = vand.u32 15, %v623_v44  ;;  %v9020_v44 = vld [vmem:[%s14795_s4 + $0x458] ss:$36 sps:$4 sm:$0xff]  }
 0x1a1   : > { %3723 = vmatprep.subr.bf16.mxu1 %v8975_v4  ;;  %8269 = vmatprep.subr.bf16.mxu0 %v9010_v32  ;;  %v8976_v4 = vld [vmem:[%s14795_s4 + $0x1c8] ss:$36 sps:$4 sm:$0xff]   ;;  %v8981_v32 = vld [vmem:[%s14795_s4 + $0x214] ss:$36 sps:$4 sm:$0xff]  }
 0x1a2   : > { %vm10398_vm5 = vcmp.gt.s32.totalorder %v655_v43, 0  ;;  %v9021_v43 = vld [vmem:[%s14795_s4 + $0x218] ss:$36 sps:$4 sm:$0xff]  }
 0x1a4   : > { %3724 = vmatpush1.bf16.msra.mxu1 %v8973_v40  ;;  %8270 = vmatpush3.bf16.msra.mxu0 %v9011_v57  ;;  %v10391_v40 = vunpack.c.h.bf16 %v9117_v24  ;;  %v15228_v57 = vrot.slane %v10355_v29, 7  ;;  %v8979_v24 = vld [vmem:[%s14795_s4 + $0x210] ss:$36 sps:$4 sm:$0xff]  }
 0x1a5   : > { %3725 = vmatprep.subr.bf16.mxu1 %v8978_v15  ;;  %8271 = vmatprep.subr.bf16.mxu0 %v9015_v42  ;;  %v15225_v15 = vmov 0  ;;  %v15229_v42 = vrot.slane %v10362_v30, 7 }
 0x1a6   : > { %15223 = vst [vmem:[#allocation48_spill] sm:$0xff] %v10391_v40  ;;  %2686 = vmatmul.mubr.bf16.gmra.mrb[76].mxu1 %v9988_v52  ;;  %2873 = vmatmul.mubr.bf16.gmra.mrb[140].mxu0 %v9988_v52  ;;  %v15226_v15 = vsel %vm10398_vm5, 4294967295, %v15225_v15 }
 0x1a7   : > { %15227 = vst [vmem:[#allocation50_spill] sm:$0xff] %v15226_v15  ;;  %v4735_v34 = vsel %vm14922_vm0, %v15229_v42, %v15228_v57  ;;  %2695 = vmatprep.mubr.bf16.mxu1 %v10002_v11  ;;  %2880 = vmatprep.mubr.bf16.mxu0 %v10002_v11  ;;  %v8986_v57 = vld [vmem:[%s14795_s4 + $0x25c] ss:$36 sps:$4 sm:$0xff]  }
 0x1a8   : > { %v4768_v22 = vsel %vm10398_vm5, %v4735_v34, -3.4028235e+38  ;;  %3726 = vmatpush1.bf16.msra.mxu1 %v8976_v4  ;;  %8272 = vmatpush3.bf16.msra.mxu0 %v9016_v6  ;;  %v14853_v34 = vrot.slane %v10391_v40, 7  ;;  %v14852_v4 = vrot.slane %v10394_v55, 7  ;;  %v8984_v6 = vld [vmem:[%s14795_s4 + $0x258] ss:$36 sps:$4 sm:$0xff]  }
 0x1a9   : > { %v10419_v41 = vmax.f32 %v10355_v29, %v4768_v22  ;;  %3727 = vmatprep.subr.bf16.mxu1 %v8981_v32  ;;  %8273 = vmatprep.subr.bf16.mxu0 %v9020_v44  ;;  %v8989_v32 = vld [vmem:[%s14795_s4 + $0x2a4] ss:$36 sps:$4 sm:$0xff]   ;;  %v8994_v22 = vld [vmem:[%s14795_s4 + $0x2ec] ss:$36 sps:$4 sm:$0xff]  }
 0x1aa   : > { %v10440_v44 = vsel %vm14922_vm0, %v14853_v34, %v14852_v4  ;;  %v8987_v42 = vld [vmem:[%s14795_s4 + $0x2a0] ss:$36 sps:$4 sm:$0xff]   ;;  %v631_v4 = vadd.s32 192, %v9589_v25  ;;  %v9014_v34 = vld [vmem:[%s14795_s4 + $0x40c] ss:$36 sps:$4 sm:$0xff]  }
 0x1ab   : > { %15230 = vst [vmem:[#allocation51_spill] sm:$0xff] %v10419_v41  ;;  %15231 = vst [vmem:[#allocation52_spill] sm:$0xff] %v10440_v44 }
 0x1ac   : > { %3728 = vmatpush1.bf16.msra.mxu1 %v8979_v24  ;;  %8274 = vmatpush3.bf16.msra.mxu0 %v9021_v43  ;;  %v8992_v24 = vld [vmem:[%s14795_s4 + $0x2e8] ss:$36 sps:$4 sm:$0xff]   ;;  %v8999_v43 = vld [vmem:[%s14795_s4 + $0x334] ss:$36 sps:$4 sm:$0xff]   ;;  %v663_v44 = vand.u32 15, %v631_v4  ;;  %v15236_v4 = vmov 0 }
 0x1ad   : > { %3729 = vmatprep.subr.bf16.mxu1 %v8986_v57  ;;  %v8997_v57 = vld [vmem:[%s14795_s4 + $0x330] ss:$36 sps:$4 sm:$0xff]  }
 0x1ae   : > { %2696 = vmatmul.mubr.bf16.gmra.mrb[80].mxu1 %v10000_v10  ;;  %2881 = vmatmul.mubr.bf16.gmra.mrb[144].mxu0 %v10000_v10  ;;  %vm10504_vm6 = vcmp.gt.s32.totalorder %v663_v44, 0  ;;  %v9017_v44 = vld [vmem:[%s14795_s4 + $0x450] ss:$36 sps:$4 sm:$0xff]  }
 0x1af   : > { %2705 = vmatprep.mubr.bf16.mxu1 %v10014_v38  ;;  %2888 = vmatprep.mubr.bf16.mxu0 %v10014_v38  ;;  %v15237_v4 = vsel %vm10504_vm6, 4294967295, %v15236_v4 }
 0x1b0   : > { %3730 = vmatpush1.bf16.msra.mxu1 %v8984_v6  ;;  %v9004_v6 = vld [vmem:[%s14795_s4 + $0x37c] ss:$36 sps:$4 sm:$0xff]   ;;  %15238 = vst [vmem:[#allocation57_spill] sm:$0xff] %v15237_v4 }
 0x1b1   : > { %3731 = vmatprep.subr.bf16.mxu1 %v8989_v32  ;;  %v9002_v32 = vld [vmem:[%s14795_s4 + $0x378] ss:$36 sps:$4 sm:$0xff]  }
 0x1b4   : > { %3732 = vmatpush1.bf16.msra.mxu1 %v8987_v42  ;;  %v9009_v42 = vld [vmem:[%s14795_s4 + $0x3c4] ss:$36 sps:$4 sm:$0xff]  }
 0x1b5   : > { %3733 = vmatprep.subr.bf16.mxu1 %v8994_v22  ;;  %v9120_v22 = vld [vmem:[%s9557_s18 + $0x60] sm:$0xff]  }
 0x1b6   : > { %2706 = vmatmul.mubr.bf16.gmra.mrb[84].mxu1 %v10012_v37  ;;  %2889 = vmatmul.mubr.bf16.gmra.mrb[148].mxu0 %v10012_v37 }
 0x1b7   : > { %2715 = vmatprep.mubr.bf16.mxu1 %v10026_v59  ;;  %2896 = vmatprep.mubr.bf16.mxu0 %v10026_v59 }
 0x1b8   : > { %3734 = vmatpush1.bf16.msra.mxu1 %v8992_v24  ;;  %v10473_v24 = vunpack.c.l.bf16 %v9120_v22 }
 0x1b9   : > { %3735 = vmatprep.subr.bf16.mxu1 %v8999_v43  ;;  %v9121_v43 = vld [vmem:[%s9557_s18 + $0x58] sm:$0xff]  }
 0x1ba   : > { %15232 = vst [vmem:[#allocation53_spill] sm:$0xff] %v10473_v24  ;;  %v14858_v41 = vrot.slane %v10473_v24, 7 }
 0x1bc   : > { %3736 = vmatpush1.bf16.msra.mxu1 %v8997_v57  ;;  %v10480_v57 = vunpack.c.h.bf16 %v9121_v43  ;;  %v9019_v43 = vld [vmem:[%s14795_s4 + $0x454] ss:$36 sps:$4 sm:$0xff]  }
 0x1bd   : > { %3737 = vmatprep.subr.bf16.mxu1 %v9004_v6  ;;  %v9007_v6 = vld [vmem:[%s14795_s4 + $0x3c0] ss:$36 sps:$4 sm:$0xff]  }
 0x1be   : > { %2716 = vmatmul.mubr.bf16.gmra.mrb[88].mxu1 %v10024_v56  ;;  %2897 = vmatmul.mubr.bf16.gmra.mrb[152].mxu0 %v10024_v56  ;;  %15233 = vst [vmem:[#allocation54_spill] sm:$0xff] %v10480_v57  ;;  %v14861_v35 = vrot.slane %v10480_v57, 7  ;;  %v15249_v57 = vmov 0 }
 0x1bf   : > { %2725 = vmatprep.mubr.bf16.mxu1 %v10038_v21  ;;  %2904 = vmatprep.mubr.bf16.mxu0 %v10038_v21 }
 0x1c0   : > { %3738 = vmatpush1.bf16.msra.mxu1 %v9002_v32  ;;  %v9012_v32 = vld [vmem:[%s14795_s4 + $0x408] ss:$36 sps:$4 sm:$0xff]  }
 0x1c1   : > { %3739 = vmatprep.subr.bf16.mxu1 %v9009_v42  ;;  %v10497_v42 = vunpack.c.h.bf16 %v9120_v22 }
 0x1c3   : > { %15234 = vst [vmem:[#allocation55_spill] sm:$0xff] %v10497_v42 }
 0x1c4   : > { %3740 = vmatpush1.bf16.msra.mxu1 %v9007_v6  ;;  %v14860_v6 = vrot.slane %v10497_v42, 7 }
 0x1c5   : > { %3741 = vmatprep.subr.bf16.mxu1 %v9014_v34  ;;  %v4727_v34 = vsel %vm14922_vm0, %v14861_v35, %v14858_v41  ;;  %v14859_v41 = vrot.slane %v10500_v23, 7 }
 0x1c6   : > { %2726 = vmatmul.mubr.bf16.gmra.mrb[92].mxu1 %v10036_v20  ;;  %2905 = vmatmul.mubr.bf16.gmra.mrb[156].mxu0 %v10036_v20  ;;  %v4776_v31 = vsel %vm10504_vm6, %v4727_v34, -3.4028235e+38 }
 0x1c7   : > { %2735 = vmatprep.mubr.bf16.mxu1 %v10050_v47  ;;  %2912 = vmatprep.mubr.bf16.mxu0 %v10050_v47  ;;  %v10522_v22 = vmax.f32 %v10473_v24, %v4776_v31  ;;  %v637_v31 = vadd.s32 240, %v9589_v25 }
 0x1c8   : > { %3742 = vmatpush1.bf16.msra.mxu1 %v9012_v32  ;;  %v10534_v32 = vsel %vm14922_vm0, %v14860_v6, %v14859_v41  ;;  %v15245_v6 = vrot.slane %v9703_v1, 7 }
 0x1c9   : > { %15239 = vst [vmem:[#allocation58_spill] sm:$0xff] %v10522_v22  ;;  %3743 = vmatprep.subr.bf16.mxu1 %v9019_v43  ;;  %15240 = vst [vmem:[#allocation59_spill] sm:$0xff] %v10534_v32  ;;  %v9123_v43 = vld [vmem:[%s9557_s18 + $0x70] sm:$0xff]   ;;  %v669_v41 = vand.u32 15, %v637_v31  ;;  %v10570_v32 = vadd.s32 8, %v9589_v25 }
 0x1ca   : > { %v10539_v34 = vunpack.c.h.bf16 %v9123_v43  ;;  %v15242_v43 = vmov 0 }
 0x1cb   : > { %vm10549_vm7 = vcmp.gt.s32.totalorder %v669_v41, 0  ;;  %v10567_v41 = vadd.s32 16, %v9589_v25  ;;  %15248 = vst [vmem:[#allocation64_spill] sm:$0xff] %v10570_v32 }
 0x1cc   : > { %3744 = vmatpush1.bf16.msra.mxu1 %v9017_v44  ;;  %15241 = vst [vmem:[#allocation60_spill] sm:$0xff] %v10539_v34  ;;  %v14863_v44 = vrot.slane %v10539_v34, 7  ;;  %v15243_v43 = vsel %vm10549_vm7, 4294967295, %v15242_v43 }
 0x1cd   : > { %15244 = vst [vmem:[#allocation61_spill] sm:$0xff] %v15243_v43  ;;  %15247 = vst [vmem:[#allocation63_spill] sm:$0xff] %v10567_v41 }
 0x1ce   : > { %2736 = vmatmul.mubr.bf16.gmra.mrb[96].mxu1 %v10048_v46  ;;  %2913 = vmatmul.mubr.bf16.gmra.mrb[160].mxu0 %v10048_v46  ;;  %v4721_v35 = vsel %vm14922_vm0, %v14863_v44, %v15245_v6  ;;  %v641_v6 = vand.u32 15, %v10567_v41  ;;  %v15252_v41 = vrot.slane %v10064_v16, 7 }
 0x1cf   : > { %2745 = vmatprep.mubr.bf16.mxu1 %v10068_v19  ;;  %2920 = vmatprep.mubr.bf16.mxu0 %v10068_v19  ;;  %v4782_v31 = vsel %vm10549_vm7, %v4721_v35, -3.4028235e+38 }
 0x1d0   : > { %v10564_v22 = vmax.f32 %v9703_v1, %v4782_v31  ;;  %v640_v31 = vand.u32 15, %v10570_v32  ;;  %vm10578_vm8 = vcmp.gt.s32.totalorder %v641_v6, 0  ;;  %v10587_v32 = vadd.s32 24, %v9589_v25 }
 0x1d1   : > { %v15250_v57 = vsel %vm10578_vm8, 4294967295, %v15249_v57 }
 0x1d2   : > { %15246 = vst [vmem:[#allocation62_spill] sm:$0xff] %v10564_v22  ;;  %15251 = vst [vmem:[#allocation65_spill] sm:$0xff] %v15250_v57  ;;  %vm10591_vm9 = vcmp.lt.s32.totalorder %v640_v31, 15 }
 0x1d3   : > { %15253 = vst [vmem:[#allocation66_spill] sm:$0xff] %v10587_v32 }
 0x1d6   : > { %2746 = vmatmul.mubr.bf16.gmra.mrb[100].mxu1 %v10066_v17  ;;  %2921 = vmatmul.mubr.bf16.gmra.mrb[164].mxu0 %v10066_v17 }
 0x1d7   : > { %2755 = vmatprep.mubr.bf16.mxu1 %v10093_v62  ;;  %2928 = vmatprep.mubr.bf16.mxu0 %v10093_v62 }
 0x1de   : > { %2756 = vmatmul.mubr.bf16.gmra.mrb[104].mxu1 %v10091_v61  ;;  %2929 = vmatmul.mubr.bf16.gmra.mrb[168].mxu0 %v10091_v61 }
 0x1df   : > { %2765 = vmatprep.mubr.bf16.mxu1 %v10113_v0  ;;  %2936 = vmatprep.mubr.bf16.mxu0 %v10113_v0 }
 0x1e6   : > { %2766 = vmatmul.mubr.bf16.gmra.mrb[108].mxu1 %v10111_v60  ;;  %2937 = vmatmul.mubr.bf16.gmra.mrb[172].mxu0 %v10111_v60 }
 0x1e7   : > { %2775 = vmatprep.mubr.bf16.mxu1 %v10143_v27  ;;  %2944 = vmatprep.mubr.bf16.mxu0 %v10143_v27 }
 0x1e9   : > { %v1607_v35 = vpop.f32.mrb[4].mxu1  ;;  %v8057_v44 = vpop.f32.mrb[68].mxu0 }
 0x1ea   : > { %v1919_v22 = vrot.slane %v1607_v35, 7  ;;  %v1609_v24 = vpop.f32.mrb[5].mxu1  ;;  %v8058_v8 = vpop.f32.mrb[69].mxu0 }
 0x1eb   : > { %v8059_v5 = vadd.f32 %v8058_v8, %v8057_v44  ;;  %v1611_v63 = vpop.f32.mrb[6].mxu1  ;;  %v8060_v60 = vpop.f32.mrb[70].mxu0  ;;  %v15254_v8 = vmov 0 }
 0x1ec   : > { %v1979_v43 = vsel %vm14922_vm0, %v15252_v41, %v1919_v22  ;;  %v1920_v27 = vrot.slane %v1611_v63, 7  ;;  %v1613_v0 = vpop.f32.mrb[7].mxu1  ;;  %v8061_v61 = vpop.f32.mrb[71].mxu0  ;;  %v15255_v8 = vsel %vm10591_vm9, 4294967295, %v15254_v8 }
 0x1ed   : > { %v2080_v6 = vsel %vm10578_vm8, %v1979_v43, 0.0  ;;  %v2144_v35 = vrot.slane %v8059_v5, 1  ;;  %v8062_v1 = vadd.f32 %v8061_v61, %v8060_v60  ;;  %15256 = vst [vmem:[#allocation67_spill] sm:$0xff] %v15255_v8  ;;  %v15257_v5 = vrot.slane %v10271_v58, 1 }
 0x1ee   : > { %v2112_v44 = vadd.f32 %v2080_v6, %v1609_v24  ;;  %v1978_v16 = vsel %vm14922_vm0, %v1919_v22, %v1920_v27  ;;  %2776 = vmatmul.mubr.bf16.gmra.mrb[112].mxu1 %v10140_v9  ;;  %2945 = vmatmul.mubr.bf16.gmra.mrb[176].mxu0 %v10140_v9  ;;  %v642_v24 = vand.u32 15, %v10587_v32  ;;  %v10614_v58 = vadd.s32 48, %v9589_v25 }
 0x1ef   : > { %v2113_v63 = vadd.f32 %v1978_v16, %v1613_v0  ;;  %v2145_v41 = vrot.slane %v8062_v1, 1  ;;  %2785 = vmatprep.mubr.bf16.mxu1 %v10178_v33  ;;  %2952 = vmatprep.mubr.bf16.mxu0 %v10178_v33  ;;  %v2204_v61 = vsel %vm14927_vm3, %v15257_v5, %v2144_v35 }
 0x1f0   : > { %v2304_v60 = vsel %vm10591_vm9, %v2204_v61, 0.0  ;;  %15259 = vst [vmem:[#allocation69_spill] sm:$0xff] %v10614_v58  ;;  %vm10622_vm10 = vcmp.lt.s32.totalorder %v642_v24, 15 }
 0x1f1   : > { %v1617_v22 = vpop.f32.mrb[8].mxu1  ;;  %v8063_v43 = vpop.f32.mrb[72].mxu0  ;;  %v10609_v31 = vadd.f32 %v2304_v60, %v10086_v50  ;;  %v2203_v1 = vsel %vm14927_vm3, %v2144_v35, %v2145_v41 }
 0x1f2   : > { %v1921_v0 = vrot.slane %v1617_v22, 7  ;;  %v1619_v6 = vpop.f32.mrb[9].mxu1  ;;  %v8064_v16 = vpop.f32.mrb[73].mxu0  ;;  %v10616_v5 = vadd.f32 %v2203_v1, %v2112_v44 }
 0x1f3   : > { %15258 = vst [vmem:[#allocation68_spill] sm:$0xff] %v10609_v31  ;;  %v8065_v8 = vadd.f32 %v8064_v16, %v8063_v43  ;;  %v1621_v32 = vpop.f32.mrb[10].mxu1  ;;  %v8066_v57 = vpop.f32.mrb[74].mxu0  ;;  %v15260_v31 = vmov 0  ;;  %v10629_v43 = vadd.s32 40, %v9589_v25 }
 0x1f4   : > { %v1977_v50 = vsel %vm14922_vm0, %v1920_v27, %v1921_v0  ;;  %v1922_v60 = vrot.slane %v1621_v32, 7  ;;  %v1623_v35 = vpop.f32.mrb[11].mxu1  ;;  %v8067_v22 = vpop.f32.mrb[75].mxu0  ;;  %v15261_v31 = vsel %vm10622_vm10, 4294967295, %v15260_v31  ;;  %v645_v27 = vand.u32 15, %v10614_v58 }
 0x1f5   : > { %15262 = vst [vmem:[#allocation70_spill] sm:$0xff] %v15261_v31  ;;  %v2082_v44 = vsel %vm10158_vm1, %v1977_v50, 0.0  ;;  %v2146_v1 = vrot.slane %v8065_v8, 1  ;;  %v8068_v61 = vadd.f32 %v8067_v22, %v8066_v57  ;;  %15263 = vst [vmem:[#allocation71_spill] sm:$0xff] %v10629_v43 }
 0x1f6   : > { %v2114_v16 = vadd.f32 %v2082_v44, %v1619_v6  ;;  %v1976_v33 = vsel %vm14922_vm0, %v1921_v0, %v1922_v60  ;;  %2786 = vmatmul.mubr.bf16.gmra.mrb[116].mxu1 %v10176_v14  ;;  %2953 = vmatmul.mubr.bf16.gmra.mrb[180].mxu0 %v10176_v14  ;;  %vm10655_vm11 = vcmp.gt.s32.totalorder %v645_v27, 0 }
 0x1f7   : > { %v2115_v32 = vadd.f32 %v1976_v33, %v1623_v35  ;;  %v2147_v24 = vrot.slane %v8068_v61, 1  ;;  %2795 = vmatprep.mubr.bf16.mxu1 %v10205_v26  ;;  %2960 = vmatprep.mubr.bf16.mxu0 %v10205_v26  ;;  %v2202_v57 = vsel %vm14927_vm3, %v2145_v41, %v2146_v1  ;;  %v644_v33 = vand.u32 15, %v10629_v43 }
 0x1f8   : > { %v2306_v8 = vsel %vm10622_vm10, %v2202_v57, 0.0  ;;  %v15264_v61 = vrot.slane %v10153_v49, 1  ;;  %v15265_v35 = vrot.slane %v10147_v51, 1  ;;  %v15267_v57 = vmov 0 }
 0x1f9   : > { %v1627_v6 = vpop.f32.mrb[12].mxu1  ;;  %v8069_v0 = vpop.f32.mrb[76].mxu0  ;;  %v10642_v50 = vadd.f32 %v2306_v8, %v2113_v63  ;;  %v2201_v22 = vsel %vm14927_vm3, %v2146_v1, %v2147_v24  ;;  %v15268_v57 = vsel %vm10655_vm11, 4294967295, %v15267_v57  ;;  %vm10668_vm12 = vcmp.lt.s32.totalorder %v644_v33, 15 }
 0x1fa   : > { %v10653_v44 = vsel %vm14927_vm3, %v15265_v35, %v15264_v61  ;;  %v1923_v41 = vrot.slane %v1627_v6, 7  ;;  %v1629_v58 = vpop.f32.mrb[13].mxu1  ;;  %15269 = vst [vmem:[#allocation73_spill] sm:$0xff] %v15268_v57  ;;  %v8070_v63 = vpop.f32.mrb[77].mxu0  ;;  %v10659_v8 = vadd.f32 %v2201_v22, %v2114_v16  ;;  %v10664_v61 = vadd.s32 56, %v9589_v25 }
 0x1fb   : > { %15266 = vst [vmem:[#allocation72_spill] sm:$0xff] %v10653_v44  ;;  %v8071_v1 = vadd.f32 %v8070_v63, %v8069_v0  ;;  %v1631_v31 = vpop.f32.mrb[14].mxu1  ;;  %v8072_v43 = vpop.f32.mrb[78].mxu0  ;;  %v15271_v16 = vmov 0 }
 0x1fc   : > { %v1975_v49 = vsel %vm14922_vm0, %v1922_v60, %v1923_v41  ;;  %v1924_v51 = vrot.slane %v1631_v31, 7  ;;  %v1633_v45 = vpop.f32.mrb[15].mxu1  ;;  %v8073_v26 = vpop.f32.mrb[79].mxu0  ;;  %15270 = vst [vmem:[#allocation74_spill] sm:$0xff] %v10664_v61  ;;  %v15272_v16 = vsel %vm10668_vm12, 4294967295, %v15271_v16 }
 0x1fd   : > { %v2084_v27 = vsel %vm10655_vm11, %v1975_v49, 0.0  ;;  %v2148_v6 = vrot.slane %v8071_v1, 1  ;;  %v8074_v35 = vadd.f32 %v8073_v26, %v8072_v43  ;;  %15273 = vst [vmem:[#allocation75_spill] sm:$0xff] %v15272_v16 }
 0x1fe   : > { %v2116_v0 = vadd.f32 %v2084_v27, %v1629_v58  ;;  %v1974_v22 = vsel %vm14922_vm0, %v1923_v41, %v1924_v51  ;;  %2796 = vmatmul.mubr.bf16.gmra.mrb[120].mxu1 %v10203_v3  ;;  %2961 = vmatmul.mubr.bf16.gmra.mrb[184].mxu0 %v10203_v3  ;;  %v646_v58 = vand.u32 15, %v10664_v61 }
 0x1ff   : > { %v2117_v31 = vadd.f32 %v1974_v22, %v1633_v45  ;;  %v2149_v60 = vrot.slane %v8074_v35, 1  ;;  %2805 = vmatprep.mubr.bf16.mxu1 %v10242_v7  ;;  %2968 = vmatprep.mubr.bf16.mxu0 %v10242_v7  ;;  %v2200_v26 = vsel %vm14927_vm3, %v2147_v24, %v2148_v6  ;;  %v617_v35 = vadd.s32 80, %v9589_v25 }
 0x200   : > { %v2308_v49 = vsel %vm10668_vm12, %v2200_v26, 0.0  ;;  %vm10694_vm13 = vcmp.lt.s32.totalorder %v646_v58, 15 }
 0x201   : > { %v1637_v43 = vpop.f32.mrb[16].mxu1  ;;  %v8075_v33 = vpop.f32.mrb[80].mxu0  ;;  %v10683_v41 = vadd.f32 %v2308_v49, %v2115_v32  ;;  %v2199_v45 = vsel %vm14927_vm3, %v2148_v6, %v2149_v60 }
 0x202   : > { %v1925_v63 = vrot.slane %v1637_v43, 7  ;;  %v1639_v1 = vpop.f32.mrb[17].mxu1  ;;  %v8076_v27 = vpop.f32.mrb[81].mxu0  ;;  %v10688_v22 = vadd.f32 %v2199_v45, %v2116_v0  ;;  %v15274_v43 = vmov 0 }
 0x203   : > { %v8077_v44 = vadd.f32 %v8076_v27, %v8075_v33  ;;  %v1641_v26 = vpop.f32.mrb[18].mxu1  ;;  %v8078_v16 = vpop.f32.mrb[82].mxu0  ;;  %v15275_v43 = vsel %vm10694_vm13, 4294967295, %v15274_v43  ;;  %v616_v33 = vadd.s32 72, %v9589_v25 }
 0x204   : > { %v1973_v32 = vsel %vm14922_vm0, %v1924_v51, %v1925_v63  ;;  %v1926_v49 = vrot.slane %v1641_v26, 7  ;;  %v1643_v57 = vpop.f32.mrb[19].mxu1  ;;  %v8079_v6 = vpop.f32.mrb[83].mxu0  ;;  %15276 = vst [vmem:[#allocation76_spill] sm:$0xff] %v15275_v43  ;;  %v649_v51 = vand.u32 15, %v617_v35 }
 0x205   : > { %v2086_v0 = vsel %vm10220_vm2, %v1973_v32, 0.0  ;;  %v2150_v45 = vrot.slane %v8077_v44, 1  ;;  %v8080_v24 = vadd.f32 %v8079_v6, %v8078_v16  ;;  %v648_v35 = vand.u32 15, %v616_v33 }
 0x206   : > { %v2118_v27 = vadd.f32 %v2086_v0, %v1639_v1  ;;  %v1972_v61 = vsel %vm14922_vm0, %v1925_v63, %v1926_v49  ;;  %2806 = vmatmul.mubr.bf16.gmra.mrb[124].mxu1 %v10240_v39  ;;  %2969 = vmatmul.mubr.bf16.gmra.mrb[188].mxu0 %v10240_v39  ;;  %vm10723_vm14 = vcmp.gt.s32.totalorder %v649_v51, 0  ;;  %v15280_v0 = vmov 0 }
 0x207   : > { %v2119_v58 = vadd.f32 %v1972_v61, %v1643_v57  ;;  %v2151_v26 = vrot.slane %v8080_v24, 1  ;;  %3745 = vmatprep.mubr.bf16.mxu1 %v9963_v13  ;;  %3938 = vmatprep.mubr.bf16.mxu0 %v9963_v13  ;;  %v2198_v44 = vsel %vm14927_vm3, %v2149_v60, %v2150_v45  ;;  %v15277_v57 = vrot.slane %v10212_v53, 1 }
 0x208   : > { %v2310_v16 = vsel %vm10694_vm13, %v2198_v44, 0.0  ;;  %v15278_v61 = vrot.slane %v10209_v48, 1  ;;  %v15281_v0 = vsel %vm10723_vm14, 4294967295, %v15280_v0  ;;  %vm10734_vm15 = vcmp.lt.s32.totalorder %v648_v35, 15 }
 0x209   : > { %v1647_v1 = vpop.f32.mrb[20].mxu1  ;;  %v8081_v32 = vpop.f32.mrb[84].mxu0  ;;  %v10711_v63 = vadd.f32 %v2310_v16, %v2117_v31  ;;  %v2197_v6 = vsel %vm14927_vm3, %v2150_v45, %v2151_v26 }
 0x20a   : > { %v10721_v13 = vsel %vm14927_vm3, %v15278_v61, %v15277_v57  ;;  %v1927_v60 = vrot.slane %v1647_v1, 7  ;;  %v1649_v24 = vpop.f32.mrb[21].mxu1  ;;  %v8082_v31 = vpop.f32.mrb[85].mxu0  ;;  %v10727_v44 = vadd.f32 %v2197_v6, %v2118_v27  ;;  %v618_v57 = vadd.s32 88, %v9589_v25 }
 0x20b   : > { %15279 = vst [vmem:[#allocation77_spill] sm:$0xff] %v10721_v13  ;;  %v8083_v16 = vadd.f32 %v8082_v31, %v8081_v32  ;;  %v1651_v45 = vpop.f32.mrb[22].mxu1  ;;  %v8084_v33 = vpop.f32.mrb[86].mxu0  ;;  %v15282_v13 = vmov 0 }
 0x20c   : > { %v1971_v53 = vsel %vm14922_vm0, %v1926_v49, %v1927_v60  ;;  %v1928_v48 = vrot.slane %v1651_v45, 7  ;;  %v1653_v43 = vpop.f32.mrb[23].mxu1  ;;  %v8085_v2 = vpop.f32.mrb[87].mxu0  ;;  %v15283_v13 = vsel %vm10734_vm15, 4294967295, %v15282_v13  ;;  %v650_v35 = vand.u32 15, %v618_v57 }
 0x20d   : > { %v2088_v51 = vsel %vm10723_vm14, %v1971_v53, 0.0  ;;  %v2152_v1 = vrot.slane %v8083_v16, 1  ;;  %v8086_v61 = vadd.f32 %v8085_v2, %v8084_v33  ;;  %15284 = vst [vmem:[#allocation78_spill] sm:$0xff] %v15283_v13  ;;  %v621_v33 = vadd.s32 112, %v9589_v25 }
 0x20e   : > { %v2120_v27 = vadd.f32 %v2088_v51, %v1649_v24  ;;  %v1970_v32 = vsel %vm14922_vm0, %v1927_v60, %v1928_v48  ;;  %3746 = vmatmul.mubr.bf16.vlgmr.msra.gmra.mrb[128].mxu1 %v9961_v12  ;;  %3939 = vmatmul.mubr.bf16.vlgmr.msra.gmra.mrb[192].mxu0 %v9961_v12 }
 0x20f   : > { %v2121_v49 = vadd.f32 %v1970_v32, %v1653_v43  ;;  %v2153_v6 = vrot.slane %v8086_v61, 1  ;;  %3755 = vmatprep.mubr.bf16.mxu1 %v9975_v36  ;;  %3946 = vmatprep.mubr.bf16.mxu0 %v9975_v36  ;;  %v2196_v53 = vsel %vm14927_vm3, %v2151_v26, %v2152_v1 }
 0x210   : > { %v2312_v2 = vsel %vm10734_vm15, %v2196_v53, 0.0  ;;  %vm10757_vm15 = vcmp.lt.s32.totalorder %v650_v35, 15 }
 0x211   : > { %v1657_v24 = vpop.f32.mrb[24].mxu1  ;;  %v8087_v31 = vpop.f32.mrb[88].mxu0  ;;  %v10748_v60 = vadd.f32 %v2312_v2, %v2119_v58  ;;  %v2195_v12 = vsel %vm14927_vm3, %v2152_v1, %v2153_v6  ;;  %v15285_v2 = vmov 0 }
 0x212   : > { %v1929_v43 = vrot.slane %v1657_v24, 7  ;;  %v1659_v16 = vpop.f32.mrb[25].mxu1  ;;  %v8088_v45 = vpop.f32.mrb[89].mxu0  ;;  %v10753_v36 = vadd.f32 %v2195_v12, %v2120_v27  ;;  %v15286_v2 = vsel %vm10757_vm15, 4294967295, %v15285_v2  ;;  %v620_v27 = vadd.s32 104, %v9589_v25 }
 0x213   : > { %v8089_v51 = vadd.f32 %v8088_v45, %v8087_v31  ;;  %v1661_v26 = vpop.f32.mrb[26].mxu1  ;;  %v8090_v61 = vpop.f32.mrb[90].mxu0  ;;  %15287 = vst [vmem:[#allocation79_spill] sm:$0xff] %v15286_v2 }
 0x214   : > { %v1969_v57 = vsel %vm14922_vm0, %v1928_v48, %v1929_v43  ;;  %v1930_v32 = vrot.slane %v1661_v26, 7  ;;  %v1663_v53 = vpop.f32.mrb[27].mxu1  ;;  %v8091_v58 = vpop.f32.mrb[91].mxu0  ;;  %v653_v48 = vand.u32 15, %v621_v33  ;;  %v652_v33 = vand.u32 15, %v620_v27 }
 0x215   : > { %v2090_v1 = vsel %vm10313_vm4, %v1969_v57, 0.0  ;;  %v2154_v24 = vrot.slane %v8089_v51, 1  ;;  %v8092_v13 = vadd.f32 %v8091_v58, %v8090_v61 }
 0x216   : > { %v2122_v31 = vadd.f32 %v2090_v1, %v1659_v16  ;;  %v1968_v12 = vsel %vm14922_vm0, %v1929_v43, %v1930_v32  ;;  %3756 = vmatmul.mubr.bf16.gmra.mrb[132].mxu1 %v9973_v18  ;;  %3947 = vmatmul.mubr.bf16.gmra.mrb[196].mxu0 %v9973_v18  ;;  %vm10778_vm0 = vcmp.gt.s32.totalorder %v653_v48, 0  ;;  %v622_v48 = vadd.s32 120, %v9589_v25 }
 0x217   : > { %v2123_v35 = vadd.f32 %v1968_v12, %v1663_v53  ;;  %v2155_v45 = vrot.slane %v8092_v13, 1  ;;  %3765 = vmatprep.mubr.bf16.mxu1 %v9990_v54  ;;  %3954 = vmatprep.mubr.bf16.mxu0 %v9990_v54  ;;  %v2194_v51 = vsel %vm14927_vm3, %v2153_v6, %v2154_v24  ;;  %v15291_v6 = vmov 0  ;;  %v6715_v53 = vld [vmem:[%s11850_s15 + $0x60] sm:$0xff] }
 0x218   : > { %v2314_v16 = vsel %vm10757_vm15, %v2194_v51, 0.0  ;;  %vm15290_vm15 = vcmp.lt.s32.totalorder %v9589_v25, 1 }
 0x219   : > { %v1667_v26 = vpop.f32.mrb[28].mxu1  ;;  %v8093_v61 = vpop.f32.mrb[92].mxu0  ;;  %v10774_v43 = vadd.f32 %v2314_v16, %v2121_v49  ;;  %v2193_v18 = vsel %vm14927_vm3, %v2154_v24, %v2155_v45  ;;  %vm10791_vm3 = vcmp.lt.s32.totalorder %v652_v33, 15  ;;  %vm15294_vm4 = vmmov %vm15290_vm15 }
 0x21a   : > { %v1931_v57 = vrot.slane %v1667_v26, 7  ;;  %v1669_v13 = vpop.f32.mrb[29].mxu1  ;;  %v8094_v54 = vpop.f32.mrb[93].mxu0  ;;  %v10782_v58 = vadd.f32 %v2193_v18, %v2122_v31  ;;  %v15292_v6 = vsel %vm10791_vm3, 4294967295, %v15291_v6 }
 0x21b   : > { %v8095_v1 = vadd.f32 %v8094_v54, %v8093_v61  ;;  %v1671_v12 = vpop.f32.mrb[30].mxu1  ;;  %v8096_v51 = vpop.f32.mrb[94].mxu0  ;;  %15293 = vst [vmem:[#allocation80_spill] sm:$0xff] %v15292_v6 }
 0x21c   : > { %v1967_v24 = vsel %vm15290_vm15, %v1930_v32, %v1931_v57  ;;  %v1932_v27 = vrot.slane %v1671_v12, 7  ;;  %v1673_v16 = vpop.f32.mrb[31].mxu1  ;;  %v8097_v26 = vpop.f32.mrb[95].mxu0  ;;  %vm15295_vm15 = vcmp.lt.s32.totalorder %v9589_v25, 7 }
 0x21d   : > { %v2092_v2 = vsel %vm10778_vm0, %v1967_v24, 0.0  ;;  %v2156_v31 = vrot.slane %v8095_v1, 1  ;;  %v8098_v18 = vadd.f32 %v8097_v26, %v8096_v51  ;;  %v15297_v51 = vrot.slane %v10355_v29, 1 }
 0x21e   : > { %v2124_v61 = vadd.f32 %v2092_v2, %v1669_v13  ;;  %v1966_v54 = vsel %vm15294_vm4, %v1931_v57, %v1932_v27  ;;  %3766 = vmatmul.mubr.bf16.gmra.mrb[136].mxu1 %v9988_v52  ;;  %3955 = vmatmul.mubr.bf16.gmra.mrb[200].mxu0 %v9988_v52  ;;  %v654_v2 = vand.u32 15, %v622_v48  ;;  %vm15296_vm4 = vmmov %vm15295_vm15  ;;  %v625_v48 = vadd.s32 144, %v9589_v25 }
 0x21f   : > { %v2192_v32 = vsel %vm15295_vm15, %v2155_v45, %v2156_v31  ;;  %v2125_v12 = vadd.f32 %v1966_v54, %v1673_v16  ;;  %v2157_v49 = vrot.slane %v8098_v18, 1  ;;  %3775 = vmatprep.mubr.bf16.mxu1 %v10002_v11  ;;  %3962 = vmatprep.mubr.bf16.mxu0 %v10002_v11  ;;  %v15298_v45 = vrot.slane %v10362_v30, 1  ;;  %vm15299_vm15 = vmmov %vm15296_vm4 }
 0x220   : > { %v2316_v33 = vsel %vm10791_vm3, %v2192_v32, 0.0 }
 0x221   : > { %v1677_v13 = vpop.f32.mrb[32].mxu1  ;;  %v8099_v1 = vpop.f32.mrb[96].mxu0  ;;  %v10805_v57 = vadd.f32 %v2316_v33, %v2123_v35  ;;  %v2191_v52 = vsel %vm15296_vm4, %v2156_v31, %v2157_v49  ;;  %v10815_v24 = vsel %vm15299_vm15, %v15298_v45, %v15297_v51  ;;  %vm15301_vm4 = vcmp.lt.s32.totalorder %v9589_v25, 1 }
 0x222   : > { %15300 = vst [vmem:[#allocation81_spill] sm:$0xff] %v10815_v24  ;;  %v1933_v11 = vrot.slane %v1677_v13, 7  ;;  %v1679_v16 = vpop.f32.mrb[33].mxu1  ;;  %v8100_v26 = vpop.f32.mrb[97].mxu0  ;;  %v10818_v18 = vadd.f32 %v2191_v52, %v2124_v61  ;;  %vm10824_vm15 = vcmp.lt.s32.totalorder %v654_v2, 15  ;;  %v15302_v13 = vmov 0  ;;  %vm15305_vm3 = vmmov %vm15301_vm4 }
 0x223   : > { %v8101_v54 = vadd.f32 %v8100_v26, %v8099_v1  ;;  %v1681_v32 = vpop.f32.mrb[34].mxu1  ;;  %v8102_v31 = vpop.f32.mrb[98].mxu0  ;;  %v15303_v13 = vsel %vm10824_vm15, 4294967295, %v15302_v13  ;;  %v624_v1 = vadd.s32 136, %v9589_v25 }
 0x224   : > { %v1965_v29 = vsel %vm15301_vm4, %v1932_v27, %v1933_v11  ;;  %v1934_v30 = vrot.slane %v1681_v32, 7  ;;  %v1683_v51 = vpop.f32.mrb[35].mxu1  ;;  %v8103_v45 = vpop.f32.mrb[99].mxu0  ;;  %15304 = vst [vmem:[#allocation82_spill] sm:$0xff] %v15303_v13  ;;  %v657_v27 = vand.u32 15, %v625_v48  ;;  %vm15306_vm4 = vcmp.lt.s32.totalorder %v9589_v25, 7 }
 0x225   : > { %v2094_v61 = vsel %vm10398_vm5, %v1965_v29, 0.0  ;;  %v2158_v52 = vrot.slane %v8101_v54, 1  ;;  %v8104_v35 = vadd.f32 %v8103_v45, %v8102_v31  ;;  %v656_v48 = vand.u32 15, %v624_v1 }
 0x226   : > { %v2126_v26 = vadd.f32 %v2094_v61, %v1679_v16  ;;  %v1964_v33 = vsel %vm15305_vm3, %v1933_v11, %v1934_v30  ;;  %3776 = vmatmul.mubr.bf16.gmra.mrb[140].mxu1 %v10000_v10  ;;  %3963 = vmatmul.mubr.bf16.gmra.mrb[204].mxu0 %v10000_v10  ;;  %vm15307_vm3 = vmmov %vm15306_vm4  ;;  %v15308_v31 = vrot.slane %v10394_v55, 1  ;;  %vm10853_vm5 = vcmp.gt.s32.totalorder %v657_v27, 0 }
 0x227   : > { %v2190_v2 = vsel %vm15306_vm4, %v2157_v49, %v2158_v52  ;;  %v2127_v32 = vadd.f32 %v1964_v33, %v1683_v51  ;;  %v2159_v24 = vrot.slane %v8104_v35, 1  ;;  %3785 = vmatprep.mubr.bf16.mxu1 %v10014_v38  ;;  %3970 = vmatprep.mubr.bf16.mxu0 %v10014_v38  ;;  %v15309_v49 = vrot.slane %v10391_v40, 1  ;;  %vm15310_vm4 = vmmov %vm15307_vm3 }
 0x228   : > { %v2318_v29 = vsel %vm10824_vm15, %v2190_v2, 0.0  ;;  %v15312_v51 = vmov 0  ;;  %v627_v45 = vadd.s32 160, %v9589_v25  ;;  %v15315_v13 = vmov 0 }
 0x229   : > { %v1687_v16 = vpop.f32.mrb[36].mxu1  ;;  %v8105_v54 = vpop.f32.mrb[100].mxu0  ;;  %v10841_v11 = vadd.f32 %v2318_v29, %v2125_v12  ;;  %v2189_v10 = vsel %vm15307_vm3, %v2158_v52, %v2159_v24  ;;  %v10851_v35 = vsel %vm15310_vm4, %v15309_v49, %v15308_v31  ;;  %v15313_v51 = vsel %vm10853_vm5, 4294967295, %v15312_v51 }
 0x22a   : > { %15311 = vst [vmem:[#allocation83_spill] sm:$0xff] %v10851_v35  ;;  %v1935_v38 = vrot.slane %v1687_v16, 7  ;;  %v1689_v33 = vpop.f32.mrb[37].mxu1  ;;  %v8106_v12 = vpop.f32.mrb[101].mxu0  ;;  %v10858_v61 = vadd.f32 %v2189_v10, %v2126_v26  ;;  %vm15314_vm3 = vcmp.lt.s32.totalorder %v9589_v25, 1  ;;  %v626_v16 = vadd.s32 152, %v9589_v25 }
 0x22b   : > { %v8107_v52 = vadd.f32 %v8106_v12, %v8105_v54  ;;  %v1691_v1 = vpop.f32.mrb[38].mxu1  ;;  %v8108_v2 = vpop.f32.mrb[102].mxu0  ;;  %vm10865_vm4 = vcmp.lt.s32.totalorder %v656_v48, 15  ;;  %vm15318_vm15 = vmmov %vm15314_vm3 }
 0x22c   : > { %v1963_v29 = vsel %vm15314_vm3, %v1934_v30, %v1935_v38  ;;  %v1936_v55 = vrot.slane %v1691_v1, 7  ;;  %v1693_v31 = vpop.f32.mrb[39].mxu1  ;;  %v8109_v49 = vpop.f32.mrb[103].mxu0  ;;  %v15316_v13 = vsel %vm10865_vm4, 4294967295, %v15315_v13  ;;  %v659_v30 = vand.u32 15, %v627_v45 }
 0x22d   : > { %v2096_v27 = vsel %vm10853_vm5, %v1963_v29, 0.0  ;;  %v2160_v35 = vrot.slane %v8107_v52, 1  ;;  %v8110_v40 = vadd.f32 %v8109_v49, %v8108_v2  ;;  %15317 = vst [vmem:[#allocation84_spill] sm:$0xff] %v15316_v13  ;;  %vm15319_vm3 = vcmp.lt.s32.totalorder %v9589_v25, 7 }
 0x22e   : > { %v2128_v26 = vadd.f32 %v2096_v27, %v1689_v33  ;;  %v1962_v54 = vsel %vm15318_vm15, %v1935_v38, %v1936_v55  ;;  %3786 = vmatmul.mubr.bf16.gmra.mrb[144].mxu1 %v10012_v37  ;;  %3971 = vmatmul.mubr.bf16.gmra.mrb[208].mxu0 %v10012_v37  ;;  %v658_v33 = vand.u32 15, %v626_v16  ;;  %vm15320_vm15 = vmmov %vm15319_vm3 }
 0x22f   : > { %v2188_v10 = vsel %vm15319_vm3, %v2159_v24, %v2160_v35  ;;  %v2129_v12 = vadd.f32 %v1962_v54, %v1693_v31  ;;  %v2161_v1 = vrot.slane %v8110_v40, 1  ;;  %3795 = vmatprep.mubr.bf16.mxu1 %v10026_v59  ;;  %3978 = vmatprep.mubr.bf16.mxu0 %v10026_v59  ;;  %vm10883_vm3 = vcmp.gt.s32.totalorder %v659_v30, 0 }
 0x230   : > { %v2320_v48 = vsel %vm10865_vm4, %v2188_v10, 0.0  ;;  %v15321_v24 = vmov 0  ;;  %v629_v59 = vadd.s32 176, %v9589_v25  ;;  %vm15324_vm4 = vcmp.lt.s32.totalorder %v9589_v25, 1 }
 0x231   : > { %v1697_v52 = vpop.f32.mrb[40].mxu1  ;;  %v8111_v38 = vpop.f32.mrb[104].mxu0  ;;  %v10879_v2 = vadd.f32 %v2320_v48, %v2127_v32  ;;  %v2187_v37 = vsel %vm15320_vm15, %v2160_v35, %v2161_v1  ;;  %v15322_v24 = vsel %vm10883_vm3, 4294967295, %v15321_v24  ;;  %vm10892_vm15 = vcmp.lt.s32.totalorder %v658_v33, 15  ;;  %vm15328_vm5 = vmmov %vm15324_vm4 }
 0x232   : > { %v1937_v45 = vrot.slane %v1697_v52, 7  ;;  %v1699_v29 = vpop.f32.mrb[41].mxu1  ;;  %15323 = vst [vmem:[#allocation85_spill] sm:$0xff] %v15322_v24  ;;  %v8112_v40 = vpop.f32.mrb[105].mxu0  ;;  %v10888_v31 = vadd.f32 %v2187_v37, %v2128_v26  ;;  %v15325_v48 = vmov 0  ;;  %v628_v26 = vadd.s32 168, %v9589_v25 }
 0x233   : > { %v8113_v49 = vadd.f32 %v8112_v40, %v8111_v38  ;;  %v1701_v16 = vpop.f32.mrb[42].mxu1  ;;  %v8114_v27 = vpop.f32.mrb[106].mxu0  ;;  %v15326_v48 = vsel %vm10892_vm15, 4294967295, %v15325_v48  ;;  %v15334_v24 = vmov 0 }
 0x234   : > { %v1961_v32 = vsel %vm15324_vm4, %v1936_v55, %v1937_v45  ;;  %v1938_v54 = vrot.slane %v1701_v16, 7  ;;  %v1703_v10 = vpop.f32.mrb[43].mxu1  ;;  %v8115_v35 = vpop.f32.mrb[107].mxu0  ;;  %15327 = vst [vmem:[#allocation86_spill] sm:$0xff] %v15326_v48  ;;  %v661_v55 = vand.u32 15, %v629_v59  ;;  %vm15329_vm4 = vcmp.lt.s32.totalorder %v9589_v25, 7 }
 0x235   : > { %v2098_v30 = vsel %vm10883_vm3, %v1961_v32, 0.0  ;;  %v2162_v52 = vrot.slane %v8113_v49, 1  ;;  %v8116_v13 = vadd.f32 %v8115_v35, %v8114_v27  ;;  %v660_v59 = vand.u32 15, %v628_v26 }
 0x236   : > { %v2130_v38 = vadd.f32 %v2098_v30, %v1699_v29  ;;  %v1960_v37 = vsel %vm15328_vm5, %v1937_v45, %v1938_v54  ;;  %3796 = vmatmul.mubr.bf16.gmra.mrb[148].mxu1 %v10024_v56  ;;  %3979 = vmatmul.mubr.bf16.gmra.mrb[212].mxu0 %v10024_v56  ;;  %vm15330_vm5 = vmmov %vm15329_vm4 }
 0x237   : > { %v2186_v33 = vsel %vm15329_vm4, %v2161_v1, %v2162_v52  ;;  %v2131_v40 = vadd.f32 %v1960_v37, %v1703_v10  ;;  %v2163_v16 = vrot.slane %v8116_v13, 1  ;;  %3805 = vmatprep.mubr.bf16.mxu1 %v10038_v21  ;;  %3986 = vmatprep.mubr.bf16.mxu0 %v10038_v21  ;;  %vm10913_vm4 = vcmp.gt.s32.totalorder %v661_v55, 0 }
 0x238   : > { %v2322_v29 = vsel %vm10892_vm15, %v2186_v33, 0.0  ;;  %v15331_v1 = vmov 0  ;;  %vm15333_vm15 = vcmp.lt.s32.totalorder %v9589_v25, 1 }
 0x239   : > { %v1707_v49 = vpop.f32.mrb[44].mxu1  ;;  %v8117_v27 = vpop.f32.mrb[108].mxu0  ;;  %v10909_v45 = vadd.f32 %v2322_v29, %v2129_v12  ;;  %v2185_v56 = vsel %vm15330_vm5, %v2162_v52, %v2163_v16  ;;  %v15332_v1 = vsel %vm10913_vm4, 4294967295, %v15331_v1  ;;  %v630_v52 = vadd.s32 184, %v9589_v25  ;;  %vm15337_vm3 = vmmov %vm15333_vm15 }
 0x23a   : > { %v1939_v32 = vrot.slane %v1707_v49, 7  ;;  %v1709_v35 = vpop.f32.mrb[45].mxu1  ;;  %v8118_v13 = vpop.f32.mrb[109].mxu0  ;;  %v10917_v10 = vadd.f32 %v2185_v56, %v2130_v38  ;;  %vm10924_vm5 = vcmp.lt.s32.totalorder %v660_v59, 15 }
 0x23b   : > { %v8119_v21 = vadd.f32 %v8118_v13, %v8117_v27  ;;  %v1711_v30 = vpop.f32.mrb[46].mxu1  ;;  %v8120_v37 = vpop.f32.mrb[110].mxu0  ;;  %v15335_v24 = vsel %vm10924_vm5, 4294967295, %v15334_v24  ;;  %v662_v59 = vand.u32 15, %v630_v52 }
 0x23c   : > { %v1959_v12 = vsel %vm15333_vm15, %v1938_v54, %v1939_v32  ;;  %v1940_v33 = vrot.slane %v1711_v30, 7  ;;  %v1713_v29 = vpop.f32.mrb[47].mxu1  ;;  %v8121_v48 = vpop.f32.mrb[111].mxu0  ;;  %15336 = vst [vmem:[#allocation87_spill] sm:$0xff] %v15335_v24  ;;  %vm15338_vm15 = vcmp.lt.s32.totalorder %v9589_v25, 7 }
 0x23d   : > { %v2100_v26 = vsel %vm10913_vm4, %v1959_v12, 0.0  ;;  %v2164_v55 = vrot.slane %v8119_v21, 1  ;;  %v8122_v49 = vadd.f32 %v8121_v48, %v8120_v37  ;;  %v633_v12 = vadd.s32 208, %v9589_v25 }
 0x23e   : > { %v2132_v38 = vadd.f32 %v2100_v26, %v1709_v35  ;;  %v1958_v27 = vsel %vm15337_vm3, %v1939_v32, %v1940_v33  ;;  %3806 = vmatmul.mubr.bf16.gmra.mrb[152].mxu1 %v10036_v20  ;;  %3987 = vmatmul.mubr.bf16.gmra.mrb[216].mxu0 %v10036_v20  ;;  %vm15339_vm3 = vmmov %vm15338_vm15  ;;  %vm15394_vm4 = vcmp.lt.s32.totalorder %v9589_v25, 7 }
 0x23f   : > { %v2184_v54 = vsel %vm15338_vm15, %v2163_v16, %v2164_v55  ;;  %v2133_v56 = vadd.f32 %v1958_v27, %v1713_v29  ;;  %v2165_v13 = vrot.slane %v8122_v49, 1  ;;  %3815 = vmatprep.mubr.bf16.mxu1 %v10050_v47  ;;  %3994 = vmatprep.mubr.bf16.mxu0 %v10050_v47  ;;  %vm15340_vm15 = vcmp.lt.s32.totalorder %v9589_v25, 1 }
 0x240   : > { %v2324_v48 = vsel %vm10924_vm5, %v2184_v54, 0.0  ;;  %vm15344_vm5 = vmmov %vm15340_vm15 }
 0x241   : > { %v1717_v35 = vpop.f32.mrb[48].mxu1  ;;  %v8123_v21 = vpop.f32.mrb[112].mxu0  ;;  %v10938_v32 = vadd.f32 %v2324_v48, %v2131_v40  ;;  %v2183_v20 = vsel %vm15339_vm3, %v2164_v55, %v2165_v13  ;;  %vm10949_vm3 = vcmp.lt.s32.totalorder %v662_v59, 15 }
 0x242   : > { %v1941_v30 = vrot.slane %v1717_v35, 7  ;;  %v1719_v37 = vpop.f32.mrb[49].mxu1  ;;  %v8124_v16 = vpop.f32.mrb[113].mxu0  ;;  %v10943_v29 = vadd.f32 %v2183_v20, %v2132_v38  ;;  %v15341_v35 = vmov 0 }
 0x243   : > { %v8125_v26 = vadd.f32 %v8124_v16, %v8123_v21  ;;  %v1721_v49 = vpop.f32.mrb[50].mxu1  ;;  %v8126_v27 = vpop.f32.mrb[114].mxu0  ;;  %v15342_v35 = vsel %vm10949_vm3, 4294967295, %v15341_v35  ;;  %v632_v21 = vadd.s32 200, %v9589_v25 }
 0x244   : > { %v1957_v40 = vsel %vm15340_vm15, %v1940_v33, %v1941_v30  ;;  %v1942_v54 = vrot.slane %v1721_v49, 7  ;;  %v1723_v48 = vpop.f32.mrb[51].mxu1  ;;  %v8127_v55 = vpop.f32.mrb[115].mxu0  ;;  %15343 = vst [vmem:[#allocation88_spill] sm:$0xff] %v15342_v35  ;;  %v665_v33 = vand.u32 15, %v633_v12  ;;  %vm15345_vm15 = vcmp.lt.s32.totalorder %v9589_v25, 7 }
 0x245   : > { %v2102_v38 = vsel %vm10504_vm6, %v1957_v40, 0.0  ;;  %v2166_v20 = vrot.slane %v8125_v26, 1  ;;  %v8128_v47 = vadd.f32 %v8127_v55, %v8126_v27  ;;  %v664_v12 = vand.u32 15, %v632_v21 }
 0x246   : > { %v2134_v16 = vadd.f32 %v2102_v38, %v1719_v37  ;;  %v1956_v52 = vsel %vm15344_vm5, %v1941_v30, %v1942_v54  ;;  %3816 = vmatmul.mubr.bf16.gmra.mrb[156].mxu1 %v10048_v46  ;;  %3995 = vmatmul.mubr.bf16.gmra.mrb[220].mxu0 %v10048_v46  ;;  %vm15346_vm5 = vmmov %vm15345_vm15  ;;  %v15347_v40 = vrot.slane %v10500_v23, 1  ;;  %vm10978_vm6 = vcmp.gt.s32.totalorder %v665_v33, 0 }
 0x247   : > { %v2182_v59 = vsel %vm15345_vm15, %v2165_v13, %v2166_v20  ;;  %v2135_v49 = vadd.f32 %v1956_v52, %v1723_v48  ;;  %v2167_v24 = vrot.slane %v8128_v47, 1  ;;  %3825 = vmatprep.mubr.bf16.mxu1 %v10068_v19  ;;  %4002 = vmatprep.mubr.bf16.mxu0 %v10068_v19  ;;  %v15348_v13 = vrot.slane %v10497_v42, 1  ;;  %vm15349_vm15 = vmmov %vm15346_vm5 }
 0x248   : > { %v2326_v37 = vsel %vm10949_vm3, %v2182_v59, 0.0  ;;  %v15351_v48 = vmov 0  ;;  %v635_v55 = vadd.s32 224, %v9589_v25  ;;  %v15354_v35 = vmov 0 }
 0x249   : > { %v1727_v26 = vpop.f32.mrb[52].mxu1  ;;  %v8129_v27 = vpop.f32.mrb[116].mxu0  ;;  %v10966_v30 = vadd.f32 %v2326_v37, %v2133_v56  ;;  %v2181_v46 = vsel %vm15346_vm5, %v2166_v20, %v2167_v24  ;;  %v10976_v47 = vsel %vm15349_vm15, %v15348_v13, %v15347_v40  ;;  %v15352_v48 = vsel %vm10978_vm6, 4294967295, %v15351_v48 }
 0x24a   : > { %15350 = vst [vmem:[#allocation89_spill] sm:$0xff] %v10976_v47  ;;  %v1943_v19 = vrot.slane %v1727_v26, 7  ;;  %v1729_v52 = vpop.f32.mrb[53].mxu1  ;;  %v8130_v56 = vpop.f32.mrb[117].mxu0  ;;  %v10983_v38 = vadd.f32 %v2181_v46, %v2134_v16  ;;  %vm15353_vm5 = vcmp.lt.s32.totalorder %v9589_v25, 1  ;;  %v634_v26 = vadd.s32 216, %v9589_v25 }
 0x24b   : > { %v8131_v20 = vadd.f32 %v8130_v56, %v8129_v27  ;;  %v1731_v21 = vpop.f32.mrb[54].mxu1  ;;  %v8132_v59 = vpop.f32.mrb[118].mxu0  ;;  %vm10990_vm15 = vcmp.lt.s32.totalorder %v664_v12, 15  ;;  %vm15357_vm3 = vmmov %vm15353_vm5 }
 0x24c   : > { %v1955_v37 = vsel %vm15353_vm5, %v1942_v54, %v1943_v19  ;;  %v1944_v23 = vrot.slane %v1731_v21, 7  ;;  %v1733_v40 = vpop.f32.mrb[55].mxu1  ;;  %v8133_v13 = vpop.f32.mrb[119].mxu0  ;;  %v15355_v35 = vsel %vm10990_vm15, 4294967295, %v15354_v35  ;;  %v667_v54 = vand.u32 15, %v635_v55 }
 0x24d   : > { %v2104_v33 = vsel %vm10978_vm6, %v1955_v37, 0.0  ;;  %v2168_v47 = vrot.slane %v8131_v20, 1  ;;  %v8134_v42 = vadd.f32 %v8133_v13, %v8132_v59  ;;  %15356 = vst [vmem:[#allocation90_spill] sm:$0xff] %v15355_v35  ;;  %vm15358_vm5 = vcmp.lt.s32.totalorder %v9589_v25, 7  ;;  %v15370_v35 = vld [vmem:[#allocation17_spill] sm:$0xff] }
 0x24e   : > { %v2136_v16 = vadd.f32 %v2104_v33, %v1729_v52  ;;  %v1954_v27 = vsel %vm15357_vm3, %v1943_v19, %v1944_v23  ;;  %3826 = vmatmul.mubr.bf16.gmra.mrb[160].mxu1 %v10066_v17  ;;  %4003 = vmatmul.mubr.bf16.gmra.mrb[224].mxu0 %v10066_v17  ;;  %v666_v52 = vand.u32 15, %v634_v26  ;;  %vm15359_vm3 = vmmov %vm15358_vm5 }
 0x24f   : > { %v2180_v46 = vsel %vm15358_vm5, %v2167_v24, %v2168_v47  ;;  %v2137_v56 = vadd.f32 %v1954_v27, %v1733_v40  ;;  %v2169_v21 = vrot.slane %v8134_v42, 1  ;;  %3835 = vmatprep.mubr.bf16.mxu1 %v10093_v62  ;;  %4010 = vmatprep.mubr.bf16.mxu0 %v10093_v62  ;;  %vm11008_vm5 = vcmp.gt.s32.totalorder %v667_v54, 0  ;;  %v15364_v27 = vld [vmem:[#allocation10_spill] sm:$0xff] }
 0x250   : > { %v2328_v12 = vsel %vm10990_vm15, %v2180_v46, 0.0  ;;  %v15360_v24 = vmov 0  ;;  %vm15365_vm15 = vcmp.lt.s32.totalorder %v9589_v25, 1  ;;  %v15366_v54 = vmov 0 }
 0x251   : > { %v1737_v20 = vpop.f32.mrb[56].mxu1  ;;  %v8135_v19 = vpop.f32.mrb[120].mxu0  ;;  %v11004_v59 = vadd.f32 %v2328_v12, %v2135_v49  ;;  %v2179_v17 = vsel %vm15359_vm3, %v2168_v47, %v2169_v21  ;;  %v15361_v24 = vsel %vm11008_vm5, 4294967295, %v15360_v24  ;;  %vm11018_vm3 = vcmp.lt.s32.totalorder %v666_v52, 15  ;;  %vm15369_vm6 = vmmov %vm15365_vm15 }
 0x252   : > { %v1945_v55 = vrot.slane %v1737_v20, 7  ;;  %v1739_v37 = vpop.f32.mrb[57].mxu1  ;;  %15362 = vst [vmem:[#allocation91_spill] sm:$0xff] %v15361_v24  ;;  %v8136_v42 = vpop.f32.mrb[121].mxu0  ;;  %v11012_v40 = vadd.f32 %v2179_v17, %v2136_v16  ;;  %v15367_v54 = vsel %vm11018_vm3, 4294967295, %v15366_v54 }
 0x253   : > { %v8137_v13 = vadd.f32 %v8136_v42, %v8135_v19  ;;  %v1741_v26 = vpop.f32.mrb[58].mxu1  ;;  %v8138_v33 = vpop.f32.mrb[122].mxu0  ;;  %15368 = vst [vmem:[#allocation93_spill] sm:$0xff] %v15367_v54  ;;  %v636_v19 = vadd.s32 232, %v9589_v25 }
 0x254   : > { %15363 = vst [vmem:[#allocation92_spill] sm:$0xff] %v11012_v40  ;;  %v1953_v46 = vsel %vm15365_vm15, %v1944_v23, %v1945_v55  ;;  %v1946_v47 = vrot.slane %v1741_v26, 7  ;;  %v1743_v12 = vpop.f32.mrb[59].mxu1  ;;  %v8139_v20 = vpop.f32.mrb[123].mxu0  ;;  %v638_v23 = vadd.s32 248, %v9589_v25  ;;  %vm15371_vm15 = vcmp.lt.s32.totalorder %v9589_v25, 7 }
 0x255   : > { %v2106_v16 = vsel %vm11008_vm5, %v1953_v46, 0.0  ;;  %v2170_v17 = vrot.slane %v8137_v13, 1  ;;  %v8140_v62 = vadd.f32 %v8139_v20, %v8138_v33  ;;  %v15372_v46 = vld [vmem:[#allocation21_spill] sm:$0xff] }
 0x256   : > { %v2138_v42 = vadd.f32 %v2106_v16, %v1739_v37  ;;  %v1952_v49 = vsel %vm15369_vm6, %v1945_v55, %v1946_v47  ;;  %3836 = vmatmul.mubr.bf16.gmra.mrb[164].mxu1 %v15370_v35  ;;  %4011 = vmatmul.mubr.bf16.gmra.mrb[228].mxu0 %v15370_v35  ;;  %v639_v37 = vand.u32 15, %v9589_v25  ;;  %vm15374_vm6 = vmmov %vm15371_vm15  ;;  %v668_v16 = vand.u32 15, %v636_v19 }
 0x257   : > { %v2178_v52 = vsel %vm15371_vm15, %v2169_v21, %v2170_v17  ;;  %v2139_v26 = vadd.f32 %v1952_v49, %v1743_v12  ;;  %v2171_v24 = vrot.slane %v8140_v62, 1  ;;  %3845 = vmatprep.mubr.bf16.mxu1 %v15372_v46  ;;  %4018 = vmatprep.mubr.bf16.mxu0 %v15372_v46  ;;  %v15375_v21 = vrot.slane %v15364_v27, 1  ;;  %vm15377_vm15 = vmmov %vm15374_vm6 }
 0x258   : > { %v2330_v55 = vsel %vm11018_vm3, %v2178_v52, 0.0  ;;  %v15376_v62 = vrot.slane %v10539_v34, 1  ;;  %v670_v40 = vand.u32 15, %v638_v23  ;;  %vm11053_vm3 = vcmp.gt.s32.totalorder %v639_v37, 0 }
 0x259   : > { %v1747_v13 = vpop.f32.mrb[60].mxu1  ;;  %v8141_v33 = vpop.f32.mrb[124].mxu0  ;;  %v11037_v20 = vadd.f32 %v2330_v55, %v2137_v56  ;;  %v2177_v35 = vsel %vm15374_vm6, %v2170_v17, %v2171_v24  ;;  %vm15379_vm6 = vcmp.lt.s32.totalorder %v9589_v25, 1  ;;  %v15380_v27 = vmov 0 }
 0x25a   : > { %v11047_v49 = vsel %vm15377_vm15, %v15376_v62, %v15375_v21  ;;  %v1947_v12 = vrot.slane %v1747_v13, 7  ;;  %v1749_v46 = vpop.f32.mrb[61].mxu1  ;;  %v8142_v54 = vpop.f32.mrb[125].mxu0  ;;  %v11049_v52 = vadd.f32 %v2177_v35, %v2138_v42  ;;  %v15381_v27 = vsel %vm11053_vm3, 4294967295, %v15380_v27  ;;  %v15383_v62 = vld [vmem:[#allocation61_spill] sm:$0xff]  ;;  %vm15389_vm5 = vmmov %vm15379_vm6 }
 0x25b   : > { %15373 = vst [vmem:[#allocation17_spill] sm:$0xff] %v11037_v20  ;;  %15378 = vst [vmem:[#allocation21_spill] sm:$0xff] %v11047_v49  ;;  %v8143_v56 = vadd.f32 %v8142_v54, %v8141_v33  ;;  %v1751_v55 = vpop.f32.mrb[62].mxu1  ;;  %v8144_v20 = vpop.f32.mrb[126].mxu0  ;;  %vm11059_vm15 = vcmp.lt.s32.totalorder %v668_v16, 15  ;;  %v15384_v23 = vmov 0 }
 0x25c   : > { %v1951_v17 = vsel %vm15379_vm6, %v1946_v47, %v1947_v12  ;;  %v1948_v19 = vrot.slane %v1751_v55, 7  ;;  %15382 = vst [vmem:[#allocation94_spill] sm:$0xff] %v15381_v27  ;;  %v1753_v34 = vpop.f32.mrb[63].mxu1  ;;  %v8145_v21 = vpop.f32.mrb[127].mxu0  ;;  %v15385_v23 = vsel %vm11059_vm15, 4294967295, %v15384_v23  ;;  %v15387_v33 = vld [vmem:[#allocation15_spill] sm:$0xff] }
 0x25d   : > { %v2108_v13 = vsel %vm10549_vm7, %v1951_v17, 0.0  ;;  %v2172_v49 = vrot.slane %v8143_v56, 1  ;;  %v8146_v42 = vadd.f32 %v8145_v21, %v8144_v20  ;;  %15386 = vst [vmem:[#allocation95_spill] sm:$0xff] %v15385_v23  ;;  %v15388_v35 = vrot.slane %v15387_v33, 7  ;;  %v15390_v55 = vld [vmem:[#allocation20_spill] sm:$0xff]  ;;  %v15395_v21 = vld [vmem:[#allocation26_spill] sm:$0xff] }
 0x25e   : > { %v2140_v54 = vadd.f32 %v2108_v13, %v1749_v46  ;;  %v1950_v37 = vsel %vm15389_vm5, %v1947_v12, %v1948_v19  ;;  %3846 = vmatmul.mubr.bf16.gmra.mrb[168].mxu1 %v15390_v55  ;;  %4019 = vmatmul.mubr.bf16.gmra.mrb[232].mxu0 %v15390_v55  ;;  %vm11071_vm7 = vcmp.lt.s32.totalorder %v670_v40, 15  ;;  %v15391_v56 = vmov 0  ;;  %v15396_v12 = vld [vmem:[#allocation16_spill] sm:$0xff]  ;;  %vm15399_vm5 = vmmov %vm15394_vm4 }
 0x25f   : > { %v1981_v47 = vsel %vm15379_vm6, %v1948_v19, %v15388_v35  ;;  %v15392_v56 = vsel %vm11071_vm7, 4294967295, %v15391_v56  ;;  %v2176_v20 = vsel %vm15394_vm4, %v2171_v24, %v2172_v49  ;;  %v2141_v46 = vadd.f32 %v1950_v37, %v1753_v34  ;;  %3855 = vmatprep.mubr.bf16.mxu1 %v15395_v21  ;;  %4026 = vmatprep.mubr.bf16.mxu0 %v15395_v21  ;;  %v15397_v13 = vld [vmem:[#allocation40_spill] sm:$0xff]  ;;  %v15401_v21 = vld [vmem:[#allocation43_spill] sm:$0xff] }
 0x260   : > { %15393 = vst [vmem:[#allocation15_spill] sm:$0xff] %v15392_v56  ;;  %v2078_v16 = vsel %vm11053_vm3, %v1981_v47, 0.0  ;;  %v2173_v17 = vrot.slane %v8146_v42, 1  ;;  %v2332_v40 = vsel %vm11059_vm15, %v2176_v20, 0.0  ;;  %v15398_v33 = vrot.slane %v15397_v13, 1 }
 0x261   : > { %v2110_v19 = vadd.f32 %v2078_v16, %v15396_v12  ;;  %v11088_v24 = vpop.f32.mrb[64].mxu1  ;;  %v8163_v55 = vpop.f32.mrb[128].mxu0  ;;  %v11090_v47 = vadd.f32 %v2332_v40, %v2139_v26 }
 0x262   : > { %v2206_v35 = vsel %vm15399_vm5, %v2173_v17, %v15398_v33  ;;  %v2175_v34 = vsel %vm15394_vm4, %v2172_v49, %v2173_v17  ;;  %v11094_v42 = vpop.f32.mrb[65].mxu1  ;;  %v8164_v37 = vpop.f32.mrb[129].mxu0  ;;  %v15000_v40 = vrot.slane %v11088_v24, 7  ;;  %vm15407_vm5 = vmmov %vm15394_vm4 }
 0x263   : > { %15400 = vst [vmem:[#allocation20_spill] sm:$0xff] %v11094_v42  ;;  %v11096_v16 = vadd.f32 %v2175_v34, %v2140_v54  ;;  %v11099_v20 = vadd.f32 %v15401_v21, %v2110_v19  ;;  %v2334_v12 = vsel %vm11071_vm7, %v2206_v35, 0.0  ;;  %v11103_v13 = vadd.f32 %v8164_v37, %v8163_v55  ;;  %v2661_v33 = vpop.f32.mrb[66].mxu1  ;;  %v8166_v23 = vpop.f32.mrb[130].mxu0  ;;  %v15405_v35 = vld [vmem:[#allocation68_spill] sm:$0xff]  ;;  %v15406_v34 = vld [vmem:[#allocation31_spill] sm:$0xff]  ;;  %vm15409_vm4 = vmmov %vm15379_vm6 }
 0x264   : > { %v11105_v26 = vadd.f32 %v2334_v12, %v2141_v46  ;;  %v2978_v49 = vrot.slane %v2661_v33, 7  ;;  %v2663_v17 = vpop.f32.mrb[67].mxu1  ;;  %v8167_v42 = vpop.f32.mrb[131].mxu0 }
 0x265   : > { %15402 = vst [vmem:[#allocation26_spill] sm:$0xff] %v11099_v20  ;;  %15403 = vst [vmem:[#allocation16_spill] sm:$0xff] %v11103_v13  ;;  %v8168_v27 = vadd.f32 %v8167_v42, %v8166_v23  ;;  %v15004_v19 = vrot.slane %v11103_v13, 1 }
 0x266   : > { %15404 = vst [vmem:[#allocation40_spill] sm:$0xff] %v11105_v26  ;;  %v3039_v54 = vsel %vm15379_vm6, %v15000_v40, %v2978_v49  ;;  %3856 = vmatmul.mubr.bf16.gmra.mrb[172].mxu1 %v10140_v9  ;;  %4027 = vmatmul.mubr.bf16.gmra.mrb[236].mxu0 %v10140_v9  ;;  %vm15411_vm6 = vmmov %vm15409_vm4 }
 0x267   : > { %v3074_v46 = vadd.f32 %v3039_v54, %v15405_v35  ;;  %v3138_v55 = vrot.slane %v8168_v27, 1  ;;  %3865 = vmatprep.mubr.bf16.mxu1 %v15406_v34  ;;  %4034 = vmatprep.mubr.bf16.mxu0 %v15406_v34 }
 0x269   : > { %v3106_v37 = vadd.f32 %v3074_v46, %v2663_v17  ;;  %v11122_v23 = vsel %vm15407_vm5, %v15004_v19, %v3138_v55  ;;  %v2667_v42 = vpop.f32.mrb[68].mxu1  ;;  %v8169_v21 = vpop.f32.mrb[132].mxu0 }
 0x26a   : > { %15408 = vst [vmem:[#allocation43_spill] sm:$0xff] %v11122_v23  ;;  %v2979_v12 = vrot.slane %v2667_v42, 7  ;;  %v2669_v9 = vpop.f32.mrb[69].mxu1  ;;  %v8170_v33 = vpop.f32.mrb[133].mxu0 }
 0x26b   : > { %v8171_v40 = vadd.f32 %v8170_v33, %v8169_v21  ;;  %v2671_v56 = vpop.f32.mrb[70].mxu1  ;;  %v8172_v54 = vpop.f32.mrb[134].mxu0  ;;  %v15412_v33 = vld [vmem:[#allocation35_spill] sm:$0xff] }
 0x26c   : > { %v3038_v27 = vsel %vm15409_vm4, %v2978_v49, %v2979_v12  ;;  %v2980_v35 = vrot.slane %v2671_v56, 7  ;;  %v2673_v34 = vpop.f32.mrb[71].mxu1  ;;  %v8173_v17 = vpop.f32.mrb[135].mxu0  ;;  %vm15414_vm4 = vmmov %vm15407_vm5 }
 0x26d   : > { %v3043_v13 = vsel %vm10578_vm8, %v3038_v27, 0.0  ;;  %v3139_v20 = vrot.slane %v8171_v40, 1  ;;  %v8174_v19 = vadd.f32 %v8173_v17, %v8172_v54 }
 0x26e   : > { %v3075_v23 = vadd.f32 %v3043_v13, %v10616_v5  ;;  %v3037_v42 = vsel %vm15411_vm6, %v2979_v12, %v2980_v35  ;;  %3866 = vmatmul.mubr.bf16.gmra.mrb[176].mxu1 %v10176_v14  ;;  %4035 = vmatmul.mubr.bf16.gmra.mrb[240].mxu0 %v10176_v14 }
 0x26f   : > { %v3198_v49 = vsel %vm15407_vm5, %v3138_v55, %v3139_v20  ;;  %v3076_v56 = vadd.f32 %v3037_v42, %v10642_v50  ;;  %v3140_v21 = vrot.slane %v8174_v19, 1  ;;  %3875 = vmatprep.mubr.bf16.mxu1 %v15412_v33  ;;  %4042 = vmatprep.mubr.bf16.mxu0 %v15412_v33  ;;  %vm15416_vm5 = vmmov %vm15411_vm6 }
 0x270   : > { %v3107_v40 = vadd.f32 %v3075_v23, %v2669_v9  ;;  %v3202_v5 = vsel %vm10591_vm9, %v3198_v49, 0.0 }
 0x271   : > { %v3108_v13 = vadd.f32 %v3076_v56, %v2673_v34  ;;  %v2677_v12 = vpop.f32.mrb[72].mxu1  ;;  %v8175_v27 = vpop.f32.mrb[136].mxu0  ;;  %v11140_v17 = vadd.f32 %v3202_v5, %v3106_v37  ;;  %v3197_v14 = vsel %vm15414_vm4, %v3139_v20, %v3140_v21  ;;  %v15415_v56 = vld [vmem:[#allocation29_spill] sm:$0xff] }
 0x272   : > { %v2981_v55 = vrot.slane %v2677_v12, 7  ;;  %v2679_v46 = vpop.f32.mrb[73].mxu1  ;;  %v8176_v50 = vpop.f32.mrb[137].mxu0  ;;  %v11144_v19 = vadd.f32 %v3197_v14, %v3107_v40 }
 0x273   : > { %v8177_v42 = vadd.f32 %v8176_v50, %v8175_v27  ;;  %v2681_v26 = vpop.f32.mrb[74].mxu1  ;;  %v8178_v33 = vpop.f32.mrb[138].mxu0 }
 0x274   : > { %v3036_v23 = vsel %vm15411_vm6, %v2980_v35, %v2981_v55  ;;  %v2982_v9 = vrot.slane %v2681_v26, 7  ;;  %v2683_v34 = vpop.f32.mrb[75].mxu1  ;;  %v8179_v49 = vpop.f32.mrb[139].mxu0  ;;  %vm15418_vm6 = vmmov %vm15414_vm4 }
 0x275   : > { %v3045_v37 = vsel %vm10158_vm1, %v3036_v23, 0.0  ;;  %v3141_v5 = vrot.slane %v8177_v42, 1  ;;  %v8180_v54 = vadd.f32 %v8179_v49, %v8178_v33 }
 0x276   : > { %v3077_v20 = vadd.f32 %v3045_v37, %v10659_v8  ;;  %v3035_v40 = vsel %vm15416_vm5, %v2981_v55, %v2982_v9  ;;  %3876 = vmatmul.mubr.bf16.gmra.mrb[180].mxu1 %v10203_v3  ;;  %4043 = vmatmul.mubr.bf16.gmra.mrb[244].mxu0 %v10203_v3 }
 0x277   : > { %v3196_v35 = vsel %vm15414_vm4, %v3140_v21, %v3141_v5  ;;  %v3078_v26 = vadd.f32 %v3035_v40, %v10683_v41  ;;  %v3142_v12 = vrot.slane %v8180_v54, 1  ;;  %3885 = vmatprep.mubr.bf16.mxu1 %v10242_v7  ;;  %4050 = vmatprep.mubr.bf16.mxu0 %v10242_v7  ;;  %vm15420_vm4 = vmmov %vm15416_vm5 }
 0x278   : > { %v3109_v27 = vadd.f32 %v3077_v20, %v2679_v46  ;;  %v3204_v8 = vsel %vm10622_vm10, %v3196_v35, 0.0  ;;  %v15419_v35 = vld [vmem:[#allocation73_spill] sm:$0xff]  ;;  %vm15464_vm10 = vcmp.lt.s32.totalorder %v9589_v25, 7 }
 0x279   : > { %v3110_v50 = vadd.f32 %v3078_v26, %v2683_v34  ;;  %v2687_v55 = vpop.f32.mrb[76].mxu1  ;;  %v8181_v42 = vpop.f32.mrb[140].mxu0  ;;  %v11162_v33 = vadd.f32 %v3204_v8, %v3108_v13  ;;  %v3195_v3 = vsel %vm15418_vm6, %v3141_v5, %v3142_v12 }
 0x27a   : > { %v2983_v21 = vrot.slane %v2687_v55, 7  ;;  %v2689_v23 = vpop.f32.mrb[77].mxu1  ;;  %v8182_v41 = vpop.f32.mrb[141].mxu0  ;;  %v11166_v54 = vadd.f32 %v3195_v3, %v3109_v27  ;;  %v15421_v3 = vmov 0.0|0.0  }
 0x27b   : > { %v8183_v49 = vadd.f32 %v8182_v41, %v8181_v42  ;;  %v2691_v37 = vpop.f32.mrb[78].mxu1  ;;  %v8184_v7 = vpop.f32.mrb[142].mxu0 }
 0x27c   : > { %v3034_v46 = vsel %vm15416_vm5, %v2982_v9, %v2983_v21  ;;  %v2984_v20 = vrot.slane %v2691_v37, 7  ;;  %v2693_v34 = vpop.f32.mrb[79].mxu1  ;;  %v8185_v40 = vpop.f32.mrb[143].mxu0  ;;  %vm15424_vm5 = vmmov %vm15418_vm6 }
 0x27d   : > { %v3047_v13 = vsel %vm10655_vm11, %v3034_v46, 0.0  ;;  %v3143_v26 = vrot.slane %v8183_v49, 1  ;;  %v8186_v8 = vadd.f32 %v8185_v40, %v8184_v7  ;;  %v15422_v49 = vld [vmem:[#allocation75_spill] sm:$0xff]  ;;  %vm15569_vm11 = vcmp.lt.s32.totalorder %v9589_v25, 7 }
 0x27e   : > { %v3079_v5 = vadd.f32 %v3047_v13, %v10688_v22  ;;  %v3033_v27 = vsel %vm15420_vm4, %v2983_v21, %v2984_v20  ;;  %3886 = vmatmul.mubr.bf16.gmra.mrb[184].mxu1 %v10240_v39  ;;  %4051 = vmatmul.mubr.bf16.gmra.mrb[248].mxu0 %v10240_v39 }
 0x27f   : > { %v3194_v9 = vsel %vm15418_vm6, %v3142_v12, %v3143_v26  ;;  %v3080_v55 = vadd.f32 %v3033_v27, %v10711_v63  ;;  %v3144_v42 = vrot.slane %v8186_v8, 1  ;;  %3895 = vmatprep.mubr.bf16.mxu1 %v15421_v3  ;;  %4058 = vmatprep.mubr.bf16.mxu0 %v15421_v3  ;;  %vm15427_vm6 = vmmov %vm15420_vm4 }
 0x280   : > { %v3111_v41 = vadd.f32 %v3079_v5, %v2689_v23  ;;  %v3206_v22 = vsel %vm10668_vm12, %v3194_v9, 0.0  ;;  %vm15475_vm12 = vcmp.lt.s32.totalorder %v9589_v25, 7 }
 0x281   : > { %v3112_v37 = vadd.f32 %v3080_v55, %v2693_v34  ;;  %v2697_v21 = vpop.f32.mrb[80].mxu1  ;;  %v8187_v7 = vpop.f32.mrb[144].mxu0  ;;  %v11184_v46 = vadd.f32 %v3206_v22, %v3110_v50  ;;  %v3193_v39 = vsel %vm15424_vm5, %v3143_v26, %v3144_v42  ;;  %vm15479_vm1 = vmmov %vm15475_vm12 }
 0x282   : > { %v2985_v12 = vrot.slane %v2697_v21, 7  ;;  %v2699_v40 = vpop.f32.mrb[81].mxu1  ;;  %v8188_v63 = vpop.f32.mrb[145].mxu0  ;;  %v11188_v13 = vadd.f32 %v3193_v39, %v3111_v41 }
 0x283   : > { %15423 = vst [vmem:[#allocation68_spill] sm:$0xff] %v11184_v46  ;;  %v8189_v8 = vadd.f32 %v8188_v63, %v8187_v7  ;;  %v2701_v27 = vpop.f32.mrb[82].mxu1  ;;  %v8190_v14 = vpop.f32.mrb[146].mxu0 }
 0x284   : > { %15425 = vst [vmem:[#allocation31_spill] sm:$0xff] %v11188_v13  ;;  %v3032_v23 = vsel %vm15420_vm4, %v2984_v20, %v2985_v12  ;;  %v2986_v5 = vrot.slane %v2701_v27, 7  ;;  %v2703_v34 = vpop.f32.mrb[83].mxu1  ;;  %v8191_v9 = vpop.f32.mrb[147].mxu0  ;;  %vm15430_vm4 = vmmov %vm15424_vm5 }
 0x285   : > { %v3049_v50 = vsel %vm10220_vm2, %v3032_v23, 0.0  ;;  %v3145_v22 = vrot.slane %v8189_v8, 1  ;;  %v8192_v46 = vadd.f32 %v8191_v9, %v8190_v14  ;;  %vm15440_vm2 = vcmp.lt.s32.totalorder %v9589_v25, 7 }
 0x286   : > { %v3081_v26 = vadd.f32 %v3049_v50, %v10727_v44  ;;  %v3031_v41 = vsel %vm15427_vm6, %v2985_v12, %v2986_v5  ;;  %3896 = vmatmul.mubr.bf16.gmra.mrb[188].mxu1 %v15421_v3  ;;  %4059 = vmatmul.mubr.bf16.gmra.mrb[252].mxu0 %v15421_v3 }
 0x287   : > { %v3192_v20 = vsel %vm15424_vm5, %v3144_v42, %v3145_v22  ;;  %v3082_v21 = vadd.f32 %v3031_v41, %v10748_v60  ;;  %v3146_v7 = vrot.slane %v8192_v46, 1  ;;  %v9022_v60 = vld [vmem:[%s14797_s6] sm:$0xff]   ;;  %vm15432_vm5 = vmmov %vm15427_vm6 }
 0x288   : > { %v3113_v39 = vadd.f32 %v3081_v26, %v2699_v40  ;;  %v3208_v8 = vsel %vm10694_vm13, %v3192_v20, 0.0  ;;  %8559 = vmatprep.subr.bf16.mxu1 %v9022_v60  ;;  %vm15436_vm13 = vmmov %vm15430_vm4 }
 0x289   : > { %v3114_v14 = vadd.f32 %v3082_v21, %v2703_v34  ;;  %v2707_v27 = vpop.f32.mrb[84].mxu1  ;;  %v8193_v44 = vpop.f32.mrb[148].mxu0  ;;  %v11204_v23 = vadd.f32 %v3208_v8, %v3112_v37  ;;  %v3191_v12 = vsel %vm15430_vm4, %v3145_v22, %v3146_v7  ;;  %8560 = vmatpush3.bf16.msra.mxu1 %v9022_v60 }
 0x28a   : > { %v2987_v9 = vrot.slane %v2707_v27, 7  ;;  %v2709_v3 = vpop.f32.mrb[85].mxu1  ;;  %v8194_v50 = vpop.f32.mrb[149].mxu0  ;;  %v11208_v55 = vadd.f32 %v3191_v12, %v3113_v39 }
 0x28b   : > { %15429 = vst [vmem:[#allocation35_spill] sm:$0xff] %v11204_v23  ;;  %v8195_v42 = vadd.f32 %v8194_v50, %v8193_v44  ;;  %v2711_v46 = vpop.f32.mrb[86].mxu1  ;;  %v8196_v40 = vpop.f32.mrb[150].mxu0  ;;  %v15433_v50 = vld [vmem:[#allocation78_spill] sm:$0xff] }
 0x28c   : > { %15431 = vst [vmem:[#allocation29_spill] sm:$0xff] %v11208_v55  ;;  %v3030_v34 = vsel %vm15427_vm6, %v2986_v5, %v2987_v9  ;;  %v2988_v37 = vrot.slane %v2711_v46, 7  ;;  %v2713_v26 = vpop.f32.mrb[87].mxu1  ;;  %v8197_v41 = vpop.f32.mrb[151].mxu0  ;;  %vm15434_vm6 = vnez %v15433_v50 }
 0x28d   : > { %v3051_v22 = vsel %vm10723_vm14, %v3030_v34, 0.0  ;;  %v3147_v20 = vrot.slane %v8195_v42, 1  ;;  %v8198_v21 = vadd.f32 %v8197_v41, %v8196_v40  ;;  %vm15493_vm14 = vcmp.lt.s32.totalorder %v9589_v25, 7 }
 0x28e   : > { %v3083_v39 = vadd.f32 %v3051_v22, %v10753_v36  ;;  %v3029_v8 = vsel %vm15432_vm5, %v2987_v9, %v2988_v37 }
 0x28f   : > { %v3190_v27 = vsel %vm15430_vm4, %v3146_v7, %v3147_v20  ;;  %v3084_v5 = vadd.f32 %v3029_v8, %v10774_v43  ;;  %v3148_v44 = vrot.slane %v8198_v21, 1  ;;  %vm15438_vm4 = vnez %v15217_v28 }
 0x290   : > { %v3115_v12 = vadd.f32 %v3083_v39, %v2709_v3  ;;  %v3210_v46 = vsel %vm15434_vm6, %v3190_v27, 0.0  ;;  %vm15468_vm6 = vmmov %vm15464_vm10 }
 0x291   : > { %v3116_v63 = vadd.f32 %v3084_v5, %v2713_v26  ;;  %v2717_v34 = vpop.f32.mrb[88].mxu1  ;;  %v8199_v42 = vpop.f32.mrb[152].mxu0  ;;  %v11225_v40 = vadd.f32 %v3210_v46, %v3114_v14  ;;  %v3189_v36 = vsel %vm15436_vm13, %v3147_v20, %v3148_v44  ;;  %vm15439_vm13 = vmmov %vm15432_vm5 }
 0x292   : > { %v2989_v60 = vrot.slane %v2717_v34, 7  ;;  %v2719_v9 = vpop.f32.mrb[89].mxu1  ;;  %v8200_v41 = vpop.f32.mrb[153].mxu0  ;;  %v11229_v22 = vadd.f32 %v3189_v36, %v3115_v12  ;;  %v15441_v36 = vld [vmem:[#allocation79_spill] sm:$0xff] }
 0x293   : > { %15435 = vst [vmem:[#allocation73_spill] sm:$0xff] %v11225_v40  ;;  %v8201_v7 = vadd.f32 %v8200_v41, %v8199_v42  ;;  %v2721_v43 = vpop.f32.mrb[90].mxu1  ;;  %v8202_v21 = vpop.f32.mrb[154].mxu0 }
 0x294   : > { %15437 = vst [vmem:[#allocation75_spill] sm:$0xff] %v11229_v22  ;;  %v3028_v3 = vsel %vm15432_vm5, %v2988_v37, %v2989_v60  ;;  %v2990_v39 = vrot.slane %v2721_v43, 7  ;;  %v2723_v26 = vpop.f32.mrb[91].mxu1  ;;  %v8203_v8 = vpop.f32.mrb[155].mxu0  ;;  %vm15442_vm5 = vnez %v15441_v36  ;;  %v15500_v36 = vld [vmem:[#allocation87_spill] sm:$0xff] }
 0x295   : > { %v3053_v14 = vsel %vm15438_vm4, %v3028_v3, 0.0  ;;  %v3149_v27 = vrot.slane %v8201_v7, 1  ;;  %v8204_v5 = vadd.f32 %v8203_v8, %v8202_v21  ;;  %vm15444_vm4 = vmmov %vm15440_vm2 }
 0x296   : > { %v3085_v20 = vadd.f32 %v3053_v14, %v10782_v58  ;;  %v3027_v12 = vsel %vm15439_vm13, %v2989_v60, %v2990_v39 }
 0x297   : > { %v3188_v46 = vsel %vm15440_vm2, %v3148_v44, %v3149_v27  ;;  %v3086_v34 = vadd.f32 %v3027_v12, %v10805_v57  ;;  %v3150_v42 = vrot.slane %v8204_v5, 1  ;;  %v9023_v57 = vld [vmem:[%s14797_s6 + $0x8] sm:$0xff]   ;;  %vm15446_vm2 = vmmov %vm15439_vm13  ;;  %vm15448_vm13 = vcmp.lt.s32.totalorder %v9589_v25, 7 }
 0x298   : > { %v3117_v37 = vadd.f32 %v3085_v20, %v2719_v9  ;;  %v3212_v41 = vsel %vm15442_vm5, %v3188_v46, 0.0  ;;  %8561 = vmatprep.subr.bf16.mxu1 %v9023_v57  ;;  %vm15451_vm5 = vmmov %vm15448_vm13 }
 0x299   : > { %v3118_v43 = vadd.f32 %v3086_v34, %v2723_v26  ;;  %v2727_v28 = vpop.f32.mrb[92].mxu1  ;;  %v8205_v3 = vpop.f32.mrb[156].mxu0  ;;  %v11243_v7 = vadd.f32 %v3212_v41, %v3116_v63  ;;  %v3187_v58 = vsel %vm15444_vm4, %v3149_v27, %v3150_v42  ;;  %8562 = vmatpush3.bf16.msra.mxu1 %v9023_v57  ;;  %vm15447_vm4 = vmmov %vm15446_vm2 }
 0x29a   : > { %v2991_v21 = vrot.slane %v2727_v28, 7  ;;  %v2729_v60 = vpop.f32.mrb[93].mxu1  ;;  %v8206_v8 = vpop.f32.mrb[157].mxu0  ;;  %v11247_v14 = vadd.f32 %v3187_v58, %v3117_v37 }
 0x29b   : > { %15443 = vst [vmem:[#allocation96_spill] sm:$0xff] %v11243_v7  ;;  %v8207_v44 = vadd.f32 %v8206_v8, %v8205_v3  ;;  %v2731_v9 = vpop.f32.mrb[94].mxu1  ;;  %v8208_v5 = vpop.f32.mrb[158].mxu0 }
 0x29c   : > { %15445 = vst [vmem:[#allocation97_spill] sm:$0xff] %v11247_v14  ;;  %v3026_v26 = vsel %vm15446_vm2, %v2990_v39, %v2991_v21  ;;  %v2992_v63 = vrot.slane %v2731_v9, 7  ;;  %v2733_v20 = vpop.f32.mrb[95].mxu1  ;;  %v8209_v12 = vpop.f32.mrb[159].mxu0  ;;  %vm15449_vm2 = vnez %v15292_v6 }
 0x29d   : > { %v3055_v28 = vsel %vm10778_vm0, %v3026_v26, 0.0  ;;  %v3151_v27 = vrot.slane %v8207_v44, 1  ;;  %v8210_v46 = vadd.f32 %v8209_v12, %v8208_v5 }
 0x29e   : > { %v3087_v34 = vadd.f32 %v3055_v28, %v10818_v18  ;;  %v3025_v37 = vsel %vm15447_vm4, %v2991_v21, %v2992_v63 }
 0x29f   : > { %v3186_v41 = vsel %vm15448_vm13, %v3150_v42, %v3151_v27  ;;  %v3088_v39 = vadd.f32 %v3025_v37, %v10841_v11  ;;  %v3152_v3 = vrot.slane %v8210_v46, 1  ;;  %vm15453_vm13 = vnez %v15226_v15 }
 0x2a0   : > { %v3119_v58 = vadd.f32 %v3087_v34, %v2729_v60  ;;  %v3214_v8 = vsel %vm15449_vm2, %v3186_v41, 0.0  ;;  %vm15455_vm2 = vcmp.lt.s32.totalorder %v9589_v25, 7 }
 0x2a1   : > { %v3120_v9 = vadd.f32 %v3088_v39, %v2733_v20  ;;  %v2737_v26 = vpop.f32.mrb[96].mxu1  ;;  %v8211_v44 = vpop.f32.mrb[160].mxu0  ;;  %v11264_v5 = vadd.f32 %v3214_v8, %v3118_v43  ;;  %v3185_v18 = vsel %vm15451_vm5, %v3151_v27, %v3152_v3  ;;  %vm15454_vm5 = vmmov %vm15447_vm4 }
 0x2a2   : > { %v2993_v57 = vrot.slane %v2737_v26, 7  ;;  %v2739_v21 = vpop.f32.mrb[97].mxu1  ;;  %v8212_v12 = vpop.f32.mrb[161].mxu0  ;;  %v11268_v28 = vadd.f32 %v3185_v18, %v3119_v58  ;;  %v15456_v18 = vld [vmem:[#allocation82_spill] sm:$0xff] }
 0x2a3   : > { %15450 = vst [vmem:[#allocation98_spill] sm:$0xff] %v11264_v5  ;;  %v8213_v42 = vadd.f32 %v8212_v12, %v8211_v44  ;;  %v2741_v11 = vpop.f32.mrb[98].mxu1  ;;  %v8214_v46 = vpop.f32.mrb[162].mxu0  ;;  %v15504_v5 = vld [vmem:[#allocation28_spill] sm:$0xff] }
 0x2a4   : > { %15452 = vst [vmem:[#allocation99_spill] sm:$0xff] %v11268_v28  ;;  %v3024_v60 = vsel %vm15447_vm4, %v2992_v63, %v2993_v57  ;;  %v2994_v34 = vrot.slane %v2741_v11, 7  ;;  %v2743_v20 = vpop.f32.mrb[99].mxu1  ;;  %v8215_v37 = vpop.f32.mrb[163].mxu0  ;;  %vm15457_vm4 = vnez %v15456_v18 }
 0x2a5   : > { %v3057_v43 = vsel %vm15453_vm13, %v3024_v60, 0.0  ;;  %v3153_v41 = vrot.slane %v8213_v42, 1  ;;  %v8216_v39 = vadd.f32 %v8215_v37, %v8214_v46  ;;  %vm15459_vm13 = vmmov %vm15455_vm2 }
 0x2a6   : > { %v3089_v27 = vadd.f32 %v3057_v43, %v10858_v61  ;;  %v3023_v58 = vsel %vm15454_vm5, %v2993_v57, %v2994_v34 }
 0x2a7   : > { %v3184_v8 = vsel %vm15455_vm2, %v3152_v3, %v3153_v41  ;;  %v3090_v26 = vadd.f32 %v3023_v58, %v10879_v2  ;;  %v3154_v44 = vrot.slane %v8216_v39, 1  ;;  %v9024_v2 = vld [vmem:[%s14797_s6 + $0x10] sm:$0xff]   ;;  %vm15461_vm2 = vmmov %vm15454_vm5 }
 0x2a8   : > { %v3121_v63 = vadd.f32 %v3089_v27, %v2739_v21  ;;  %v3216_v12 = vsel %vm15457_vm4, %v3184_v8, 0.0  ;;  %8563 = vmatprep.subr.bf16.mxu1 %v9024_v2  ;;  %vm15463_vm5 = vmmov %vm15461_vm2 }
 0x2a9   : > { %v3122_v11 = vadd.f32 %v3090_v26, %v2743_v20  ;;  %v2747_v15 = vpop.f32.mrb[100].mxu1  ;;  %v8217_v60 = vpop.f32.mrb[164].mxu0  ;;  %v11282_v42 = vadd.f32 %v3216_v12, %v3120_v9  ;;  %v3183_v61 = vsel %vm15459_vm13, %v3153_v41, %v3154_v44  ;;  %vm15462_vm13 = vnez %v15313_v51  ;;  %8564 = vmatpush3.bf16.msra.mxu1 %v9024_v2  ;;  %v6724_v51 = vld [vmem:[%s11850_s15 + $0xa8] sm:$0xff] }
 0x2aa   : > { %v2995_v46 = vrot.slane %v2747_v15, 7  ;;  %v2749_v57 = vpop.f32.mrb[101].mxu1  ;;  %v8218_v37 = vpop.f32.mrb[165].mxu0  ;;  %v11286_v43 = vadd.f32 %v3183_v61, %v3121_v63 }
 0x2ab   : > { %15458 = vst [vmem:[#allocation82_spill] sm:$0xff] %v11282_v42  ;;  %v8219_v3 = vadd.f32 %v8218_v37, %v8217_v60  ;;  %v2751_v21 = vpop.f32.mrb[102].mxu1  ;;  %v8220_v39 = vpop.f32.mrb[166].mxu0  ;;  %v15465_v37 = vld [vmem:[#allocation84_spill] sm:$0xff] }
 0x2ac   : > { %15460 = vst [vmem:[#allocation100_spill] sm:$0xff] %v11286_v43  ;;  %v3022_v20 = vsel %vm15461_vm2, %v2994_v34, %v2995_v46  ;;  %v2996_v9 = vrot.slane %v2751_v21, 7  ;;  %v2753_v27 = vpop.f32.mrb[103].mxu1  ;;  %v8221_v58 = vpop.f32.mrb[167].mxu0  ;;  %vm15466_vm2 = vnez %v15465_v37 }
 0x2ad   : > { %v3059_v15 = vsel %vm15462_vm13, %v3022_v20, 0.0  ;;  %v3155_v41 = vrot.slane %v8219_v3, 1  ;;  %v8222_v8 = vadd.f32 %v8221_v58, %v8220_v39 }
 0x2ae   : > { %v3091_v26 = vadd.f32 %v3059_v15, %v10888_v31  ;;  %v3021_v63 = vsel %vm15463_vm5, %v2995_v46, %v2996_v9 }
 0x2af   : > { %v3182_v12 = vsel %vm15464_vm10, %v3154_v44, %v3155_v41  ;;  %v3092_v34 = vadd.f32 %v3021_v63, %v10909_v45  ;;  %v3156_v60 = vrot.slane %v8222_v8, 1  ;;  %vm15470_vm10 = vmmov %vm15463_vm5 }
 0x2b0   : > { %v3123_v61 = vadd.f32 %v3091_v26, %v2749_v57  ;;  %v3218_v21 = vsel %vm15466_vm2, %v3182_v12, 0.0 }
 0x2b1   : > { %v3124_v43 = vadd.f32 %v3092_v34, %v2753_v27  ;;  %v2757_v20 = vpop.f32.mrb[104].mxu1  ;;  %v8223_v3 = vpop.f32.mrb[168].mxu0  ;;  %v11303_v39 = vadd.f32 %v3218_v21, %v3122_v11  ;;  %v3181_v31 = vsel %vm15468_vm6, %v3155_v41, %v3156_v60  ;;  %v15471_v11 = vld [vmem:[#allocation85_spill] sm:$0xff]  ;;  %v9124_v41 = vld [vmem:[%s9557_s18] sm:$0xff]   ;;  %vm15474_vm6 = vmmov %vm15470_vm10 }
 0x2b2   : > { %v2997_v46 = vrot.slane %v2757_v20, 7  ;;  %v2759_v2 = vpop.f32.mrb[105].mxu1  ;;  %v8224_v58 = vpop.f32.mrb[169].mxu0  ;;  %v11307_v44 = vadd.f32 %v3181_v31, %v3123_v61  ;;  %vm15472_vm5 = vnez %v15471_v11  ;;  %v11314_v20 = vunpack.c.l.bf16 %v9124_v41 }
 0x2b3   : > { %15467 = vst [vmem:[#allocation84_spill] sm:$0xff] %v11303_v39  ;;  %v8225_v45 = vadd.f32 %v8224_v58, %v8223_v3  ;;  %v2761_v15 = vpop.f32.mrb[106].mxu1  ;;  %v8226_v57 = vpop.f32.mrb[170].mxu0 }
 0x2b4   : > { %15469 = vst [vmem:[#allocation101_spill] sm:$0xff] %v11307_v44  ;;  %v3020_v8 = vsel %vm15470_vm10, %v2996_v9, %v2997_v46  ;;  %v2998_v27 = vrot.slane %v2761_v15, 7  ;;  %v2763_v26 = vpop.f32.mrb[107].mxu1  ;;  %v8227_v63 = vpop.f32.mrb[171].mxu0  ;;  %15473 = vst [vmem:[#allocation85_spill] sm:$0xff] %v11314_v20  ;;  %v15476_v44 = vld [vmem:[#allocation86_spill] sm:$0xff] }
 0x2b5   : > { %v3061_v12 = vsel %vm15472_vm5, %v3020_v8, 0.0  ;;  %v3157_v34 = vrot.slane %v8225_v45, 1  ;;  %v8228_v21 = vadd.f32 %v8227_v63, %v8226_v57  ;;  %vm15477_vm10 = vnez %v15476_v44 }
 0x2b6   : > { %v3093_v61 = vadd.f32 %v3061_v12, %v10917_v10  ;;  %v3019_v3 = vsel %vm15474_vm6, %v2997_v46, %v2998_v27  ;;  %v15017_v46 = vrot.slane %v11314_v20, 7 }
 0x2b7   : > { %v3180_v31 = vsel %vm15475_vm12, %v3156_v60, %v3157_v34  ;;  %v3094_v9 = vadd.f32 %v3019_v3, %v10938_v32  ;;  %v3158_v58 = vrot.slane %v8228_v21, 1  ;;  %v9025_v32 = vld [vmem:[%s14797_s6 + $0x18] sm:$0xff]   ;;  %vm15481_vm12 = vmmov %vm15474_vm6 }
 0x2b8   : > { %v3125_v15 = vadd.f32 %v3093_v61, %v2759_v2  ;;  %v3220_v8 = vsel %vm15477_vm10, %v3180_v31, 0.0  ;;  %8565 = vmatprep.subr.bf16.mxu1 %v9025_v32 }
 0x2b9   : > { %v3126_v45 = vadd.f32 %v3094_v9, %v2763_v26  ;;  %v2767_v57 = vpop.f32.mrb[108].mxu1  ;;  %v8229_v63 = vpop.f32.mrb[172].mxu0  ;;  %v11324_v41 = vadd.f32 %v3220_v8, %v3124_v43  ;;  %v3179_v10 = vsel %vm15479_vm1, %v3157_v34, %v3158_v58  ;;  %v15482_v9 = vld [vmem:[#allocation18_spill] sm:$0xff]  ;;  %vm15483_vm1 = vnez %v15332_v1  ;;  %8566 = vmatpush3.bf16.msra.mxu1 %v9025_v32 }
 0x2ba   : > { %v2999_v12 = vrot.slane %v2767_v57, 7  ;;  %v2769_v39 = vpop.f32.mrb[109].mxu1  ;;  %v8230_v60 = vpop.f32.mrb[173].mxu0  ;;  %v11329_v42 = vadd.f32 %v3179_v10, %v3125_v15 }
 0x2bb   : > { %15478 = vst [vmem:[#allocation86_spill] sm:$0xff] %v11324_v41  ;;  %v8231_v2 = vadd.f32 %v8230_v60, %v8229_v63  ;;  %v2771_v26 = vpop.f32.mrb[110].mxu1  ;;  %v8232_v21 = vpop.f32.mrb[174].mxu0  ;;  %v15484_v63 = vrot.slane %v15482_v9, 7 }
 0x2bc   : > { %15480 = vst [vmem:[#allocation102_spill] sm:$0xff] %v11329_v42  ;;  %v3018_v61 = vsel %vm15481_vm12, %v2998_v27, %v2999_v12  ;;  %v3000_v34 = vrot.slane %v2771_v26, 7  ;;  %v2773_v3 = vpop.f32.mrb[111].mxu1  ;;  %v8233_v31 = vpop.f32.mrb[175].mxu0  ;;  %v15486_v27 = vld [vmem:[#allocation19_spill] sm:$0xff]  ;;  %vm15487_vm12 = vmmov %vm15474_vm6 }
 0x2bd   : > { %v3063_v15 = vsel %vm15483_vm1, %v3018_v61, 0.0  ;;  %v3159_v57 = vrot.slane %v8231_v2, 1  ;;  %v8234_v10 = vadd.f32 %v8233_v31, %v8232_v21  ;;  %v11346_v60 = vsel %vm15474_vm6, %v15017_v46, %v15484_v63  ;;  %v15488_v42 = vld [vmem:[#allocation23_spill] sm:$0xff]  ;;  %vm15491_vm1 = vmmov %vm15474_vm6  ;;  %v15496_v46 = vld [vmem:[#allocation24_spill] sm:$0xff] }
 0x2be   : > { %15485 = vst [vmem:[#allocation103_spill] sm:$0xff] %v11346_v60  ;;  %v3095_v43 = vadd.f32 %v3063_v15, %v10943_v29  ;;  %v3017_v8 = vsel %vm15487_vm12, %v2999_v12, %v3000_v34  ;;  %v15489_v61 = vrot.slane %v15488_v42, 7  ;;  %v15490_v2 = vrot.slane %v15486_v27, 7  ;;  %v15494_v29 = vld [vmem:[#allocation27_spill] sm:$0xff]  ;;  %vm15498_vm6 = vmmov %vm15491_vm1  ;;  %v15542_v60 = vld [vmem:[#allocation46_spill] sm:$0xff] }
 0x2bf   : > { %v3178_v21 = vsel %vm15493_vm14, %v3158_v58, %v3159_v57  ;;  %v3096_v31 = vadd.f32 %v3017_v8, %v10966_v30  ;;  %v3160_v63 = vrot.slane %v8234_v10, 1  ;;  %v15495_v15 = vrot.slane %v15494_v29, 7  ;;  %vm15506_vm14 = vmmov %vm15498_vm6 }
 0x2c0   : > { %v11358_v32 = vsel %vm15491_vm1, %v15490_v2, %v15489_v61  ;;  %v15497_v12 = vrot.slane %v15496_v46, 7  ;;  %v3127_v28 = vadd.f32 %v3095_v43, %v2769_v39  ;;  %vm15501_vm1 = vnez %v15500_v36  ;;  %v15502_v2 = vld [vmem:[#allocation33_spill] sm:$0xff]  ;;  %v15551_v46 = vld [vmem:[#allocation90_spill] sm:$0xff] }
 0x2c1   : > { %15492 = vst [vmem:[#allocation104_spill] sm:$0xff] %v11358_v32  ;;  %v3222_v61 = vsel %vm15501_vm1, %v3178_v21, 0.0  ;;  %v15503_v58 = vrot.slane %v15502_v2, 7  ;;  %v15505_v30 = vrot.slane %v15504_v5, 7  ;;  %v3128_v10 = vadd.f32 %v3096_v31, %v2773_v3  ;;  %v2777_v26 = vpop.f32.mrb[112].mxu1  ;;  %v8235_v14 = vpop.f32.mrb[176].mxu0 }
 0x2c2   : > { %v11370_v41 = vsel %vm15498_vm6, %v15497_v12, %v15495_v15  ;;  %v11382_v7 = vadd.f32 %v3222_v61, %v3126_v45  ;;  %vm15509_vm12 = vcmp.lt.s32.totalorder %v9589_v25, 7  ;;  %v3001_v15 = vrot.slane %v2777_v26, 7  ;;  %v2779_v12 = vpop.f32.mrb[113].mxu1  ;;  %v8236_v5 = vpop.f32.mrb[177].mxu0  ;;  %v9125_v45 = vld [vmem:[%s9557_s18 + $0x38] sm:$0xff]  }
 0x2c3   : > { %15499 = vst [vmem:[#allocation105_spill] sm:$0xff] %v11370_v41  ;;  %v11380_v8 = vsel %vm15506_vm14, %v15505_v30, %v15503_v58  ;;  %v3177_v39 = vsel %vm15509_vm12, %v3159_v57, %v3160_v63  ;;  %v11395_v61 = vunpack.c.l.bf16 %v9125_v45  ;;  %v8237_v58 = vadd.f32 %v8236_v5, %v8235_v14  ;;  %v2781_v57 = vpop.f32.mrb[114].mxu1  ;;  %v8238_v30 = vpop.f32.mrb[178].mxu0  ;;  %v15511_v31 = vld [vmem:[#allocation34_spill] sm:$0xff]  ;;  %vm15516_vm12 = vmmov %vm15498_vm6  ;;  %v15521_v41 = vld [vmem:[#allocation37_spill] sm:$0xff] }
 0x2c4   : > { %15507 = vst [vmem:[#allocation106_spill] sm:$0xff] %v11380_v8  ;;  %15508 = vst [vmem:[#allocation107_spill] sm:$0xff] %v11382_v7  ;;  %v11390_v22 = vadd.f32 %v3177_v39, %v3127_v28  ;;  %v3016_v28 = vsel %vm15498_vm6, %v3000_v34, %v3001_v15  ;;  %v3002_v39 = vrot.slane %v2781_v57, 7  ;;  %v2783_v21 = vpop.f32.mrb[115].mxu1  ;;  %v8239_v3 = vpop.f32.mrb[179].mxu0  ;;  %vm15512_vm14 = vnez %v15237_v4  ;;  %v15513_v7 = vld [vmem:[#allocation36_spill] sm:$0xff] }
 0x2c5   : > { %v3065_v14 = vsel %vm15512_vm14, %v3016_v28, 0.0  ;;  %v3161_v5 = vrot.slane %v8237_v58, 1  ;;  %v8240_v45 = vadd.f32 %v8239_v3, %v8238_v30  ;;  %v15514_v32 = vrot.slane %v15513_v7, 7  ;;  %v15518_v34 = vld [vmem:[#allocation42_spill] sm:$0xff]  ;;  %v15525_v57 = vld [vmem:[#allocation88_spill] sm:$0xff] }
 0x2c6   : > { %15510 = vst [vmem:[#allocation108_spill] sm:$0xff] %v11390_v22  ;;  %v15515_v43 = vrot.slane %v15511_v31, 7  ;;  %v3097_v8 = vadd.f32 %v3065_v14, %v10983_v38  ;;  %v3015_v22 = vsel %vm15498_vm6, %v3001_v15, %v3002_v39  ;;  %vm15519_vm14 = vcmp.lt.s32.totalorder %v9589_v25, 7  ;;  %v9126_v38 = vld [vmem:[%s9557_s18 + $0x48] sm:$0xff]   ;;  %v9128_v2 = vld [vmem:[%s9557_s18 + $0x58] sm:$0xff]  }
 0x2c7   : > { %v3176_v3 = vsel %vm15519_vm14, %v3160_v63, %v3161_v5  ;;  %v3098_v58 = vadd.f32 %v3015_v22, %v11004_v59  ;;  %v3162_v30 = vrot.slane %v8240_v45, 1  ;;  %v15520_v28 = vrot.slane %v15518_v34, 7  ;;  %v15540_v31 = vld [vmem:[#allocation48_spill] sm:$0xff] }
 0x2c8   : > { %v11412_v26 = vsel %vm15516_vm12, %v15515_v43, %v15514_v32  ;;  %v15522_v32 = vrot.slane %v15521_v41, 7  ;;  %vm15523_vm12 = vmmov %vm15498_vm6  ;;  %v11431_v14 = vunpack.c.h.bf16 %v9126_v38  ;;  %v3129_v15 = vadd.f32 %v3097_v8, %v2779_v12  ;;  %v15529_v38 = vld [vmem:[#allocation8_spill] sm:$0xff] }
 0x2c9   : > { %15517 = vst [vmem:[#allocation109_spill] sm:$0xff] %v11412_v26  ;;  %vm15526_vm6 = vnez %v15525_v57  ;;  %v3130_v59 = vadd.f32 %v3098_v58, %v2783_v21  ;;  %v2787_v22 = vpop.f32.mrb[116].mxu1  ;;  %v8241_v45 = vpop.f32.mrb[180].mxu0  ;;  %v9026_v21 = vld [vmem:[%s14797_s6 + $0x20] sm:$0xff]   ;;  %v9127_v26 = vld [vmem:[%s9557_s18 + $0x50] sm:$0xff]   ;;  %v15543_v9 = vrot.slane %v15542_v60, 7 }
 0x2ca   : > { %v11428_v43 = vsel %vm15523_vm12, %v15522_v32, %v15520_v28  ;;  %v3224_v4 = vsel %vm15526_vm6, %v3176_v3, 0.0  ;;  %v3175_v28 = vsel %vm15519_vm14, %v3161_v5, %v3162_v30  ;;  %v3003_v8 = vrot.slane %v2787_v22, 7  ;;  %v2789_v12 = vpop.f32.mrb[117].mxu1  ;;  %v8242_v57 = vpop.f32.mrb[181].mxu0  ;;  %vm15535_vm14 = vmmov %vm15523_vm12  ;;  %8567 = vmatprep.subr.bf16.mxu1 %v9026_v21 }
 0x2cb   : > { %15524 = vst [vmem:[#allocation110_spill] sm:$0xff] %v11428_v43  ;;  %v11437_v29 = vadd.f32 %v3224_v4, %v3128_v10  ;;  %v11443_v3 = vadd.f32 %v3175_v28, %v3129_v15  ;;  %v15531_v10 = vld [vmem:[#allocation47_spill] sm:$0xff]  ;;  %v15533_v5 = vrot.slane %v11395_v61, 7  ;;  %v8243_v41 = vadd.f32 %v8242_v57, %v8241_v45  ;;  %v2791_v15 = vpop.f32.mrb[118].mxu1  ;;  %v8244_v28 = vpop.f32.mrb[182].mxu0  ;;  %8568 = vmatpush3.bf16.msra.mxu1 %v9026_v21  ;;  %vm15544_vm6 = vmmov %vm15535_vm14  ;;  %v15546_v21 = vld [vmem:[#allocation17_spill] sm:$0xff] }
 0x2cc   : > { %v15532_v58 = vrot.slane %v15531_v10, 7  ;;  %v11461_v7 = vunpack.c.l.bf16 %v9127_v26  ;;  %v3014_v4 = vsel %vm15535_vm14, %v3002_v39, %v3003_v8  ;;  %v3004_v43 = vrot.slane %v2791_v15, 7  ;;  %v2793_v34 = vpop.f32.mrb[119].mxu1  ;;  %v8245_v32 = vpop.f32.mrb[183].mxu0 }
 0x2cd   : > { %15527 = vst [vmem:[#allocation111_spill] sm:$0xff] %v11437_v29  ;;  %15530 = vst [vmem:[#allocation112_spill] sm:$0xff] %v11443_v3  ;;  %v3163_v45 = vrot.slane %v8243_v41, 1  ;;  %v11472_v3 = vunpack.c.l.bf16 %v9128_v2  ;;  %v15539_v29 = vld [vmem:[#allocation92_spill] sm:$0xff]  ;;  %vm15545_vm1 = vcmp.lt.s32.totalorder %v9589_v25, 7  ;;  %v15565_v55 = vrot.slane %v11395_v61, 7 }
 0x2ce   : > { %v11456_v63 = vsel %vm15523_vm12, %v15533_v5, %v15532_v58  ;;  %15534 = vst [vmem:[#allocation47_spill] sm:$0xff] %v11461_v7  ;;  %v11465_v58 = vunpack.c.h.bf16 %v9127_v26  ;;  %vm15537_vm12 = vnez %v15352_v48  ;;  %v8246_v5 = vadd.f32 %v8245_v32, %v8244_v28 }
 0x2cf   : > { %v3067_v57 = vsel %vm15537_vm12, %v3014_v4, 0.0  ;;  %15538 = vst [vmem:[#allocation114_spill] sm:$0xff] %v11472_v3  ;;  %v3013_v15 = vsel %vm15535_vm14, %v3003_v8, %v3004_v43  ;;  %v15541_v26 = vrot.slane %v15540_v31, 7  ;;  %v3174_v32 = vsel %vm15545_vm1, %v3162_v30, %v3163_v45  ;;  %vm15550_vm14 = vmmov %vm15544_vm6 }
 0x2d0   : > { %15536 = vst [vmem:[#allocation113_spill] sm:$0xff] %v11465_v58  ;;  %v3099_v39 = vadd.f32 %v3067_v57, %v15539_v29  ;;  %v3100_v4 = vadd.f32 %v3013_v15, %v15546_v21  ;;  %v3164_v2 = vrot.slane %v8246_v5, 1  ;;  %v15547_v28 = vrot.slane %v11431_v14, 7  ;;  %v15548_v29 = vld [vmem:[#allocation49_spill] sm:$0xff] }
 0x2d1   : > { %v11483_v41 = vsel %vm15544_vm6, %v15543_v9, %v15541_v26  ;;  %v15549_v57 = vrot.slane %v15548_v29, 7  ;;  %vm15552_vm6 = vnez %v15551_v46  ;;  %v15034_v26 = vrot.slane %v11465_v58, 7  ;;  %v2797_v27 = vpop.f32.mrb[120].mxu1  ;;  %v8247_v15 = vpop.f32.mrb[184].mxu0  ;;  %v9130_v46 = vld [vmem:[%s9557_s18 + $0x70] sm:$0xff]  }
 0x2d2   : > { %v3131_v42 = vadd.f32 %v3099_v39, %v2789_v12  ;;  %v3226_v9 = vsel %vm15552_vm6, %v3174_v32, 0.0  ;;  %v3132_v30 = vadd.f32 %v3100_v4, %v2793_v34  ;;  %v3173_v21 = vsel %vm15545_vm1, %v3163_v45, %v3164_v2  ;;  %v2799_v22 = vpop.f32.mrb[121].mxu1  ;;  %v8248_v12 = vpop.f32.mrb[185].mxu0  ;;  %vm15556_vm1 = vmmov %vm15550_vm14 }
 0x2d3   : > { %v11494_v8 = vsel %vm15550_vm14, %v15549_v57, %v15547_v28  ;;  %v11500_v5 = vadd.f32 %v3226_v9, %v3130_v59  ;;  %v3005_v57 = vrot.slane %v2797_v27, 7  ;;  %v8249_v4 = vadd.f32 %v8248_v12, %v8247_v15  ;;  %v2801_v9 = vpop.f32.mrb[122].mxu1  ;;  %v8250_v45 = vpop.f32.mrb[186].mxu0  ;;  %v15558_v12 = vld [vmem:[#allocation91_spill] sm:$0xff]  ;;  %vm15567_vm12 = vmmov %vm15556_vm1 }
 0x2d4   : > { %v11506_v39 = vadd.f32 %v3173_v21, %v3131_v42  ;;  %v3006_v21 = vrot.slane %v2801_v9, 7  ;;  %v2803_v28 = vpop.f32.mrb[123].mxu1  ;;  %v8251_v32 = vpop.f32.mrb[187].mxu0  ;;  %v15555_v34 = vrot.slane %v11461_v7, 7  ;;  %vm15559_vm6 = vnez %v15558_v12 }
 0x2d5   : > { %15553 = vst [vmem:[#allocation92_spill] sm:$0xff] %v11500_v5  ;;  %v3012_v42 = vsel %vm15550_vm14, %v3004_v43, %v3005_v57  ;;  %v3165_v59 = vrot.slane %v8249_v4, 1  ;;  %v8252_v27 = vadd.f32 %v8251_v32, %v8250_v45  ;;  %v15562_v43 = vrot.slane %v11472_v3, 7  ;;  %vm15563_vm14 = vmmov %vm15556_vm1  ;;  %v9129_v4 = vld [vmem:[%s9557_s18 + $0x68] sm:$0xff]   ;;  %s7709_s18 = sshll.u32 %s14674_s26, 4  ;;  %s14744_s18 = int_to_ptr.vmem [resolvable:$true] %s7709_s18 }
 0x2d6   : > { %15554 = vst [vmem:[#allocation48_spill] sm:$0xff] %v11506_v39  ;;  %v11523_v15 = vsel %vm15556_vm1, %v15555_v34, %v15034_v26  ;;  %v3069_v40 = vsel %vm15559_vm6, %v3012_v42, 0.0  ;;  %v15560_v39 = vld [vmem:[#allocation54_spill] sm:$0xff]  ;;  %v15566_v23 = vrot.slane %v15529_v38, 7  ;;  %v3011_v32 = vsel %vm15567_vm12, %v3005_v57, %v3006_v21  ;;  %vm15579_vm12 = vmmov %vm15556_vm1  ;;  %s9333_s17 = scalar_lea.vmem %s14744_s18, 4096 }
 0x2d7   : > { %15557 = vst [vmem:[#allocation46_spill] sm:$0xff] %v11523_v15  ;;  %v15561_v5 = vrot.slane %v15560_v39, 7  ;;  %v3101_v26 = vadd.f32 %v3069_v40, %v11049_v52  ;;  %v11545_v45 = vunpack.c.h.bf16 %v9129_v4  ;;  %v3172_v42 = vsel %vm15569_vm11, %v3164_v2, %v3165_v59  ;;  %p9334_p11 = scmp.ne.s32.totalorder %s14744_s18, %s9333_s17 }
 0x2d8   : > { %v4737_v34 = vsel %vm15556_vm1, %v15566_v23, %v15565_v55  ;;  %v11552_v36 = vunpack.c.l.bf16 %v9130_v46  ;;  %v15571_v23 = vld [vmem:[#allocation93_spill] sm:$0xff] }
 0x2d9   : > { %v11533_v9 = vsel %vm15563_vm14, %v15562_v43, %v15561_v5  ;;  %15568 = vst [vmem:[#allocation49_spill] sm:$0xff] %v11545_v45  ;;  %v3102_v5 = vadd.f32 %v3011_v32, %v11090_v47  ;;  %v3166_v43 = vrot.slane %v8252_v27, 1  ;;  %v3133_v55 = vadd.f32 %v3101_v26, %v2799_v22  ;;  %v2807_v4 = vpop.f32.mrb[124].mxu1  ;;  %v8253_v6 = vpop.f32.mrb[188].mxu0  ;;  %p9335_p12 = pnand %p9334_p11, %p9497_p5 }
 0x2da   : > { %15564 = vst [vmem:[#allocation17_spill] sm:$0xff] %v11533_v9  ;;  %15570 = vst [vmem:[#allocation91_spill] sm:$0xff] %v11552_v36  ;;  %vm15572_vm14 = vnez %v15571_v23  ;;  %v4766_v40 = vsel %vm10778_vm0, %v4737_v34, -3.4028235e+38  ;;  %v3007_v22 = vrot.slane %v2807_v4, 7  ;;  %v2809_v26 = vpop.f32.mrb[125].mxu1 }
 0x2db   : > { %v3228_v52 = vsel %vm15572_vm14, %v3172_v42, 0.0  ;;  %v3134_v57 = vadd.f32 %v3102_v5, %v2803_v28  ;;  %v3171_v47 = vsel %vm15569_vm11, %v3165_v59, %v3166_v43  ;;  %v8254_v27 = vpop.f32.mrb[189].mxu0  ;;  %v9027_v28 = vld [vmem:[%s14797_s6 + $0x28] sm:$0xff]   ;;  %v15577_v42 = vld [vmem:[#allocation53_spill] sm:$0xff]  ;;  %v2811_v2 = vpop.f32.mrb[126].mxu1  ;;  %v4798_v13 = vmax.f32 %v11395_v61, %v4766_v40  ;;  %p9336_p13 = pneg %p9335_p12 }
 0x2dc   : > { %v11558_v50 = vadd.f32 %v3228_v52, %v3132_v30  ;;  %v11566_v32 = vadd.f32 %v3171_v47, %v3133_v55  ;;  %v15575_v30 = vld [vmem:[#allocation55_spill] sm:$0xff]  ;;  %v15578_v5 = vrot.slane %v15577_v42, 7  ;;  %v8255_v46 = vadd.f32 %v8254_v27, %v8253_v6  ;;  %v8256_v55 = vpop.f32.mrb[190].mxu0  ;;  %v2813_v39 = vpop.f32.mrb[127].mxu1  ;;  %8569 = vmatprep.subr.bf16.mxu1 %v9027_v28  ;;  %v15583_v47 = vld [vmem:[#allocation81_spill] sm:$0xff] }
 0x2dd   : > { %v15576_v34 = vrot.slane %v15575_v30, 7  ;;  %v3010_v9 = vsel %vm15556_vm1, %v3006_v21, %v3007_v22  ;;  %v3008_v15 = vrot.slane %v2811_v2, 7  ;;  %v8257_v23 = vpop.f32.mrb[191].mxu0  ;;  %vm15582_vm11 = vnez %v15383_v62  ;;  %8570 = vmatpush3.bf16.msra.mxu1 %v9027_v28  ;;  %v15588_v28 = vld [vmem:[#allocation40_spill] sm:$0xff] }
 0x2de   : > { %15573 = vst [vmem:[#allocation115_spill] sm:$0xff] %v11558_v50  ;;  %15574 = vst [vmem:[#allocation116_spill] sm:$0xff] %v11566_v32  ;;  %v3071_v6 = vsel %vm15582_vm11, %v3010_v9, 0.0  ;;  %v3167_v27 = vrot.slane %v8255_v46, 1  ;;  %v8258_v52 = vadd.f32 %v8257_v23, %v8256_v55  ;;  %v4895_v40 = vsel %vm15457_vm4, %v15583_v47, -3.4028235e+38 }
 0x2df   : > { %v11577_v59 = vsel %vm15579_vm12, %v15578_v5, %v15576_v34  ;;  %v15581_v34 = vld [vmem:[#allocation52_spill] sm:$0xff]  ;;  %v3103_v21 = vadd.f32 %v3071_v6, %v11096_v16  ;;  %v15584_v2 = vrot.slane %v11088_v24, 7  ;;  %vm15585_vm12 = vmmov %vm15556_vm1  ;;  %vm15586_vm14 = vcmp.lt.s32.totalorder %v9589_v25, 7  ;;  %v15589_v47 = vld [vmem:[#allocation83_spill] sm:$0xff] }
 0x2e0   : > { %15580 = vst [vmem:[#allocation117_spill] sm:$0xff] %v11577_v59  ;;  %v4770_v5 = vsel %vm15462_vm13, %v15581_v34, -3.4028235e+38  ;;  %v3009_v34 = vsel %vm15556_vm1, %v3007_v22, %v3008_v15  ;;  %v3170_v9 = vsel %vm15586_vm14, %v3166_v43, %v3167_v27  ;;  %v3168_v42 = vrot.slane %v8258_v52, 1  ;;  %v15590_v6 = vld [vmem:[#allocation26_spill] sm:$0xff]  ;;  %v15592_v22 = vld [vmem:[#allocation16_spill] sm:$0xff] }
 0x2e1   : > { %v3040_v4 = vsel %vm15585_vm12, %v3008_v15, %v15584_v2  ;;  %v3104_v55 = vadd.f32 %v3009_v34, %v15588_v28  ;;  %v4897_v16 = vsel %vm15466_vm2, %v15589_v47, -3.4028235e+38  ;;  %v3135_v24 = vadd.f32 %v3103_v21, %v2809_v26  ;;  %v8275_v34 = vpop.f32.mrb[192].mxu0  ;;  %vm15594_vm12 = vmmov %vm15586_vm14  ;;  %v15595_v26 = vld [vmem:[#allocation20_spill] sm:$0xff] }
 0x2e2   : > { %v3041_v23 = vsel %vm11053_vm3, %v3040_v4, 0.0  ;;  %v3230_v32 = vsel %vm11059_vm15, %v3170_v9, 0.0  ;;  %v15593_v50 = vrot.slane %v15592_v22, 1  ;;  %v11615_v4 = vpop.f32.mrb[128].mxu1  ;;  %v3169_v28 = vsel %vm15594_vm12, %v3167_v27, %v3168_v42  ;;  %vm15604_vm1 = vmmov %vm15594_vm12 }
 0x2e3   : > { %v3073_v62 = vadd.f32 %v3041_v23, %v15590_v6  ;;  %v3136_v15 = vadd.f32 %v3104_v55, %v2813_v39  ;;  %v11617_v52 = vadd.f32 %v3230_v32, %v3134_v57  ;;  %v11623_v47 = vpop.f32.mrb[129].mxu1  ;;  %v8276_v39 = vpop.f32.mrb[193].mxu0  ;;  %v11625_v9 = vadd.f32 %v3169_v28, %v3135_v24  ;;  %vm15610_vm12 = vmmov %vm15604_vm1 }
 0x2e4   : > { %v3200_v43 = vsel %vm15586_vm14, %v3168_v42, %v15593_v50  ;;  %15596 = vst [vmem:[#allocation52_spill] sm:$0xff] %v11623_v47  ;;  %v11629_v6 = vadd.f32 %v8276_v39, %v8275_v34  ;;  %v3751_v22 = vpop.f32.mrb[130].mxu1  ;;  %v8278_v57 = vpop.f32.mrb[194].mxu0  ;;  %v9029_v42 = vld [vmem:[%s14797_s6 + $0x38] sm:$0xff]   ;;  %v4802_v27 = vmax.f32 %v15548_v29, %v4770_v5  ;;  %v15044_v39 = vmov 0.0   ;;  %vm15607_vm14 = vmmov %vm15604_vm1 }
 0x2e5   : > { %v3105_v21 = vadd.f32 %v3073_v62, %v15595_v26  ;;  %v3232_v50 = vsel %vm11071_vm7, %v3200_v43, 0.0  ;;  %v9028_v62 = vld [vmem:[%s14797_s6 + $0x30] sm:$0xff]   ;;  %v4068_v24 = vrot.slane %v3751_v22, 7  ;;  %v3753_v28 = vpop.f32.mrb[131].mxu1  ;;  %v8279_v26 = vpop.f32.mrb[195].mxu0  ;;  %v15600_v43 = vld [vmem:[#allocation43_spill] sm:$0xff]  ;;  %8631 = vmatprep.subr.bf16.mxu0 %v15044_v39  ;;  %vm15666_vm11 = vnez %v15415_v56 }
 0x2e6   : > { %15598 = vst [vmem:[#allocation81_spill] sm:$0xff] %v11629_v6  ;;  %v11631_v32 = vadd.f32 %v3232_v50, %v3136_v15  ;;  %v15602_v15 = vrot.slane %v11461_v7, 1  ;;  %v15603_v50 = vrot.slane %v11431_v14, 1  ;;  %v15606_v5 = vrot.slane %v15548_v29, 1  ;;  %8571 = vmatprep.subr.bf16.mxu1 %v9028_v62 }
 0x2e7   : > { %v11641_v34 = vadd.f32 %v15600_v43, %v3105_v21  ;;  %v8280_v43 = vadd.f32 %v8279_v26, %v8278_v57  ;;  %v15608_v39 = vrot.slane %v15540_v31, 1  ;;  %v15609_v47 = vrot.slane %v15542_v60, 1  ;;  %8572 = vmatpush3.bf16.msra.mxu1 %v9028_v62 }
 0x2e8   : > { %15599 = vst [vmem:[#allocation94_spill] sm:$0xff] %v11631_v32  ;;  %v4859_v23 = vsel %vm15604_vm1, %v15603_v50, %v15602_v15  ;;  %v15605_v55 = vmov %v15603_v50  ;;  %v15611_v15 = vrot.slane %v15531_v10, 1  ;;  %v15612_v50 = vrot.slane %v11395_v61, 1  ;;  %8573 = vmatprep.subr.bf16.mxu1 %v9029_v42 }
 0x2e9   : > { %15601 = vst [vmem:[#allocation40_spill] sm:$0xff] %v11641_v34  ;;  %v4860_v22 = vsel %vm15607_vm14, %v15606_v5, %v15605_v55  ;;  %v4862_v34 = vsel %vm15610_vm12, %v15609_v47, %v15608_v39  ;;  %v15613_v55 = vrot.slane %v11615_v4, 7  ;;  %vm15614_vm14 = vcmp.lt.s32.totalorder %v9589_v25, 1 }
 0x2ea   : > { %v4864_v29 = vsel %vm15604_vm1, %v15612_v50, %v15611_v15  ;;  %v4899_v26 = vsel %vm15477_vm10, %v4859_v23, -3.4028235e+38  ;;  %v15616_v47 = vmax.f32 %v15531_v10, %v11456_v63  ;;  %v4228_v21 = vrot.slane %v8280_v43, 1  ;;  %v15618_v15 = vld [vmem:[#allocation51_spill] sm:$0xff]  ;;  %v15621_v23 = vld [vmem:[#allocation56_spill] sm:$0xff]  ;;  %vm15623_vm12 = vmmov %vm15614_vm14 }
 0x2eb   : > { %v4129_v57 = vsel %vm15614_vm14, %v15613_v55, %v4068_v24  ;;  %v11675_v60 = vmax.f32 %v4798_v13, %v4864_v29  ;;  %v4928_v50 = vmax.f32 %v15618_v15, %v4862_v34  ;;  %v15619_v55 = vmax.f32 %v15540_v31, %v11483_v41  ;;  %v15625_v63 = vld [vmem:[#allocation60_spill] sm:$0xff]  ;;  %vm15628_vm1 = vmmov %vm15623_vm12  ;;  %8574 = vmatpush3.bf16.msra.mxu1 %v9029_v42 }
 0x2ec   : > { %v11680_v39 = vmax.f32 %v15616_v47, %v4895_v40  ;;  %v4164_v5 = vadd.f32 %v4129_v57, %v11140_v17  ;;  %v15620_v2 = vrot.slane %v11545_v45, 7  ;;  %v15622_v13 = vrot.slane %v15621_v23, 7  ;;  %v3757_v57 = vpop.f32.mrb[132].mxu1  ;;  %v8281_v47 = vpop.f32.mrb[196].mxu0 }
 0x2ed   : > { %15615 = vst [vmem:[#allocation83_spill] sm:$0xff] %v11675_v60  ;;  %v4929_v62 = vmax.f32 %v15619_v55, %v4897_v16  ;;  %v15626_v10 = vrot.slane %v15625_v63, 7  ;;  %v15627_v17 = vrot.slane %v11552_v36, 7  ;;  %v11703_v34 = vmax.f32 %v4802_v27, %v4860_v22  ;;  %v15641_v27 = vld [vmem:[#allocation11_spill] sm:$0xff] }
 0x2ee   : > { %15617 = vst [vmem:[#allocation26_spill] sm:$0xff] %v11680_v39  ;;  %v11693_v29 = vsel %vm15623_vm12, %v15622_v13, %v15620_v2  ;;  %v15631_v31 = vmax.f32 %v11431_v14, %v11494_v8  ;;  %v4196_v16 = vadd.f32 %v4164_v5, %v3753_v28  ;;  %v15633_v43 = vrot.slane %v11629_v6, 1  ;;  %v8282_v5 = vpop.f32.mrb[197].mxu0  ;;  %vm15639_vm12 = vmmov %vm15628_vm1 }
 0x2ef   : > { %15624 = vst [vmem:[#allocation16_spill] sm:$0xff] %v11693_v29  ;;  %v11701_v40 = vsel %vm15628_vm1, %v15627_v17, %v15626_v10  ;;  %15630 = vst [vmem:[#allocation43_spill] sm:$0xff] %v11703_v34  ;;  %vm15634_vm14 = vcmp.lt.s32.totalorder %v9589_v25, 7  ;;  %v5127_v15 = vmax.f32 %v4928_v50, %v11675_v60  ;;  %v5128_v55 = vmax.f32 %v4929_v62, %v11680_v39 }
 0x2f0   : > { %15629 = vst [vmem:[#allocation20_spill] sm:$0xff] %v11701_v40  ;;  %v11708_v41 = vmax.f32 %v15631_v31, %v4899_v26  ;;  %v11714_v2 = vsel %vm15634_vm14, %v15633_v43, %v4228_v21  ;;  %v4069_v28 = vrot.slane %v3757_v57, 7  ;;  %v3759_v26 = vpop.f32.mrb[133].mxu1  ;;  %v8283_v10 = vadd.f32 %v8282_v5, %v8281_v47  ;;  %v8284_v31 = vpop.f32.mrb[198].mxu0  ;;  %vm15644_vm14 = vmmov %vm15628_vm1  ;;  %v15654_v40 = vld [vmem:[#allocation32_spill] sm:$0xff] }
 0x2f1   : > { %15635 = vst [vmem:[#allocation118_spill] sm:$0xff] %v11714_v2  ;;  %v3761_v17 = vpop.f32.mrb[134].mxu1  ;;  %v5129_v50 = vmax.f32 %v5127_v15, %v11703_v34  ;;  %v15636_v43 = vmov 0.0   ;;  %v15637_v57 = vrot.slane %v11461_v7, 7  ;;  %v15638_v8 = vrot.slane %v11431_v14, 7  ;;  %v8285_v15 = vpop.f32.mrb[199].mxu0 }
 0x2f2   : > { %15632 = vst [vmem:[#allocation51_spill] sm:$0xff] %v11708_v41  ;;  %v5130_v62 = vmax.f32 %v5128_v55, %v11708_v41  ;;  %8607 = vmatprep.subr.bf16.mxu1 %v15636_v43  ;;  %v4128_v47 = vsel %vm15628_vm1, %v4068_v24, %v4069_v28  ;;  %v4070_v5 = vrot.slane %v3761_v17, 7  ;;  %v3763_v13 = vpop.f32.mrb[135].mxu1  ;;  %v4229_v29 = vrot.slane %v8283_v10, 1  ;;  %v15683_v41 = vld [vmem:[#allocation70_spill] sm:$0xff] }
 0x2f3   : > { %v4731_v42 = vsel %vm15639_vm12, %v15638_v8, %v15637_v57  ;;  %v4133_v55 = vsel %vm10578_vm8, %v4128_v47, 0.0  ;;  %v8286_v59 = vadd.f32 %v8285_v15, %v8284_v31  ;;  %v15642_v63 = vrot.slane %v11552_v36, 7  ;;  %vm15645_vm12 = vmmov %vm15628_vm1  ;;  %v15646_v57 = vld [vmem:[#allocation22_spill] sm:$0xff] }
 0x2f4   : > { %v5131_v30 = vpack.c.bf16 %v5130_v62, %v5129_v50  ;;  %v15643_v14 = vrot.slane %v11545_v45, 7  ;;  %v4165_v24 = vadd.f32 %v4133_v55, %v11144_v19  ;;  %v4127_v17 = vsel %vm15645_vm12, %v4069_v28, %v4070_v5 }
 0x2f5   : > { %vm15647_vm1 = vcmp.lt.s32.totalorder %v9589_v25, 7  ;;  %v4166_v50 = vadd.f32 %v4127_v17, %v11162_v33  ;;  %v4230_v62 = vrot.slane %v8286_v59, 1  ;;  %v4772_v47 = vsel %vm15472_vm5, %v4731_v42, -3.4028235e+38  ;;  %v3767_v42 = vpop.f32.mrb[136].mxu1  ;;  %v8287_v17 = vpop.f32.mrb[200].mxu0 }
 0x2f6   : > { %v4723_v8 = vsel %vm15644_vm14, %v15643_v14, %v15642_v63  ;;  %v4288_v31 = vsel %vm15647_vm1, %v4228_v21, %v4229_v29  ;;  %8632 = vmatpush3.bf16.msra.mxu0 %v5131_v30  ;;  %v15648_v63 = vrot.slane %v11472_v3, 7  ;;  %v15649_v19 = vrot.slane %v11465_v58, 7  ;;  %vm15650_vm14 = vmmov %vm15645_vm12 }
 0x2f7   : > { %v4197_v15 = vadd.f32 %v4165_v24, %v3759_v26  ;;  %v4292_v14 = vsel %vm10591_vm9, %v4288_v31, 0.0  ;;  %8643 = vmatprep.subr.bf16.mxu0 %v15636_v43  ;;  %v4780_v33 = vsel %vm15559_vm6, %v4723_v8, -3.4028235e+38  ;;  %v4198_v59 = vadd.f32 %v4166_v50, %v3763_v13  ;;  %vm15653_vm12 = vmmov %vm15647_vm1  ;;  %v3769_v13 = vpop.f32.mrb[137].mxu1  ;;  %v8288_v50 = vpop.f32.mrb[201].mxu0 }
 0x2f8   : > { %v11763_v28 = vsel %vm15650_vm14, %v15649_v19, %v15648_v63  ;;  %v4324_v30 = vadd.f32 %v4292_v14, %v4196_v16  ;;  %v4287_v21 = vsel %vm15653_vm12, %v4229_v29, %v4230_v62  ;;  %vm15655_vm1 = vnez %v15419_v35  ;;  %v15658_v19 = vld [vmem:[#allocation41_spill] sm:$0xff]  ;;  %v8290_v45 = vpop.f32.mrb[202].mxu0 }
 0x2f9   : > { %15651 = vst [vmem:[#allocation65_spill] sm:$0xff] %v11763_v28  ;;  %v15656_v26 = vrot.slane %v11314_v20, 7  ;;  %v15657_v24 = vrot.slane %v15641_v27, 7  ;;  %v4325_v8 = vadd.f32 %v4287_v21, %v4197_v15  ;;  %v4071_v16 = vrot.slane %v3767_v42, 7  ;;  %v3771_v27 = vpop.f32.mrb[138].mxu1  ;;  %v8291_v29 = vpop.f32.mrb[203].mxu0 }
 0x2fa   : > { %vm15659_vm12 = vnez %v15281_v0  ;;  %v11787_v14 = vmax.f32 %v11461_v7, %v4772_v47  ;;  %v8289_v10 = vadd.f32 %v8288_v50, %v8287_v17  ;;  %v11796_v21 = vmax.f32 %v11552_v36, %v4780_v33  ;;  %v3773_v47 = vpop.f32.mrb[139].mxu1  ;;  %v11806_v17 = vld [vmem:[%s14796_s5] ss:$0 sm:$0xff] }
 0x2fb   : > { %v11781_v31 = vsel %vm15650_vm14, %v15657_v24, %v15656_v26  ;;  %vm15665_vm15 = vcmp.lt.s32.totalorder %v9589_v25, 1  ;;  %v4072_v24 = vrot.slane %v3771_v27, 7  ;;  %v8292_v15 = vadd.f32 %v8291_v29, %v8290_v45  ;;  %v15681_v26 = vld [vmem:[#allocation78_spill] sm:$0xff] }
 0x2fc   : > { %15660 = vst [vmem:[#allocation22_spill] sm:$0xff] %v11787_v14  ;;  %15664 = vst [vmem:[#allocation67_spill] sm:$0xff] %v11796_v21  ;;  %v4126_v42 = vsel %vm15665_vm15, %v4070_v5, %v4071_v16  ;;  %v4231_v50 = vrot.slane %v8289_v10, 1  ;;  %v15667_v21 = vld [vmem:[#allocation72_spill] sm:$0xff]  ;;  %vm15668_vm15 = vnez %v15422_v49  ;;  %v15669_v5 = vrot.slane %v11395_v61, 1 }
 0x2fd   : > { %v4135_v33 = vsel %vm15666_vm11, %v4126_v42, 0.0  ;;  %v15670_v36 = vrot.slane %v15529_v38, 1  ;;  %vm15671_vm6 = vcmp.lt.s32.totalorder %v9589_v25, 7  ;;  %vm15673_vm14 = vcmp.lt.s32.totalorder %v9589_v25, 1  ;;  %v15679_v42 = vld [vmem:[#allocation68_spill] sm:$0xff] }
 0x2fe   : > { %v4167_v23 = vadd.f32 %v4135_v33, %v11166_v54  ;;  %v4125_v56 = vsel %vm15673_vm14, %v4071_v16, %v4072_v24  ;;  %v15674_v10 = vrot.slane %v11472_v3, 1  ;;  %v15675_v45 = vrot.slane %v11465_v58, 1  ;;  %vm15676_vm11 = vmmov %vm15671_vm6 }
 0x2ff   : > { %v11819_v63 = vsel %vm15671_vm6, %v15670_v36, %v15669_v5  ;;  %vm15678_vm7 = vmmov %vm15671_vm6  ;;  %v4168_v27 = vadd.f32 %v4125_v56, %v15679_v42  ;;  %v4232_v36 = vrot.slane %v8292_v15, 1  ;;  %v15680_v5 = vld [vmem:[#allocation77_spill] sm:$0xff]  ;;  %vm15682_vm6 = vnez %v15681_v26  ;;  %v3777_v56 = vpop.f32.mrb[140].mxu1  ;;  %v8293_v42 = vpop.f32.mrb[204].mxu0 }
 0x300   : > { %15672 = vst [vmem:[#allocation32_spill] sm:$0xff] %v11819_v63  ;;  %v11830_v29 = vsel %vm15676_vm11, %v15675_v45, %v15674_v10  ;;  %v4286_v61 = vsel %vm15678_vm7, %v4230_v62, %v4231_v50  ;;  %v4363_v16 = vadd.f32 %v11806_v17, %v4325_v8  ;;  %v4199_v33 = vadd.f32 %v4167_v23, %v3769_v13  ;;  %v15685_v10 = vld [vmem:[#allocation80_spill] sm:$0xff]  ;;  %v15687_v23 = vld [vmem:[#allocation87_spill] sm:$0xff]  ;;  %v3779_v45 = vpop.f32.mrb[141].mxu1 }
 0x301   : > { %15677 = vst [vmem:[#allocation41_spill] sm:$0xff] %v11830_v29  ;;  %vm15684_vm14 = vnez %v15683_v41  ;;  %vm15686_vm11 = vnez %v15685_v10  ;;  %v4200_v62 = vadd.f32 %v4168_v27, %v3773_v47  ;;  %v4285_v15 = vsel %vm15678_vm7, %v4231_v50, %v4232_v36  ;;  %v6703_v47 = vld [vmem:[%s11850_s15] sm:$0xff]  ;;  %v15691_v27 = vld [vmem:[#allocation90_spill] sm:$0xff]  ;;  %v3781_v60 = vpop.f32.mrb[142].mxu1  ;;  %v6704_v63 = vld [vmem:[%s11850_s15 + $0x8] sm:$0xff] }
 0x302   : > { %v4294_v34 = vsel %vm15684_vm14, %v4286_v61, 0.0  ;;  %v4327_v13 = vadd.f32 %v4285_v15, %v4199_v33  ;;  %v4073_v61 = vrot.slane %v3777_v56, 7  ;;  %v6735_v28 = vmin.f32 %v6703_v47, 2.0  ;;  %v15694_v50 = vld [vmem:[#allocation31_spill] sm:$0xff] }
 0x303   : > { %v4326_v14 = vadd.f32 %v4294_v34, %v4198_v59  ;;  %v8294_v34 = vpop.f32.mrb[205].mxu0  ;;  %v11856_v59 = vadd.f32 %v11806_v17, %v4324_v30  ;;  %v4395_v33 = vmax.f32 %v4363_v16, 0.0  ;;  %vm15693_vm10 = vcmp.lt.s32.totalorder %v9589_v25, 1  ;;  %v3783_v30 = vpop.f32.mrb[143].mxu1 }
 0x304   : > { %v8295_v58 = vadd.f32 %v8294_v34, %v8293_v42  ;;  %v8296_v3 = vpop.f32.mrb[206].mxu0  ;;  %v4124_v15 = vsel %vm15693_vm10, %v4072_v24, %v4073_v61  ;;  %v4074_v56 = vrot.slane %v3781_v60, 7  ;;  %v4365_v29 = vadd.f32 %v11806_v17, %v4327_v13  ;;  %v6705_v34 = vld [vmem:[%s11850_s15 + $0x10] sm:$0xff]  ;;  %vm15695_vm7 = vmmov %vm15693_vm10  ;;  %v3787_v24 = vpop.f32.mrb[144].mxu1 }
 0x305   : > { %15689 = vst [vmem:[#allocation72_spill] sm:$0xff] %v11856_v59  ;;  %v4364_v7 = vadd.f32 %v11806_v17, %v4326_v14  ;;  %v8297_v8 = vpop.f32.mrb[207].mxu0  ;;  %v4137_v54 = vsel %vm15655_vm1, %v4124_v15, 0.0  ;;  %v11873_v60 = vadd.f32 -1.0, %v6735_v28  ;;  %vm15697_vm10 = vcmp.lt.s32.totalorder %v9589_v25, 7 }
 0x306   : > { %v4233_v14 = vrot.slane %v8295_v58, 1  ;;  %v8298_v42 = vadd.f32 %v8297_v8, %v8296_v3  ;;  %v4169_v47 = vadd.f32 %v4137_v54, %v15694_v50  ;;  %v4123_v16 = vsel %vm15695_vm7, %v4073_v61, %v4074_v56  ;;  %v6706_v3 = vld [vmem:[%s11850_s15 + $0x18] sm:$0xff]  ;;  %vm15700_vm7 = vmmov %vm15697_vm10 }
 0x307   : > { %v4396_v39 = vmax.f32 %v4364_v7, 0.0  ;;  %15696 = vst [vmem:[#allocation68_spill] sm:$0xff] %v11873_v60  ;;  %v15698_v7 = vld [vmem:[#allocation35_spill] sm:$0xff]  ;;  %v4397_v8 = vmax.f32 %v4365_v29, 0.0  ;;  %6801 = vperm.xlu0 %8772, %v11873_v60   ;;  %v6737_v28 = vmin.f32 %v6705_v34, 2.0 }
 0x308   : > { %v4284_v13 = vsel %vm15697_vm10, %v4232_v36, %v4233_v14  ;;  %v4170_v38 = vadd.f32 %v4123_v16, %v15698_v7  ;;  %v4234_v2 = vrot.slane %v8298_v42, 1  ;;  %v4201_v58 = vadd.f32 %v4169_v47, %v3779_v45  ;;  %v8299_v16 = vpop.f32.mrb[208].mxu0  ;;  %v3789_v7 = vpop.f32.mrb[145].mxu1 }
 0x309   : > { %v11879_v15 = vpack.c.bf16 %v4396_v39, %v4395_v33  ;;  %v4296_v54 = vsel %vm15668_vm15, %v4284_v13, 0.0  ;;  %v6736_v42 = vmin.f32 %v6704_v63, 2.0  ;;  %v4075_v33 = vrot.slane %v3787_v24, 7  ;;  %v8300_v45 = vpop.f32.mrb[209].mxu0  ;;  %v3791_v59 = vpop.f32.mrb[146].mxu1 }
 0x30a   : > { %v4328_v61 = vadd.f32 %v4296_v54, %v4200_v62  ;;  %v4202_v50 = vadd.f32 %v4170_v38, %v3783_v30  ;;  %v4283_v36 = vsel %vm15700_vm7, %v4233_v14, %v4234_v2  ;;  %v11887_v47 = vadd.f32 -1.0, %v6737_v28  ;;  %v8302_v6 = vpop.f32.mrb[210].mxu0  ;;  %v3793_v34 = vpop.f32.mrb[147].mxu1  ;;  %v15704_v54 = vld [vmem:[#allocation38_spill] sm:$0xff] }
 0x30b   : > { %15699 = vst [vmem:[#allocation77_spill] sm:$0xff] %v11879_v15  ;;  %v4329_v39 = vadd.f32 %v4283_v36, %v4201_v58  ;;  %v6738_v13 = vmin.f32 %v6706_v3, 2.0  ;;  %v6707_v15 = vld [vmem:[%s11850_s15 + $0x20] sm:$0xff]  ;;  %v8301_v29 = vadd.f32 %v8300_v45, %v8299_v16  ;;  %v11892_v30 = vadd.f32 -1.0, %v6736_v42  ;;  %v8303_v24 = vpop.f32.mrb[211].mxu0  ;;  %v6708_v42 = vld [vmem:[%s11850_s15 + $0x28] sm:$0xff] }
 0x30c   : > { %15701 = vst [vmem:[#allocation78_spill] sm:$0xff] %v11887_v47  ;;  %v4366_v38 = vadd.f32 %v11806_v17, %v4328_v61  ;;  %vm15703_vm10 = vcmp.lt.s32.totalorder %v9589_v25, 1  ;;  %v4076_v14 = vrot.slane %v3791_v59, 7  ;;  %6811 = vperm.xlu1 %8773, %v11887_v47   ;;  %v6739_v3 = vmin.f32 %v6707_v15, 2.0  ;;  %v15706_v45 = vld [vmem:[#allocation29_spill] sm:$0xff]  ;;  %v8305_v47 = vpop.f32.mrb[212].mxu0 }
 0x30d   : > { %15702 = vst [vmem:[#allocation70_spill] sm:$0xff] %v11892_v30  ;;  %v4122_v63 = vsel %vm15703_vm10, %v4074_v56, %v4075_v33  ;;  %v4367_v58 = vadd.f32 %v11806_v17, %v4329_v39  ;;  %vm15705_vm7 = vnez %v15704_v54  ;;  %v4235_v36 = vrot.slane %v8301_v29, 1  ;;  %6806 = vperm.xlu0 %8772, %v11892_v30   ;;  %v15709_v54 = vld [vmem:[#allocation73_spill] sm:$0xff] }
 0x30e   : > { %v4139_v28 = vsel %vm15705_vm7, %v4122_v63, 0.0  ;;  %v8304_v61 = vadd.f32 %v8303_v24, %v8302_v6  ;;  %v4398_v16 = vmax.f32 %v4366_v38, 0.0  ;;  %v4121_v59 = vsel %vm15703_vm10, %v4075_v33, %v4076_v14  ;;  %v15711_v24 = vld [vmem:[#allocation76_spill] sm:$0xff] }
 0x30f   : > { %v4171_v62 = vadd.f32 %v4139_v28, %v15706_v45  ;;  %v11906_v39 = vadd.f32 -1.0, %v6738_v13  ;;  %vm15708_vm15 = vcmp.lt.s32.totalorder %v9589_v25, 7  ;;  %v4172_v63 = vadd.f32 %v4121_v59, %v15709_v54  ;;  %v15719_v54 = vld [vmem:[#allocation24_spill] sm:$0xff] }
 0x310   : > { %v4282_v15 = vsel %vm15708_vm15, %v4234_v2, %v4235_v36  ;;  %v4236_v29 = vrot.slane %v8304_v61, 1  ;;  %v11911_v6 = vpack.c.bf16 %v4398_v16, %v4397_v8  ;;  %vm15712_vm7 = vnez %v15711_v24  ;;  %vm15714_vm10 = vmmov %vm15708_vm15  ;;  %v3797_v2 = vpop.f32.mrb[148].mxu1 }
 0x311   : > { %15707 = vst [vmem:[#allocation80_spill] sm:$0xff] %v11906_v39  ;;  %v4203_v38 = vadd.f32 %v4171_v62, %v3789_v7  ;;  %v4298_v30 = vsel %vm15712_vm7, %v4282_v15, 0.0  ;;  %6816 = vperm.xlu1 %8773, %v11906_v39   ;;  %v11916_v28 = vadd.f32 -1.0, %v6739_v3  ;;  %v6740_v33 = vmin.f32 %v6708_v42, 2.0  ;;  %v3799_v16 = vpop.f32.mrb[149].mxu1  ;;  %v8306_v7 = vpop.f32.mrb[213].mxu0  ;;  %vm15723_vm15 = vmmov %vm15714_vm10 }
 0x312   : > { %15710 = vst [vmem:[#allocation87_spill] sm:$0xff] %v11911_v6  ;;  %v4330_v45 = vadd.f32 %v4298_v30, %v4202_v50  ;;  %v4204_v13 = vadd.f32 %v4172_v63, %v3793_v34  ;;  %v4281_v56 = vsel %vm15714_vm10, %v4235_v36, %v4236_v29  ;;  %v4399_v59 = vmax.f32 %v4367_v58, 0.0  ;;  %v15717_v50 = vld [vmem:[#allocation19_spill] sm:$0xff]  ;;  %v3801_v42 = vpop.f32.mrb[150].mxu1  ;;  %v8308_v36 = vpop.f32.mrb[214].mxu0  ;;  %v15728_v6 = vld [vmem:[#allocation18_spill] sm:$0xff] }
 0x313   : > { %15713 = vst [vmem:[#allocation90_spill] sm:$0xff] %v11916_v28  ;;  %v4331_v61 = vadd.f32 %v4281_v56, %v4203_v38  ;;  %v4077_v8 = vrot.slane %v3797_v2, 7  ;;  %6821 = vperm.xlu0 %8772, %v11916_v28   ;;  %v11921_v62 = vadd.f32 -1.0, %v6740_v33  ;;  %v15716_v3 = vsel %vm10578_vm8, %v15646_v57, -3.4028235e+38  ;;  %v15721_v38 = vld [vmem:[#allocation23_spill] sm:$0xff] }
 0x314   : > { %v4786_v30 = vmax.f32 %v15717_v50, %v15716_v3  ;;  %v8307_v34 = vadd.f32 %v8306_v7, %v8305_v47  ;;  %v4368_v15 = vadd.f32 %v11806_v17, %v4330_v45  ;;  %v15718_v58 = vsel %vm11053_vm3, %v11781_v31, -3.4028235e+38  ;;  %v3803_v2 = vpop.f32.mrb[151].mxu1  ;;  %v8309_v7 = vpop.f32.mrb[215].mxu0  ;;  %v15731_v28 = vld [vmem:[#allocation75_spill] sm:$0xff] }
 0x315   : > { %15715 = vst [vmem:[#allocation31_spill] sm:$0xff] %v11921_v62  ;;  %v4784_v56 = vmax.f32 %v11314_v20, %v15718_v58  ;;  %v15720_v63 = vrot.slane %v15719_v54, 1  ;;  %v15722_v33 = vrot.slane %v15721_v38, 1  ;;  %vm15724_vm8 = vcmp.lt.s32.totalorder %v9589_v25, 1  ;;  %6826 = vperm.xlu1 %8773, %v11921_v62  }
 0x316   : > { %v4120_v57 = vsel %vm15724_vm8, %v4076_v14, %v4077_v8  ;;  %v4078_v47 = vrot.slane %v3801_v42, 7  ;;  %v15726_v31 = vrot.slane %v15717_v50, 1  ;;  %v15729_v39 = vrot.slane %v15728_v6, 1 }
 0x317   : > { %v4875_v22 = vsel %vm15723_vm15, %v15722_v33, %v15720_v63  ;;  %v15725_v45 = vmov %v15722_v33  ;;  %vm15730_vm15 = vmmov %vm15714_vm10  ;;  %v4141_v14 = vsel %vm15659_vm12, %v4120_v57, 0.0  ;;  %v4237_v42 = vrot.slane %v8307_v34, 1 }
 0x318   : > { %v4876_v3 = vsel %vm15714_vm10, %v15726_v31, %v15725_v45  ;;  %v15727_v58 = vmov %v15726_v31  ;;  %v8310_v33 = vadd.f32 %v8309_v7, %v8308_v36  ;;  %v4400_v62 = vmax.f32 %v4368_v15, 0.0  ;;  %v15735_v36 = vld [vmem:[#allocation96_spill] sm:$0xff] }
 0x319   : > { %v4877_v63 = vsel %vm15730_vm15, %v15729_v39, %v15727_v58  ;;  %v4173_v60 = vadd.f32 %v4141_v14, %v15731_v28  ;;  %v4119_v32 = vsel %vm15724_vm8, %v4077_v8, %v4078_v47  ;;  %v4369_v45 = vadd.f32 %v11806_v17, %v4331_v61  ;;  %vm15734_vm15 = vmmov %vm15714_vm10 }
 0x31a   : > { %v15732_v50 = vmov %v15729_v39  ;;  %v15733_v31 = vrot.slane %v11314_v20, 1  ;;  %v4280_v34 = vsel %vm15734_vm15, %v4236_v29, %v4237_v42  ;;  %v4174_v15 = vadd.f32 %v4119_v32, %v15735_v36  ;;  %vm15737_vm8 = vmmov %vm15714_vm10  ;;  %v8311_v32 = vpop.f32.mrb[216].mxu0 }
 0x31b   : > { %v4238_v57 = vrot.slane %v8310_v33, 1  ;;  %v11970_v28 = vpack.c.bf16 %v4400_v62, %v4399_v59  ;;  %v4205_v7 = vadd.f32 %v4173_v60, %v3799_v16  ;;  %v4300_v61 = vsel %vm15682_vm6, %v4280_v34, 0.0  ;;  %v6709_v59 = vld [vmem:[%s11850_s15 + $0x30] sm:$0xff]  ;;  %v8312_v36 = vpop.f32.mrb[217].mxu0  ;;  %v15738_v34 = vld [vmem:[#allocation103_spill] sm:$0xff]  ;;  %vm15747_vm15 = vmmov %vm15737_vm8 }
 0x31c   : > { %v4878_v39 = vsel %vm15714_vm10, %v15733_v31, %v15732_v50  ;;  %v4881_v8 = vsel %vm10591_vm9, %v4877_v63, -3.4028235e+38  ;;  %v4883_v58 = vsel %vm15684_vm14, %v4875_v22, -3.4028235e+38  ;;  %v4332_v14 = vadd.f32 %v4300_v61, %v4204_v13  ;;  %v3807_v31 = vpop.f32.mrb[152].mxu1  ;;  %v8314_v22 = vpop.f32.mrb[218].mxu0 }
 0x31d   : > { %15736 = vst [vmem:[#allocation35_spill] sm:$0xff] %v11970_v28  ;;  %v4206_v50 = vadd.f32 %v4174_v15, %v3803_v2  ;;  %v4279_v29 = vsel %vm15737_vm8, %v4237_v42, %v4238_v57  ;;  %v4912_v33 = vmax.f32 %v4784_v56, %v4878_v39  ;;  %v4079_v60 = vrot.slane %v3807_v31, 7  ;;  %v3809_v16 = vpop.f32.mrb[153].mxu1  ;;  %v15740_v15 = vld [vmem:[#allocation104_spill] sm:$0xff] }
 0x31e   : > { %v4333_v62 = vadd.f32 %v4279_v29, %v4205_v7  ;;  %v15739_v55 = vmax.f32 %v15728_v6, %v15738_v34  ;;  %v11984_v28 = vmax.f32 %v4786_v30, %v4876_v3  ;;  %v8313_v41 = vadd.f32 %v8312_v36, %v8311_v32  ;;  %v3811_v13 = vpop.f32.mrb[154].mxu1  ;;  %v15743_v29 = vld [vmem:[#allocation44_spill] sm:$0xff]  ;;  %v15745_v32 = vld [vmem:[#allocation97_spill] sm:$0xff] }
 0x31f   : > { %v4370_v2 = vadd.f32 %v11806_v17, %v4332_v14  ;;  %v4401_v42 = vmax.f32 %v4369_v45, 0.0  ;;  %v15741_v56 = vmax.f32 %v15721_v38, %v15740_v15  ;;  %vm15742_vm9 = vcmp.lt.s32.totalorder %v9589_v25, 1  ;;  %v3813_v6 = vpop.f32.mrb[155].mxu1 }
 0x320   : > { %v4913_v63 = vmax.f32 %v15739_v55, %v4881_v8  ;;  %v4118_v7 = vsel %vm15742_vm9, %v4078_v47, %v4079_v60  ;;  %v4080_v61 = vrot.slane %v3811_v13, 7  ;;  %v8315_v8 = vpop.f32.mrb[219].mxu0  ;;  %v4945_v30 = vmax.f32 %v4912_v33, %v11984_v28  ;;  %vm15746_vm10 = vmmov %vm15742_vm9  ;;  %v6710_v55 = vld [vmem:[%s11850_s15 + $0x38] sm:$0xff] }
 0x321   : > { %v11990_v39 = vmax.f32 %v15741_v56, %v4883_v58  ;;  %v6741_v3 = vmin.f32 %v6709_v59, 2.0  ;;  %vm15744_vm14 = vnez %v15743_v29  ;;  %v4239_v14 = vrot.slane %v8313_v41, 1  ;;  %v15748_v59 = vld [vmem:[#allocation98_spill] sm:$0xff]  ;;  %vm15753_vm9 = vmmov %vm15747_vm15 }
 0x322   : > { %v4143_v45 = vsel %vm15744_vm14, %v4118_v7, 0.0  ;;  %v8316_v31 = vadd.f32 %v8315_v8, %v8314_v22  ;;  %v4402_v38 = vmax.f32 %v4370_v2, 0.0  ;;  %v4117_v36 = vsel %vm15746_vm10, %v4079_v60, %v4080_v61  ;;  %v6711_v22 = vld [vmem:[%s11850_s15 + $0x40] sm:$0xff]  ;;  %v6712_v2 = vld [vmem:[%s11850_s15 + $0x48] sm:$0xff]  ;;  %vm15754_vm14 = vmmov %vm15746_vm10 }
 0x323   : > { %v4175_v58 = vadd.f32 %v4143_v45, %v15745_v32  ;;  %v4371_v47 = vadd.f32 %v11806_v17, %v4333_v62  ;;  %v4946_v34 = vmax.f32 %v4913_v63, %v11990_v39  ;;  %v4278_v33 = vsel %vm15747_vm15, %v4238_v57, %v4239_v14  ;;  %v15750_v7 = vld [vmem:[#allocation79_spill] sm:$0xff]  ;;  %v3817_v45 = vpop.f32.mrb[156].mxu1  ;;  %v8317_v32 = vpop.f32.mrb[220].mxu0 }
 0x324   : > { %v4176_v13 = vadd.f32 %v4117_v36, %v15748_v59  ;;  %v4240_v15 = vrot.slane %v8316_v31, 1  ;;  %v12006_v41 = vpack.c.bf16 %v4402_v38, %v4401_v42  ;;  %vm15751_vm8 = vnez %v15750_v7  ;;  %v6713_v42 = vld [vmem:[%s11850_s15 + $0x50] sm:$0xff]  ;;  %v3819_v59 = vpop.f32.mrb[157].mxu1 }
 0x325   : > { %v4207_v56 = vadd.f32 %v4175_v58, %v3809_v16  ;;  %v4302_v60 = vsel %vm15751_vm8, %v4278_v33, 0.0  ;;  %v12012_v8 = vpack.c.bf16 %v4946_v34, %v4945_v30  ;;  %v12014_v62 = vadd.f32 -1.0, %v6741_v3  ;;  %v8318_v16 = vpop.f32.mrb[221].mxu0  ;;  %v3821_v3 = vpop.f32.mrb[158].mxu1 }
 0x326   : > { %15749 = vst [vmem:[#allocation38_spill] sm:$0xff] %v12006_v41  ;;  %v4334_v63 = vadd.f32 %v4302_v60, %v4206_v50  ;;  %v4208_v29 = vadd.f32 %v4176_v13, %v3813_v6  ;;  %v4277_v57 = vsel %vm15753_vm9, %v4239_v14, %v4240_v15  ;;  %v6742_v31 = vmin.f32 %v6710_v55, 2.0  ;;  %v8320_v50 = vpop.f32.mrb[222].mxu0  ;;  %v6717_v41 = vld [vmem:[%s11850_s15 + $0x70] sm:$0xff] }
 0x327   : > { %15752 = vst [vmem:[#allocation29_spill] sm:$0xff] %v12012_v8  ;;  %v4335_v38 = vadd.f32 %v4277_v57, %v4207_v56  ;;  %v4081_v36 = vrot.slane %v3817_v45, 7  ;;  %6831 = vperm.xlu0 %8772, %v12014_v62   ;;  %v6743_v58 = vmin.f32 %v6711_v22, 2.0  ;;  %v6744_v30 = vmin.f32 %v6712_v2, 2.0  ;;  %v3823_v56 = vpop.f32.mrb[159].mxu1  ;;  %v8321_v60 = vpop.f32.mrb[223].mxu0 }
 0x328   : > { %v8319_v34 = vadd.f32 %v8318_v16, %v8317_v32  ;;  %v4372_v6 = vadd.f32 %v11806_v17, %v4334_v63  ;;  %v4403_v33 = vmax.f32 %v4371_v47, 0.0  ;;  %v12021_v14 = vadd.f32 -1.0, %v6742_v31  ;;  %v6714_v47 = vld [vmem:[%s11850_s15 + $0x58] sm:$0xff]  ;;  %v15756_v31 = vld [vmem:[#allocation99_spill] sm:$0xff]  ;;  %v8323_v8 = vpop.f32.mrb[224].mxu0 }
 0x329   : > { %v4116_v55 = vsel %vm15754_vm14, %v4080_v61, %v4081_v36  ;;  %v4082_v13 = vrot.slane %v3821_v3, 7  ;;  %v12025_v57 = vadd.f32 -1.0, %v6743_v58  ;;  %v6745_v22 = vmin.f32 %v6713_v42, 2.0  ;;  %v15759_v3 = vld [vmem:[#allocation82_spill] sm:$0xff] }
 0x32a   : > { %v4145_v2 = vsel %vm10778_vm0, %v4116_v55, 0.0  ;;  %v4241_v45 = vrot.slane %v8319_v34, 1  ;;  %v8322_v32 = vadd.f32 %v8321_v60, %v8320_v50  ;;  %v4404_v63 = vmax.f32 %v4372_v6, 0.0  ;;  %6836 = vperm.xlu1 %8773, %v12021_v14   ;;  %vm15758_vm0 = vmmov %vm15753_vm9  ;;  %v6716_v60 = vld [vmem:[%s11850_s15 + $0x68] sm:$0xff] }
 0x32b   : > { %15755 = vst [vmem:[#allocation73_spill] sm:$0xff] %v12025_v57  ;;  %v4177_v61 = vadd.f32 %v4145_v2, %v15756_v31  ;;  %v4115_v16 = vsel %vm15746_vm10, %v4081_v36, %v4082_v13  ;;  %v4373_v58 = vadd.f32 %v11806_v17, %v4335_v38  ;;  %6841 = vperm.xlu0 %8772, %v12025_v57   ;;  %v12036_v42 = vadd.f32 -1.0, %v6744_v30  ;;  %vm15762_vm15 = vmmov %vm15758_vm0 }
 0x32c   : > { %v4276_v34 = vsel %vm15758_vm0, %v4240_v15, %v4241_v45  ;;  %v4178_v50 = vadd.f32 %v4115_v16, %v15759_v3  ;;  %v4242_v6 = vrot.slane %v8322_v32, 1  ;;  %v12042_v55 = vpack.c.bf16 %v4404_v63, %v4403_v33  ;;  %v3827_v15 = vpop.f32.mrb[160].mxu1  ;;  %vm15765_vm9 = vmmov %vm15746_vm10 }
 0x32d   : > { %15757 = vst [vmem:[#allocation76_spill] sm:$0xff] %v12036_v42  ;;  %v4209_v2 = vadd.f32 %v4177_v61, %v3819_v59  ;;  %v4304_v36 = vsel %vm15686_vm11, %v4276_v34, 0.0  ;;  %v12047_v31 = vadd.f32 -1.0, %v6745_v22  ;;  %v6746_v38 = vmin.f32 %v6714_v47, 2.0  ;;  %v3829_v59 = vpop.f32.mrb[161].mxu1  ;;  %v8324_v61 = vpop.f32.mrb[225].mxu0  ;;  %vm15769_vm10 = vmmov %vm15765_vm9 }
 0x32e   : > { %15760 = vst [vmem:[#allocation19_spill] sm:$0xff] %v12042_v55  ;;  %v4336_v30 = vadd.f32 %v4304_v36, %v4208_v29  ;;  %v4210_v20 = vadd.f32 %v4178_v50, %v3823_v56  ;;  %v4275_v57 = vsel %vm15762_vm15, %v4241_v45, %v4242_v6  ;;  %6846 = vperm.xlu1 %8773, %v12036_v42   ;;  %v6747_v33 = vmin.f32 %v6715_v53, 2.0  ;;  %v3831_v29 = vpop.f32.mrb[162].mxu1  ;;  %v8326_v56 = vpop.f32.mrb[226].mxu0  ;;  %vm15772_vm15 = vmmov %vm15758_vm0 }
 0x32f   : > { %15761 = vst [vmem:[#allocation24_spill] sm:$0xff] %v12047_v31  ;;  %v4337_v32 = vadd.f32 %v4275_v57, %v4209_v2  ;;  %v4083_v63 = vrot.slane %v3827_v15, 7  ;;  %6851 = vperm.xlu0 %8772, %v12047_v31   ;;  %v12054_v22 = vadd.f32 -1.0, %v6746_v38  ;;  %v6748_v47 = vmin.f32 %v6716_v60, 2.0  ;;  %v3833_v50 = vpop.f32.mrb[163].mxu1  ;;  %v8327_v2 = vpop.f32.mrb[227].mxu0 }
 0x330   : > { %v8325_v16 = vadd.f32 %v8324_v61, %v8323_v8  ;;  %v4374_v45 = vadd.f32 %v11806_v17, %v4336_v30  ;;  %v12057_v34 = vadd.f32 -1.0, %v6747_v33  ;;  %v6749_v3 = vmin.f32 %v6717_v41, 2.0  ;;  %v15766_v8 = vld [vmem:[#allocation50_spill] sm:$0xff]  ;;  %v6719_v41 = vld [vmem:[%s11850_s15 + $0x80] sm:$0xff]  ;;  %v15768_v33 = vld [vmem:[#allocation100_spill] sm:$0xff]  ;;  %v3837_v31 = vpop.f32.mrb[164].mxu1 }
 0x331   : > { %15763 = vst [vmem:[#allocation23_spill] sm:$0xff] %v12054_v22  ;;  %v4114_v57 = vsel %vm15765_vm9, %v4082_v13, %v4083_v63  ;;  %v4084_v53 = vrot.slane %v3831_v29, 7  ;;  %v4405_v36 = vmax.f32 %v4373_v58, 0.0  ;;  %v12061_v38 = vadd.f32 -1.0, %v6748_v47  ;;  %v6718_v30 = vld [vmem:[%s11850_s15 + $0x78] sm:$0xff] }
 0x332   : > { %15764 = vst [vmem:[#allocation18_spill] sm:$0xff] %v12057_v34  ;;  %vm15767_vm14 = vnez %v15766_v8  ;;  %v4243_v15 = vrot.slane %v8325_v16, 1  ;;  %v8328_v61 = vadd.f32 %v8327_v2, %v8326_v56  ;;  %v4406_v55 = vmax.f32 %v4374_v45, 0.0  ;;  %6856 = vperm.xlu1 %8773, %v12054_v22   ;;  %v15770_v56 = vld [vmem:[#allocation84_spill] sm:$0xff]  ;;  %v6721_v22 = vld [vmem:[%s11850_s15 + $0x90] sm:$0xff] }
 0x333   : > { %v4147_v60 = vsel %vm15767_vm14, %v4114_v57, 0.0  ;;  %v4113_v29 = vsel %vm15769_vm10, %v4083_v63, %v4084_v53  ;;  %v4375_v58 = vadd.f32 %v11806_v17, %v4337_v32  ;;  %6861 = vperm.xlu0 %8772, %v12057_v34   ;;  %v12073_v47 = vadd.f32 -1.0, %v6749_v3  ;;  %v6720_v57 = vld [vmem:[%s11850_s15 + $0x88] sm:$0xff]  ;;  %vm15781_vm14 = vmmov %vm15758_vm0 }
 0x334   : > { %v4179_v13 = vadd.f32 %v4147_v60, %v15768_v33  ;;  %v4274_v16 = vsel %vm15758_vm0, %v4242_v6, %v4243_v15  ;;  %v4180_v45 = vadd.f32 %v4113_v29, %v15770_v56  ;;  %v4244_v2 = vrot.slane %v8328_v61, 1  ;;  %v8329_v6 = vpop.f32.mrb[228].mxu0  ;;  %v6722_v61 = vld [vmem:[%s11850_s15 + $0x98] sm:$0xff] }
 0x335   : > { %v12079_v8 = vpack.c.bf16 %v4406_v55, %v4405_v36  ;;  %v4306_v63 = vsel %vm15457_vm4, %v4274_v16, 0.0  ;;  %v6750_v33 = vmin.f32 %v6718_v30, 2.0  ;;  %v6751_v32 = vmin.f32 %v6719_v41, 2.0  ;;  %vm15775_vm4 = vmmov %vm15765_vm9 }
 0x336   : > { %v4211_v60 = vadd.f32 %v4179_v13, %v3829_v59  ;;  %v4338_v34 = vadd.f32 %v4306_v63, %v4210_v20  ;;  %v4212_v3 = vadd.f32 %v4180_v45, %v3833_v50  ;;  %v4273_v42 = vsel %vm15772_vm15, %v4243_v15, %v4244_v2  ;;  %6866 = vperm.xlu1 %8773, %v12061_v38   ;;  %v3839_v59 = vpop.f32.mrb[165].mxu1  ;;  %v8330_v13 = vpop.f32.mrb[229].mxu0  ;;  %vm15777_vm9 = vmmov %vm15775_vm4 }
 0x337   : > { %15771 = vst [vmem:[#allocation75_spill] sm:$0xff] %v12079_v8  ;;  %v6752_v29 = vmin.f32 %v6720_v57, 2.0  ;;  %v4085_v36 = vrot.slane %v3837_v31, 7  ;;  %6871 = vperm.xlu0 %8772, %v12073_v47   ;;  %v12089_v18 = vadd.f32 -1.0, %v6750_v33  ;;  %v12091_v30 = vadd.f32 -1.0, %v6751_v32  ;;  %v3841_v50 = vpop.f32.mrb[166].mxu1 }
 0x338   : > { %v4339_v55 = vadd.f32 %v4273_v42, %v4211_v60  ;;  %v8331_v20 = vadd.f32 %v8330_v13, %v8329_v6  ;;  %v8332_v15 = vpop.f32.mrb[230].mxu0  ;;  %v4376_v41 = vadd.f32 %v11806_v17, %v4338_v34  ;;  %v4407_v16 = vmax.f32 %v4375_v58, 0.0  ;;  %v3843_v57 = vpop.f32.mrb[167].mxu1  ;;  %v15776_v34 = vld [vmem:[#allocation101_spill] sm:$0xff] }
 0x339   : > { %15773 = vst [vmem:[#allocation96_spill] sm:$0xff] %v12089_v18  ;;  %15774 = vst [vmem:[#allocation103_spill] sm:$0xff] %v12091_v30  ;;  %v6753_v56 = vmin.f32 %v6721_v22, 2.0  ;;  %v4112_v42 = vsel %vm15775_vm4, %v4084_v53, %v4085_v36  ;;  %v4086_v31 = vrot.slane %v3841_v50, 7  ;;  %v8333_v45 = vpop.f32.mrb[231].mxu0  ;;  %v12096_v60 = vadd.f32 -1.0, %v6752_v29 }
 0x33a   : > { %v6754_v63 = vmin.f32 %v6722_v61, 2.0  ;;  %v4149_v33 = vsel %vm15462_vm13, %v4112_v42, 0.0  ;;  %v4245_v32 = vrot.slane %v8331_v20, 1  ;;  %v8334_v6 = vadd.f32 %v8333_v45, %v8332_v15  ;;  %6876 = vperm.xlu1 %8773, %v12089_v18   ;;  %v6723_v22 = vld [vmem:[%s11850_s15 + $0xa0] sm:$0xff]  ;;  %vm15778_vm13 = vmmov %vm15758_vm0  ;;  %v15779_v20 = vld [vmem:[#allocation86_spill] sm:$0xff]  ;;  %v3847_v8 = vpop.f32.mrb[168].mxu1 }
 0x33b   : > { %v4408_v13 = vmax.f32 %v4376_v41, 0.0  ;;  %v4181_v58 = vadd.f32 %v4149_v33, %v15776_v34  ;;  %v4111_v53 = vsel %vm15777_vm9, %v4085_v36, %v4086_v31  ;;  %v4377_v50 = vadd.f32 %v11806_v17, %v4339_v55  ;;  %6881 = vperm.xlu0 %8772, %v12091_v30   ;;  %v6725_v45 = vld [vmem:[%s11850_s15 + $0xb0] sm:$0xff]  ;;  %vm15788_vm15 = vmmov %vm15778_vm13 }
 0x33c   : > { %v12107_v29 = vadd.f32 -1.0, %v6753_v56  ;;  %v4272_v61 = vsel %vm15778_vm13, %v4244_v2, %v4245_v32  ;;  %v4182_v15 = vadd.f32 %v4111_v53, %v15779_v20  ;;  %v4246_v41 = vrot.slane %v8334_v6, 1  ;;  %v8335_v2 = vpop.f32.mrb[232].mxu0  ;;  %vm15793_vm9 = vmmov %vm15778_vm13 }
 0x33d   : > { %v12113_v42 = vpack.c.bf16 %v4408_v13, %v4407_v16  ;;  %v4213_v33 = vadd.f32 %v4181_v58, %v3839_v59  ;;  %v4308_v36 = vsel %vm15466_vm2, %v4272_v61, 0.0  ;;  %v12118_v34 = vadd.f32 -1.0, %v6754_v63  ;;  %v3849_v59 = vpop.f32.mrb[169].mxu1  ;;  %v8336_v58 = vpop.f32.mrb[233].mxu0  ;;  %v6726_v61 = vld [vmem:[%s11850_s15 + $0xb8] sm:$0xff]  ;;  %vm15783_vm2 = vmmov %vm15775_vm4 }
 0x33e   : > { %v6755_v55 = vmin.f32 %v6723_v22, 2.0  ;;  %v4340_v18 = vadd.f32 %v4308_v36, %v4212_v3  ;;  %v4214_v56 = vadd.f32 %v4182_v15, %v3843_v57  ;;  %v4271_v30 = vsel %vm15781_vm14, %v4245_v32, %v4246_v41  ;;  %6886 = vperm.xlu1 %8773, %v12096_v60   ;;  %v3851_v57 = vpop.f32.mrb[170].mxu1  ;;  %v8338_v22 = vpop.f32.mrb[234].mxu0  ;;  %v15785_v36 = vld [vmem:[#allocation102_spill] sm:$0xff]  ;;  %vm15786_vm0 = vmmov %vm15783_vm2 }
 0x33f   : > { %15780 = vst [vmem:[#allocation104_spill] sm:$0xff] %v12118_v34  ;;  %v6756_v16 = vmin.f32 %v6724_v51, 2.0  ;;  %v4341_v6 = vadd.f32 %v4271_v30, %v4213_v33  ;;  %v4087_v13 = vrot.slane %v3847_v8, 7  ;;  %6891 = vperm.xlu0 %8772, %v12107_v29   ;;  %v6757_v63 = vmin.f32 %v6725_v45, 2.0  ;;  %v3853_v30 = vpop.f32.mrb[171].mxu1  ;;  %v8339_v8 = vpop.f32.mrb[235].mxu0  ;;  %vm15800_vm13 = vmmov %vm15793_vm9 }
 0x340   : > { %v12124_v37 = vadd.f32 -1.0, %v6755_v55  ;;  %v8337_v3 = vadd.f32 %v8336_v58, %v8335_v2  ;;  %v4378_v32 = vadd.f32 %v11806_v17, %v4340_v18  ;;  %v4409_v53 = vmax.f32 %v4377_v50, 0.0  ;;  %v6727_v58 = vld [vmem:[%s11850_s15 + $0xc0] sm:$0xff] }
 0x341   : > { %v4110_v20 = vsel %vm15783_vm2, %v4086_v31, %v4087_v13  ;;  %v4088_v51 = vrot.slane %v3851_v57, 7  ;;  %v12131_v15 = vadd.f32 %v11806_v17, %v4341_v6  ;;  %v12133_v33 = vadd.f32 -1.0, %v6756_v16  ;;  %v15789_v57 = vld [vmem:[#allocation107_spill] sm:$0xff]  ;;  %vm15804_vm2 = vmmov %vm15786_vm0 }
 0x342   : > { %15782 = vst [vmem:[#allocation44_spill] sm:$0xff] %v12124_v37  ;;  %vm15102_vm10 = vmmov 0   ;;  %v4151_v18 = vsel %vm15472_vm5, %v4110_v20, 0.0  ;;  %v4247_v50 = vrot.slane %v8337_v3, 1  ;;  %v8340_v45 = vadd.f32 %v8339_v8, %v8338_v22  ;;  %6896 = vperm.xlu1 %8773, %v12118_v34   ;;  %v6728_v20 = vld [vmem:[%s11850_s15 + $0xc8] sm:$0xff] }
 0x343   : > { %15784 = vst [vmem:[#allocation97_spill] sm:$0xff] %v12133_v33  ;;  %8633 = vmatprep.mubr.msk.bf16.mxu0 %vm15102_vm10, %v15636_v43  ;;  %v4410_v31 = vmax.f32 %v4378_v32, 0.0  ;;  %v4183_v55 = vadd.f32 %v4151_v18, %v15785_v36  ;;  %v4109_v2 = vsel %vm15786_vm0, %v4087_v13, %v4088_v51  ;;  %6901 = vperm.xlu0 %8772, %v12124_v37   ;;  %v12144_v16 = vadd.f32 -1.0, %v6757_v63  ;;  %v12160_v63 = vld [vmem:[%s14799_s8] sm:$0xf] }
 0x344   : > { %v6758_v6 = vmin.f32 %v6726_v61, 2.0  ;;  %v4270_v11 = vsel %vm15788_vm15, %v4246_v41, %v4247_v50  ;;  %v4184_v3 = vadd.f32 %v4109_v2, %v15789_v57  ;;  %v4248_v22 = vrot.slane %v8340_v45, 1 }
 0x345   : > { %15787 = vst [vmem:[#allocation98_spill] sm:$0xff] %v12144_v16  ;;  %v12150_v32 = vpack.c.bf16 %v4410_v31, %v4409_v53  ;;  %v4215_v8 = vadd.f32 %v4183_v55, %v3849_v59  ;;  %vm15791_vm5 = vnez %v15476_v44  ;;  %vm4948_vm4 = vcmask 130048   ;;  %v3857_v53 = vpop.f32.mrb[172].mxu1  ;;  %v8341_v31 = vpop.f32.mrb[236].mxu0 }
 0x346   : > { %v4310_v18 = vsel %vm15791_vm5, %v4270_v11, 0.0  ;;  %v12155_v13 = vadd.f32 -1.0, %v6758_v6  ;;  %v4216_v41 = vadd.f32 %v4184_v3, %v3853_v30  ;;  %v4269_v45 = vsel %vm15793_vm9, %v4247_v50, %v4248_v22  ;;  %6906 = vperm.xlu1 %8773, %v12133_v33   ;;  %8634 = vmatmul.mubr.msk.bf16.vlgmr.msra.gmra.mrb[0].mxu0 %vm4948_vm4, %v12160_v63  ;;  %v3859_v55 = vpop.f32.mrb[173].mxu1  ;;  %v8342_v2 = vpop.f32.mrb[237].mxu0  ;;  %v15795_v30 = vld [vmem:[#allocation28_spill] sm:$0xff] }
 0x347   : > { %15790 = vst [vmem:[#allocation79_spill] sm:$0xff] %v12150_v32  ;;  %v4342_v61 = vadd.f32 %v4310_v18, %v4214_v56  ;;  %v6759_v59 = vmin.f32 %v6727_v58, 2.0  ;;  %v4343_v44 = vadd.f32 %v4269_v45, %v4215_v8  ;;  %v4089_v36 = vrot.slane %v3857_v53, 7  ;;  %6911 = vperm.xlu0 %8772, %v12144_v16   ;;  %8645 = vmatprep.mubr.msk.bf16.mxu0 %vm15102_vm10, %v15636_v43  ;;  %v3861_v11 = vpop.f32.mrb[174].mxu1  ;;  %v8344_v57 = vpop.f32.mrb[238].mxu0  ;;  %v15796_v18 = vld [vmem:[#allocation34_spill] sm:$0xff] }
 0x348   : > { %15792 = vst [vmem:[#allocation99_spill] sm:$0xff] %v12155_v13  ;;  %v6760_v6 = vmin.f32 %v6728_v20, 2.0  ;;  %v15794_v56 = vsel %vm15655_vm1, %v15654_v40, -3.4028235e+38  ;;  %v8343_v58 = vadd.f32 %v8342_v2, %v8341_v31  ;;  %v15797_v45 = vrot.slane %v15796_v18, 1  ;;  %v15798_v53 = vld [vmem:[#allocation33_spill] sm:$0xff]  ;;  %vm15801_vm1 = vmmov %vm15786_vm0 }
 0x349   : > { %v4790_v50 = vmax.f32 %v15795_v30, %v15794_v56  ;;  %v4380_v3 = vadd.f32 %v11806_v17, %v4342_v61  ;;  %v12176_v8 = vadd.f32 -1.0, %v6759_v59  ;;  %v15799_v20 = vrot.slane %v15798_v53, 1  ;;  %v3863_v33 = vpop.f32.mrb[175].mxu1  ;;  %v8345_v16 = vpop.f32.mrb[239].mxu0  ;;  %v15803_v32 = vld [vmem:[#allocation108_spill] sm:$0xff]  ;;  %vm15807_vm0 = vmmov %vm15793_vm9 }
 0x34a   : > { %v4108_v40 = vsel %vm15801_vm1, %v4088_v51, %v4089_v36  ;;  %v4090_v56 = vrot.slane %v3861_v11, 7  ;;  %v4411_v31 = vmax.f32 %v12131_v15, 0.0  ;;  %v12187_v2 = vadd.f32 -1.0, %v6760_v6  ;;  %6916 = vperm.xlu1 %8773, %v12155_v13   ;;  %vm15808_vm15 = vmmov %vm15807_vm0 }
 0x34b   : > { %v4871_v35 = vsel %vm15800_vm13, %v15799_v20, %v15797_v45  ;;  %vm15802_vm14 = vnez %v15332_v1  ;;  %v4249_v59 = vrot.slane %v8343_v58, 1  ;;  %v8346_v34 = vadd.f32 %v8345_v16, %v8344_v57  ;;  %6921 = vperm.xlu0 %8772, %v12176_v8   ;;  %v15809_v57 = vld [vmem:[#allocation111_spill] sm:$0xff]  ;;  %vm15814_vm9 = vmmov %vm15807_vm0 }
 0x34c   : > { %v4153_v61 = vsel %vm15802_vm14, %v4108_v40, 0.0  ;;  %v4412_v37 = vmax.f32 %v4380_v3, 0.0  ;;  %v4107_v51 = vsel %vm15804_vm2, %v4089_v36, %v4090_v56  ;;  %v4381_v11 = vadd.f32 %v11806_v17, %v4343_v44  ;;  %v15811_v40 = vld [vmem:[#allocation27_spill] sm:$0xff]  ;;  %vm15815_vm13 = vmmov %vm15807_vm0 }
 0x34d   : > { %v4185_v45 = vadd.f32 %v4153_v61, %v15803_v32  ;;  %v15805_v15 = vmov %v15799_v20  ;;  %v15806_v6 = vrot.slane %v15795_v30, 1  ;;  %v4268_v16 = vsel %vm15808_vm15, %v4248_v22, %v4249_v59  ;;  %vm15828_vm15 = vmmov %vm15814_vm9 }
 0x34e   : > { %v4186_v3 = vadd.f32 %v4107_v51, %v15809_v57  ;;  %v4250_v32 = vrot.slane %v8346_v34, 1  ;;  %v12206_v20 = vpack.c.bf16 %v4412_v37, %v4411_v31  ;;  %vm15810_vm5 = vnez %v15687_v23  ;;  %v3867_v37 = vpop.f32.mrb[176].mxu1  ;;  %6926 = vperm.xlu1 %8773, %v12187_v2   ;;  %v15816_v31 = vld [vmem:[#allocation30_spill] sm:$0xff]  ;;  %v15933_v23 = vld [vmem:[#allocation31_spill] sm:$0xff] }
 0x34f   : > { %v4872_v58 = vsel %vm15807_vm0, %v15806_v6, %v15805_v15  ;;  %v4217_v36 = vadd.f32 %v4185_v45, %v3859_v55  ;;  %v4312_v44 = vsel %vm15810_vm5, %v4268_v16, 0.0  ;;  %v15812_v61 = vrot.slane %v15811_v40, 1  ;;  %v8347_v55 = vpop.f32.mrb[240].mxu0 }
 0x350   : > { %v15813_v13 = vrot.slane %v15719_v54, 1  ;;  %v4887_v15 = vsel %vm15712_vm7, %v4871_v35, -3.4028235e+38  ;;  %v4344_v22 = vadd.f32 %v4312_v44, %v4216_v41  ;;  %v4218_v6 = vadd.f32 %v4186_v3, %v3863_v33  ;;  %v3869_v54 = vpop.f32.mrb[177].mxu1  ;;  %v8348_v57 = vpop.f32.mrb[241].mxu0  ;;  %vm15823_vm7 = vmmov %vm15804_vm2 }
 0x351   : > { %v4267_v34 = vsel %vm15815_vm13, %v4249_v59, %v4250_v32  ;;  %v4091_v16 = vrot.slane %v3867_v37, 7  ;;  %vm15817_vm1 = vnez %v15422_v49  ;;  %v12229_v35 = vmax.f32 %v4790_v50, %v4872_v58  ;;  %v3871_v3 = vpop.f32.mrb[178].mxu1  ;;  %v8350_v44 = vpop.f32.mrb[242].mxu0  ;;  %vm15827_vm0 = vmmov %vm15823_vm7 }
 0x352   : > { %v4874_v30 = vsel %vm15814_vm9, %v15813_v13, %v15812_v61  ;;  %v4345_v51 = vadd.f32 %v4267_v34, %v4217_v36  ;;  %v15818_v24 = vsel %vm15817_vm1, %v15667_v21, -3.4028235e+38  ;;  %v15819_v13 = vld [vmem:[#allocation105_spill] sm:$0xff]  ;;  %v8349_v59 = vadd.f32 %v8348_v57, %v8347_v55  ;;  %v15821_v36 = vld [vmem:[#allocation106_spill] sm:$0xff]  ;;  %v3873_v50 = vpop.f32.mrb[179].mxu1  ;;  %v8351_v58 = vpop.f32.mrb[243].mxu0  ;;  %vm15834_vm1 = vmmov %vm15827_vm0 }
 0x353   : > { %v4916_v45 = vmax.f32 %v15816_v31, %v4874_v30  ;;  %v15820_v33 = vmax.f32 %v15811_v40, %v15819_v13  ;;  %v4382_v61 = vadd.f32 %v11806_v17, %v4344_v22  ;;  %v15822_v30 = vmax.f32 %v15798_v53, %v15821_v36  ;;  %v15824_v31 = vld [vmem:[#allocation57_spill] sm:$0xff]  ;;  %v15826_v13 = vld [vmem:[#allocation112_spill] sm:$0xff] }
 0x354   : > { %v4106_v21 = vsel %vm15823_vm7, %v4090_v56, %v4091_v16  ;;  %v4092_v40 = vrot.slane %v3871_v3, 7  ;;  %v4413_v37 = vmax.f32 %v4381_v11, 0.0  ;;  %vm15825_vm2 = vnez %v15824_v31  ;;  %v6730_v11 = vld [vmem:[%s11850_s15 + $0xd8] sm:$0xff]  ;;  %v15830_v36 = vld [vmem:[#allocation88_spill] sm:$0xff] }
 0x355   : > { %v4917_v41 = vmax.f32 %v15820_v33, %v15818_v24  ;;  %v12235_v34 = vmax.f32 %v15822_v30, %v4887_v15  ;;  %v4992_v49 = vmax.f32 %v4916_v45, %v11984_v28  ;;  %v4155_v22 = vsel %vm15825_vm2, %v4106_v21, 0.0  ;;  %v6729_v15 = vld [vmem:[%s11850_s15 + $0xd0] sm:$0xff]  ;;  %vm15837_vm2 = vmmov %vm15827_vm0 }
 0x356   : > { %v4251_v57 = vrot.slane %v8349_v59, 1  ;;  %v8352_v24 = vadd.f32 %v8351_v58, %v8350_v44  ;;  %v4414_v53 = vmax.f32 %v4382_v61, 0.0  ;;  %v4187_v28 = vadd.f32 %v4155_v22, %v15826_v13  ;;  %v3877_v22 = vpop.f32.mrb[180].mxu1 }
 0x357   : > { %v4993_v55 = vmax.f32 %v4917_v41, %v11990_v39  ;;  %v4105_v45 = vsel %vm15827_vm0, %v4091_v16, %v4092_v40  ;;  %v4383_v56 = vadd.f32 %v11806_v17, %v4345_v51  ;;  %v4994_v33 = vmax.f32 %v4992_v49, %v12229_v35  ;;  %v15829_v41 = vld [vmem:[#allocation92_spill] sm:$0xff]  ;;  %v6731_v51 = vld [vmem:[%s11850_s15 + $0xe0] sm:$0xff]  ;;  %vm15839_vm0 = vmmov %vm15815_vm13 }
 0x358   : > { %v4266_v39 = vsel %vm15828_vm15, %v4250_v32, %v4251_v57  ;;  %v4188_v59 = vadd.f32 %v4105_v45, %v15829_v41  ;;  %v4252_v3 = vrot.slane %v8352_v24, 1  ;;  %v12253_v44 = vpack.c.bf16 %v4414_v53, %v4413_v37  ;;  %v8353_v32 = vpop.f32.mrb[244].mxu0  ;;  %v6732_v45 = vld [vmem:[%s11850_s15 + $0xe8] sm:$0xff]  ;;  %v3879_v53 = vpop.f32.mrb[181].mxu1 }
 0x359   : > { %v4219_v61 = vadd.f32 %v4187_v28, %v3869_v54  ;;  %vm15831_vm9 = vnez %v15830_v36  ;;  %v4995_v16 = vmax.f32 %v4993_v55, %v12235_v34  ;;  %v6761_v21 = vmin.f32 %v6729_v15, 2.0  ;;  %v8354_v54 = vpop.f32.mrb[245].mxu0  ;;  %v3881_v15 = vpop.f32.mrb[182].mxu1 }
 0x35a   : > { %v4314_v30 = vsel %vm15831_vm9, %v4266_v39, 0.0  ;;  %v4220_v49 = vadd.f32 %v4188_v59, %v3873_v50  ;;  %v4265_v31 = vsel %vm15815_vm13, %v4251_v57, %v4252_v3  ;;  %v6762_v13 = vmin.f32 %v6730_v11, 2.0  ;;  %v8356_v41 = vpop.f32.mrb[246].mxu0  ;;  %vm15845_vm13 = vmmov %vm15839_vm0 }
 0x35b   : > { %v4346_v58 = vadd.f32 %v4314_v30, %v4218_v6  ;;  %v4347_v24 = vadd.f32 %v4265_v31, %v4219_v61  ;;  %v4093_v37 = vrot.slane %v3877_v22, 7  ;;  %v12262_v28 = vpack.c.bf16 %v4995_v16, %v4994_v33  ;;  %v3883_v61 = vpop.f32.mrb[183].mxu1  ;;  %v8357_v30 = vpop.f32.mrb[247].mxu0 }
 0x35c   : > { %v12264_v39 = vadd.f32 -1.0, %v6761_v21  ;;  %v8355_v55 = vadd.f32 %v8354_v54, %v8353_v32  ;;  %v12267_v50 = vadd.f32 -1.0, %v6762_v13  ;;  %v6763_v57 = vmin.f32 %v6731_v51, 2.0 }
 0x35d   : > { %15832 = vst [vmem:[#allocation82_spill] sm:$0xff] %v12262_v28  ;;  %v4384_v6 = vadd.f32 %v11806_v17, %v4346_v58  ;;  %v4104_v11 = vsel %vm15834_vm1, %v4092_v40, %v4093_v37  ;;  %v4094_v59 = vrot.slane %v3881_v15, 7  ;;  %v4415_v31 = vmax.f32 %v4383_v56, 0.0  ;;  %v15836_v58 = vld [vmem:[#allocation48_spill] sm:$0xff]  ;;  %vm15850_vm1 = vmmov %vm15839_vm0 }
 0x35e   : > { %15833 = vst [vmem:[#allocation50_spill] sm:$0xff] %v12267_v50  ;;  %6931 = vperm.xlu0 %8772, %v12264_v39   ;;  %v6764_v33 = vmin.f32 %v6732_v45, 2.0  ;;  %vm15835_vm7 = vnez %v15352_v48  ;;  %v4253_v21 = vrot.slane %v8355_v55, 1  ;;  %v8358_v22 = vadd.f32 %v8357_v30, %v8356_v41  ;;  %6936 = vperm.xlu1 %8773, %v12267_v50   ;;  %v15840_v45 = vld [vmem:[#allocation115_spill] sm:$0xff]  ;;  %v15949_v48 = vld [vmem:[#allocation29_spill] sm:$0xff] }
 0x35f   : > { %v4157_v16 = vsel %vm15835_vm7, %v4104_v11, 0.0  ;;  %v4416_v32 = vmax.f32 %v4384_v6, 0.0  ;;  %v4103_v40 = vsel %vm15837_vm2, %v4093_v37, %v4094_v59  ;;  %v4385_v13 = vadd.f32 %v11806_v17, %v4347_v24  ;;  %v15844_v24 = vld [vmem:[#allocation37_spill] sm:$0xff]  ;;  %vm15857_vm2 = vmmov %vm15839_vm0 }
 0x360   : > { %v4189_v51 = vadd.f32 %v4157_v16, %v15836_v58  ;;  %v12279_v54 = vadd.f32 -1.0, %v6763_v57  ;;  %v4264_v56 = vsel %vm15839_vm0, %v4252_v3, %v4253_v21  ;;  %v4190_v15 = vadd.f32 %v4103_v40, %v15840_v45  ;;  %v3887_v16 = vpop.f32.mrb[184].mxu1  ;;  %v15848_v58 = vld [vmem:[#allocation42_spill] sm:$0xff] }
 0x361   : > { %v4254_v11 = vrot.slane %v8358_v22, 1  ;;  %v12284_v55 = vpack.c.bf16 %v4416_v32, %v4415_v31  ;;  %vm15841_vm15 = vnez %v15691_v27  ;;  %v12289_v30 = vadd.f32 -1.0, %v6764_v33  ;;  %v15846_v22 = vld [vmem:[#allocation7_spill] sm:$0xff] }
 0x362   : > { %15838 = vst [vmem:[#allocation100_spill] sm:$0xff] %v12279_v54  ;;  %v4221_v41 = vadd.f32 %v4189_v51, %v3879_v53  ;;  %v4316_v6 = vsel %vm15841_vm15, %v4264_v56, 0.0  ;;  %6941 = vperm.xlu0 %8772, %v12279_v54   ;;  %v15843_v17 = vsel %vm15659_vm12, %v15658_v19, -3.4028235e+38  ;;  %v4222_v57 = vadd.f32 %v4190_v15, %v3883_v61  ;;  %v8359_v53 = vpop.f32.mrb[248].mxu0  ;;  %v3889_v56 = vpop.f32.mrb[185].mxu1  ;;  %vm15854_vm12 = vmmov %vm15839_vm0 }
 0x363   : > { %15842 = vst [vmem:[#allocation84_spill] sm:$0xff] %v12289_v30  ;;  %v4794_v37 = vmax.f32 %v15844_v24, %v15843_v17  ;;  %v4348_v3 = vadd.f32 %v4316_v6, %v4220_v49  ;;  %v4263_v31 = vsel %vm15845_vm13, %v4253_v21, %v4254_v11  ;;  %v15847_v32 = vrot.slane %v15846_v22, 1  ;;  %v8360_v19 = vpop.f32.mrb[249].mxu0  ;;  %6946 = vperm.xlu1 %8773, %v12289_v30   ;;  %v15851_v49 = vld [vmem:[#allocation36_spill] sm:$0xff]  ;;  %v3891_v17 = vpop.f32.mrb[186].mxu1 }
 0x364   : > { %v15849_v51 = vrot.slane %v15848_v58, 1  ;;  %v4349_v40 = vadd.f32 %v4263_v31, %v4221_v41  ;;  %v4095_v0 = vrot.slane %v3887_v16, 7  ;;  %v4417_v45 = vmax.f32 %v4385_v13, 0.0  ;;  %v8362_v28 = vpop.f32.mrb[250].mxu0  ;;  %v12314_v41 = vld [vmem:[%s14796_s5] ss:$0 sm:$0xff] }
 0x365   : > { %v15852_v61 = vrot.slane %v15851_v49, 1  ;;  %v15853_v21 = vrot.slane %v15796_v18, 1  ;;  %v8361_v6 = vadd.f32 %v8360_v19, %v8359_v53  ;;  %v4386_v31 = vadd.f32 %v12314_v41, %v4348_v3 }
 0x366   : > { %v4867_v33 = vsel %vm15850_vm1, %v15849_v51, %v15847_v32  ;;  %v15855_v13 = vmov %v15849_v51  ;;  %v15856_v16 = vrot.slane %v15844_v24, 1  ;;  %v15858_v32 = vld [vmem:[#allocation39_spill] sm:$0xff]  ;;  %vm15859_vm0 = vcmp.lt.s32.totalorder %v9589_v25, 1  ;;  %v15861_v24 = vld [vmem:[#allocation109_spill] sm:$0xff] }
 0x367   : > { %v4870_v15 = vsel %vm15854_vm12, %v15853_v21, %v15852_v61  ;;  %v4102_v53 = vsel %vm15859_vm0, %v4094_v59, %v4095_v0  ;;  %v4096_v19 = vrot.slane %v3891_v17, 7  ;;  %v3893_v61 = vpop.f32.mrb[187].mxu1  ;;  %v8363_v21 = vpop.f32.mrb[251].mxu0  ;;  %v4891_v30 = vsel %vm15751_vm8, %v4867_v33, -3.4028235e+38  ;;  %vm15865_vm1 = vmmov %vm15859_vm0 }
 0x368   : > { %v4868_v18 = vsel %vm15857_vm2, %v15856_v16, %v15855_v13  ;;  %v4920_v51 = vmax.f32 %v15858_v32, %v4870_v15  ;;  %v15860_v3 = vsel %vm15682_vm6, %v15680_v5, -3.4028235e+38  ;;  %v15862_v50 = vmax.f32 %v15851_v49, %v15861_v24  ;;  %v15864_v32 = vld [vmem:[#allocation116_spill] sm:$0xff]  ;;  %vm15866_vm6 = vmmov %vm15857_vm2 }
 0x369   : > { %vm15863_vm13 = vnez %v15558_v12  ;;  %v4255_v16 = vrot.slane %v8361_v6, 1  ;;  %v8364_v59 = vadd.f32 %v8363_v21, %v8362_v28  ;;  %v4418_v17 = vmax.f32 %v4386_v31, 0.0  ;;  %v6733_v28 = vld [vmem:[%s11850_s15 + $0xf0] sm:$0xff]  ;;  %vm15871_vm12 = vmmov %vm15857_vm2 }
 0x36a   : > { %v4921_v13 = vmax.f32 %v15862_v50, %v15860_v3  ;;  %v4159_v15 = vsel %vm15863_vm13, %v4102_v53, 0.0  ;;  %v4101_v7 = vsel %vm15865_vm1, %v4095_v0, %v4096_v19  ;;  %v4387_v33 = vadd.f32 %v12314_v41, %v4349_v40  ;;  %v15867_v31 = vld [vmem:[#allocation93_spill] sm:$0xff]  ;;  %v15869_v0 = vld [vmem:[#allocation110_spill] sm:$0xff]  ;;  %vm15872_vm2 = vmmov %vm15859_vm0 }
 0x36b   : > { %v4191_v54 = vadd.f32 %v4159_v15, %v15864_v32  ;;  %v12341_v26 = vmax.f32 %v4794_v37, %v4868_v18  ;;  %v4262_v5 = vsel %vm15866_vm6, %v4254_v11, %v4255_v16  ;;  %v4192_v50 = vadd.f32 %v4101_v7, %v11617_v52  ;;  %v3897_v11 = vpop.f32.mrb[188].mxu1  ;;  %vm15876_vm13 = vmmov %vm15865_vm1 }
 0x36c   : > { %v4256_v12 = vrot.slane %v8364_v59, 1  ;;  %v12346_v49 = vpack.c.bf16 %v4418_v17, %v4417_v45  ;;  %vm15868_vm8 = vnez %v15867_v31  ;;  %v15870_v21 = vmax.f32 %v15848_v58, %v15869_v0  ;;  %v8365_v45 = vpop.f32.mrb[252].mxu0  ;;  %v3899_v59 = vpop.f32.mrb[189].mxu1  ;;  %v15960_v31 = vld [vmem:[#allocation16_spill] sm:$0xff] }
 0x36d   : > { %v4223_v6 = vadd.f32 %v4191_v54, %v3889_v56  ;;  %v4318_v53 = vsel %vm15868_vm8, %v4262_v5, 0.0  ;;  %v5037_v37 = vmax.f32 %v4920_v51, %v12229_v35  ;;  %v4224_v3 = vadd.f32 %v4192_v50, %v3893_v61  ;;  %v6734_v54 = vld [vmem:[%s11850_s15 + $0xf8] sm:$0xff]  ;;  %v8366_v17 = vpop.f32.mrb[253].mxu0  ;;  %v3901_v7 = vpop.f32.mrb[190].mxu1 }
 0x36e   : > { %v12354_v40 = vmax.f32 %v15870_v21, %v4891_v30  ;;  %v4350_v18 = vadd.f32 %v4318_v53, %v4222_v57  ;;  %v4261_v52 = vsel %vm15871_vm12, %v4255_v16, %v4256_v12  ;;  %v5038_v24 = vmax.f32 %v4921_v13, %v12235_v34  ;;  %v8368_v35 = vpop.f32.mrb[254].mxu0  ;;  %v3903_v13 = vpop.f32.mrb[191].mxu1  ;;  %v15873_v53 = vld [vmem:[#allocation61_spill] sm:$0xff] }
 0x36f   : > { %v4351_v56 = vadd.f32 %v4261_v52, %v4223_v6  ;;  %v4097_v15 = vrot.slane %v3897_v11, 7  ;;  %v5039_v58 = vmax.f32 %v5037_v37, %v12341_v26  ;;  %v6765_v30 = vmin.f32 %v6733_v28, 2.0  ;;  %v8369_v5 = vpop.f32.mrb[255].mxu0 }
 0x370   : > { %v8367_v32 = vadd.f32 %v8366_v17, %v8365_v45  ;;  %v4388_v57 = vadd.f32 %v12314_v41, %v4350_v18  ;;  %v4419_v51 = vmax.f32 %v4387_v33, 0.0  ;;  %v5040_v61 = vmax.f32 %v5038_v24, %v12354_v40 }
 0x371   : > { %v4100_v16 = vsel %vm15872_vm2, %v4096_v19, %v4097_v15  ;;  %v4098_v34 = vrot.slane %v3901_v7, 7  ;;  %v12366_v50 = vadd.f32 -1.0, %v6765_v30  ;;  %v6766_v6 = vmin.f32 %v6734_v54, 2.0  ;;  %v15877_v54 = vld [vmem:[#allocation94_spill] sm:$0xff]  ;;  %v15878_v30 = vld [vmem:[#allocation95_spill] sm:$0xff]  ;;  %v15880_v7 = vld [vmem:[#allocation40_spill] sm:$0xff] }
 0x372   : > { %vm15874_vm0 = vnez %v15873_v53  ;;  %v4257_v0 = vrot.slane %v8367_v32, 1  ;;  %v8370_v21 = vadd.f32 %v8369_v5, %v8368_v35  ;;  %v4420_v37 = vmax.f32 %v4388_v57, 0.0  ;;  %vm15881_vm2 = vmmov %vm15866_vm6  ;;  %v15885_v5 = vld [vmem:[#allocation52_spill] sm:$0xff] }
 0x373   : > { %v4161_v28 = vsel %vm15874_vm0, %v4100_v16, 0.0  ;;  %v15875_v33 = vrot.slane %v11615_v4, 7  ;;  %v4099_v19 = vsel %vm15865_vm1, %v4097_v15, %v4098_v34  ;;  %v4389_v11 = vadd.f32 %v12314_v41, %v4351_v56  ;;  %6951 = vperm.xlu0 %8772, %v12366_v50   ;;  %vm15922_vm1 = vmmov %vm15881_vm2 }
 0x374   : > { %v4193_v18 = vadd.f32 %v4161_v28, %v11625_v9  ;;  %v4260_v45 = vsel %vm15866_vm6, %v4256_v12, %v4257_v0  ;;  %v4194_v9 = vadd.f32 %v4099_v19, %v15877_v54  ;;  %v4258_v17 = vrot.slane %v8370_v21, 1  ;;  %v15882_v12 = vld [vmem:[#allocation81_spill] sm:$0xff]  ;;  %vm15974_vm6 = vmmov %vm15922_vm1 }
 0x375   : > { %v4130_v52 = vsel %vm15876_vm13, %v4098_v34, %v15875_v33  ;;  %vm15879_vm12 = vnez %v15878_v30  ;;  %v12387_v15 = vpack.c.bf16 %v4420_v37, %v4419_v51  ;;  %v15883_v34 = vrot.slane %v15882_v12, 1  ;;  %v15888_v51 = vld [vmem:[#allocation68_spill] sm:$0xff]  ;;  %vm15894_vm13 = vmmov %vm15881_vm2  ;;  %v15940_v30 = vld [vmem:[#allocation91_spill] sm:$0xff] }
 0x376   : > { %v4131_v24 = vsel %vm11053_vm3, %v4130_v52, 0.0  ;;  %v4225_v4 = vadd.f32 %v4193_v18, %v3899_v59  ;;  %v4320_v32 = vsel %vm15879_vm12, %v4260_v45, 0.0  ;;  %v4226_v57 = vadd.f32 %v4194_v9, %v3903_v13  ;;  %vm15884_vm3 = vmmov %vm15881_vm2  ;;  %v15886_v59 = vld [vmem:[#allocation15_spill] sm:$0xff]  ;;  %v15890_v52 = vld [vmem:[#allocation118_spill] sm:$0xff] }
 0x377   : > { %v4163_v35 = vadd.f32 %v4131_v24, %v15880_v7  ;;  %v4352_v56 = vadd.f32 %v4320_v32, %v4224_v3  ;;  %v4259_v16 = vsel %vm15881_vm2, %v4257_v0, %v4258_v17  ;;  %v4290_v46 = vsel %vm15884_vm3, %v4258_v17, %v15883_v34  ;;  %v15891_v24 = vld [vmem:[#allocation8_spill] sm:$0xff]  ;;  %v15901_v34 = vld [vmem:[#allocation78_spill] sm:$0xff] }
 0x378   : > { %vm15887_vm0 = vnez %v15886_v59  ;;  %v4353_v21 = vadd.f32 %v4259_v16, %v4225_v4  ;;  %v12398_v18 = vpack.c.bf16 %v5040_v61, %v5039_v58  ;;  %v15889_v37 = vsub.f32 1.0, %v15888_v51  ;;  %v15895_v61 = vld [vmem:[#allocation32_spill] sm:$0xff]  ;;  %v15897_v4 = vld [vmem:[#allocation9_spill] sm:$0xff] }
 0x379   : > { %v4195_v53 = vadd.f32 %v4163_v35, %v15885_v5  ;;  %v4322_v28 = vsel %vm15887_vm0, %v4290_v46, 0.0  ;;  %v4390_v13 = vadd.f32 %v12314_v41, %v4352_v56  ;;  %v4421_v0 = vmax.f32 %v4389_v11, 0.0  ;;  %v15899_v35 = vld [vmem:[#allocation70_spill] sm:$0xff] }
 0x37a   : > { %7025 = vperm.xlu0 %8772, %v15889_v37   ;;  %v4354_v3 = vadd.f32 %v4322_v28, %v4226_v57  ;;  %v12403_v33 = vadd.f32 -1.0, %v6766_v6  ;;  %v4391_v45 = vadd.f32 %v12314_v41, %v4353_v21  ;;  %v15892_v54 = vrot.slane %v15891_v24, 1  ;;  %v15900_v57 = vld [vmem:[#allocation45_spill] sm:$0xff]  ;;  %v15903_v5 = vld [vmem:[#allocation90_spill] sm:$0xff]  ;;  %v15904_v37 = vld [vmem:[#allocation80_spill] sm:$0xff] }
 0x37b   : > { %v4323_v19 = vadd.f32 %v15890_v52, %v4195_v53  ;;  %v15893_v9 = vrot.slane %v15846_v22, 1  ;;  %v15896_v17 = vsel %vm15686_vm11, %v15895_v61, -3.4028235e+38  ;;  %v15898_v11 = vmax.f32 %v15891_v24, %v15897_v4  ;;  %v15905_v52 = vld [vmem:[#allocation26_spill] sm:$0xff]  ;;  %vm15913_vm11 = vmmov %vm15881_vm2 }
 0x37c   : > { %v4422_v32 = vmax.f32 %v4390_v13, 0.0  ;;  %v4392_v7 = vadd.f32 %v12314_v41, %v4354_v3  ;;  %6956 = vperm.xlu1 %8773, %v12403_v33   ;;  %v6992_v56 = vsub.f32 1.0, %v15899_v35  ;;  %v4423_v12 = vmax.f32 %v4391_v45, 0.0  ;;  %v15920_v35 = vld [vmem:[#allocation47_spill] sm:$0xff] }
 0x37d   : > { %v4866_v58 = vsel %vm15894_vm13, %v15893_v9, %v15892_v54  ;;  %v4925_v6 = vmax.f32 %v15898_v11, %v15896_v17  ;;  %v4361_v16 = vadd.f32 %v12314_v41, %v4323_v19  ;;  %v15902_v46 = vsub.f32 1.0, %v15901_v34  ;;  %v15906_v41 = vld [vmem:[#allocation65_spill] sm:$0xff]  ;;  %v15925_v34 = vld [vmem:[#allocation22_spill] sm:$0xff] }
 0x37e   : > { %v4924_v22 = vmax.f32 %v15900_v57, %v4866_v58  ;;  %v6995_v53 = vsub.f32 1.0, %v15903_v5  ;;  %v12429_v28 = vpack.c.bf16 %v4422_v32, %v4421_v0  ;;  %v4424_v21 = vmax.f32 %v4392_v7, 0.0  ;;  %v15909_v54 = vld [vmem:[#allocation53_spill] sm:$0xff]  ;;  %v15911_v58 = vld [vmem:[#allocation54_spill] sm:$0xff] }
 0x37f   : > { %v5083_v10 = vmax.f32 %v4925_v6, %v12354_v40  ;;  %7035 = vperm.xlu0 %8772, %v15902_v46   ;;  %v6994_v3 = vsub.f32 1.0, %v15904_v37  ;;  %v4393_v13 = vmax.f32 %v4361_v16, 0.0  ;;  %v15907_v19 = vsel %vm15802_vm14, %v15906_v41, -3.4028235e+38  ;;  %v15908_v40 = vld [vmem:[#allocation114_spill] sm:$0xff]  ;;  %vm15917_vm14 = vmmov %vm15881_vm2  ;;  %v15918_v32 = vld [vmem:[#allocation113_spill] sm:$0xff] }
 0x380   : > { %v5082_v51 = vmax.f32 %v4924_v22, %v12341_v26  ;;  %v4806_v45 = vmax.f32 %v15908_v40, %v15907_v19  ;;  %v15910_v9 = vrot.slane %v15909_v54, 1  ;;  %v15912_v61 = vrot.slane %v15911_v58, 1  ;;  %7030 = vperm.xlu1 %8773, %v6992_v56   ;;  %v15914_v26 = vld [vmem:[#allocation83_spill] sm:$0xff]  ;;  %v15923_v16 = vld [vmem:[#allocation72_spill] sm:$0xff]  ;;  %v15926_v5 = vld [vmem:[#allocation41_spill] sm:$0xff] }
 0x381   : > { %v5085_v24 = vmax.f32 %v5083_v10, %v15905_v52  ;;  %v12445_v17 = vpack.c.bf16 %v4424_v21, %v4423_v12  ;;  %v15916_v1 = vrot.slane %v15908_v40, 1  ;;  %v15919_v7 = vrot.slane %v15918_v32, 1  ;;  %v15930_v40 = vld [vmem:[#allocation17_spill] sm:$0xff]  ;;  %vm16029_vm2 = vmmov %vm15922_vm1 }
 0x382   : > { %v4855_v0 = vsel %vm15913_vm11, %v15912_v61, %v15910_v9  ;;  %v5084_v4 = vmax.f32 %v5082_v51, %v15914_v26  ;;  %v15915_v11 = vmov %v15912_v61  ;;  %v15921_v57 = vrot.slane %v15920_v35, 1  ;;  %v15928_v51 = vld [vmem:[#allocation46_spill] sm:$0xff]  ;;  %v15932_v9 = vld [vmem:[#allocation21_spill] sm:$0xff]  ;;  %v15934_v26 = vld [vmem:[#allocation43_spill] sm:$0xff] }
 0x383   : > { %v4856_v6 = vsel %vm15917_vm14, %v15916_v1, %v15915_v11  ;;  %v15924_v12 = vmax.f32 %v15923_v16, 0.0  ;;  %7045 = vperm.xlu0 %8772, %v6995_v53   ;;  %v4903_v56 = vsel %vm15831_vm9, %v4855_v0, -3.4028235e+38  ;;  %v15927_v21 = vsel %vm15810_vm5, %v15926_v5, -3.4028235e+38  ;;  %v15935_v1 = vld [vmem:[#allocation51_spill] sm:$0xff]  ;;  %vm15944_vm5 = vmmov %vm15922_vm1 }
 0x384   : > { %v4858_v22 = vsel %vm15922_vm1, %v15921_v57, %v15919_v7  ;;  %v15929_v37 = vmax.f32 %v15918_v32, %v15928_v51  ;;  %v12472_v41 = vpack.c.bf16 %v5085_v24, %v5084_v4  ;;  %v4934_v19 = vmax.f32 %v4806_v45, %v4856_v6  ;;  %v15936_v24 = vld [vmem:[#allocation77_spill] sm:$0xff]  ;;  %7040 = vperm.xlu1 %8773, %v6994_v3   ;;  %v15939_v4 = vld [vmem:[#allocation56_spill] sm:$0xff]  ;;  %vm15947_vm9 = vmmov %vm15922_vm1 }
 0x385   : > { %v4425_v10 = vpack.c.bf16 %v15924_v12, %v4393_v13  ;;  %v4932_v46 = vmax.f32 %v15925_v34, %v4858_v22  ;;  %v15931_v13 = vmax.f32 %v15911_v58, %v15930_v40  ;;  %v6997_v36 = vsub.f32 1.0, %v12014_v62  ;;  %v15937_v58 = vld [vmem:[#allocation59_spill] sm:$0xff]  ;;  %v15942_v35 = vld [vmem:[#allocation49_spill] sm:$0xff]  ;;  %v15955_v40 = vld [vmem:[#allocation58_spill] sm:$0xff] }
 0x386   : > { %v4933_v52 = vmax.f32 %v15929_v37, %v15927_v21  ;;  %v4909_v61 = vsel %vm15879_vm12, %v15932_v9, -3.4028235e+38  ;;  %v6996_v0 = vsub.f32 1.0, %v15933_v23  ;;  %v6998_v45 = vsub.f32 1.0, %v12021_v14  ;;  %v15948_v3 = vld [vmem:[#allocation87_spill] sm:$0xff]  ;;  %v15954_v37 = vld [vmem:[#allocation73_spill] sm:$0xff] }
 0x387   : > { %v4935_v53 = vmax.f32 %v15931_v13, %v4903_v56  ;;  %8575 = vmatprep.mubr.bf16.mxu1 %v4425_v10  ;;  %v5172_v11 = vmax.f32 %v4932_v46, %v15934_v26  ;;  %v15938_v62 = vsel %vm15835_vm7, %v15937_v58, -3.4028235e+38  ;;  %v15941_v7 = vrot.slane %v15940_v30, 1  ;;  %v15950_v34 = vld [vmem:[#allocation55_spill] sm:$0xff]  ;;  %vm15953_vm7 = vmmov %vm15922_vm1  ;;  %7055 = vperm.xlu0 %8772, %v6997_v36   ;;  %v15956_v9 = vld [vmem:[#allocation89_spill] sm:$0xff] }
 0x388   : > { %v5173_v32 = vmax.f32 %v4933_v52, %v15935_v1  ;;  %8576 = vmatmul.mubr.bf16.vlgmr.msra.gmra.mrb[192].mxu1 %v15936_v24  ;;  %v4810_v6 = vmax.f32 %v15939_v4, %v15938_v62  ;;  %v15943_v57 = vrot.slane %v15942_v35, 1  ;;  %v15946_v12 = vrot.slane %v15939_v4, 1  ;;  %v15958_v26 = vld [vmem:[#allocation117_spill] sm:$0xff]  ;;  %v15962_v36 = vld [vmem:[#allocation11_spill] sm:$0xff]  ;;  %v15964_v4 = vld [vmem:[#allocation10_spill] sm:$0xff]  ;;  %7050 = vperm.xlu1 %8773, %v6996_v0  }
 0x389   : > { %8579 = vmatprep.mubr.bf16.mxu1 %v15948_v3  ;;  %8608 = vmatpush3.bf16.msra.mxu1 %v15949_v48  ;;  %v5174_v10 = vmax.f32 %v5172_v11, %v4934_v19  ;;  %v15951_v46 = vrot.slane %v15950_v34, 1  ;;  %v15952_v5 = vrot.slane %v15909_v54, 1  ;;  %v6999_v52 = vsub.f32 1.0, %v15954_v37  ;;  %v15971_v3 = vld [vmem:[#allocation85_spill] sm:$0xff] }
 0x38a   : > { %v4851_v22 = vsel %vm15944_vm5, %v15943_v57, %v15941_v7  ;;  %v15945_v16 = vmov %v15943_v57  ;;  %v5175_v56 = vmax.f32 %v5173_v32, %v4935_v53  ;;  %8613 = vmatprep.subr.bf16.mxu1 %v15636_v43  ;;  %v15957_v23 = vsel %vm15841_vm15, %v15956_v9, -3.4028235e+38  ;;  %v15967_v57 = vld [vmem:[#allocation60_spill] sm:$0xff]  ;;  %vm15970_vm15 = vmmov %vm15922_vm1 }
 0x38b   : > { %v4852_v14 = vsel %vm15947_vm9, %v15946_v12, %v15945_v16  ;;  %v4854_v21 = vsel %vm15953_vm7, %v15952_v5, %v15951_v46  ;;  %v4907_v51 = vsel %vm15868_vm8, %v4851_v22, -3.4028235e+38  ;;  %v15959_v54 = vmax.f32 %v15950_v34, %v15958_v26  ;;  %vm15966_vm8 = vmmov %vm15922_vm1  ;;  %7065 = vperm.xlu0 %8772, %v6999_v52   ;;  %v15985_v52 = vld [vmem:[#allocation18_spill] sm:$0xff] }
 0x38c   : > { %v4936_v13 = vmax.f32 %v15955_v40, %v4854_v21  ;;  %v4938_v1 = vmax.f32 %v4810_v6, %v4852_v14  ;;  %v12523_v32 = vpack.c.bf16 %v5175_v56, %v5174_v10  ;;  %v15961_v24 = vmax.f32 %v15942_v35, %v15960_v31  ;;  %v15975_v56 = vld [vmem:[#allocation67_spill] sm:$0xff]  ;;  %7060 = vperm.xlu1 %8773, %v6998_v45   ;;  %v15983_v31 = vld [vmem:[#allocation76_spill] sm:$0xff]  ;;  %vm16044_vm5 = vmmov %vm16029_vm2 }
 0x38d   : > { %v4937_v11 = vmax.f32 %v15959_v54, %v15957_v23  ;;  %v15963_v62 = vrot.slane %v15962_v36, 1  ;;  %v15965_v7 = vrot.slane %v15964_v4, 1  ;;  %v15968_v22 = vrot.slane %v15967_v57, 1  ;;  %v9132_v45 = vld [vmem:[%s14793_s2 + $0x4] ss:$8 sps:$4 sm:$0xff]   ;;  %vm16049_vm7 = vmmov %vm16029_vm2 }
 0x38e   : > { %v4939_v58 = vmax.f32 %v15961_v24, %v4907_v51  ;;  %v15969_v16 = vrot.slane %v15940_v30, 1  ;;  %v5217_v12 = vmax.f32 %v4936_v13, %v4934_v19  ;;  %v15972_v35 = vrot.slane %v15971_v3, 1  ;;  %v15976_v30 = vld [vmem:[#allocation20_spill] sm:$0xff]  ;;  %v15978_v51 = vld [vmem:[#allocation62_spill] sm:$0xff] }
 0x38f   : > { %v4848_v27 = vsel %vm15966_vm8, %v15965_v7, %v15963_v62  ;;  %v5218_v14 = vmax.f32 %v4937_v11, %v4935_v53  ;;  %v15973_v48 = vmov %v15963_v62  ;;  %v15977_v5 = vmax.f32 %v15967_v57, %v15976_v30  ;;  %v15979_v19 = vld [vmem:[#allocation24_spill] sm:$0xff]  ;;  %v15982_v11 = vld [vmem:[#allocation35_spill] sm:$0xff]  ;;  %v15984_v62 = vld [vmem:[#allocation38_spill] sm:$0xff] }
 0x390   : > { %v4850_v6 = vsel %vm15970_vm15, %v15969_v16, %v15968_v22  ;;  %v4879_v10 = vsel %vm15974_vm6, %v15973_v48, %v15972_v35  ;;  %v4942_v0 = vmax.f32 %v15978_v51, %v4848_v27  ;;  %v7001_v53 = vsub.f32 1.0, %v15979_v19  ;;  %v15980_v13 = vld [vmem:[#allocation12_spill] sm:$0xff]  ;;  %8580 = vmatmul.mubr.bf16.gmra.mrb[196].mxu1 %v15982_v11  ;;  %v9134_v22 = vld [vmem:[%s14793_s2 + $0x14] ss:$8 sps:$4 sm:$0xff]   ;;  %v9135_v35 = vld [vmem:[%s14793_s2 + $0x10] ss:$8 sps:$4 sm:$0xff]  }
 0x391   : > { %v4940_v34 = vmax.f32 %v15975_v56, %v4850_v6  ;;  %v4911_v46 = vsel %vm15887_vm0, %v4879_v10, -3.4028235e+38  ;;  %v4941_v21 = vmax.f32 %v15977_v5, %v4909_v61  ;;  %v5219_v37 = vmax.f32 %v5217_v12, %v4938_v1  ;;  %8583 = vmatprep.mubr.bf16.mxu1 %v15984_v62  ;;  %v9133_v57 = vld [vmem:[%s14793_s2] ss:$8 sps:$4 sm:$0xff]   ;;  %v9136_v48 = vld [vmem:[%s14793_s2 + $0x24] ss:$8 sps:$4 sm:$0xff]  }
 0x392   : > { %v5220_v40 = vmax.f32 %v5218_v14, %v4939_v58  ;;  %v15981_v9 = vmax.f32 %v15962_v36, %v15980_v13  ;;  %v7000_v24 = vsub.f32 1.0, %v15983_v31  ;;  %7075 = vperm.xlu0 %8772, %v7001_v53   ;;  %v7003_v7 = vsub.f32 1.0, %v15985_v52  ;;  %v15988_v6 = vld [vmem:[#allocation19_spill] sm:$0xff]  ;;  %v15991_v10 = vld [vmem:[#allocation96_spill] sm:$0xff]  ;;  %v9139_v51 = vld [vmem:[%s14793_s2 + $0x30] ss:$8 sps:$4 sm:$0xff]  }
 0x393   : > { %v5262_v26 = vmax.f32 %v4940_v34, %v4938_v1  ;;  %v5263_v54 = vmax.f32 %v4941_v21, %v4939_v58  ;;  %v15986_v58 = vld [vmem:[#allocation23_spill] sm:$0xff]  ;;  %v7005_v27 = vsub.f32 1.0, %v12073_v47  ;;  %v15987_v16 = vmov 0   ;;  %v15993_v21 = vld [vmem:[#allocation44_spill] sm:$0xff]  ;;  %v15996_v13 = vld [vmem:[#allocation97_spill] sm:$0xff] }
 0x394   : > { %v4943_v23 = vmax.f32 %v15981_v9, %v4911_v46  ;;  %v5221_v59 = vpack.c.bf16 %v5220_v40, %v5219_v37  ;;  %7070 = vperm.xlu1 %8773, %v7000_v24   ;;  %v7002_v36 = vsub.f32 1.0, %v15986_v58  ;;  %v7004_v12 = vsub.f32 1.0, %v12061_v38  ;;  %v15989_v14 = vld [vmem:[#allocation75_spill] sm:$0xff]  ;;  %v9138_v46 = vld [vmem:[%s14793_s2 + $0x34] ss:$8 sps:$4 sm:$0xff]   ;;  %v15998_v24 = vld [vmem:[#allocation100_spill] sm:$0xff] }
 0x395   : > { %v12559_v61 = vmax.f32 %v5262_v26, %v4942_v0  ;;  %v15990_v47 = vld [vmem:[#allocation103_spill] sm:$0xff]  ;;  %v7006_v56 = vsub.f32 1.0, %v15991_v10  ;;  %v7009_v38 = vsub.f32 1.0, %v12107_v29  ;;  %v7008_v30 = vsub.f32 1.0, %v12096_v60  ;;  %v15995_v60 = vld [vmem:[#allocation98_spill] sm:$0xff] }
 0x396   : > { %v12562_v4 = vmax.f32 %v5263_v54, %v4943_v23  ;;  %8644 = vmatpush3.bf16.msra.mxu0 %v5221_v59  ;;  %7085 = vperm.xlu0 %8772, %v7003_v7   ;;  %v7007_v3 = vsub.f32 1.0, %v15990_v47  ;;  %v9137_v34 = vld [vmem:[%s14793_s2 + $0x20] ss:$8 sps:$4 sm:$0xff]   ;;  %v7011_v29 = vsub.f32 1.0, %v15993_v21  ;;  %v9140_v0 = vld [vmem:[%s14793_s2 + $0x44] ss:$8 sps:$4 sm:$0xff]  }
 0x397   : > { %5319 = vmatprep.subr.bf16.mxu0 %v9132_v45  ;;  %v15992_v5 = vld [vmem:[#allocation79_spill] sm:$0xff]  ;;  %v7013_v53 = vsub.f32 1.0, %v15995_v60  ;;  %v9142_v40 = vld [vmem:[%s14793_s2 + $0x54] ss:$8 sps:$4 sm:$0xff]   ;;  %v7012_v9 = vsub.f32 1.0, %v15996_v13  ;;  %v7015_v23 = vsub.f32 1.0, %v12176_v8 }
 0x398   : > { %v5266_v1 = vpack.c.bf16 %v12562_v4, %v12559_v61  ;;  %8584 = vmatmul.mubr.bf16.gmra.mrb[200].mxu1 %v15988_v6  ;;  %7080 = vperm.xlu1 %8773, %v7002_v36   ;;  %v9141_v37 = vld [vmem:[%s14793_s2 + $0x40] ss:$8 sps:$4 sm:$0xff]   ;;  %v9143_v26 = vld [vmem:[%s14793_s2 + $0x50] ss:$8 sps:$4 sm:$0xff]   ;;  %v9144_v54 = vld [vmem:[%s14793_s2 + $0x64] ss:$8 sps:$4 sm:$0xff]  }
 0x399   : > { %8646 = vmatmul.mubr.msk.bf16.vlgmr.msra.gmra.mrb[4].mxu0 %vm4948_vm4, %v12160_v63  ;;  %8587 = vmatprep.mubr.bf16.mxu1 %v15989_v14  ;;  %v7017_v59 = vsub.f32 1.0, %v12264_v39  ;;  %v9145_v8 = vld [vmem:[%s14793_s2 + $0x60] ss:$8 sps:$4 sm:$0xff]   ;;  %v7016_v31 = vsub.f32 1.0, %v12187_v2  ;;  %v7019_v39 = vsub.f32 1.0, %v15998_v24  ;;  %v7021_v2 = vsub.f32 1.0, %v12366_v50 }
 0x39a   : > { %5320 = vmatpush1.bf16.msra.mxu0 %v9133_v57  ;;  %5351 = vmatprep.mubr.bf16.mxu0 %v15987_v16  ;;  %v9147_v62 = vld [vmem:[%s14793_s2 + $0x70] ss:$8 sps:$4 sm:$0xff]   ;;  %v9148_v52 = vld [vmem:[%s14795_s4 + $0x248] ss:$36 sps:$4 sm:$0xff]   ;;  %v7022_v58 = vsub.f32 1.0, %v12403_v33  ;;  %vm16028_vm12 = vcmp.lt.s32.totalorder %v9589_v25, 1 }
 0x39b   : > { %5321 = vmatprep.subr.bf16.mxu0 %v9134_v22  ;;  %7095 = vperm.xlu0 %8772, %v7005_v27   ;;  %v16001_v50 = vld [vmem:[#allocation82_spill] sm:$0xff]  ;;  %v9151_v33 = vld [vmem:[%s14795_s4 + $0x4c] ss:$36 sps:$4 sm:$0xff]   ;;  %v9157_v61 = vld [vmem:[%s14795_s4 + $0x124] ss:$36 sps:$4 sm:$0xff]  }
 0x39c   : > { %7090 = vperm.xlu1 %8773, %v7004_v12   ;;  %v9158_v4 = vld [vmem:[%s14795_s4 + $0x120] ss:$36 sps:$4 sm:$0xff]   ;;  %v9160_v36 = vld [vmem:[%s14795_s4 + $0x168] ss:$36 sps:$4 sm:$0xff]   ;;  %v9161_v27 = vld [vmem:[%s14795_s4 + $0x1b4] ss:$36 sps:$4 sm:$0xff]  }
 0x39d   : > { %v9162_v57 = vld [vmem:[%s14795_s4 + $0x1b0] ss:$36 sps:$4 sm:$0xff]   ;;  %v9163_v22 = vld [vmem:[%s14795_s4 + $0x1fc] ss:$36 sps:$4 sm:$0xff]   ;;  %v9165_v12 = vld [vmem:[%s14795_s4 + $0x244] ss:$36 sps:$4 sm:$0xff]  }
 0x39e   : > { %5322 = vmatpush1.bf16.msra.mxu0 %v9135_v35  ;;  %v9164_v6 = vld [vmem:[%s14795_s4 + $0x1f8] ss:$36 sps:$4 sm:$0xff]   ;;  %v9166_v14 = vld [vmem:[%s14795_s4 + $0x240] ss:$36 sps:$4 sm:$0xff]   ;;  %v9167_v47 = vld [vmem:[%s14795_s4 + $0x28c] ss:$36 sps:$4 sm:$0xff]  }
 0x39f   : > { %5323 = vmatprep.subr.bf16.mxu0 %v9136_v48  ;;  %7105 = vperm.xlu0 %8772, %v7007_v3   ;;  %v9168_v3 = vld [vmem:[%s14795_s4 + $0x288] ss:$36 sps:$4 sm:$0xff]   ;;  %v9169_v35 = vld [vmem:[%s14795_s4 + $0x2d4] ss:$36 sps:$4 sm:$0xff]   ;;  %v9171_v10 = vld [vmem:[%s14795_s4 + $0x31c] ss:$36 sps:$4 sm:$0xff]  }
 0x3a0   : > { %8588 = vmatmul.mubr.bf16.gmra.mrb[204].mxu1 %v12113_v42  ;;  %7100 = vperm.xlu1 %8773, %v7006_v56   ;;  %v15994_v42 = vld [vmem:[#allocation104_spill] sm:$0xff]  ;;  %v9170_v48 = vld [vmem:[%s14795_s4 + $0x2d0] ss:$36 sps:$4 sm:$0xff]   ;;  %v9172_v56 = vld [vmem:[%s14795_s4 + $0x318] ss:$36 sps:$4 sm:$0xff]  }
 0x3a1   : > { %8591 = vmatprep.mubr.bf16.mxu1 %v15992_v5  ;;  %v7010_v19 = vsub.f32 1.0, %v15994_v42  ;;  %v9177_v5 = vld [vmem:[%s14795_s4 + $0x3f4] ss:$36 sps:$4 sm:$0xff]   ;;  %vm16034_vm0 = vmmov %vm16028_vm12 }
 0x3a2   : > { %5324 = vmatpush1.bf16.msra.mxu0 %v9137_v34  ;;  %v9174_v34 = vld [vmem:[%s14795_s4 + $0x360] ss:$36 sps:$4 sm:$0xff]   ;;  %v9178_v21 = vld [vmem:[%s14795_s4 + $0x3f0] ss:$36 sps:$4 sm:$0xff]   ;;  %vm16040_vm14 = vmmov %vm16034_vm0 }
 0x3a3   : > { %5325 = vmatprep.subr.bf16.mxu0 %v9138_v46  ;;  %7115 = vperm.xlu0 %8772, %v7009_v38   ;;  %v9173_v38 = vld [vmem:[%s14795_s4 + $0x364] ss:$36 sps:$4 sm:$0xff]   ;;  %v9175_v46 = vld [vmem:[%s14795_s4 + $0x3ac] ss:$36 sps:$4 sm:$0xff]  }
 0x3a4   : > { %7110 = vperm.xlu1 %8773, %v7008_v30   ;;  %v9176_v30 = vld [vmem:[%s14795_s4 + $0x3a8] ss:$36 sps:$4 sm:$0xff]  }
 0x3a6   : > { %5326 = vmatpush1.bf16.msra.mxu0 %v9139_v51  ;;  %v9180_v51 = vld [vmem:[%s14795_s4 + $0x438] ss:$36 sps:$4 sm:$0xff]  }
 0x3a7   : > { %5327 = vmatprep.subr.bf16.mxu0 %v9140_v0  ;;  %7125 = vperm.xlu0 %8772, %v7011_v29   ;;  %v9179_v29 = vld [vmem:[%s14795_s4 + $0x43c] ss:$36 sps:$4 sm:$0xff]   ;;  %v9181_v0 = vld [vmem:[%s14795_s4 + $0x254] ss:$36 sps:$4 sm:$0xff]  }
 0x3a8   : > { %8592 = vmatmul.mubr.bf16.gmra.mrb[208].mxu1 %v12206_v20  ;;  %7120 = vperm.xlu1 %8773, %v7010_v19   ;;  %v15997_v20 = vld [vmem:[#allocation99_spill] sm:$0xff] }
 0x3a9   : > { %8595 = vmatprep.mubr.bf16.mxu1 %v12253_v44  ;;  %v7014_v11 = vsub.f32 1.0, %v15997_v20  ;;  %v9146_v44 = vld [vmem:[%s14793_s2 + $0x74] ss:$8 sps:$4 sm:$0xff]  }
 0x3aa   : > { %5328 = vmatpush1.bf16.msra.mxu0 %v9141_v37 }
 0x3ab   : > { %5329 = vmatprep.subr.bf16.mxu0 %v9142_v40  ;;  %7135 = vperm.xlu0 %8772, %v7013_v53  }
 0x3ac   : > { %7130 = vperm.xlu1 %8773, %v7012_v9  }
 0x3ae   : > { %5330 = vmatpush1.bf16.msra.mxu0 %v9143_v26 }
 0x3af   : > { %5331 = vmatprep.subr.bf16.mxu0 %v9144_v54  ;;  %7145 = vperm.xlu0 %8772, %v7015_v23  }
 0x3b0   : > { %8596 = vmatmul.mubr.bf16.gmra.mrb[212].mxu1 %v12284_v55  ;;  %7140 = vperm.xlu1 %8773, %v7014_v11   ;;  %v15999_v55 = vld [vmem:[#allocation50_spill] sm:$0xff] }
 0x3b1   : > { %8599 = vmatprep.mubr.bf16.mxu1 %v12346_v49  ;;  %v7018_v7 = vsub.f32 1.0, %v15999_v55  ;;  %v16000_v49 = vld [vmem:[#allocation84_spill] sm:$0xff] }
 0x3b2   : > { %5332 = vmatpush1.bf16.msra.mxu0 %v9145_v8  ;;  %v7020_v45 = vsub.f32 1.0, %v16000_v49 }
 0x3b3   : > { %5333 = vmatprep.subr.bf16.mxu0 %v9146_v44  ;;  %7155 = vperm.xlu0 %8772, %v7017_v59  }
 0x3b4   : > { %7150 = vperm.xlu1 %8773, %v7016_v31  }
 0x3b6   : > { %5334 = vmatpush1.bf16.msra.mxu0 %v9147_v62 }
 0x3b7   : > { %8411 = vmatprep.subr.bf16.mxu0 %v9148_v52  ;;  %7165 = vperm.xlu0 %8772, %v7019_v39  }
 0x3b8   : > { %8600 = vmatmul.mubr.bf16.gmra.mrb[216].mxu1 %v12387_v15  ;;  %7160 = vperm.xlu1 %8773, %v7018_v7   ;;  %v9149_v15 = vld [vmem:[%s14795_s4 + $0x4] ss:$36 sps:$4 sm:$0xff]  }
 0x3b9   : > { %8603 = vmatprep.mubr.bf16.mxu1 %v12429_v28  ;;  %v9152_v28 = vld [vmem:[%s14795_s4 + $0x48] ss:$36 sps:$4 sm:$0xff]  }
 0x3bb   : > { %7175 = vperm.xlu0 %8772, %v7021_v2  }
 0x3bc   : > { %7170 = vperm.xlu1 %8773, %v7020_v45  }
 0x3c0   : > { %8604 = vmatmul.mubr.bf16.gmra.mrb[220].mxu1 %v12445_v17  ;;  %7180 = vperm.xlu1 %8773, %v7022_v58   ;;  %v9153_v17 = vld [vmem:[%s14795_s4 + $0x94] ss:$36 sps:$4 sm:$0xff]  }
 0x3c1   : > { %8609 = vmatprep.mubr.msk.bf16.mxu1 %vm15102_vm10, %v15636_v43 }
 0x3c8   : > { %8610 = vmatmul.mubr.msk.bf16.vlgmr.msra.gmra.mrb[224].mxu1 %vm4948_vm4, %v12160_v63 }
 0x3c9   : > { %8614 = vmatpush3.bf16.msra.mxu1 %v16001_v50  ;;  %8615 = vmatprep.mubr.msk.bf16.mxu1 %vm15102_vm10, %v15636_v43 }
 0x3ca   : > { %8619 = vmatprep.subr.bf16.mxu1 %v15636_v43 }
 0x3d0   : > { %8616 = vmatmul.mubr.msk.bf16.vlgmr.msra.gmra.mrb[228].mxu1 %vm4948_vm4, %v12160_v63 }
 0x3d1   : > { %8620 = vmatpush3.bf16.msra.mxu1 %v12398_v18  ;;  %8621 = vmatprep.mubr.msk.bf16.mxu1 %vm15102_vm10, %v15636_v43  ;;  %v9150_v18 = vld [vmem:[%s14795_s4] ss:$36 sps:$4 sm:$0xff]  }
 0x3d2   : > { %8625 = vmatprep.subr.bf16.mxu1 %v15636_v43 }
 0x3d8   : > { %8622 = vmatmul.mubr.msk.bf16.vlgmr.msra.gmra.mrb[232].mxu1 %vm4948_vm4, %v12160_v63 }
 0x3d9   : > { %8626 = vmatpush3.bf16.msra.mxu1 %v12472_v41  ;;  %8627 = vmatprep.mubr.msk.bf16.mxu1 %vm15102_vm10, %v15636_v43  ;;  %v9155_v41 = vld [vmem:[%s14795_s4 + $0xdc] ss:$36 sps:$4 sm:$0xff]  }
 0x3da   : > { %8637 = vmatprep.subr.bf16.mxu1 %v15636_v43 }
 0x3e0   : > { %8628 = vmatmul.mubr.msk.bf16.vlgmr.msra.gmra.mrb[236].mxu1 %vm4948_vm4, %v12160_v63 }
 0x3e1   : > { %8638 = vmatpush3.bf16.msra.mxu1 %v12523_v32  ;;  %8639 = vmatprep.mubr.msk.bf16.mxu1 %vm15102_vm10, %v15636_v43  ;;  %v9156_v32 = vld [vmem:[%s14795_s4 + $0xd8] ss:$36 sps:$4 sm:$0xff]  }
 0x3e2   : > { %8649 = vmatprep.subr.bf16.mxu1 %v15636_v43 }
 0x3e8   : > { %8640 = vmatmul.mubr.msk.bf16.vlgmr.msra.gmra.mrb[240].mxu1 %vm4948_vm4, %v12160_v63 }
 0x3e9   : > { %8650 = vmatpush3.bf16.msra.mxu1 %v5266_v1  ;;  %8651 = vmatprep.mubr.msk.bf16.mxu1 %vm15102_vm10, %v15636_v43  ;;  %v9159_v1 = vld [vmem:[%s14795_s4 + $0x16c] ss:$36 sps:$4 sm:$0xff]  }
 0x3ea   : > { %5456 = vmatprep.subr.bf16.mxu1 %v9149_v15 }
 0x3f0   : > { %8652 = vmatmul.mubr.msk.bf16.vlgmr.msra.gmra.mrb[244].mxu1 %vm4948_vm4, %v12160_v63  ;;  %v9154_v63 = vld [vmem:[%s14795_s4 + $0x90] ss:$36 sps:$4 sm:$0xff]  }
 0x3f1   : > { %5457 = vmatpush1.bf16.msra.mxu1 %v9150_v18 }
 0x3f2   : > { %5458 = vmatprep.subr.bf16.mxu1 %v9151_v33 }
 0x3f5   : > { %5459 = vmatpush1.bf16.msra.mxu1 %v9152_v28 }
 0x3f6   : > { %5460 = vmatprep.subr.bf16.mxu1 %v9153_v17 }
 0x3f9   : > { %5461 = vmatpush1.bf16.msra.mxu1 %v9154_v63 }
 0x3fa   : > { %5462 = vmatprep.subr.bf16.mxu1 %v9155_v41 }
 0x3fd   : > { %5463 = vmatpush1.bf16.msra.mxu1 %v9156_v32 }
 0x3fe   : > { %5464 = vmatprep.subr.bf16.mxu1 %v9157_v61 }
 0x401   : > { %5465 = vmatpush1.bf16.msra.mxu1 %v9158_v4 }
 0x402   : > { %5466 = vmatprep.subr.bf16.mxu1 %v9159_v1 }
 0x405   : > { %5467 = vmatpush1.bf16.msra.mxu1 %v9160_v36 }
 0x406   : > { %5468 = vmatprep.subr.bf16.mxu1 %v9161_v27 }
 0x409   : > { %5469 = vmatpush1.bf16.msra.mxu1 %v9162_v57 }
 0x40a   : > { %5470 = vmatprep.subr.bf16.mxu1 %v9163_v22 }
 0x40d   : > { %5471 = vmatpush1.bf16.msra.mxu1 %v9164_v6 }
 0x40e   : > { %5472 = vmatprep.subr.bf16.mxu1 %v9165_v12 }
 0x411   : > { %5473 = vmatpush1.bf16.msra.mxu1 %v9166_v14 }
 0x412   : > { %5474 = vmatprep.subr.bf16.mxu1 %v9167_v47 }
 0x415   : > { %5475 = vmatpush1.bf16.msra.mxu1 %v9168_v3 }
 0x416   : > { %5476 = vmatprep.subr.bf16.mxu1 %v9169_v35 }
 0x419   : > { %5477 = vmatpush1.bf16.msra.mxu1 %v9170_v48  ;;  %v12786_v42 = vpop.f32.mrb[0].mxu0  ;;  %v9182_v48 = vld [vmem:[%s14795_s4 + $0x8] ss:$36 sps:$4 sm:$0xff]  }
 0x41a   : > { %5478 = vmatprep.subr.bf16.mxu1 %v9171_v10  ;;  %v8635_v19 = vpop.f32.mrb[1].mxu0  ;;  %v9183_v10 = vld [vmem:[%s14795_s4 + $0x290] ss:$36 sps:$4 sm:$0xff]  }
 0x41b   : > { %v5169_v60 = vpop.f32.mrb[2].mxu0 }
 0x41c   : > { %v8636_v53 = vpop.f32.mrb[3].mxu0 }
 0x41d   : > { %5479 = vmatpush1.bf16.msra.mxu1 %v9172_v56  ;;  %v9189_v53 = vld [vmem:[%s14795_s4 + $0x368] ss:$36 sps:$4 sm:$0xff]  }
 0x41e   : > { %5480 = vmatprep.subr.bf16.mxu1 %v9173_v38  ;;  %v9184_v38 = vld [vmem:[%s14795_s4 + $0x50] ss:$36 sps:$4 sm:$0xff]  }
 0x421   : > { %5481 = vmatpush1.bf16.msra.mxu1 %v9174_v34 }
 0x422   : > { %5482 = vmatprep.subr.bf16.mxu1 %v9175_v46  ;;  %v9185_v46 = vld [vmem:[%s14795_s4 + $0x2d8] ss:$36 sps:$4 sm:$0xff]  }
 0x425   : > { %5483 = vmatpush1.bf16.msra.mxu1 %v9176_v30 }
 0x426   : > { %5484 = vmatprep.subr.bf16.mxu1 %v9177_v5 }
 0x429   : > { %5485 = vmatpush1.bf16.msra.mxu1 %v9178_v21  ;;  %v9186_v21 = vld [vmem:[%s14795_s4 + $0x98] ss:$36 sps:$4 sm:$0xff]  }
 0x42a   : > { %5486 = vmatprep.subr.bf16.mxu1 %v9179_v29  ;;  %v9187_v29 = vld [vmem:[%s14795_s4 + $0x320] ss:$36 sps:$4 sm:$0xff]  }
 0x42d   : > { %5487 = vmatpush1.bf16.msra.mxu1 %v9180_v51 }
 0x42e   : > { %8451 = vmatprep.subr.bf16.mxu1 %v9181_v0  ;;  %v9188_v0 = vld [vmem:[%s14795_s4 + $0xe0] ss:$36 sps:$4 sm:$0xff]  }
 0x45b   : > { %v12788_v37 = vpop.f32.mrb[192].mxu1 }
 0x45c   : > { %v12790_v40 = vpop.f32.mrb[193].mxu1 }
 0x45d   : > { %v12792_v13 = vpop.f32.mrb[194].mxu1 }
 0x45e   : > { %v12794_v9 = vpop.f32.mrb[195].mxu1 }
 0x463   : > { %v12796_v23 = vpop.f32.mrb[196].mxu1 }
 0x464   : > { %v12798_v26 = vpop.f32.mrb[197].mxu1 }
 0x465   : > { %v12800_v54 = vpop.f32.mrb[198].mxu1 }
 0x466   : > { %v12802_v20 = vpop.f32.mrb[199].mxu1 }
 0x46b   : > { %v12806_v44 = vpop.f32.mrb[200].mxu1 }
 0x46c   : > { %v12804_v11 = vpop.f32.mrb[4].mxu0  ;;  %v12808_v24 = vpop.f32.mrb[201].mxu1 }
 0x46d   : > { %v8647_v59 = vpop.f32.mrb[5].mxu0  ;;  %v12810_v39 = vpop.f32.mrb[202].mxu1 }
 0x46e   : > { %v5259_v8 = vpop.f32.mrb[6].mxu0  ;;  %v12812_v62 = vpop.f32.mrb[203].mxu1 }
 0x46f   : > { %v8648_v31 = vpop.f32.mrb[7].mxu0  ;;  %16002 = vst [vmem:[#allocation101_spill] sm:$0xff] %v12812_v62  ;;  %v9322_v62 = vld [vmem:[%s11850_s15 + $0xb0] sm:$0xff] }
 0x470   : > { %v9190_v31 = vld [vmem:[%s14795_s4 + $0x128] ss:$36 sps:$4 sm:$0xff]  }
 0x473   : > { %v12814_v52 = vpop.f32.mrb[204].mxu1 }
 0x474   : > { %16003 = vst [vmem:[#allocation86_spill] sm:$0xff] %v12814_v52  ;;  %v12816_v55 = vpop.f32.mrb[205].mxu1 }
 0x475   : > { %16004 = vst [vmem:[#allocation102_spill] sm:$0xff] %v12816_v55  ;;  %v12818_v7 = vpop.f32.mrb[206].mxu1 }
 0x476   : > { %16005 = vst [vmem:[#allocation107_spill] sm:$0xff] %v12818_v7  ;;  %v12820_v2 = vpop.f32.mrb[207].mxu1 }
 0x477   : > { %16006 = vst [vmem:[#allocation28_spill] sm:$0xff] %v12820_v2  ;;  %v9306_v2 = vld [vmem:[%s11850_s15 + $0x30] sm:$0xff] }
 0x47b   : > { %v12822_v49 = vpop.f32.mrb[208].mxu1 }
 0x47c   : > { %16007 = vst [vmem:[#allocation34_spill] sm:$0xff] %v12822_v49  ;;  %v12824_v45 = vpop.f32.mrb[209].mxu1 }
 0x47d   : > { %16008 = vst [vmem:[#allocation33_spill] sm:$0xff] %v12824_v45  ;;  %v12826_v58 = vpop.f32.mrb[210].mxu1 }
 0x47e   : > { %16009 = vst [vmem:[#allocation108_spill] sm:$0xff] %v12826_v58  ;;  %v12828_v50 = vpop.f32.mrb[211].mxu1 }
 0x47f   : > { %16010 = vst [vmem:[#allocation111_spill] sm:$0xff] %v12828_v50 }
 0x483   : > { %v12830_v15 = vpop.f32.mrb[212].mxu1 }
 0x484   : > { %16011 = vst [vmem:[#allocation27_spill] sm:$0xff] %v12830_v15  ;;  %v12832_v18 = vpop.f32.mrb[213].mxu1  ;;  %v9301_v15 = vld [vmem:[%s11850_s15 + $0x8] sm:$0xff] }
 0x485   : > { %16012 = vst [vmem:[#allocation30_spill] sm:$0xff] %v12832_v18  ;;  %v12834_v33 = vpop.f32.mrb[214].mxu1 }
 0x486   : > { %16013 = vst [vmem:[#allocation105_spill] sm:$0xff] %v12834_v33  ;;  %v12836_v28 = vpop.f32.mrb[215].mxu1  ;;  %v16064_v33 = vmov 0 }
 0x487   : > { %16014 = vst [vmem:[#allocation106_spill] sm:$0xff] %v12836_v28 }
 0x48b   : > { %v12838_v17 = vpop.f32.mrb[216].mxu1 }
 0x48c   : > { %16015 = vst [vmem:[#allocation57_spill] sm:$0xff] %v12838_v17  ;;  %v12840_v63 = vpop.f32.mrb[217].mxu1 }
 0x48d   : > { %16016 = vst [vmem:[#allocation112_spill] sm:$0xff] %v12840_v63  ;;  %v12842_v41 = vpop.f32.mrb[218].mxu1 }
 0x48e   : > { %16017 = vst [vmem:[#allocation92_spill] sm:$0xff] %v12842_v41  ;;  %v12844_v32 = vpop.f32.mrb[219].mxu1 }
 0x48f   : > { %16018 = vst [vmem:[#allocation88_spill] sm:$0xff] %v12844_v32 }
 0x493   : > { %v12846_v61 = vpop.f32.mrb[220].mxu1 }
 0x494   : > { %16019 = vst [vmem:[#allocation48_spill] sm:$0xff] %v12846_v61  ;;  %v12848_v4 = vpop.f32.mrb[221].mxu1 }
 0x495   : > { %16020 = vst [vmem:[#allocation115_spill] sm:$0xff] %v12848_v4  ;;  %v12850_v1 = vpop.f32.mrb[222].mxu1  ;;  %v16042_v4 = vmov 0 }
 0x496   : > { %16021 = vst [vmem:[#allocation37_spill] sm:$0xff] %v12850_v1  ;;  %v12852_v36 = vpop.f32.mrb[223].mxu1 }
 0x497   : > { %16022 = vst [vmem:[#allocation7_spill] sm:$0xff] %v12852_v36 }
 0x49b   : > { %v4986_v27 = vpop.f32.mrb[224].mxu1 }
 0x49c   : > { %v8611_v57 = vpop.f32.mrb[225].mxu1 }
 0x49d   : > { %v4989_v22 = vpop.f32.mrb[226].mxu1 }
 0x49e   : > { %v8612_v6 = vpop.f32.mrb[227].mxu1  ;;  %v9192_v22 = vld [vmem:[%s14795_s4 + $0x170] ss:$36 sps:$4 sm:$0xff]  }
 0x4a3   : > { %v5031_v12 = vpop.f32.mrb[228].mxu1 }
 0x4a4   : > { %v5315_v14 = vpack.c.bf16 %v5031_v12, %v4986_v27  ;;  %v8617_v47 = vpop.f32.mrb[229].mxu1  ;;  %v9191_v27 = vld [vmem:[%s14795_s4 + $0x3b0] ss:$36 sps:$4 sm:$0xff]  }
 0x4a5   : > { %v5034_v3 = vpop.f32.mrb[230].mxu1 }
 0x4a6   : > { %v8618_v35 = vpop.f32.mrb[231].mxu1  ;;  %5352 = vmatmul.mubr.bf16.vlgmr.msra.gmra.mrb[8].mxu0 %v5315_v14  ;;  %v9193_v14 = vld [vmem:[%s14795_s4 + $0x3f8] ss:$36 sps:$4 sm:$0xff]  }
 0x4a7   : > { %5361 = vmatprep.mubr.bf16.mxu0 %v15987_v16  ;;  %8412 = vmatpush3.bf16.msra.mxu0 %v9182_v48  ;;  %v9194_v35 = vld [vmem:[%s14795_s4 + $0x1b8] ss:$36 sps:$4 sm:$0xff]  }
 0x4a8   : > { %8413 = vmatprep.subr.bf16.mxu0 %v9183_v10  ;;  %v9196_v10 = vld [vmem:[%s14795_s4 + $0x200] ss:$36 sps:$4 sm:$0xff]  }
 0x4ab   : > { %v5076_v56 = vpop.f32.mrb[232].mxu1  ;;  %8414 = vmatpush3.bf16.msra.mxu0 %v9184_v38 }
 0x4ac   : > { %v8623_v34 = vpop.f32.mrb[233].mxu1  ;;  %8415 = vmatprep.subr.bf16.mxu0 %v9185_v46 }
 0x4ad   : > { %v5079_v30 = vpop.f32.mrb[234].mxu1  ;;  %v9197_v34 = vld [vmem:[%s14795_s4 + $0x10] ss:$36 sps:$4 sm:$0xff]  }
 0x4ae   : > { %v8624_v5 = vpop.f32.mrb[235].mxu1 }
 0x4af   : > { %8416 = vmatpush3.bf16.msra.mxu0 %v9186_v21  ;;  %v16023_v21 = vld [vmem:[#allocation13_spill] sm:$0xff] }
 0x4b0   : > { %8417 = vmatprep.subr.bf16.mxu0 %v9187_v29 }
 0x4b3   : > { %v5121_v51 = vpop.f32.mrb[236].mxu1  ;;  %8418 = vmatpush3.bf16.msra.mxu0 %v9188_v0  ;;  %v16024_v0 = vld [vmem:[#allocation14_spill] sm:$0xff] }
 0x4b4   : > { %v5316_v19 = vpack.c.bf16 %v5121_v51, %v5076_v56  ;;  %v8629_v60 = vpop.f32.mrb[237].mxu1  ;;  %8419 = vmatprep.subr.bf16.mxu0 %v9189_v53 }
 0x4b5   : > { %v5124_v59 = vpop.f32.mrb[238].mxu1 }
 0x4b6   : > { %v8630_v8 = vpop.f32.mrb[239].mxu1  ;;  %5362 = vmatmul.mubr.bf16.gmra.mrb[12].mxu0 %v5316_v19 }
 0x4b7   : > { %5371 = vmatprep.mubr.bf16.mxu0 %v15987_v16  ;;  %8420 = vmatpush3.bf16.msra.mxu0 %v9190_v31 }
 0x4b8   : > { %8421 = vmatprep.subr.bf16.mxu0 %v9191_v27 }
 0x4bb   : > { %v5211_v57 = vpop.f32.mrb[240].mxu1  ;;  %8422 = vmatpush3.bf16.msra.mxu0 %v9192_v22 }
 0x4bc   : > { %v5317_v6 = vpack.c.bf16 %v5211_v57, %v12786_v42  ;;  %v8641_v12 = vpop.f32.mrb[241].mxu1  ;;  %8423 = vmatprep.subr.bf16.mxu0 %v9193_v14  ;;  %v9195_v42 = vld [vmem:[%s14795_s4 + $0x440] ss:$36 sps:$4 sm:$0xff]  }
 0x4bd   : > { %v5214_v47 = vpop.f32.mrb[242].mxu1 }
 0x4be   : > { %v8642_v3 = vpop.f32.mrb[243].mxu1  ;;  %5372 = vmatmul.mubr.bf16.gmra.mrb[16].mxu0 %v5317_v6  ;;  %v9198_v47 = vld [vmem:[%s14795_s4 + $0xc] ss:$36 sps:$4 sm:$0xff]  }
 0x4bf   : > { %5381 = vmatprep.mubr.bf16.mxu0 %v15987_v16  ;;  %8424 = vmatpush3.bf16.msra.mxu0 %v9194_v35  ;;  %v9199_v3 = vld [vmem:[%s14795_s4 + $0x14] ss:$36 sps:$4 sm:$0xff]  }
 0x4c0   : > { %8425 = vmatprep.subr.bf16.mxu0 %v9195_v42  ;;  %v9200_v35 = vld [vmem:[%s14795_s4 + $0x58] ss:$36 sps:$4 sm:$0xff]  }
 0x4c1   : > { %v9201_v42 = vld [vmem:[%s14795_s4 + $0x29c] ss:$36 sps:$4 sm:$0xff]  }
 0x4c3   : > { %v5301_v48 = vpop.f32.mrb[244].mxu1  ;;  %8426 = vmatpush3.bf16.msra.mxu0 %v9196_v10  ;;  %v9203_v10 = vld [vmem:[%s14795_s4 + $0x5c] ss:$36 sps:$4 sm:$0xff]  }
 0x4c4   : > { %v5318_v56 = vpack.c.bf16 %v5301_v48, %v12804_v11  ;;  %v8653_v38 = vpop.f32.mrb[245].mxu1  ;;  %5714 = vmatprep.subr.bf16.mxu0 %v9197_v34  ;;  %v9202_v48 = vld [vmem:[%s14795_s4 + $0x54] ss:$36 sps:$4 sm:$0xff]  }
 0x4c5   : > { %v5304_v46 = vpop.f32.mrb[246].mxu1  ;;  %v9205_v38 = vld [vmem:[%s14795_s4 + $0x2e4] ss:$36 sps:$4 sm:$0xff]  }
 0x4c6   : > { %v8654_v30 = vpop.f32.mrb[247].mxu1  ;;  %5382 = vmatmul.mubr.bf16.gmra.mrb[20].mxu0 %v5318_v56  ;;  %v9204_v56 = vld [vmem:[%s14795_s4 + $0xa0] ss:$36 sps:$4 sm:$0xff]  }
 0x579   : > { %v5353_v5 = vpop.f32.mrb[8].mxu0 }
 0x57a   : > { %v5354_v29 = vadd.f32 %v5353_v5, %v16023_v21  ;;  %v5355_v51 = vpop.f32.mrb[9].mxu0 }
 0x57b   : > { %v5356_v19 = vadd.f32 %v5355_v51, %v16024_v0  ;;  %v5357_v60 = vpop.f32.mrb[10].mxu0 }
 0x57c   : > { %v5392_v53 = vmax.f32 %v5354_v29, 0.0  ;;  %v5358_v59 = vadd.f32 %v5357_v60, %v16023_v21  ;;  %v5359_v11 = vpop.f32.mrb[11].mxu0  ;;  %v9206_v29 = vld [vmem:[%s14795_s4 + $0x9c] ss:$36 sps:$4 sm:$0xff]  }
 0x57d   : > { %v5393_v8 = vmax.f32 %v5356_v19, 0.0  ;;  %v5360_v31 = vadd.f32 %v5359_v11, %v16024_v0  ;;  %v9207_v19 = vld [vmem:[%s14795_s4 + $0xa4] ss:$36 sps:$4 sm:$0xff]  }
 0x57e   : > { %v5394_v27 = vmax.f32 %v5358_v59, 0.0  ;;  %v5448_v6 = vpack.c.bf16 %v5392_v53, %v15636_v43  ;;  %v9208_v11 = vld [vmem:[%s14795_s4 + $0xe8] ss:$36 sps:$4 sm:$0xff]  }
 0x57f   : > { %v5449_v57 = vpack.c.bf16 %v5393_v8, %v15636_v43  ;;  %v5395_v22 = vmax.f32 %v5360_v31, 0.0 }
 0x580   : > { %v12913_v12 = vpack.c.bf16 %v5394_v27, %v5392_v53 }
 0x581   : > { %v12915_v14 = vpack.c.bf16 %v5395_v22, %v5393_v8  ;;  %5488 = vmatprep.mubr.bf16.mxu1 %v5449_v57  ;;  %5561 = vmatprep.mubr.bf16.mxu0 %v5449_v57  ;;  %v9209_v8 = vld [vmem:[%s14795_s4 + $0x32c] ss:$36 sps:$4 sm:$0xff]  }
 0x582   : > { %5489 = vmatmul.mubr.bf16.vlgmr.msra.gmra.mrb[248].mxu1 %v5448_v6  ;;  %5562 = vmatmul.mubr.bf16.vlgmr.msra.gmra.mrb[24].mxu0 %v5448_v6 }
 0x583   : > { %5715 = vmatpush1.bf16.msra.mxu0 %v9198_v47  ;;  %8452 = vmatpush3.bf16.msra.mxu1 %v9199_v3 }
 0x584   : > { %5716 = vmatprep.subr.bf16.mxu0 %v9200_v35  ;;  %8453 = vmatprep.subr.bf16.mxu1 %v9201_v42  ;;  %v9210_v42 = vld [vmem:[%s14795_s4 + $0xe4] ss:$36 sps:$4 sm:$0xff]  }
 0x587   : > { %5717 = vmatpush1.bf16.msra.mxu0 %v9202_v48  ;;  %8454 = vmatpush3.bf16.msra.mxu1 %v9203_v10  ;;  %v9211_v48 = vld [vmem:[%s14795_s4 + $0xec] ss:$36 sps:$4 sm:$0xff]  }
 0x588   : > { %5718 = vmatprep.subr.bf16.mxu0 %v9204_v56  ;;  %8455 = vmatprep.subr.bf16.mxu1 %v9205_v38 }
 0x589   : > { %v5363_v34 = vpop.f32.mrb[12].mxu0 }
 0x58a   : > { %v5364_v46 = vadd.f32 %v5363_v34, %v16023_v21  ;;  %v5365_v30 = vpop.f32.mrb[13].mxu0 }
 0x58b   : > { %v5366_v5 = vadd.f32 %v5365_v30, %v16024_v0  ;;  %5719 = vmatpush1.bf16.msra.mxu0 %v9206_v29  ;;  %v5367_v51 = vpop.f32.mrb[14].mxu0  ;;  %8456 = vmatpush3.bf16.msra.mxu1 %v9207_v19 }
 0x58c   : > { %v5396_v60 = vmax.f32 %v5364_v46, 0.0  ;;  %v5368_v53 = vadd.f32 %v5367_v51, %v16023_v21  ;;  %v5369_v59 = vpop.f32.mrb[15].mxu0  ;;  %5720 = vmatprep.subr.bf16.mxu0 %v9208_v11  ;;  %8457 = vmatprep.subr.bf16.mxu1 %v9209_v8  ;;  %v9215_v51 = vld [vmem:[%s14795_s4 + $0x134] ss:$36 sps:$4 sm:$0xff]   ;;  %v9217_v11 = vld [vmem:[%s14795_s4 + $0x3bc] ss:$36 sps:$4 sm:$0xff]  }
 0x58d   : > { %v5397_v31 = vmax.f32 %v5366_v5, 0.0  ;;  %v5370_v57 = vadd.f32 %v5369_v59, %v16024_v0  ;;  %v9214_v5 = vld [vmem:[%s14795_s4 + $0x12c] ss:$36 sps:$4 sm:$0xff]   ;;  %v9216_v59 = vld [vmem:[%s14795_s4 + $0x178] ss:$36 sps:$4 sm:$0xff]  }
 0x58e   : > { %v12957_v6 = vpack.c.bf16 %v5396_v60, %v5394_v27  ;;  %v5398_v47 = vmax.f32 %v5368_v53, 0.0  ;;  %v9212_v27 = vld [vmem:[%s14795_s4 + $0x130] ss:$36 sps:$4 sm:$0xff]  }
 0x58f   : > { %v12959_v3 = vpack.c.bf16 %v5397_v31, %v5395_v22  ;;  %v5399_v35 = vmax.f32 %v5370_v57, 0.0  ;;  %5721 = vmatpush1.bf16.msra.mxu0 %v9210_v42  ;;  %8458 = vmatpush3.bf16.msra.mxu1 %v9211_v48  ;;  %v9213_v22 = vld [vmem:[%s14795_s4 + $0x374] ss:$36 sps:$4 sm:$0xff]  }
 0x590   : > { %v12967_v10 = vpack.c.bf16 %v5398_v47, %v5396_v60  ;;  %5722 = vmatprep.subr.bf16.mxu0 %v9212_v27  ;;  %8459 = vmatprep.subr.bf16.mxu1 %v9213_v22  ;;  %v9218_v22 = vld [vmem:[%s14795_s4 + $0x174] ss:$36 sps:$4 sm:$0xff]  }
 0x591   : > { %v12975_v56 = vpack.c.bf16 %v5399_v35, %v5397_v31  ;;  %v5373_v38 = vpop.f32.mrb[16].mxu0  ;;  %5498 = vmatprep.mubr.bf16.mxu1 %v12959_v3  ;;  %5569 = vmatprep.mubr.bf16.mxu0 %v12959_v3 }
 0x592   : > { %v5374_v34 = vadd.f32 %v5373_v38, %v16023_v21  ;;  %v5375_v46 = vpop.f32.mrb[17].mxu0  ;;  %5499 = vmatmul.mubr.bf16.gmra.mrb[252].mxu1 %v12957_v6  ;;  %5570 = vmatmul.mubr.bf16.gmra.mrb[28].mxu0 %v12957_v6  ;;  %v9219_v38 = vld [vmem:[%s14795_s4 + $0x17c] ss:$36 sps:$4 sm:$0xff]  }
 0x593   : > { %v5376_v30 = vadd.f32 %v5375_v46, %v16024_v0  ;;  %5723 = vmatpush1.bf16.msra.mxu0 %v9214_v5  ;;  %v5377_v29 = vpop.f32.mrb[18].mxu0  ;;  %8460 = vmatpush3.bf16.msra.mxu1 %v9215_v51 }
 0x594   : > { %v5400_v19 = vmax.f32 %v5374_v34, 0.0  ;;  %v5378_v60 = vadd.f32 %v5377_v29, %v16023_v21  ;;  %v5379_v53 = vpop.f32.mrb[19].mxu0  ;;  %5724 = vmatprep.subr.bf16.mxu0 %v9216_v59  ;;  %8461 = vmatprep.subr.bf16.mxu1 %v9217_v11 }
 0x595   : > { %v5401_v8 = vmax.f32 %v5376_v30, 0.0  ;;  %v5380_v31 = vadd.f32 %v5379_v53, %v16024_v0  ;;  %v9223_v53 = vld [vmem:[%s14795_s4 + $0x1c4] ss:$36 sps:$4 sm:$0xff]  }
 0x596   : > { %v12997_v57 = vpack.c.bf16 %v5400_v19, %v5398_v47  ;;  %v5402_v42 = vmax.f32 %v5378_v60, 0.0  ;;  %v9220_v47 = vld [vmem:[%s14795_s4 + $0x1c0] ss:$36 sps:$4 sm:$0xff]  }
 0x597   : > { %v12999_v48 = vpack.c.bf16 %v5401_v8, %v5399_v35  ;;  %v5403_v27 = vmax.f32 %v5380_v31, 0.0  ;;  %5725 = vmatpush1.bf16.msra.mxu0 %v9218_v22  ;;  %8462 = vmatpush3.bf16.msra.mxu1 %v9219_v38  ;;  %v9221_v35 = vld [vmem:[%s14795_s4 + $0x404] ss:$36 sps:$4 sm:$0xff]   ;;  %v9225_v22 = vld [vmem:[%s14795_s4 + $0x44c] ss:$36 sps:$4 sm:$0xff]  }
 0x598   : > { %v13007_v34 = vpack.c.bf16 %v5402_v42, %v5400_v19  ;;  %5726 = vmatprep.subr.bf16.mxu0 %v9220_v47  ;;  %8463 = vmatprep.subr.bf16.mxu1 %v9221_v35  ;;  %v9222_v19 = vld [vmem:[%s14795_s4 + $0x1bc] ss:$36 sps:$4 sm:$0xff]   ;;  %v9224_v31 = vld [vmem:[%s14795_s4 + $0x208] ss:$36 sps:$4 sm:$0xff]  }
 0x599   : > { %v13015_v46 = vpack.c.bf16 %v5403_v27, %v5401_v8  ;;  %v5383_v30 = vpop.f32.mrb[20].mxu0  ;;  %5508 = vmatprep.mubr.bf16.mxu1 %v12999_v48  ;;  %5577 = vmatprep.mubr.bf16.mxu0 %v12999_v48 }
 0x59a   : > { %v5384_v5 = vadd.f32 %v5383_v30, %v16023_v21  ;;  %v5385_v29 = vpop.f32.mrb[21].mxu0  ;;  %5509 = vmatmul.mubr.bf16.gmra.mrb[0].mxu1 %v12997_v57  ;;  %5578 = vmatmul.mubr.bf16.gmra.mrb[32].mxu0 %v12997_v57 }
 0x59b   : > { %v5386_v51 = vadd.f32 %v5385_v29, %v16024_v0  ;;  %5727 = vmatpush1.bf16.msra.mxu0 %v9222_v19  ;;  %v5387_v60 = vpop.f32.mrb[22].mxu0  ;;  %8464 = vmatpush3.bf16.msra.mxu1 %v9223_v53  ;;  %v9226_v29 = vld [vmem:[%s14795_s4 + $0x204] ss:$36 sps:$4 sm:$0xff]   ;;  %v9231_v53 = vld [vmem:[%s14795_s4 + $0x298] ss:$36 sps:$4 sm:$0xff]  }
 0x59c   : > { %v5404_v59 = vmax.f32 %v5384_v5, 0.0  ;;  %v13030_v11 = vadd.f32 %v5387_v60, %v16023_v21  ;;  %v5389_v8 = vpop.f32.mrb[23].mxu0  ;;  %5728 = vmatprep.subr.bf16.mxu0 %v9224_v31  ;;  %8465 = vmatprep.subr.bf16.mxu1 %v9225_v22  ;;  %v9230_v60 = vld [vmem:[%s14795_s4 + $0x24c] ss:$36 sps:$4 sm:$0xff]   ;;  %v9235_v31 = vld [vmem:[%s14795_s4 + $0x18] ss:$36 sps:$4 sm:$0xff]  }
 0x59d   : > { %v5405_v38 = vmax.f32 %v5386_v51, 0.0  ;;  %v13039_v47 = vadd.f32 %v5389_v8, %v16024_v0  ;;  %v9227_v51 = vld [vmem:[%s14795_s4 + $0x20c] ss:$36 sps:$4 sm:$0xff]   ;;  %v9233_v8 = vld [vmem:[%s14795_s4 + $0x2e0] ss:$36 sps:$4 sm:$0xff]  }
 0x59e   : > { %v13041_v35 = vpack.c.bf16 %v5404_v59, %v5402_v42  ;;  %v5406_v21 = vmax.f32 %v13030_v11, 0.0  ;;  %v9228_v42 = vld [vmem:[%s14795_s4 + $0x250] ss:$36 sps:$4 sm:$0xff]   ;;  %v9236_v22 = vld [vmem:[%s14795_s4 + $0x328] ss:$36 sps:$4 sm:$0xff]  }
 0x59f   : > { %v13044_v30 = vpack.c.bf16 %v5405_v38, %v5403_v27  ;;  %v5407_v5 = vmax.f32 %v13039_v47, 0.0  ;;  %5729 = vmatpush1.bf16.msra.mxu0 %v9226_v29  ;;  %8466 = vmatpush3.bf16.msra.mxu1 %v9227_v51  ;;  %v9229_v27 = vld [vmem:[%s14795_s4 + $0x1c] ss:$36 sps:$4 sm:$0xff]   ;;  %v9238_v29 = vld [vmem:[%s14795_s4 + $0x324] ss:$36 sps:$4 sm:$0xff]   ;;  %v9298_v47 = vld [vmem:[%s14797_s6 + $0x30] sm:$0xff]  }
 0x5a0   : > { %v13055_v0 = vpack.c.bf16 %v5406_v21, %v5404_v59  ;;  %5730 = vmatprep.subr.bf16.mxu0 %v9228_v42  ;;  %5972 = vmatprep.subr.bf16.mxu1 %v9229_v27  ;;  %v9232_v59 = vld [vmem:[%s14795_s4 + $0x294] ss:$36 sps:$4 sm:$0xff]   ;;  %v9239_v51 = vld [vmem:[%s14795_s4 + $0x60] ss:$36 sps:$4 sm:$0xff]   ;;  %v9241_v27 = vld [vmem:[%s14795_s4 + $0xac] ss:$36 sps:$4 sm:$0xff]  }
 0x5a1   : > { %v13065_v19 = vpack.c.bf16 %v5407_v5, %v5405_v38  ;;  %5518 = vmatprep.mubr.bf16.mxu1 %v13044_v30  ;;  %5585 = vmatprep.mubr.bf16.mxu0 %v13044_v30  ;;  %v9237_v38 = vld [vmem:[%s14795_s4 + $0x64] ss:$36 sps:$4 sm:$0xff]   ;;  %v9240_v42 = vld [vmem:[%s14795_s4 + $0x370] ss:$36 sps:$4 sm:$0xff]  }
 0x5a2   : > { %5519 = vmatmul.mubr.bf16.gmra.mrb[4].mxu1 %v13041_v35  ;;  %5586 = vmatmul.mubr.bf16.gmra.mrb[36].mxu0 %v13041_v35  ;;  %v16025_v11 = vld [vmem:[#allocation64_spill] sm:$0xff] }
 0x5a3   : > { %5731 = vmatpush1.bf16.msra.mxu0 %v9230_v60  ;;  %5746 = vmatprep.mubr.bf16.mxu0 %v12915_v14  ;;  %v9242_v60 = vld [vmem:[%s14795_s4 + $0x36c] ss:$36 sps:$4 sm:$0xff]  }
 0x5a4   : > { %5819 = vmatprep.mubr.bf16.mxu1 %v12915_v14  ;;  %5732 = vmatprep.subr.bf16.mxu0 %v9231_v53  ;;  %v9234_v14 = vld [vmem:[%s14795_s4 + $0x2dc] ss:$36 sps:$4 sm:$0xff]   ;;  %v9243_v53 = vld [vmem:[%s14795_s4 + $0xa8] ss:$36 sps:$4 sm:$0xff]  }
 0x5a7   : > { %5733 = vmatpush1.bf16.msra.mxu0 %v9232_v59  ;;  %v9244_v59 = vld [vmem:[%s14795_s4 + $0x3b8] ss:$36 sps:$4 sm:$0xff]  }
 0x5a8   : > { %5734 = vmatprep.subr.bf16.mxu0 %v9233_v8  ;;  %v9245_v8 = vld [vmem:[%s14795_s4 + $0xf4] ss:$36 sps:$4 sm:$0xff]  }
 0x5aa   : > { %5820 = vmatmul.mubr.bf16.vlgmr.msra.gmra.mrb[8].mxu1 %v12913_v12 }
 0x5ab   : > { %5735 = vmatpush1.bf16.msra.mxu0 %v9234_v14  ;;  %5973 = vmatpush1.bf16.msra.mxu1 %v9235_v31  ;;  %v9246_v14 = vld [vmem:[%s14795_s4 + $0x3b4] ss:$36 sps:$4 sm:$0xff]  }
 0x5ac   : > { %5827 = vmatprep.mubr.bf16.mxu1 %v12975_v56  ;;  %5736 = vmatprep.subr.bf16.mxu0 %v9236_v22  ;;  %v9247_v31 = vld [vmem:[%s14795_s4 + $0xf0] ss:$36 sps:$4 sm:$0xff]   ;;  %v9248_v22 = vld [vmem:[%s14795_s4 + $0x400] ss:$36 sps:$4 sm:$0xff]  }
 0x5ad   : > { %5974 = vmatprep.subr.bf16.mxu1 %v9237_v38  ;;  %v9249_v38 = vld [vmem:[%s14795_s4 + $0x13c] ss:$36 sps:$4 sm:$0xff]  }
 0x5af   : > { %5737 = vmatpush1.bf16.msra.mxu0 %v9238_v29  ;;  %5975 = vmatpush1.bf16.msra.mxu1 %v9239_v51  ;;  %v9250_v29 = vld [vmem:[%s14795_s4 + $0x3fc] ss:$36 sps:$4 sm:$0xff]  }
 0x5b0   : > { %5738 = vmatprep.subr.bf16.mxu0 %v9240_v42  ;;  %5976 = vmatprep.subr.bf16.mxu1 %v9241_v27  ;;  %v9251_v51 = vld [vmem:[%s14795_s4 + $0x138] ss:$36 sps:$4 sm:$0xff]   ;;  %v9252_v42 = vld [vmem:[%s14795_s4 + $0x448] ss:$36 sps:$4 sm:$0xff]  }
 0x5b1   : > { %v9253_v27 = vld [vmem:[%s14795_s4 + $0x184] ss:$36 sps:$4 sm:$0xff]  }
 0x5b2   : > { %5828 = vmatmul.mubr.bf16.gmra.mrb[12].mxu1 %v12967_v10 }
 0x5b3   : > { %5739 = vmatpush1.bf16.msra.mxu0 %v9242_v60  ;;  %5977 = vmatpush1.bf16.msra.mxu1 %v9243_v53  ;;  %v9254_v60 = vld [vmem:[%s14795_s4 + $0x444] ss:$36 sps:$4 sm:$0xff]  }
 0x5b4   : > { %5835 = vmatprep.mubr.bf16.mxu1 %v13015_v46  ;;  %5740 = vmatprep.subr.bf16.mxu0 %v9244_v59  ;;  %v9255_v53 = vld [vmem:[%s14795_s4 + $0x180] ss:$36 sps:$4 sm:$0xff]   ;;  %v9256_v59 = vld [vmem:[%s14795_s4 + $0x1cc] ss:$36 sps:$4 sm:$0xff]  }
 0x5b5   : > { %5978 = vmatprep.subr.bf16.mxu1 %v9245_v8  ;;  %v9257_v8 = vld [vmem:[%s14795_s4 + $0x260] ss:$36 sps:$4 sm:$0xff]  }
 0x5b7   : > { %5741 = vmatpush1.bf16.msra.mxu0 %v9246_v14  ;;  %5979 = vmatpush1.bf16.msra.mxu1 %v9247_v31  ;;  %v9258_v14 = vld [vmem:[%s14795_s4 + $0x1c8] ss:$36 sps:$4 sm:$0xff]   ;;  %v9259_v31 = vld [vmem:[%s14795_s4 + $0x20] ss:$36 sps:$4 sm:$0xff]  }
 0x5b8   : > { %5742 = vmatprep.subr.bf16.mxu0 %v9248_v22  ;;  %5980 = vmatprep.subr.bf16.mxu1 %v9249_v38  ;;  %v9262_v22 = vld [vmem:[%s14795_s4 + $0x210] ss:$36 sps:$4 sm:$0xff]   ;;  %v9263_v38 = vld [vmem:[%s14795_s4 + $0x68] ss:$36 sps:$4 sm:$0xff]  }
 0x5ba   : > { %5836 = vmatmul.mubr.bf16.gmra.mrb[16].mxu1 %v13007_v34 }
 0x5bb   : > { %5743 = vmatpush1.bf16.msra.mxu0 %v9250_v29  ;;  %5981 = vmatpush1.bf16.msra.mxu1 %v9251_v51  ;;  %v9264_v29 = vld [vmem:[%s14795_s4 + $0x25c] ss:$36 sps:$4 sm:$0xff]   ;;  %v9265_v51 = vld [vmem:[%s14795_s4 + $0x2f0] ss:$36 sps:$4 sm:$0xff]  }
 0x5bc   : > { %5843 = vmatprep.mubr.bf16.mxu1 %v13065_v19  ;;  %5744 = vmatprep.subr.bf16.mxu0 %v9252_v42  ;;  %v9266_v42 = vld [vmem:[%s14795_s4 + $0x258] ss:$36 sps:$4 sm:$0xff]  }
 0x5bd   : > { %5982 = vmatprep.subr.bf16.mxu1 %v9253_v27  ;;  %v9267_v27 = vld [vmem:[%s14795_s4 + $0xb0] ss:$36 sps:$4 sm:$0xff]  }
 0x5bf   : > { %5745 = vmatpush1.bf16.msra.mxu0 %v9254_v60  ;;  %5983 = vmatpush1.bf16.msra.mxu1 %v9255_v53  ;;  %v9268_v60 = vld [vmem:[%s14795_s4 + $0x2a4] ss:$36 sps:$4 sm:$0xff]   ;;  %v9271_v53 = vld [vmem:[%s14795_s4 + $0xf8] ss:$36 sps:$4 sm:$0xff]  }
 0x5c0   : > { %5984 = vmatprep.subr.bf16.mxu1 %v9256_v59  ;;  %8491 = vmatprep.subr.bf16.mxu0 %v9257_v8  ;;  %v9272_v59 = vld [vmem:[%s14795_s4 + $0x2ec] ss:$36 sps:$4 sm:$0xff]   ;;  %v9273_v8 = vld [vmem:[%s14795_s4 + $0x380] ss:$36 sps:$4 sm:$0xff]  }
 0x5c2   : > { %5747 = vmatmul.mubr.bf16.vlgmr.msra.gmra.mrb[40].mxu0 %v12913_v12  ;;  %5844 = vmatmul.mubr.bf16.gmra.mrb[20].mxu1 %v13055_v0  ;;  %v9260_v12 = vld [vmem:[%s14795_s4 + $0x214] ss:$36 sps:$4 sm:$0xff]  }
 0x5c3   : > { %5756 = vmatprep.mubr.bf16.mxu0 %v12975_v56  ;;  %5985 = vmatpush1.bf16.msra.mxu1 %v9258_v14  ;;  %v9261_v56 = vld [vmem:[%s14795_s4 + $0x2a8] ss:$36 sps:$4 sm:$0xff]  }
 0x5c4   : > { %8492 = vmatpush3.bf16.msra.mxu0 %v9259_v31  ;;  %6004 = vmatprep.mubr.bf16.mxu1 %v12959_v3  ;;  %v9274_v14 = vld [vmem:[%s14795_s4 + $0x2e8] ss:$36 sps:$4 sm:$0xff]   ;;  %v9275_v31 = vld [vmem:[%s14795_s4 + $0x140] ss:$36 sps:$4 sm:$0xff]  }
 0x5c5   : > { %5986 = vmatprep.subr.bf16.mxu1 %v9260_v12  ;;  %8493 = vmatprep.subr.bf16.mxu0 %v9261_v56  ;;  %v9276_v12 = vld [vmem:[%s14795_s4 + $0x334] ss:$36 sps:$4 sm:$0xff]   ;;  %v9279_v56 = vld [vmem:[%s14795_s4 + $0x188] ss:$36 sps:$4 sm:$0xff]  }
 0x5c7   : > { %5987 = vmatpush1.bf16.msra.mxu1 %v9262_v22  ;;  %v9280_v22 = vld [vmem:[%s14795_s4 + $0x37c] ss:$36 sps:$4 sm:$0xff]  }
 0x5c8   : > { %8494 = vmatpush3.bf16.msra.mxu0 %v9263_v38  ;;  %5988 = vmatprep.subr.bf16.mxu1 %v9264_v29  ;;  %v9281_v38 = vld [vmem:[%s14795_s4 + $0x410] ss:$36 sps:$4 sm:$0xff]   ;;  %v9282_v29 = vld [vmem:[%s14795_s4 + $0x378] ss:$36 sps:$4 sm:$0xff]  }
 0x5c9   : > { %8495 = vmatprep.subr.bf16.mxu0 %v9265_v51  ;;  %v9283_v51 = vld [vmem:[%s14795_s4 + $0x1d0] ss:$36 sps:$4 sm:$0xff]  }
 0x5ca   : > { %5757 = vmatmul.mubr.bf16.gmra.mrb[44].mxu0 %v12967_v10  ;;  %v9269_v10 = vld [vmem:[%s14795_s4 + $0x338] ss:$36 sps:$4 sm:$0xff]  }
 0x5cb   : > { %5766 = vmatprep.mubr.bf16.mxu0 %v13015_v46  ;;  %5989 = vmatpush1.bf16.msra.mxu1 %v9266_v42  ;;  %v9270_v46 = vld [vmem:[%s14795_s4 + $0x2a0] ss:$36 sps:$4 sm:$0xff]  }
 0x5cc   : > { %8496 = vmatpush3.bf16.msra.mxu0 %v9267_v27  ;;  %5990 = vmatprep.subr.bf16.mxu1 %v9268_v60  ;;  %v9284_v42 = vld [vmem:[%s14795_s4 + $0x3c4] ss:$36 sps:$4 sm:$0xff]   ;;  %v9288_v60 = vld [vmem:[%s14795_s4 + $0x40c] ss:$36 sps:$4 sm:$0xff]  }
 0x5cd   : > { %8497 = vmatprep.subr.bf16.mxu0 %v9269_v10  ;;  %v9286_v27 = vld [vmem:[%s14795_s4 + $0x3c0] ss:$36 sps:$4 sm:$0xff]  }
 0x5ce   : > { %v9289_v10 = vld [vmem:[%s14797_s6] sm:$0xff]  }
 0x5cf   : > { %5991 = vmatpush1.bf16.msra.mxu1 %v9270_v46  ;;  %v9290_v46 = vld [vmem:[%s14795_s4 + $0x408] ss:$36 sps:$4 sm:$0xff]  }
 0x5d0   : > { %8498 = vmatpush3.bf16.msra.mxu0 %v9271_v53  ;;  %5992 = vmatprep.subr.bf16.mxu1 %v9272_v59  ;;  %v9291_v53 = vld [vmem:[%s14795_s4 + $0x454] ss:$36 sps:$4 sm:$0xff]   ;;  %v9292_v59 = vld [vmem:[%s14797_s6 + $0x8] sm:$0xff]  }
 0x5d1   : > { %8499 = vmatprep.subr.bf16.mxu0 %v9273_v8  ;;  %v9293_v8 = vld [vmem:[%s14795_s4 + $0x450] ss:$36 sps:$4 sm:$0xff]  }
 0x5d2   : > { %5767 = vmatmul.mubr.bf16.gmra.mrb[48].mxu0 %v13007_v34  ;;  %v9277_v34 = vld [vmem:[%s14795_s4 + $0x3c8] ss:$36 sps:$4 sm:$0xff]  }
 0x5d3   : > { %5776 = vmatprep.mubr.bf16.mxu0 %v13065_v19  ;;  %5993 = vmatpush1.bf16.msra.mxu1 %v9274_v14  ;;  %v9278_v19 = vld [vmem:[%s14795_s4 + $0x330] ss:$36 sps:$4 sm:$0xff]  }
 0x5d4   : > { %8500 = vmatpush3.bf16.msra.mxu0 %v9275_v31  ;;  %5994 = vmatprep.subr.bf16.mxu1 %v9276_v12  ;;  %v9294_v14 = vld [vmem:[%s14797_s6 + $0x10] sm:$0xff]   ;;  %v9295_v31 = vld [vmem:[%s14797_s6 + $0x18] sm:$0xff]   ;;  %v9296_v12 = vld [vmem:[%s14797_s6 + $0x20] sm:$0xff]  }
 0x5d5   : > { %8501 = vmatprep.subr.bf16.mxu0 %v9277_v34 }
 0x5d7   : > { %5995 = vmatpush1.bf16.msra.mxu1 %v9278_v19 }
 0x5d8   : > { %8502 = vmatpush3.bf16.msra.mxu0 %v9279_v56  ;;  %5996 = vmatprep.subr.bf16.mxu1 %v9280_v22 }
 0x5d9   : > { %8503 = vmatprep.subr.bf16.mxu0 %v9281_v38 }
 0x5da   : > { %5777 = vmatmul.mubr.bf16.gmra.mrb[52].mxu0 %v13055_v0  ;;  %v9285_v0 = vld [vmem:[%s14795_s4 + $0x458] ss:$36 sps:$4 sm:$0xff]  }
 0x5db   : > { %5997 = vmatpush1.bf16.msra.mxu1 %v9282_v29  ;;  %6077 = vmatprep.mubr.bf16.mxu0 %v12959_v3  ;;  %v9287_v3 = vld [vmem:[%s14795_s4 + $0x218] ss:$36 sps:$4 sm:$0xff]  }
 0x5dc   : > { %8504 = vmatpush3.bf16.msra.mxu0 %v9283_v51  ;;  %5998 = vmatprep.subr.bf16.mxu1 %v9284_v42 }
 0x5dd   : > { %8505 = vmatprep.subr.bf16.mxu0 %v9285_v0 }
 0x5df   : > { %5999 = vmatpush1.bf16.msra.mxu1 %v9286_v27 }
 0x5e0   : > { %8506 = vmatpush3.bf16.msra.mxu0 %v9287_v3  ;;  %6000 = vmatprep.subr.bf16.mxu1 %v9288_v60 }
 0x5e1   : > { %8655 = vmatprep.subr.bf16.mxu0 %v9289_v10 }
 0x5e3   : > { %6078 = vmatmul.mubr.bf16.vlgmr.msra.gmra.mrb[56].mxu0 %v12957_v6  ;;  %6001 = vmatpush1.bf16.msra.mxu1 %v9290_v46 }
 0x5e4   : > { %6085 = vmatprep.mubr.bf16.mxu0 %v12999_v48  ;;  %6002 = vmatprep.subr.bf16.mxu1 %v9291_v53 }
 0x5e5   : > { %8656 = vmatpush3.bf16.msra.mxu0 %v9289_v10 }
 0x5e6   : > { %8657 = vmatprep.subr.bf16.mxu0 %v9292_v59 }
 0x5e7   : > { %6003 = vmatpush1.bf16.msra.mxu1 %v9293_v8 }
 0x5e8   : > { %8679 = vmatprep.subr.bf16.mxu1 %v15636_v43 }
 0x5e9   : > { %8658 = vmatpush3.bf16.msra.mxu0 %v9292_v59 }
 0x5ea   : > { %6005 = vmatmul.mubr.bf16.vlgmr.msra.gmra.mrb[24].mxu1 %v12957_v6  ;;  %8659 = vmatprep.subr.bf16.mxu0 %v9294_v14  ;;  %v5971_v6 = vpack.c.bf16 %v15636_v43, %v5407_v5 }
 0x5eb   : > { %6086 = vmatmul.mubr.bf16.gmra.mrb[60].mxu0 %v12997_v57  ;;  %6014 = vmatprep.mubr.bf16.mxu1 %v12999_v48  ;;  %v9297_v48 = vld [vmem:[%s14797_s6 + $0x28] sm:$0xff]  }
 0x5ec   : > { %6093 = vmatprep.mubr.bf16.mxu0 %v13044_v30 }
 0x5ed   : > { %8660 = vmatpush3.bf16.msra.mxu0 %v9294_v14  ;;  %v16030_v14 = vld [vmem:[#allocation63_spill] sm:$0xff] }
 0x5ee   : > { %8661 = vmatprep.subr.bf16.mxu0 %v9295_v31 }
 0x5f1   : > { %8662 = vmatpush3.bf16.msra.mxu0 %v9295_v31  ;;  %v5309_v31 = vand.u32 7, %v16030_v14 }
 0x5f2   : > { %6015 = vmatmul.mubr.bf16.gmra.mrb[28].mxu1 %v12997_v57  ;;  %8663 = vmatprep.subr.bf16.mxu0 %v9296_v12  ;;  %v5970_v57 = vpack.c.bf16 %v15636_v43, %v5406_v21 }
 0x5f3   : > { %6094 = vmatmul.mubr.bf16.gmra.mrb[64].mxu0 %v13041_v35  ;;  %6024 = vmatprep.mubr.bf16.mxu1 %v13044_v30  ;;  %v9299_v30 = vld [vmem:[%s14797_s6 + $0x38] sm:$0xff]   ;;  %vm13346_vm3 = vcmp.gt.s32.totalorder %v5309_v31, 0  ;;  %vm13367_vm1 = vcmp.lt.s32.totalorder %v5309_v31, 7 }
 0x5f4   : > { %6101 = vmatprep.mubr.bf16.mxu0 %v5971_v6  ;;  %v16043_v4 = vsel %vm13367_vm1, 4294967295, %v16042_v4 }
 0x5f5   : > { %8664 = vmatpush3.bf16.msra.mxu0 %v9296_v12 }
 0x5f6   : > { %8665 = vmatprep.subr.bf16.mxu0 %v9297_v48 }
 0x5f9   : > { %8666 = vmatpush3.bf16.msra.mxu0 %v9297_v48 }
 0x5fa   : > { %6025 = vmatmul.mubr.bf16.gmra.mrb[32].mxu1 %v13041_v35  ;;  %8667 = vmatprep.subr.bf16.mxu0 %v9298_v47  ;;  %v5308_v35 = vand.u32 7, %v16025_v11  ;;  %v16032_v11 = vmov 0 }
 0x5fb   : > { %6102 = vmatmul.mubr.bf16.gmra.mrb[68].mxu0 %v5970_v57  ;;  %6034 = vmatprep.mubr.bf16.mxu1 %v5971_v6  ;;  %v16031_v6 = vld [vmem:[#allocation66_spill] sm:$0xff]  ;;  %v16033_v11 = vsel %vm13346_vm3, 4294967295, %v16032_v11 }
 0x5fc   : > { %vm13327_vm4 = vcmp.gt.s32.totalorder %v5308_v35, 0  ;;  %v5310_v12 = vand.u32 7, %v16031_v6  ;;  %vm13357_vm11 = vcmp.lt.s32.totalorder %v5308_v35, 7  ;;  %v16037_v6 = vmov 0 }
 0x5fd   : > { %8668 = vmatpush3.bf16.msra.mxu0 %v9298_v47  ;;  %v16038_v6 = vsel %vm13357_vm11, 4294967295, %v16037_v6 }
 0x5fe   : > { %8669 = vmatprep.subr.bf16.mxu0 %v9299_v30  ;;  %vm13353_vm13 = vcmp.gt.s32.totalorder %v5310_v12, 0  ;;  %vm13397_vm6 = vcmp.lt.s32.totalorder %v5310_v12, 7 }
 0x601   : > { %8670 = vmatpush3.bf16.msra.mxu0 %v9299_v30 }
 0x602   : > { %6035 = vmatmul.mubr.bf16.gmra.mrb[36].mxu1 %v5970_v57  ;;  %8691 = vmatprep.subr.bf16.mxu0 %v15636_v43 }
 0x603   : > { %8681 = vmatprep.mubr.msk.bf16.mxu1 %vm15102_vm10, %v15636_v43  ;;  %vm16066_vm10 = vcmp.lt.s32.totalorder %v9589_v25, 1 }
 0x655   : > { %v13320_v21 = vpop.f32.mrb[248].mxu1  ;;  %v8427_v5 = vpop.f32.mrb[24].mxu0 }
 0x656   : > { %v13322_v34 = vpop.f32.mrb[249].mxu1  ;;  %v8428_v19 = vpop.f32.mrb[25].mxu0  ;;  %v15101_v29 = vrot.slane %v13320_v21, 7 }
 0x657   : > { %v13324_v56 = vadd.f32 %v8428_v19, %v8427_v5  ;;  %v5494_v22 = vpop.f32.mrb[250].mxu1  ;;  %v8430_v38 = vpop.f32.mrb[26].mxu0  ;;  %v5307_v19 = vand.u32 7, %v9589_v25 }
 0x658   : > { %v5595_v51 = vrot.slane %v5494_v22, 7  ;;  %v5496_v42 = vpop.f32.mrb[251].mxu1  ;;  %v8431_v27 = vpop.f32.mrb[27].mxu0 }
 0x659   : > { %v8432_v3 = vadd.f32 %v8431_v27, %v8430_v38  ;;  %v15100_v10 = vrot.slane %v13324_v56, 1  ;;  %vm13379_vm9 = vcmp.lt.s32.totalorder %v5307_v19, 7 }
 0x65a   : > { %v5608_v60 = vsel %vm16028_vm12, %v15101_v29, %v5595_v51 }
 0x65b   : > { %v5635_v46 = vsel %vm13327_vm4, %v5608_v60, 0.0  ;;  %v5651_v53 = vrot.slane %v8432_v3, 1 }
 0x65c   : > { %v5643_v59 = vadd.f32 %v5635_v46, %v5496_v42  ;;  %v16035_v46 = vmov 0 }
 0x65d   : > { %v13342_v8 = vsel %vm16029_vm2, %v15100_v10, %v5651_v53  ;;  %v16036_v46 = vsel %vm13353_vm13, 4294967295, %v16035_v46  ;;  %v16039_v10 = vld [vmem:[#allocation25_spill] sm:$0xff] }
 0x65e   : > { %v5311_v29 = vand.u32 7, %v16039_v10 }
 0x660   : > { %vm13385_vm8 = vcmp.gt.s32.totalorder %v5311_v29, 0  ;;  %vm13407_vm2 = vcmp.lt.s32.totalorder %v5311_v29, 7 }
 0x665   : > { %v5500_v48 = vpop.f32.mrb[252].mxu1  ;;  %v8433_v57 = vpop.f32.mrb[28].mxu0 }
 0x666   : > { %v5596_v47 = vrot.slane %v5500_v48, 7  ;;  %v5502_v30 = vpop.f32.mrb[253].mxu1  ;;  %v8434_v5 = vpop.f32.mrb[29].mxu0 }
 0x667   : > { %v8435_v22 = vadd.f32 %v8434_v5, %v8433_v57  ;;  %v5504_v38 = vpop.f32.mrb[254].mxu1  ;;  %v8436_v42 = vpop.f32.mrb[30].mxu0 }
 0x668   : > { %v5607_v27 = vsel %vm16034_vm0, %v5595_v51, %v5596_v47  ;;  %v5597_v3 = vrot.slane %v5504_v38, 7  ;;  %v5506_v60 = vpop.f32.mrb[255].mxu1  ;;  %v8437_v14 = vpop.f32.mrb[31].mxu0  ;;  %v16041_v38 = vld [vmem:[#allocation71_spill] sm:$0xff] }
 0x669   : > { %v5636_v48 = vsel %vm13346_vm3, %v5607_v27, 0.0  ;;  %v5652_v57 = vrot.slane %v8435_v22, 1  ;;  %v8438_v5 = vadd.f32 %v8437_v14, %v8436_v42  ;;  %v5312_v1 = vand.u32 7, %v16041_v38  ;;  %v16045_v42 = vld [vmem:[#allocation69_spill] sm:$0xff] }
 0x66a   : > { %v5644_v36 = vadd.f32 %v5636_v48, %v5502_v30  ;;  %v5606_v51 = vsel %vm16040_vm14, %v5596_v47, %v5597_v3  ;;  %v5313_v14 = vand.u32 7, %v16045_v42  ;;  %v16046_v30 = vld [vmem:[#allocation74_spill] sm:$0xff]  ;;  %vm13413_vm14 = vcmp.gt.s32.totalorder %v5307_v19, 0 }
 0x66b   : > { %v5663_v35 = vsel %vm16044_vm5, %v5651_v53, %v5652_v57  ;;  %v5637_v27 = vsel %vm13353_vm13, %v5606_v51, 0.0  ;;  %v5653_v22 = vrot.slane %v8438_v5, 1  ;;  %v5314_v48 = vand.u32 7, %v16046_v30 }
 0x66c   : > { %v5645_v10 = vadd.f32 %v5637_v27, %v5506_v60  ;;  %v5691_v47 = vsel %vm13357_vm11, %v5663_v35, 0.0  ;;  %v16050_v51 = vmov 0  ;;  %vm13391_vm15 = vcmp.gt.s32.totalorder %v5312_v1, 0 }
 0x66d   : > { %v5662_v38 = vsel %vm16049_vm7, %v5652_v57, %v5653_v22  ;;  %v5510_v53 = vpop.f32.mrb[0].mxu1  ;;  %v8439_v61 = vpop.f32.mrb[32].mxu0  ;;  %v16051_v51 = vsel %vm13385_vm8, 4294967295, %v16050_v51  ;;  %v13389_v5 = vadd.f32 %v5691_v47, %v5643_v59  ;;  %v16052_v35 = vmov 0 }
 0x66e   : > { %v5598_v60 = vrot.slane %v5510_v53, 7  ;;  %v5512_v27 = vpop.f32.mrb[1].mxu1  ;;  %v8440_v42 = vpop.f32.mrb[33].mxu0  ;;  %v16053_v35 = vsel %vm13391_vm15, 4294967295, %v16052_v35  ;;  %v5692_v30 = vsel %vm13367_vm1, %v5662_v38, 0.0  ;;  %vm13401_vm12 = vcmp.gt.s32.totalorder %v5313_v14, 0 }
 0x66f   : > { %v8441_v32 = vadd.f32 %v8440_v42, %v8439_v61  ;;  %v5514_v41 = vpop.f32.mrb[2].mxu1  ;;  %v8442_v63 = vpop.f32.mrb[34].mxu0  ;;  %v13405_v47 = vadd.f32 %v5692_v30, %v5644_v36  ;;  %vm13417_vm5 = vcmp.gt.s32.totalorder %v5314_v48, 0  ;;  %vm13425_vm7 = vcmp.lt.s32.totalorder %v5312_v1, 7 }
 0x670   : > { %v5605_v12 = vsel %vm16034_vm0, %v5597_v3, %v5598_v60  ;;  %v5599_v38 = vrot.slane %v5514_v41, 7  ;;  %v5516_v17 = vpop.f32.mrb[3].mxu1  ;;  %v8443_v61 = vpop.f32.mrb[35].mxu0  ;;  %v16065_v33 = vsel %vm13425_vm7, 4294967295, %v16064_v33  ;;  %v9300_v41 = vld [vmem:[%s11850_s15] sm:$0xff]  ;;  %vm7248_vm1 = vcmp.gt.f32.partialorder %v9301_v15, 1.0 }
 0x671   : > { %v5638_v36 = vsel %vm13385_vm8, %v5605_v12, 0.0  ;;  %v5654_v29 = vrot.slane %v8441_v32, 1  ;;  %v13423_v30 = vadd.f32 %v8443_v61, %v8442_v63  ;;  %vm7247_vm0 = vcmp.gt.f32.partialorder %v9300_v41, 1.0  ;;  %v9302_v61 = vld [vmem:[%s11850_s15 + $0x10] sm:$0xff] }
 0x672   : > { %v5646_v19 = vadd.f32 %v5638_v36, %v5512_v27  ;;  %v5604_v3 = vsel %vm16066_vm10, %v5598_v60, %v5599_v38  ;;  %v7279_v18 = vsel %vm7247_vm0, 1, %v15987_v16  ;;  %vm16067_vm8 = vcmp.lt.s32.totalorder %v9589_v25, 7 }
 0x673   : > { %v5661_v63 = vsel %vm16067_vm8, %v5653_v22, %v5654_v29  ;;  %v5639_v32 = vsel %vm13391_vm15, %v5604_v3, 0.0  ;;  %v5655_v1 = vrot.slane %v13423_v30, 1  ;;  %vm13439_vm13 = vcmp.lt.s32.totalorder %v5313_v14, 7  ;;  %7312 = vperm.xlu0 %8772, %v7279_v18   ;;  %v9303_v14 = vld [vmem:[%s11850_s15 + $0x18] sm:$0xff] }
 0x674   : > { %vm13443_vm3 = vcmp.lt.s32.totalorder %v5314_v48, 7  ;;  %v16070_v27 = vmov 0  ;;  %v7280_v60 = vsel %vm7248_vm1, 1, %v15987_v16  ;;  %v5647_v15 = vadd.f32 %v5639_v32, %v5516_v17 }
 0x675   : > { %v16071_v27 = vsel %vm13443_vm3, 4294967295, %v16070_v27  ;;  %v5693_v22 = vsel %vm13397_vm6, %v5661_v63, 0.0  ;;  %7315 = vperm.xlu1 %8773, %v7280_v60   ;;  %vm7249_vm10 = vcmp.gt.f32.partialorder %v9302_v61, 1.0  ;;  %vm7250_vm8 = vcmp.gt.f32.partialorder %v9303_v14, 1.0  ;;  %v5520_v36 = vpop.f32.mrb[4].mxu1  ;;  %v8445_v30 = vpop.f32.mrb[36].mxu0 }
 0x676   : > { %vm16072_vm0 = vcmp.lt.s32.totalorder %v9589_v25, 7  ;;  %v13454_v41 = vadd.f32 %v5693_v22, %v5645_v10  ;;  %v7281_v18 = vsel %vm7249_vm10, 1, %v15987_v16  ;;  %v7282_v17 = vsel %vm7250_vm8, 1, %v15987_v16  ;;  %v5522_v63 = vpop.f32.mrb[5].mxu1  ;;  %v8446_v32 = vpop.f32.mrb[37].mxu0  ;;  %v9304_v61 = vld [vmem:[%s11850_s15 + $0x20] sm:$0xff] }
 0x677   : > { %v5660_v48 = vsel %vm16072_vm0, %v5654_v29, %v5655_v1  ;;  %v5600_v3 = vrot.slane %v5520_v36, 7  ;;  %vm7251_vm1 = vcmp.gt.f32.partialorder %v9304_v61, 1.0  ;;  %v9305_v14 = vld [vmem:[%s11850_s15 + $0x28] sm:$0xff]  ;;  %v5690_v10 = vsel %vm13379_vm9, %v13342_v8, 0.0  ;;  %v5524_v22 = vpop.f32.mrb[6].mxu1  ;;  %v8448_v50 = vpop.f32.mrb[38].mxu0  ;;  %7318 = vperm.xlu0 %8772, %v7281_v18  }
 0x678   : > { %v5694_v60 = vsel %vm13407_vm2, %v5660_v48, 0.0  ;;  %vm7252_vm15 = vcmp.gt.f32.partialorder %v9305_v14, 1.0  ;;  %v8447_v29 = vadd.f32 %v8446_v32, %v8445_v30  ;;  %v7283_v36 = vsel %vm7251_vm1, 1, %v15987_v16  ;;  %v5526_v45 = vpop.f32.mrb[7].mxu1  ;;  %v8449_v49 = vpop.f32.mrb[39].mxu0  ;;  %v9307_v32 = vld [vmem:[%s11850_s15 + $0x38] sm:$0xff] }
 0x679   : > { %v13465_v58 = vadd.f32 %v5694_v60, %v5646_v19  ;;  %vm16073_vm10 = vcmp.lt.s32.totalorder %v9589_v25, 1  ;;  %v5601_v61 = vrot.slane %v5524_v22, 7  ;;  %7321 = vperm.xlu1 %8773, %v7282_v17   ;;  %v7284_v14 = vsel %vm7252_vm15, 1, %v15987_v16 }
 0x67a   : > { %v5603_v48 = vsel %vm16073_vm10, %v5599_v38, %v5600_v3  ;;  %vm7253_vm8 = vcmp.gt.f32.partialorder %v9306_v2, 1.0  ;;  %v5656_v30 = vrot.slane %v8447_v29, 1  ;;  %v8450_v19 = vadd.f32 %v8449_v49, %v8448_v50  ;;  %vm16075_vm1 = vmmov %vm16073_vm10 }
 0x67b   : > { %v5640_v8 = vsel %vm13401_vm12, %v5603_v48, 0.0  ;;  %vm7254_vm0 = vcmp.gt.f32.partialorder %v9307_v32, 1.0  ;;  %v16074_v60 = vrot.slane %v13320_v21, 7  ;;  %vm16076_vm10 = vmmov %vm16075_vm1  ;;  %v7285_v22 = vsel %vm7253_vm8, 1, %v15987_v16  ;;  %7324 = vperm.xlu0 %8772, %v7283_v36   ;;  %v9308_v32 = vld [vmem:[%s11850_s15 + $0x40] sm:$0xff] }
 0x67c   : > { %v5648_v18 = vadd.f32 %v5640_v8, %v5522_v63  ;;  %v5602_v17 = vsel %vm16076_vm10, %v5600_v3, %v5601_v61  ;;  %vm16077_vm15 = vcmp.lt.s32.totalorder %v9589_v25, 7  ;;  %v5657_v63 = vrot.slane %v8450_v19, 1 }
 0x67d   : > { %v5609_v38 = vsel %vm16075_vm1, %v5601_v61, %v16074_v60  ;;  %v5659_v2 = vsel %vm16077_vm15, %v5655_v1, %v5656_v30  ;;  %v5641_v50 = vsel %vm13417_vm5, %v5602_v17, 0.0  ;;  %7327 = vperm.xlu1 %8773, %v7284_v14   ;;  %v7286_v48 = vsel %vm7254_vm0, 1, %v15987_v16  ;;  %vm16078_vm8 = vmmov %vm16077_vm15  ;;  %v8467_v19 = vpop.f32.mrb[8].mxu1 }
 0x67e   : > { %v5634_v49 = vsel %vm13413_vm14, %v5609_v38, 0.0  ;;  %v5649_v29 = vadd.f32 %v5641_v50, %v5526_v45  ;;  %v5695_v3 = vsel %vm13425_vm7, %v5659_v2, 0.0  ;;  %v5658_v1 = vsel %vm16078_vm8, %v5656_v30, %v5657_v63  ;;  %vm16080_vm1 = vmmov %vm16078_vm8  ;;  %v8468_v45 = vpop.f32.mrb[9].mxu1 }
 0x67f   : > { %v5642_v21 = vadd.f32 %v5634_v49, %v13322_v34  ;;  %v16079_v61 = vrot.slane %v13324_v56, 1  ;;  %v13498_v36 = vadd.f32 %v5695_v3, %v5647_v15  ;;  %vm7255_vm10 = vcmp.gt.f32.partialorder %v9308_v32, 1.0  ;;  %v9309_v56 = vld [vmem:[%s11850_s15 + $0x48] sm:$0xff]  ;;  %v8470_v38 = vpop.f32.mrb[10].mxu1  ;;  %7330 = vperm.xlu0 %8772, %v7285_v22  }
 0x680   : > { %v5696_v34 = vsel %vm13439_vm13, %v5658_v1, 0.0  ;;  %vm7256_vm0 = vcmp.gt.f32.partialorder %v9309_v56, 1.0  ;;  %v13508_v60 = vadd.f32 %v8468_v45, %v8467_v19  ;;  %v8471_v2 = vpop.f32.mrb[11].mxu1  ;;  %v9313_v19 = vld [vmem:[%s11850_s15 + $0x68] sm:$0xff] }
 0x681   : > { %v5665_v8 = vsel %vm16080_vm1, %v5657_v63, %v16079_v61  ;;  %v13503_v14 = vadd.f32 %v5690_v10, %v5642_v21  ;;  %v13510_v15 = vadd.f32 %v5696_v34, %v5648_v18  ;;  %7333 = vperm.xlu1 %8773, %v7286_v48   ;;  %v7287_v10 = vsel %vm7255_vm10, 1, %v15987_v16  ;;  %v9310_v63 = vld [vmem:[%s11850_s15 + $0x50] sm:$0xff]  ;;  %v9311_v21 = vld [vmem:[%s11850_s15 + $0x58] sm:$0xff]  ;;  %v9312_v61 = vld [vmem:[%s11850_s15 + $0x60] sm:$0xff] }
 0x682   : > { %v5697_v30 = vsel %vm13443_vm3, %v5665_v8, 0.0  ;;  %v8472_v49 = vadd.f32 %v8471_v2, %v8470_v38  ;;  %v7288_v50 = vsel %vm7256_vm0, 1, %v15987_v16  ;;  %vm7257_vm15 = vcmp.gt.f32.partialorder %v9310_v63, 1.0 }
 0x683   : > { %v13512_v17 = vadd.f32 %v5697_v30, %v5649_v29  ;;  %vm7258_vm8 = vcmp.gt.f32.partialorder %v9311_v21, 1.0  ;;  %v15116_v3 = vrot.slane %v13508_v60, 1  ;;  %7336 = vperm.xlu0 %8772, %v7287_v10   ;;  %v7289_v22 = vsel %vm7257_vm15, 1, %v15987_v16  ;;  %v9314_v10 = vld [vmem:[%s11850_s15 + $0x70] sm:$0xff] }
 0x684   : > { %v5893_v18 = vrot.slane %v8472_v49, 1  ;;  %v7290_v1 = vsel %vm7258_vm8, 1, %v15987_v16  ;;  %vm7259_vm10 = vcmp.gt.f32.partialorder %v9312_v61, 1.0  ;;  %vm7260_vm0 = vcmp.gt.f32.partialorder %v9313_v19, 1.0  ;;  %v9315_v49 = vld [vmem:[%s11850_s15 + $0x78] sm:$0xff]  ;;  %v9316_v61 = vld [vmem:[%s11850_s15 + $0x80] sm:$0xff] }
 0x685   : > { %7339 = vperm.xlu1 %8773, %v7288_v50   ;;  %v8473_v48 = vpop.f32.mrb[12].mxu1  ;;  %v7291_v30 = vsel %vm7259_vm10, 1, %v15987_v16  ;;  %v7292_v2 = vsel %vm7260_vm0, 1, %v15987_v16  ;;  %vm7261_vm15 = vcmp.gt.f32.partialorder %v9314_v10, 1.0  ;;  %vm7262_vm8 = vcmp.gt.f32.partialorder %v9315_v49, 1.0  ;;  %vm16081_vm10 = vmmov %vm16080_vm1  ;;  %v9317_v19 = vld [vmem:[%s11850_s15 + $0x88] sm:$0xff] }
 0x686   : > { %v13524_v29 = vsel %vm16080_vm1, %v15116_v3, %v5893_v18  ;;  %v8474_v8 = vpop.f32.mrb[13].mxu1  ;;  %v7293_v21 = vsel %vm7261_vm15, 1, %v15987_v16  ;;  %vm7263_vm0 = vcmp.gt.f32.partialorder %v9316_v61, 1.0  ;;  %vm7264_vm3 = vcmp.gt.f32.partialorder %v9317_v19, 1.0  ;;  %v9319_v10 = vld [vmem:[%s11850_s15 + $0x98] sm:$0xff] }
 0x687   : > { %v8475_v32 = vadd.f32 %v8474_v8, %v8473_v48  ;;  %v8476_v45 = vpop.f32.mrb[14].mxu1  ;;  %7342 = vperm.xlu0 %8772, %v7289_v22  }
 0x688   : > { %v8477_v34 = vpop.f32.mrb[15].mxu1 }
 0x689   : > { %7345 = vperm.xlu1 %8773, %v7290_v1   ;;  %v5894_v56 = vrot.slane %v8475_v32, 1  ;;  %v8478_v38 = vadd.f32 %v8477_v34, %v8476_v45  ;;  %v7294_v1 = vsel %vm7262_vm8, 1, %v15987_v16  ;;  %v7295_v34 = vsel %vm7263_vm0, 1, %v15987_v16 }
 0x68a   : > { %vm7266_vm8 = vcmp.gt.f32.partialorder %v9319_v10, 1.0 }
 0x68b   : > { %v5895_v50 = vrot.slane %v8478_v38, 1  ;;  %v13535_v63 = vsel %vm16080_vm1, %v5893_v18, %v5894_v56  ;;  %7348 = vperm.xlu0 %8772, %v7291_v30   ;;  %v7296_v38 = vsel %vm7264_vm3, 1, %v15987_v16  ;;  %v7298_v19 = vsel %vm7266_vm8, 1, %v15987_v16 }
 0x68c   : > { %vm16083_vm8 = vcmp.lt.s32.totalorder %v9589_v25, 1 }
 0x68d   : > { %7351 = vperm.xlu1 %8773, %v7292_v2   ;;  %v8479_v22 = vpop.f32.mrb[16].mxu1  ;;  %v13540_v48 = vsel %vm16081_vm10, %v5894_v56, %v5895_v50  ;;  %v9318_v2 = vld [vmem:[%s11850_s15 + $0x90] sm:$0xff]  ;;  %vm16082_vm10 = vmmov %vm16080_vm1 }
 0x68e   : > { %v8480_v8 = vpop.f32.mrb[17].mxu1  ;;  %vm7265_vm15 = vcmp.gt.f32.partialorder %v9318_v2, 1.0 }
 0x68f   : > { %v8481_v18 = vadd.f32 %v8480_v8, %v8479_v22  ;;  %v8482_v32 = vpop.f32.mrb[18].mxu1  ;;  %7354 = vperm.xlu0 %8772, %v7293_v21   ;;  %v7297_v21 = vsel %vm7265_vm15, 1, %v15987_v16  ;;  %vm7269_vm15 = vcmp.gt.f32.partialorder %v9322_v62, 1.0 }
 0x690   : > { %v8483_v45 = vpop.f32.mrb[19].mxu1  ;;  %v7301_v62 = vsel %vm7269_vm15, 1, %v15987_v16 }
 0x691   : > { %7357 = vperm.xlu1 %8773, %v7294_v1   ;;  %v5896_v30 = vrot.slane %v8481_v18, 1  ;;  %v8484_v56 = vadd.f32 %v8483_v45, %v8482_v32  ;;  %v9320_v18 = vld [vmem:[%s11850_s15 + $0xa0] sm:$0xff] }
 0x692   : > { %vm7267_vm3 = vcmp.gt.f32.partialorder %v9320_v18, 1.0 }
 0x693   : > { %v5897_v49 = vrot.slane %v8484_v56, 1  ;;  %v13551_v22 = vsel %vm16080_vm1, %v5895_v50, %v5896_v30  ;;  %7360 = vperm.xlu0 %8772, %v7295_v34   ;;  %v9321_v50 = vld [vmem:[%s11850_s15 + $0xa8] sm:$0xff]  ;;  %v7299_v7 = vsel %vm7267_vm3, 1, %v15987_v16  ;;  %vm16084_vm3 = vmmov %vm16082_vm10 }
 0x694   : > { %vm7268_vm0 = vcmp.gt.f32.partialorder %v9321_v50, 1.0 }
 0x695   : > { %7363 = vperm.xlu1 %8773, %v7296_v38   ;;  %v13554_v1 = vpop.f32.mrb[40].mxu0  ;;  %v8485_v61 = vpop.f32.mrb[20].mxu1  ;;  %v13558_v8 = vsel %vm16082_vm10, %v5896_v30, %v5897_v49  ;;  %v7300_v52 = vsel %vm7268_vm0, 1, %v15987_v16  ;;  %vm16086_vm0 = vmmov %vm16084_vm3 }
 0x696   : > { %v13562_v32 = vpop.f32.mrb[41].mxu0  ;;  %v8486_v45 = vpop.f32.mrb[21].mxu1  ;;  %v15117_v2 = vrot.slane %v13554_v1, 7 }
 0x697   : > { %v5752_v34 = vpop.f32.mrb[42].mxu0  ;;  %v8487_v56 = vadd.f32 %v8486_v45, %v8485_v61  ;;  %v8488_v38 = vpop.f32.mrb[22].mxu1  ;;  %7366 = vperm.xlu0 %8772, %v7297_v21   ;;  %v9323_v61 = vld [vmem:[%s11850_s15 + $0xb8] sm:$0xff] }
 0x698   : > { %v5853_v10 = vrot.slane %v5752_v34, 7  ;;  %v5754_v30 = vpop.f32.mrb[43].mxu0  ;;  %v8489_v3 = vpop.f32.mrb[23].mxu1  ;;  %vm7270_vm1 = vcmp.gt.f32.partialorder %v9323_v61, 1.0  ;;  %v9325_v61 = vld [vmem:[%s11850_s15 + $0xc8] sm:$0xff] }
 0x699   : > { %7369 = vperm.xlu1 %8773, %v7298_v19   ;;  %v5898_v18 = vrot.slane %v8487_v56, 1  ;;  %v8490_v55 = vadd.f32 %v8489_v3, %v8488_v38  ;;  %v16085_v38 = vrot.slane %v13508_v60, 1  ;;  %vm7272_vm15 = vcmp.gt.f32.partialorder %v9325_v61, 1.0 }
 0x69a   : > { %v5866_v21 = vsel %vm16083_vm8, %v15117_v2, %v5853_v10 }
 0x69b   : > { %v5869_v45 = vsel %vm13327_vm4, %v5866_v21, 0.0  ;;  %v5899_v19 = vrot.slane %v8490_v55, 1  ;;  %v13578_v3 = vsel %vm16082_vm10, %v5897_v49, %v5898_v18  ;;  %7372 = vperm.xlu0 %8772, %v7299_v7   ;;  %v7302_v49 = vsel %vm7270_vm1, 1, %v15987_v16  ;;  %v9324_v21 = vld [vmem:[%s11850_s15 + $0xc0] sm:$0xff] }
 0x69c   : > { %v5877_v50 = vadd.f32 %v5869_v45, %v13389_v5  ;;  %vm7271_vm8 = vcmp.gt.f32.partialorder %v9324_v21, 1.0  ;;  %vm16087_vm10 = vcmp.lt.s32.totalorder %v9589_v25, 1  ;;  %vm16088_vm1 = vnez %v16033_v11  ;;  %v9326_v21 = vld [vmem:[%s11850_s15 + $0xd0] sm:$0xff] }
 0x69d   : > { %7375 = vperm.xlu1 %8773, %v7300_v52   ;;  %v5758_v34 = vpop.f32.mrb[44].mxu0  ;;  %v13584_v56 = vsel %vm16084_vm3, %v5898_v18, %v5899_v19  ;;  %v13590_v55 = vsel %vm16086_vm0, %v5899_v19, %v16085_v38  ;;  %v5909_v18 = vsel %vm13357_vm11, %v13535_v63, 0.0  ;;  %vm7273_vm3 = vcmp.gt.f32.partialorder %v9326_v21, 1.0  ;;  %vm16089_vm0 = vmmov %vm16087_vm10 }
 0x69e   : > { %v5885_v7 = vadd.f32 %v5877_v50, %v5754_v30  ;;  %v5854_v52 = vrot.slane %v5758_v34, 7  ;;  %v5760_v5 = vpop.f32.mrb[45].mxu0  ;;  %v7303_v30 = vsel %vm7271_vm8, 1, %v15987_v16  ;;  %v7304_v34 = vsel %vm7272_vm15, 1, %v15987_v16  ;;  %vm16092_vm15 = vmmov %vm16089_vm0 }
 0x69f   : > { %v5762_v45 = vpop.f32.mrb[46].mxu0  ;;  %7378 = vperm.xlu0 %8772, %v7301_v62   ;;  %vm16090_vm11 = vnez %v16036_v46  ;;  %v7305_v61 = vsel %vm7273_vm3, 1, %v15987_v16  ;;  %vm16091_vm8 = vnez %v16043_v4  ;;  %vm16094_vm3 = vmmov %vm16089_vm0  ;;  %v9327_v4 = vld [vmem:[%s14796_s5] ss:$0 sm:$0xff] }
 0x6a0   : > { %v13598_v60 = vadd.f32 %v5909_v18, %v5885_v7  ;;  %v5865_v19 = vsel %vm16087_vm10, %v5853_v10, %v5854_v52  ;;  %v5855_v38 = vrot.slane %v5762_v45, 7  ;;  %v5764_v2 = vpop.f32.mrb[47].mxu0  ;;  %v5910_v18 = vsel %vm16091_vm8, %v13540_v48, 0.0 }
 0x6a1   : > { %7381 = vperm.xlu1 %8773, %v7302_v49   ;;  %v5870_v50 = vsel %vm16088_vm1, %v5865_v19, 0.0  ;;  %vm16093_vm10 = vnez %v16051_v51 }
 0x6a2   : > { %v5878_v63 = vadd.f32 %v5870_v50, %v13405_v47  ;;  %v5864_v62 = vsel %vm16089_vm0, %v5854_v52, %v5855_v38  ;;  %vm16095_vm0 = vnez %v16053_v35 }
 0x6a3   : > { %v5871_v10 = vsel %vm16090_vm11, %v5864_v62, 0.0  ;;  %7384 = vperm.xlu0 %8772, %v7303_v30   ;;  %v5911_v30 = vsel %vm13397_vm6, %v13551_v22, 0.0 }
 0x6a4   : > { %v5886_v7 = vadd.f32 %v5878_v63, %v5760_v5  ;;  %v5879_v49 = vadd.f32 %v5871_v10, %v13454_v41 }
 0x6a5   : > { %7387 = vperm.xlu1 %8773, %v7304_v34   ;;  %v5768_v45 = vpop.f32.mrb[48].mxu0 }
 0x6a6   : > { %v13617_v19 = vadd.f32 %v5910_v18, %v5886_v7  ;;  %v5887_v47 = vadd.f32 %v5879_v49, %v5764_v2  ;;  %v5856_v50 = vrot.slane %v5768_v45, 7  ;;  %v5770_v52 = vpop.f32.mrb[49].mxu0 }
 0x6a7   : > { %v5772_v5 = vpop.f32.mrb[50].mxu0  ;;  %7390 = vperm.xlu0 %8772, %v7305_v61  }
 0x6a8   : > { %v13622_v41 = vadd.f32 %v5911_v30, %v5887_v47  ;;  %v5863_v34 = vsel %vm16092_vm15, %v5855_v38, %v5856_v50  ;;  %v5857_v21 = vrot.slane %v5772_v5, 7  ;;  %v5774_v63 = vpop.f32.mrb[51].mxu0  ;;  %v5912_v38 = vsel %vm13407_vm2, %v13558_v8, 0.0  ;;  %vm16096_vm15 = vmmov %vm16094_vm3 }
 0x6a9   : > { %v5872_v48 = vsel %vm16093_vm10, %v5863_v34, 0.0 }
 0x6aa   : > { %v5880_v2 = vadd.f32 %v5872_v48, %v13465_v58  ;;  %v5862_v62 = vsel %vm16094_vm3, %v5856_v50, %v5857_v21  ;;  %v5913_v58 = vsel %vm13425_vm7, %v13578_v3, 0.0  ;;  %vm16098_vm7 = vmmov %vm16094_vm3 }
 0x6ab   : > { %v5873_v22 = vsel %vm16095_vm0, %v5862_v62, 0.0 }
 0x6ac   : > { %v5888_v10 = vadd.f32 %v5880_v2, %v5770_v52  ;;  %v5881_v7 = vadd.f32 %v5873_v22, %v13498_v36 }
 0x6ad   : > { %v5778_v49 = vpop.f32.mrb[52].mxu0 }
 0x6ae   : > { %v13637_v61 = vadd.f32 %v5912_v38, %v5888_v10  ;;  %v5889_v18 = vadd.f32 %v5881_v7, %v5774_v63  ;;  %v5858_v45 = vrot.slane %v5778_v49, 7  ;;  %v5780_v47 = vpop.f32.mrb[53].mxu0  ;;  %v16097_v63 = vrot.slane %v13554_v1, 7 }
 0x6af   : > { %v5782_v50 = vpop.f32.mrb[54].mxu0 }
 0x6b0   : > { %v13642_v30 = vadd.f32 %v5913_v58, %v5889_v18  ;;  %v5861_v36 = vsel %vm16096_vm15, %v5857_v21, %v5858_v45  ;;  %v5859_v52 = vrot.slane %v5782_v50, 7  ;;  %v5784_v5 = vpop.f32.mrb[55].mxu0  ;;  %v5908_v18 = vsel %vm13379_vm9, %v13524_v29, 0.0 }
 0x6b1   : > { %v5874_v8 = vsel %vm13401_vm12, %v5861_v36, 0.0  ;;  %vm16100_vm15 = vcmp.lt.s32.totalorder %v9589_v25, 7 }
 0x6b2   : > { %v5882_v34 = vadd.f32 %v5874_v8, %v13510_v15  ;;  %v5867_v48 = vsel %vm16094_vm3, %v5859_v52, %v16097_v63  ;;  %v5860_v3 = vsel %vm16098_vm7, %v5858_v45, %v5859_v52  ;;  %v5914_v15 = vsel %vm13439_vm13, %v13584_v56, 0.0 }
 0x6b3   : > { %v5868_v2 = vsel %vm13413_vm14, %v5867_v48, 0.0  ;;  %v5875_v21 = vsel %vm13417_vm5, %v5860_v3, 0.0  ;;  %vm16099_vm7 = vnez %v16071_v27 }
 0x6b4   : > { %v5890_v62 = vadd.f32 %v5882_v34, %v5780_v47  ;;  %v5876_v22 = vadd.f32 %v5868_v2, %v13503_v14  ;;  %v5883_v10 = vadd.f32 %v5875_v21, %v13512_v17  ;;  %v5915_v14 = vsel %vm16099_vm7, %v13590_v55, 0.0  ;;  %vm16101_vm7 = vmmov %vm16100_vm15 }
 0x6b6   : > { %v13664_v1 = vadd.f32 %v5914_v15, %v5890_v62  ;;  %v5884_v7 = vadd.f32 %v5876_v22, %v13562_v32  ;;  %v5891_v38 = vadd.f32 %v5883_v10, %v5784_v5  ;;  %v8507_v49 = vpop.f32.mrb[56].mxu0 }
 0x6b7   : > { %v8508_v45 = vpop.f32.mrb[57].mxu0 }
 0x6b8   : > { %v13673_v17 = vadd.f32 %v5915_v14, %v5891_v38  ;;  %v13675_v47 = vadd.f32 %v8508_v45, %v8507_v49  ;;  %v8510_v56 = vpop.f32.mrb[58].mxu0  ;;  %v13677_v58 = vadd.f32 %v5908_v18, %v5884_v7 }
 0x6b9   : > { %v8511_v50 = vpop.f32.mrb[59].mxu0 }
 0x6ba   : > { %v8512_v32 = vadd.f32 %v8511_v50, %v8510_v56  ;;  %v6150_v36 = vrot.slane %v13675_v47, 1 }
 0x6bc   : > { %v6151_v52 = vrot.slane %v8512_v32, 1 }
 0x6bd   : > { %v13680_v5 = vpop.f32.mrb[24].mxu1 }
 0x6be   : > { %v13686_v29 = vsel %vm16100_vm15, %v6150_v36, %v6151_v52  ;;  %v8513_v55 = vpop.f32.mrb[60].mxu0  ;;  %v13688_v8 = vpop.f32.mrb[25].mxu1  ;;  %v6110_v48 = vrot.slane %v13680_v5, 7 }
 0x6bf   : > { %v8514_v34 = vpop.f32.mrb[61].mxu0  ;;  %v6010_v63 = vpop.f32.mrb[26].mxu1  ;;  %v6166_v42 = vsel %vm13379_vm9, %v13686_v29, 0.0 }
 0x6c0   : > { %v8515_v3 = vadd.f32 %v8514_v34, %v8513_v55  ;;  %v6111_v2 = vrot.slane %v6010_v63, 7  ;;  %v8516_v21 = vpop.f32.mrb[62].mxu0  ;;  %v6012_v62 = vpop.f32.mrb[27].mxu1 }
 0x6c1   : > { %v8517_v22 = vpop.f32.mrb[63].mxu0 }
 0x6c2   : > { %v6152_v10 = vrot.slane %v8515_v3, 1  ;;  %v6124_v15 = vsel %vm16094_vm3, %v6110_v48, %v6111_v2  ;;  %v8518_v7 = vadd.f32 %v8517_v22, %v8516_v21  ;;  %vm16102_vm3 = vnez %v16038_v6 }
 0x6c3   : > { %v6127_v38 = vsel %vm13327_vm4, %v6124_v15, 0.0  ;;  %vm16103_vm4 = vcmp.lt.s32.totalorder %v9589_v25, 1 }
 0x6c4   : > { %v6135_v49 = vadd.f32 %v6127_v38, %v13598_v60  ;;  %v6163_v18 = vsel %vm16100_vm15, %v6151_v52, %v6152_v10  ;;  %v6153_v14 = vrot.slane %v8518_v7, 1 }
 0x6c5   : > { %v6016_v45 = vpop.f32.mrb[28].mxu1  ;;  %v6167_v63 = vsel %vm16102_vm3, %v6163_v18, 0.0 }
 0x6c6   : > { %v6143_v56 = vadd.f32 %v6135_v49, %v6012_v62  ;;  %v6112_v50 = vrot.slane %v6016_v45, 7  ;;  %v8519_v32 = vpop.f32.mrb[64].mxu0  ;;  %v6018_v55 = vpop.f32.mrb[29].mxu1  ;;  %v6162_v34 = vsel %vm16101_vm7, %v6152_v10, %v6153_v14  ;;  %vm16104_vm7 = vmmov %vm16103_vm4 }
 0x6c7   : > { %v8520_v3 = vpop.f32.mrb[65].mxu0  ;;  %v6020_v0 = vpop.f32.mrb[30].mxu1  ;;  %v6168_v11 = vsel %vm16091_vm8, %v6162_v34, 0.0 }
 0x6c8   : > { %v13704_v21 = vadd.f32 %v6167_v63, %v6143_v56  ;;  %v6123_v60 = vsel %vm16103_vm4, %v6111_v2, %v6112_v50  ;;  %v8521_v52 = vadd.f32 %v8520_v3, %v8519_v32  ;;  %v6113_v22 = vrot.slane %v6020_v0, 7  ;;  %v8522_v15 = vpop.f32.mrb[66].mxu0  ;;  %v6022_v62 = vpop.f32.mrb[31].mxu1 }
 0x6c9   : > { %v6128_v7 = vsel %vm16088_vm1, %v6123_v60, 0.0  ;;  %v8523_v38 = vpop.f32.mrb[67].mxu0  ;;  %vm16106_vm1 = vmmov %vm16103_vm4 }
 0x6ca   : > { %v6136_v10 = vadd.f32 %v6128_v7, %v13617_v19  ;;  %v6154_v49 = vrot.slane %v8521_v52, 1  ;;  %v6122_v6 = vsel %vm16104_vm7, %v6112_v50, %v6113_v22  ;;  %v8524_v45 = vadd.f32 %v8523_v38, %v8522_v15  ;;  %vm16112_vm3 = vmmov %vm16106_vm1 }
 0x6cb   : > { %v6129_v18 = vsel %vm16090_vm11, %v6122_v6, 0.0  ;;  %vm16105_vm11 = vmmov %vm16100_vm15 }
 0x6cc   : > { %v6144_v56 = vadd.f32 %v6136_v10, %v6018_v55  ;;  %v6137_v2 = vadd.f32 %v6129_v18, %v13622_v41  ;;  %v6161_v32 = vsel %vm16100_vm15, %v6153_v14, %v6154_v49  ;;  %v6155_v63 = vrot.slane %v8524_v45, 1  ;;  %vm16108_vm8 = vmmov %vm16105_vm11 }
 0x6cd   : > { %v6026_v3 = vpop.f32.mrb[32].mxu1  ;;  %v6169_v46 = vsel %vm13397_vm6, %v6161_v32, 0.0  ;;  %vm16107_vm6 = vmmov %vm16106_vm1 }
 0x6ce   : > { %v6176_v19 = vadd.f32 %v6168_v11, %v6144_v56  ;;  %v6145_v0 = vadd.f32 %v6137_v2, %v6022_v62  ;;  %v6114_v60 = vrot.slane %v6026_v3, 7  ;;  %v8525_v52 = vpop.f32.mrb[68].mxu0  ;;  %v6028_v50 = vpop.f32.mrb[33].mxu1  ;;  %v6160_v55 = vsel %vm16105_vm11, %v6154_v49, %v6155_v63  ;;  %vm16113_vm4 = vmmov %vm16106_vm1 }
 0x6cf   : > { %v8526_v41 = vpop.f32.mrb[69].mxu0  ;;  %v6030_v15 = vpop.f32.mrb[34].mxu1  ;;  %v6170_v51 = vsel %vm13407_vm2, %v6160_v55, 0.0  ;;  %vm16111_vm2 = vnez %v16065_v33  ;;  %vm16114_vm7 = vmmov %vm16106_vm1 }
 0x6d0   : > { %v6184_v14 = vadd.f32 %v9327_v4, %v6176_v19  ;;  %v6177_v34 = vadd.f32 %v6169_v46, %v6145_v0  ;;  %v6121_v62 = vsel %vm16106_vm1, %v6113_v22, %v6114_v60  ;;  %v8528_v7 = vpop.f32.mrb[70].mxu0  ;;  %v6032_v38 = vpop.f32.mrb[35].mxu1  ;;  %v8527_v10 = vadd.f32 %v8526_v41, %v8525_v52 }
 0x6d1   : > { %v6130_v57 = vsel %vm16093_vm10, %v6121_v62, 0.0  ;;  %v6115_v6 = vrot.slane %v6030_v15, 7  ;;  %v8529_v18 = vpop.f32.mrb[71].mxu0  ;;  %vm16109_vm10 = vmmov %vm16108_vm8  ;;  %vm6279_vm1 = vcmask 1043456  }
 0x6d2   : > { %v6185_v49 = vadd.f32 %v9327_v4, %v6177_v34  ;;  %v6138_v45 = vadd.f32 %v6130_v57, %v13637_v61  ;;  %v8530_v56 = vadd.f32 %v8529_v18, %v8528_v7  ;;  %v6192_v2 = vmax.f32 %v6184_v14, 0.0 }
 0x6d3   : > { %v6156_v32 = vrot.slane %v8527_v10, 1  ;;  %v6120_v11 = vsel %vm16107_vm6, %v6114_v60, %v6115_v6  ;;  %vm6275_vm6 = vcmask 64512  }
 0x6d4   : > { %v6193_v3 = vmax.f32 %v6185_v49, 0.0  ;;  %v6146_v19 = vadd.f32 %v6138_v45, %v6028_v50  ;;  %v6131_v22 = vsel %vm16095_vm0, %v6120_v11, 0.0  ;;  %v6157_v0 = vrot.slane %v8530_v56, 1  ;;  %vm16110_vm0 = vmmov %vm16108_vm8 }
 0x6d5   : > { %v6139_v52 = vadd.f32 %v6131_v22, %v13642_v30  ;;  %v6159_v61 = vsel %vm16108_vm8, %v6155_v63, %v6156_v32  ;;  %v6036_v46 = vpop.f32.mrb[36].mxu1 }
 0x6d6   : > { %v6199_v41 = vpack.c.bf16 %v6193_v3, %v6192_v2  ;;  %v6178_v15 = vadd.f32 %v6170_v51, %v6146_v19  ;;  %v6116_v14 = vrot.slane %v6036_v46, 7  ;;  %v6038_v34 = vpop.f32.mrb[37].mxu1  ;;  %v6158_v50 = vsel %vm16109_vm10, %v6156_v32, %v6157_v0  ;;  %v9331_v46 = vld [vmem:[%s11850_s15 + $0xf0] sm:$0xff] }
 0x6d7   : > { %v6147_v60 = vadd.f32 %v6139_v52, %v6032_v38  ;;  %v6040_v35 = vpop.f32.mrb[38].mxu1  ;;  %v6165_v53 = vsel %vm16110_vm0, %v6157_v0, %v6150_v36  ;;  %v6171_v30 = vsel %vm16111_vm2, %v6159_v61, 0.0  ;;  %v9330_v61 = vld [vmem:[%s11850_s15 + $0xe8] sm:$0xff]  ;;  %vm7277_vm15 = vcmp.gt.f32.partialorder %v9331_v46, 1.0 }
 0x6d8   : > { %v6119_v63 = vsel %vm16112_vm3, %v6115_v6, %v6116_v14  ;;  %v6117_v55 = vrot.slane %v6040_v35, 7  ;;  %v6042_v62 = vpop.f32.mrb[39].mxu1  ;;  %v6186_v7 = vadd.f32 %v9327_v4, %v6178_v15  ;;  %v7309_v15 = vsel %vm7277_vm15, 1, %v15987_v16 }
 0x6d9   : > { %v6179_v57 = vadd.f32 %v6171_v30, %v6147_v60  ;;  %v6132_v38 = vsel %vm13401_vm12, %v6119_v63, 0.0  ;;  %vm16115_vm12 = vnez %v16071_v27  ;;  %v9328_v27 = vld [vmem:[%s11850_s15 + $0xd8] sm:$0xff]  ;;  %v13787_v60 = vpop.permute.xlu0 %6801 }
 0x6da   : > { %v6140_v10 = vadd.f32 %v6132_v38, %v13664_v1  ;;  %v6125_v47 = vsel %vm16113_vm4, %v6117_v55, %v6110_v48  ;;  %v6118_v33 = vsel %vm16114_vm7, %v6116_v14, %v6117_v55  ;;  %v6194_v45 = vmax.f32 %v6186_v7, 0.0  ;;  %v9332_v14 = vld [vmem:[%s11850_s15 + $0xf8] sm:$0xff] }
 0x6db   : > { %v6187_v36 = vadd.f32 %v9327_v4, %v6179_v57  ;;  %v6126_v6 = vsel %vm13413_vm14, %v6125_v47, 0.0  ;;  %v6133_v18 = vsel %vm13417_vm5, %v6118_v33, 0.0  ;;  %v6172_v48 = vsel %vm13439_vm13, %v6158_v50, 0.0  ;;  %v13789_v50 = vpop.permute.xlu1 %6811 }
 0x6dc   : > { %v6148_v49 = vadd.f32 %v6140_v10, %v6038_v34  ;;  %v6134_v59 = vadd.f32 %v6126_v6, %v13677_v58  ;;  %v6141_v1 = vadd.f32 %v6133_v18, %v13673_v17  ;;  %v6173_v28 = vsel %vm16115_vm12, %v6165_v53, 0.0 }
 0x6dd   : > { %v6195_v5 = vmax.f32 %v6187_v36, 0.0  ;;  %v6183_v58 = vadd.f32 %v9327_v4, %v13704_v21  ;;  %vm16116_vm13 = vmmov 0   ;;  %vm7274_vm9 = vcmp.gt.f32.partialorder %v9328_v27, 1.0  ;;  %v9329_v21 = vld [vmem:[%s11850_s15 + $0xe0] sm:$0xff]  ;;  %v13791_v35 = vpop.permute.xlu0 %6806  ;;  %s9401_s15 = smov [#allocation2]  }
 0x6de   : > { %v6180_v56 = vadd.f32 %v6172_v48, %v6148_v49  ;;  %v6142_v25 = vadd.f32 %v6134_v59, %v13688_v8  ;;  %v6149_v2 = vadd.f32 %v6141_v1, %v6042_v62  ;;  %vm7275_vm14 = vcmp.gt.f32.partialorder %v9329_v21, 1.0  ;;  %v13817_v1 = vld [vmem:[%s14800_s9] sm:$0xff]   ;;  %s9337_s21 = sshll.u32 %s9401_s15, 4  ;;  %s9338_s21 = int_to_ptr.vmem [resolvable:$false] %s9337_s21 }
 0x6df   : > { %v6200_v32 = vpack.c.bf16 %v6195_v5, %v6194_v45  ;;  %v6191_v22 = vmax.f32 %v6183_v58, 0.0  ;;  %v7307_v52 = vsel %vm7275_vm14, 1, %v15987_v16  ;;  %vm7276_vm5 = vcmp.gt.f32.partialorder %v9330_v61, 1.0  ;;  %v13793_v53 = vpop.permute.xlu1 %6816  ;;  %s9339_s25 = scalar_lea.vmem %s9338_s21, 8192  ;;  %p9340_p0 = scmp.lt.s32.totalorder %s14744_s18, %s9338_s21 }
 0x6e0   : > { %v6188_v17 = vadd.f32 %v9327_v4, %v6180_v56  ;;  %v6181_v11 = vadd.f32 %v6173_v28, %v6149_v2  ;;  %v6174_v3 = vadd.f32 %v6166_v42, %v6142_v25  ;;  %7396 = vperm.xlu0 %8772, %v7307_v52   ;;  %vm7278_vm11 = vcmp.gt.f32.partialorder %v9332_v14, 1.0  ;;  %16117 = vst [vmem:[#allocation42_spill] sm:$0xff] %v13793_v53  ;;  %p9341_p1 = scmp.lt.s32.totalorder %s9339_s25, %s9333_s17 }
 0x6e1   : > { %v7310_v34 = vsel %vm7278_vm11, 1, %v15987_v16  ;;  %v13795_v30 = vpop.permute.xlu0 %6821 }
 0x6e2   : > { %v6189_v12 = vadd.f32 %v9327_v4, %v6181_v11  ;;  %v6182_v19 = vadd.f32 %v9327_v4, %v6174_v3  ;;  %v6196_v8 = vmax.f32 %v6188_v17, 0.0  ;;  %v7306_v4 = vsel %vm7274_vm9, 1, %v15987_v16  ;;  %p9342_p2 = por %p9341_p1, %p9340_p0 }
 0x6e3   : > { %7393 = vperm.xlu1 %8773, %v7306_v4   ;;  %v13797_v63 = vpop.permute.xlu1 %6826 }
 0x6e4   : > { %v6197_v0 = vmax.f32 %v6189_v12, 0.0  ;;  %v6190_v51 = vmax.f32 %v6182_v19, 0.0  ;;  %7402 = vperm.xlu0 %8772, %v7309_v15   ;;  %16118 = vst [vmem:[#allocation36_spill] sm:$0xff] %v13797_v63  ;;  %p9343_p3 = pnand %p9342_p2, %p9336_p13 }
 0x6e5   : > { %v13799_v55 = vpop.permute.xlu0 %6831 }
 0x6e6   : > { %v6201_v31 = vpack.c.bf16 %v6197_v0, %v6196_v8  ;;  %v6198_v29 = vpack.c.bf16 %v6191_v22, %v6190_v51 }
 0x6e7   : > { %v13801_v62 = vpop.permute.xlu1 %6836 }
 0x6e8   : > { %8671 = vmatprep.mubr.bf16.mxu0 %v6198_v29  ;;  %16119 = vst [vmem:[#allocation39_spill] sm:$0xff] %v13801_v62 }
 0x6e9   : > { %8672 = vmatmul.mubr.bf16.vlgmr.msra.gmra.mrb[72].mxu0 %v6199_v41  ;;  %v7308_v41 = vsel %vm7276_vm5, 1, %v15987_v16  ;;  %v13806_v16 = vld [vmem:[%s14798_s7] ss:$0 sm:$0xff]  ;;  %v13811_v49 = vpop.permute.xlu0 %6841 }
 0x6ea   : > { %8675 = vmatprep.mubr.bf16.mxu0 %v6200_v32  ;;  %7399 = vperm.xlu1 %8773, %v7308_v41   ;;  %v13991_v63 = vadd.f32 %v12788_v37, %v13806_v16  ;;  %v14011_v37 = vadd.f32 %v12796_v23, %v13806_v16  ;;  %v14034_v23 = vadd.f32 %v12800_v54, %v13806_v16  ;;  %v16164_v54 = vld [vmem:[#allocation101_spill] sm:$0xff] }
 0x6eb   : > { %v13819_v45 = vpop.permute.xlu1 %6846 }
 0x6ec   : > { %16120 = vst [vmem:[#allocation109_spill] sm:$0xff] %v13819_v45  ;;  %16151 = vst [vmem:[#allocation41_spill] sm:$0xff] %v13991_v63 }
 0x6ed   : > { %v13834_v17 = vpop.permute.xlu0 %6851  ;;  %16155 = vst [vmem:[#allocation31_spill] sm:$0xff] %v14011_v37  ;;  %16158 = vst [vmem:[#allocation77_spill] sm:$0xff] %v14034_v23 }
 0x6ee   : > { %7405 = vperm.xlu1 %8773, %v7310_v34   ;;  %16121 = vst [vmem:[#allocation116_spill] sm:$0xff] %v13834_v17 }
 0x6ef   : > { %v13838_v3 = vpop.permute.xlu1 %6856 }
 0x6f0   : > { %16122 = vst [vmem:[#allocation93_spill] sm:$0xff] %v13838_v3 }
 0x6f1   : > { %8676 = vmatmul.mubr.bf16.gmra.mrb[76].mxu0 %v6201_v31  ;;  %v13843_v0 = vpop.permute.xlu0 %6861 }
 0x6f2   : > { %8693 = vmatprep.mubr.msk.bf16.mxu0 %vm16116_vm13, %v15636_v43  ;;  %16123 = vst [vmem:[#allocation110_spill] sm:$0xff] %v13843_v0 }
 0x6f3   : > { %v13845_v51 = vpop.permute.xlu1 %6866 }
 0x6f4   : > { %16124 = vst [vmem:[#allocation61_spill] sm:$0xff] %v13845_v51 }
 0x6f5   : > { %v13859_v4 = vpop.permute.xlu0 %6871 }
 0x6f6   : > { %16125 = vst [vmem:[#allocation94_spill] sm:$0xff] %v13859_v4 }
 0x6f7   : > { %v13861_v52 = vpop.permute.xlu1 %6876 }
 0x6f8   : > { %16126 = vst [vmem:[#allocation95_spill] sm:$0xff] %v13861_v52 }
 0x6f9   : > { %v13872_v41 = vpop.permute.xlu0 %6881 }
 0x6fa   : > { %16127 = vst [vmem:[#allocation40_spill] sm:$0xff] %v13872_v41 }
 0x6fb   : > { %v13874_v15 = vpop.permute.xlu1 %6886 }
 0x6fc   : > { %16128 = vst [vmem:[#allocation81_spill] sm:$0xff] %v13874_v15 }
 0x7bc   : > { %v8673_v7 = vpop.f32.mrb[72].mxu0 }
 0x7bd   : > { %v6245_v57 = vadd.f32 %v8673_v7, %v13806_v16  ;;  %v6236_v38 = vpop.f32.mrb[73].mxu0  ;;  %v13879_v7 = vpop.permute.xlu0 %6891 }
 0x7be   : > { %v6237_v10 = vadd.f32 %v13806_v16, %v6236_v38  ;;  %v8674_v47 = vpop.f32.mrb[74].mxu0  ;;  %16129 = vst [vmem:[#allocation52_spill] sm:$0xff] %v13879_v7 }
 0x7bf   : > { %v6369_v33 = vpack.c.bf16 %v6245_v57, %v6245_v57  ;;  %v6239_v36 = vpop.f32.mrb[75].mxu0  ;;  %v6248_v2 = vadd.f32 %v8674_v47, %v13806_v16  ;;  %v13883_v57 = vpop.permute.xlu1 %6896 }
 0x7c0   : > { %v6269_v6 = vpack.c.bf16 %v6237_v10, %v6237_v10  ;;  %v6240_v18 = vadd.f32 %v13806_v16, %v6239_v36  ;;  %16130 = vst [vmem:[#allocation15_spill] sm:$0xff] %v13883_v57 }
 0x7c1   : > { %v6371_v59 = vsel %vm6279_vm1, %v6369_v33, 0  ;;  %v6414_v19 = vpack.c.bf16 %v6248_v2, %v6248_v2  ;;  %v13885_v38 = vpop.permute.xlu0 %6901 }
 0x7c2   : > { %v6281_v5 = vsel %vm6279_vm1, %v6269_v6, 0  ;;  %v6324_v48 = vpack.c.bf16 %v6240_v18, %v6240_v18  ;;  %8692 = vmatpush3.bf16.msra.mxu0 %v6371_v59  ;;  %16131 = vst [vmem:[#allocation68_spill] sm:$0xff] %v13885_v38 }
 0x7c3   : > { %8680 = vmatpush3.bf16.msra.mxu1 %v6281_v5  ;;  %8703 = vmatprep.subr.bf16.mxu0 %v15636_v43  ;;  %v6416_v31 = vsel %vm6279_vm1, %v6414_v19, 0  ;;  %v13887_v10 = vpop.permute.xlu1 %6906 }
 0x7c4   : > { %v8677_v56 = vpop.f32.mrb[76].mxu0  ;;  %8685 = vmatprep.subr.bf16.mxu1 %v15636_v43  ;;  %v6326_v42 = vsel %vm6279_vm1, %v6324_v48, 0  ;;  %16132 = vst [vmem:[#allocation118_spill] sm:$0xff] %v13887_v10 }
 0x7c5   : > { %v6252_v25 = vpop.f32.mrb[77].mxu0  ;;  %8694 = vmatmul.mubr.msk.bf16.vlgmr.msra.gmra.mrb[80].mxu0 %vm6275_vm6, %v13817_v1  ;;  %v6261_v28 = vadd.f32 %v8677_v56, %v13806_v16  ;;  %v13891_v47 = vpop.permute.xlu0 %6911 }
 0x7c6   : > { %v6253_v32 = vadd.f32 %v13806_v16, %v6252_v25  ;;  %v8678_v58 = vpop.f32.mrb[78].mxu0  ;;  %8682 = vmatmul.mubr.msk.bf16.vlgmr.msra.gmra.mrb[40].mxu1 %vm6275_vm6, %v13817_v1  ;;  %8705 = vmatprep.mubr.msk.bf16.mxu0 %vm16116_vm13, %v15636_v43  ;;  %16133 = vst [vmem:[#allocation8_spill] sm:$0xff] %v13891_v47 }
 0x7c7   : > { %v6255_v11 = vpop.f32.mrb[79].mxu0  ;;  %8686 = vmatpush3.bf16.msra.mxu1 %v6326_v42  ;;  %8687 = vmatprep.mubr.msk.bf16.mxu1 %vm16116_vm13, %v15636_v43  ;;  %v6549_v22 = vpack.c.bf16 %v6261_v28, %v6261_v28  ;;  %v6264_v61 = vadd.f32 %v8678_v58, %v13806_v16  ;;  %v13893_v33 = vpop.permute.xlu1 %6916 }
 0x7c8   : > { %v6459_v12 = vpack.c.bf16 %v6253_v32, %v6253_v32  ;;  %8697 = vmatprep.subr.bf16.mxu1 %v15636_v43  ;;  %v6256_v27 = vadd.f32 %v13806_v16, %v6255_v11  ;;  %16134 = vst [vmem:[#allocation32_spill] sm:$0xff] %v13893_v33 }
 0x7c9   : > { %v6551_v29 = vsel %vm6279_vm1, %v6549_v22, 0  ;;  %v6594_v14 = vpack.c.bf16 %v6264_v61, %v6264_v61  ;;  %v13895_v36 = vpop.permute.xlu0 %6921 }
 0x7ca   : > { %v6461_v8 = vsel %vm6279_vm1, %v6459_v12, 0  ;;  %v6504_v21 = vpack.c.bf16 %v6256_v27, %v6256_v27  ;;  %16135 = vst [vmem:[#allocation9_spill] sm:$0xff] %v13895_v36 }
 0x7cb   : > { %8704 = vmatpush3.bf16.msra.mxu0 %v6461_v8  ;;  %v6596_v34 = vsel %vm6279_vm1, %v6594_v14, 0  ;;  %v13897_v6 = vpop.permute.xlu1 %6926 }
 0x7cc   : > { %8715 = vmatprep.subr.bf16.mxu0 %v15636_v43  ;;  %v6506_v46 = vsel %vm6279_vm1, %v6504_v21, 0  ;;  %16136 = vst [vmem:[#allocation70_spill] sm:$0xff] %v13897_v6 }
 0x7cd   : > { %v13899_v18 = vpop.permute.xlu0 %6931 }
 0x7ce   : > { %8688 = vmatmul.mubr.msk.bf16.vlgmr.msra.gmra.mrb[44].mxu1 %vm6275_vm6, %v13817_v1  ;;  %8706 = vmatmul.mubr.msk.bf16.vlgmr.msra.gmra.mrb[84].mxu0 %vm6275_vm6, %v13817_v1  ;;  %16137 = vst [vmem:[#allocation45_spill] sm:$0xff] %v13899_v18 }
 0x7cf   : > { %8698 = vmatpush3.bf16.msra.mxu1 %v6416_v31  ;;  %8716 = vmatpush3.bf16.msra.mxu0 %v6551_v29 }
 0x7d0   : > { %8699 = vmatprep.mubr.msk.bf16.mxu1 %vm16116_vm13, %v15636_v43  ;;  %8709 = vmatprep.subr.bf16.mxu1 %v15636_v43 }
 0x7d1   : > { %8717 = vmatprep.mubr.msk.bf16.mxu0 %vm16116_vm13, %v15636_v43  ;;  %v13903_v59 = vpop.permute.xlu0 %6941 }
 0x7d2   : > { %16139 = vst [vmem:[#allocation90_spill] sm:$0xff] %v13903_v59 }
 0x7d5   : > { %v13907_v48 = vpop.permute.xlu0 %6951 }
 0x7d6   : > { %8700 = vmatmul.mubr.msk.bf16.vlgmr.msra.gmra.mrb[48].mxu1 %vm6275_vm6, %v13817_v1  ;;  %8718 = vmatmul.mubr.msk.bf16.vlgmr.msra.gmra.mrb[88].mxu0 %vm6275_vm6, %v13817_v1  ;;  %16141 = vst [vmem:[#allocation26_spill] sm:$0xff] %v13907_v48 }
 0x7d7   : > { %8710 = vmatpush3.bf16.msra.mxu1 %v6506_v46  ;;  %8711 = vmatprep.mubr.msk.bf16.mxu1 %vm16116_vm13, %v15636_v43 }
 0x7d8   : > { %8721 = vmatprep.subr.bf16.mxu1 %v15636_v43 }
 0x7de   : > { %8712 = vmatmul.mubr.msk.bf16.vlgmr.msra.gmra.mrb[52].mxu1 %vm6275_vm6, %v13817_v1 }
 0x7df   : > { %8722 = vmatpush3.bf16.msra.mxu1 %v6596_v34  ;;  %8723 = vmatprep.mubr.msk.bf16.mxu1 %vm16116_vm13, %v15636_v43  ;;  %v13901_v43 = vpop.permute.xlu1 %6936 }
 0x7e0   : > { %16138 = vst [vmem:[#allocation78_spill] sm:$0xff] %v13901_v43 }
 0x7e3   : > { %v13905_v5 = vpop.permute.xlu1 %6946 }
 0x7e4   : > { %16140 = vst [vmem:[#allocation80_spill] sm:$0xff] %v13905_v5 }
 0x7e6   : > { %8724 = vmatmul.mubr.msk.bf16.vlgmr.msra.gmra.mrb[56].mxu1 %vm6275_vm6, %v13817_v1  ;;  %v7026_v1 = vpop.permute.xlu0 %7025 }
 0x7e7   : > { %v13909_v56 = vpop.permute.xlu1 %6956 }
 0x7e8   : > { %16142 = vst [vmem:[#allocation65_spill] sm:$0xff] %v13909_v56 }
 0x7ea   : > { %v7036_v2 = vpop.permute.xlu0 %7035 }
 0x7eb   : > { %v7031_v25 = vpop.permute.xlu1 %7030 }
 0x7ee   : > { %v13911_v28 = vpop.permute.xlu0 %7045 }
 0x7ef   : > { %v7041_v42 = vpop.permute.xlu1 %7040 }
 0x7f2   : > { %v7056_v58 = vpop.permute.xlu0 %7055 }
 0x7f3   : > { %v13913_v32 = vpop.permute.xlu1 %7050 }
 0x7f6   : > { %v13917_v12 = vpop.permute.xlu0 %7065 }
 0x7f7   : > { %v13915_v11 = vpop.permute.xlu1 %7060 }
 0x7fa   : > { %v13921_v22 = vpop.permute.xlu0 %7075 }
 0x7fb   : > { %v13919_v19 = vpop.permute.xlu1 %7070 }
 0x7fe   : > { %v13925_v31 = vpop.permute.xlu0 %7085 }
 0x7ff   : > { %v13923_v8 = vpop.permute.xlu1 %7080 }
 0x802   : > { %v13929_v27 = vpop.permute.xlu0 %7095 }
 0x803   : > { %v13927_v29 = vpop.permute.xlu1 %7090 }
 0x806   : > { %v13933_v61 = vpop.permute.xlu0 %7105 }
 0x807   : > { %v13931_v21 = vpop.permute.xlu1 %7100 }
 0x80a   : > { %v13937_v14 = vpop.permute.xlu0 %7115 }
 0x80b   : > { %v13935_v46 = vpop.permute.xlu1 %7110 }
 0x80e   : > { %v13941_v56 = vpop.permute.xlu0 %7125 }
 0x80f   : > { %v13939_v34 = vpop.permute.xlu1 %7120 }
 0x812   : > { %v13945_v43 = vpop.permute.xlu0 %7135 }
 0x813   : > { %v13943_v5 = vpop.permute.xlu1 %7130 }
 0x816   : > { %v13949_v59 = vpop.permute.xlu0 %7145 }
 0x817   : > { %v13947_v48 = vpop.permute.xlu1 %7140 }
 0x81a   : > { %v13953_v6 = vpop.permute.xlu0 %7155 }
 0x81b   : > { %v13951_v18 = vpop.permute.xlu1 %7150 }
 0x81e   : > { %v13957_v10 = vpop.permute.xlu0 %7165 }
 0x81f   : > { %v13955_v33 = vpop.permute.xlu1 %7160 }
 0x822   : > { %v13961_v36 = vpop.permute.xlu0 %7175 }
 0x823   : > { %v13959_v57 = vpop.permute.xlu1 %7170 }
 0x826   : > { %v13965_v38 = vpop.permute.xlu0 %7312 }
 0x827   : > { %v13963_v47 = vpop.permute.xlu1 %7180  ;;  %vm7407_vm8 = vcmp.eq.s32.totalorder %v13965_v38, 1 }
 0x82a   : > { %v13969_v15 = vpop.permute.xlu0 %7318 }
 0x82b   : > { %v13967_v7 = vpop.permute.xlu1 %7315  ;;  %vm7409_vm0 = vcmp.eq.s32.totalorder %v13969_v15, 1 }
 0x82c   : > { %vm7408_vm10 = vcmp.eq.s32.totalorder %v13967_v7, 1 }
 0x82e   : > { %v13973_v51 = vpop.permute.xlu0 %7324 }
 0x82f   : > { %v13971_v52 = vpop.permute.xlu1 %7321  ;;  %vm7411_vm2 = vcmp.eq.s32.totalorder %v13973_v51, 1 }
 0x830   : > { %16143 = vst [vmem:[#allocation114_spill] sm:$0xff] %v13971_v52  ;;  %v16181_v52 = vld [vmem:[#allocation111_spill] sm:$0xff] }
 0x832   : > { %v13977_v41 = vpop.permute.xlu0 %7330 }
 0x833   : > { %v13975_v3 = vpop.permute.xlu1 %7327  ;;  %16145 = vst [vmem:[#allocation54_spill] sm:$0xff] %v13977_v41  ;;  %v16179_v41 = vld [vmem:[#allocation108_spill] sm:$0xff] }
 0x834   : > { %16144 = vst [vmem:[#allocation53_spill] sm:$0xff] %v13975_v3  ;;  %v13997_v3 = vadd.f32 %v13806_v16, %v12790_v40 }
 0x836   : > { %v13981_v0 = vpop.permute.xlu0 %7336  ;;  %v14017_v40 = vmul.f32 %v7026_v1, %v13997_v3  ;;  %v14038_v1 = vadd.f32 %v13806_v16, %v12802_v20  ;;  %v16166_v20 = vld [vmem:[#allocation86_spill] sm:$0xff] }
 0x837   : > { %v13979_v4 = vpop.permute.xlu1 %7333  ;;  %16147 = vst [vmem:[#allocation113_spill] sm:$0xff] %v13981_v0  ;;  %v14060_v0 = vadd.f32 %v16166_v20, %v13806_v16 }
 0x838   : > { %16146 = vst [vmem:[#allocation83_spill] sm:$0xff] %v13979_v4  ;;  %v14001_v4 = vadd.f32 %v12792_v13, %v13806_v16  ;;  %16159 = vst [vmem:[#allocation59_spill] sm:$0xff] %v14038_v1 }
 0x839   : > { %16167 = vst [vmem:[#allocation55_spill] sm:$0xff] %v14060_v0 }
 0x83a   : > { %v13985_v45 = vpop.permute.xlu0 %7342  ;;  %16153 = vst [vmem:[#allocation17_spill] sm:$0xff] %v14001_v4  ;;  %v14023_v13 = vmul.f32 %v7041_v42, %v14001_v4  ;;  %v14052_v42 = vadd.f32 %v12810_v39, %v13806_v16  ;;  %v16173_v39 = vld [vmem:[#allocation28_spill] sm:$0xff] }
 0x83b   : > { %v13983_v17 = vpop.permute.xlu1 %7339  ;;  %16149 = vst [vmem:[#allocation72_spill] sm:$0xff] %v13985_v45 }
 0x83c   : > { %16148 = vst [vmem:[#allocation47_spill] sm:$0xff] %v13983_v17  ;;  %v14005_v17 = vadd.f32 %v13806_v16, %v12794_v9  ;;  %16156 = vst [vmem:[#allocation43_spill] sm:$0xff] %v14023_v13  ;;  %v14027_v9 = vadd.f32 %v13806_v16, %v12798_v26  ;;  %v14048_v26 = vadd.f32 %v13806_v16, %v12808_v24  ;;  %v16171_v24 = vld [vmem:[#allocation107_spill] sm:$0xff] }
 0x83d   : > { %16163 = vst [vmem:[#allocation87_spill] sm:$0xff] %v14052_v42  ;;  %v14070_v4 = vadd.f32 %v16171_v24, %v13806_v16  ;;  %v14090_v24 = vadd.f32 %v16179_v41, %v13806_v16 }
 0x83e   : > { %v13993_v53 = vpop.permute.xlu0 %7348  ;;  %16157 = vst [vmem:[#allocation51_spill] sm:$0xff] %v14027_v9  ;;  %16162 = vst [vmem:[#allocation49_spill] sm:$0xff] %v14048_v26  ;;  %v14082_v20 = vmul.f32 %v13911_v28, %v14027_v9  ;;  %v14102_v28 = vmul.f32 %v13915_v11, %v14034_v23  ;;  %v16183_v9 = vld [vmem:[#allocation27_spill] sm:$0xff]  ;;  %v14122_v11 = vmul.f32 %v13923_v8, %v14052_v42 }
 0x83f   : > { %v13987_v62 = vpop.permute.xlu1 %7345  ;;  %16152 = vst [vmem:[#allocation46_spill] sm:$0xff] %v13993_v53  ;;  %v14014_v53 = vmul.f32 %v7036_v2, %v13991_v63  ;;  %16172 = vst [vmem:[#allocation89_spill] sm:$0xff] %v14070_v4  ;;  %v14074_v63 = vadd.f32 %v13806_v16, %v16173_v39  ;;  %v14094_v39 = vadd.f32 %v13806_v16, %v16181_v52 }
 0x840   : > { %16150 = vst [vmem:[#allocation22_spill] sm:$0xff] %v13987_v62  ;;  %v14020_v62 = vmul.f32 %v7031_v25, %v14005_v17  ;;  %v14042_v25 = vadd.f32 %v12806_v44, %v13806_v16  ;;  %16180 = vst [vmem:[#allocation10_spill] sm:$0xff] %v14090_v24  ;;  %v14110_v41 = vadd.f32 %v16183_v9, %v13806_v16 }
 0x841   : > { %16174 = vst [vmem:[#allocation117_spill] sm:$0xff] %v14074_v63  ;;  %16182 = vst [vmem:[#allocation60_spill] sm:$0xff] %v14094_v39  ;;  %v14114_v52 = vmul.f32 %v13917_v12, %v14048_v26  ;;  %v14134_v12 = vmul.f32 %v13927_v29, %v14074_v63  ;;  %v14156_v29 = vmul.f32 %v13939_v34, %v14090_v24  ;;  %v16197_v34 = vld [vmem:[#allocation57_spill] sm:$0xff] }
 0x842   : > { %16160 = vst [vmem:[#allocation56_spill] sm:$0xff] %v14042_v25  ;;  %v14044_v2 = vpop.permute.xlu0 %7354  ;;  %16184 = vst [vmem:[#allocation85_spill] sm:$0xff] %v14110_v41  ;;  %v14166_v63 = vmul.f32 %v13945_v43, %v14110_v41  ;;  %v14178_v24 = vadd.f32 %v16197_v34, %v13806_v16  ;;  %v16201_v43 = vld [vmem:[#allocation92_spill] sm:$0xff] }
 0x843   : > { %v14007_v45 = vpop.permute.xlu1 %7351  ;;  %16161 = vst [vmem:[#allocation91_spill] sm:$0xff] %v14044_v2  ;;  %16188 = vst [vmem:[#allocation24_spill] sm:$0xff] %v14156_v29  ;;  %v14186_v41 = vadd.f32 %v16201_v43, %v13806_v16  ;;  %v16205_v34 = vld [vmem:[#allocation48_spill] sm:$0xff] }
 0x844   : > { %16154 = vst [vmem:[#allocation21_spill] sm:$0xff] %v14007_v45  ;;  %v14030_v45 = vmul.f32 %v7056_v58, %v14011_v37  ;;  %v14056_v58 = vadd.f32 %v13806_v16, %v16164_v54  ;;  %v16169_v37 = vld [vmem:[#allocation102_spill] sm:$0xff]  ;;  %16192 = vst [vmem:[#allocation76_spill] sm:$0xff] %v14166_v63  ;;  %v14194_v26 = vadd.f32 %v16205_v34, %v13806_v16 }
 0x845   : > { %v14066_v2 = vadd.f32 %v13806_v16, %v16169_v37  ;;  %v16175_v54 = vld [vmem:[#allocation34_spill] sm:$0xff]  ;;  %16198 = vst [vmem:[#allocation23_spill] sm:$0xff] %v14178_v24  ;;  %16202 = vst [vmem:[#allocation75_spill] sm:$0xff] %v14186_v41 }
 0x846   : > { %16165 = vst [vmem:[#allocation29_spill] sm:$0xff] %v14056_v58  ;;  %v14078_v13 = vadd.f32 %v16175_v54, %v13806_v16  ;;  %v14098_v54 = vmul.f32 %v13913_v32, %v14038_v1  ;;  %v14118_v32 = vmul.f32 %v13919_v19, %v14056_v58  ;;  %v14138_v19 = vmul.f32 %v13931_v21, %v14070_v4  ;;  %v14144_v42 = vpop.permute.xlu0 %7360  ;;  %v16189_v21 = vld [vmem:[#allocation30_spill] sm:$0xff]  ;;  %v16199_v58 = vld [vmem:[#allocation112_spill] sm:$0xff]  ;;  %v16209_v1 = vld [vmem:[#allocation37_spill] sm:$0xff] }
 0x847   : > { %v14062_v44 = vpop.permute.xlu1 %7357  ;;  %16170 = vst [vmem:[#allocation58_spill] sm:$0xff] %v14066_v2  ;;  %v14130_v9 = vmul.f32 %v13925_v31, %v14066_v2  ;;  %16186 = vst [vmem:[#allocation20_spill] sm:$0xff] %v14144_v42  ;;  %v14152_v31 = vmul.f32 %v13935_v46, %v14094_v39  ;;  %v14160_v4 = vadd.f32 %v13806_v16, %v16189_v21  ;;  %v16195_v46 = vld [vmem:[#allocation106_spill] sm:$0xff] }
 0x848   : > { %16168 = vst [vmem:[#allocation73_spill] sm:$0xff] %v14062_v44  ;;  %16176 = vst [vmem:[#allocation16_spill] sm:$0xff] %v14078_v13  ;;  %v16177_v44 = vld [vmem:[#allocation33_spill] sm:$0xff]  ;;  %v14142_v8 = vmul.f32 %v13937_v14, %v14078_v13  ;;  %v14174_v39 = vadd.f32 %v13806_v16, %v16195_v46  ;;  %v14182_v2 = vadd.f32 %v13806_v16, %v16199_v58  ;;  %v16203_v46 = vld [vmem:[#allocation88_spill] sm:$0xff] }
 0x849   : > { %v14086_v37 = vadd.f32 %v13806_v16, %v16177_v44  ;;  %v14106_v44 = vmul.f32 %v13921_v22, %v14042_v25  ;;  %v14126_v22 = vmul.f32 %v13929_v27, %v14060_v0  ;;  %16187 = vst [vmem:[#allocation62_spill] sm:$0xff] %v14152_v31  ;;  %16190 = vst [vmem:[#allocation12_spill] sm:$0xff] %v14160_v4 }
 0x84a   : > { %16185 = vst [vmem:[#allocation67_spill] sm:$0xff] %v14142_v8  ;;  %16196 = vst [vmem:[#allocation18_spill] sm:$0xff] %v14174_v39  ;;  %v14190_v25 = vadd.f32 %v13806_v16, %v16203_v46  ;;  %v14202_v43 = vadd.f32 %v16209_v1, %v13806_v16  ;;  %v14210_v34 = vmul.f32 %v13943_v5, %v14174_v39  ;;  %v16221_v39 = vld [vmem:[#allocation43_spill] sm:$0xff] }
 0x84b   : > { %16178 = vst [vmem:[#allocation11_spill] sm:$0xff] %v14086_v37  ;;  %v14148_v27 = vmul.f32 %v13933_v61, %v14086_v37  ;;  %v14162_v14 = vpop.permute.xlu1 %7363  ;;  %v16193_v61 = vld [vmem:[#allocation105_spill] sm:$0xff]  ;;  %16200 = vst [vmem:[#allocation19_spill] sm:$0xff] %v14182_v2  ;;  %v14218_v1 = vmul.f32 %v13953_v6, %v14178_v24  ;;  %v14230_v5 = vmul.f32 %v13955_v33, %v14186_v41  ;;  %v14249_v33 = vpop.permute.xlu0 %7366 }
 0x84c   : > { %16191 = vst [vmem:[#allocation35_spill] sm:$0xff] %v14162_v14  ;;  %v14170_v37 = vadd.f32 %v16193_v61, %v13806_v16  ;;  %16204 = vst [vmem:[#allocation103_spill] sm:$0xff] %v14190_v25 }
 0x84d   : > { %16206 = vst [vmem:[#allocation96_spill] sm:$0xff] %v14194_v26  ;;  %16210 = vst [vmem:[#allocation44_spill] sm:$0xff] %v14202_v43 }
 0x84e   : > { %16194 = vst [vmem:[#allocation38_spill] sm:$0xff] %v14170_v37 }
 0x898   : > { %v6407_v13 = vpop.f32.mrb[80].mxu0 }
 0x899   : > { %v6317_v21 = vpop.f32.mrb[40].mxu1  ;;  %v8695_v0 = vpop.f32.mrb[81].mxu0 }
 0x89a   : > { %v6639_v61 = vmul.f32 0.75, %v6317_v21  ;;  %v6641_v14 = vmul.f32 0.25, %v6317_v21  ;;  %v8683_v42 = vpop.f32.mrb[41].mxu1  ;;  %v6410_v23 = vpop.f32.mrb[82].mxu0  ;;  %v16207_v0 = vld [vmem:[#allocation115_spill] sm:$0xff] }
 0x89b   : > { %v14198_v58 = vadd.f32 %v13806_v16, %v16207_v0  ;;  %v6320_v29 = vpop.f32.mrb[42].mxu1  ;;  %v8696_v21 = vpop.f32.mrb[83].mxu0  ;;  %v14206_v42 = vmul.f32 %v13941_v56, %v14160_v4  ;;  %v14214_v0 = vmul.f32 %v13947_v48, %v14170_v37  ;;  %v14235_v37 = vmul.f32 %v13951_v18, %v14190_v25 }
 0x89c   : > { %v6643_v46 = vadd.f32 %v6641_v14, %v6639_v61  ;;  %v6640_v63 = vmul.f32 0.75, %v6320_v29  ;;  %v6642_v8 = vmul.f32 0.25, %v6320_v29  ;;  %v8684_v31 = vpop.f32.mrb[43].mxu1  ;;  %v16211_v21 = vld [vmem:[#allocation7_spill] sm:$0xff]  ;;  %v14226_v29 = vmul.f32 %v13949_v59, %v14182_v2 }
 0x89d   : > { %16208 = vst [vmem:[#allocation79_spill] sm:$0xff] %v14198_v58  ;;  %v14222_v56 = vadd.f32 %v13806_v16, %v16211_v21  ;;  %v14239_v6 = vmul.f32 %v13957_v10, %v14198_v58  ;;  %v14243_v16 = vmul.f32 %v13961_v36, %v14194_v26  ;;  %v14247_v59 = vmul.f32 %v13963_v47, %v14202_v43 }
 0x89e   : > { %v6959_v31 = vmul.f32 %v13787_v60, %v6643_v46  ;;  %v6644_v48 = vadd.f32 %v6642_v8, %v6640_v63  ;;  %v14251_v60 = vpop.permute.xlu1 %7369  ;;  %v14254_v18 = vmul.f32 0.25, %v6407_v13  ;;  %v14256_v21 = vmul.f32 0.75, %v6407_v13 }
 0x89f   : > { %16212 = vst [vmem:[#allocation104_spill] sm:$0xff] %v14222_v56  ;;  %v14261_v36 = vmul.f32 %v13959_v57, %v14222_v56  ;;  %v14265_v43 = vmul.f32 0.25, %v6410_v23  ;;  %v14271_v57 = vmul.f32 0.75, %v6410_v23 }
 0x8a0   : > { %v6960_v46 = vmul.f32 %v13791_v35, %v6644_v48  ;;  %v7215_v10 = vadd.f32 %v14017_v40, %v6959_v31 }
 0x8a1   : > { %v6362_v47 = vpop.f32.mrb[44].mxu1  ;;  %v6497_v26 = vpop.f32.mrb[84].mxu0 }
 0x8a2   : > { %v6645_v41 = vmul.f32 0.25, %v6362_v47  ;;  %v6649_v35 = vmul.f32 0.75, %v6362_v47  ;;  %v8689_v48 = vpop.f32.mrb[45].mxu1  ;;  %v14268_v13 = vsel %vm7407_vm8, %v7215_v10, %v13997_v3  ;;  %v7216_v40 = vadd.f32 %v14020_v62, %v6960_v46  ;;  %v8707_v31 = vpop.f32.mrb[85].mxu0 }
 0x8a3   : > { %16213 = vst [vmem:[#allocation98_spill] sm:$0xff] %v14268_v13  ;;  %v6365_v58 = vpop.f32.mrb[46].mxu1  ;;  %v7471_v38 = vmul.f32 %v14268_v13, %v14268_v13  ;;  %v14275_v56 = vmul.f32 0.25, %v6497_v26  ;;  %v14277_v25 = vmul.f32 0.75, %v6497_v26  ;;  %v6500_v24 = vpop.f32.mrb[86].mxu0 }
 0x8a4   : > { %v6647_v3 = vadd.f32 %v6645_v41, %v6639_v61  ;;  %v6651_v10 = vadd.f32 %v6649_v35, %v6641_v14  ;;  %v6655_v62 = vadd.f32 %v14254_v18, %v6649_v35  ;;  %v6659_v46 = vadd.f32 %v14256_v21, %v6645_v41  ;;  %v8690_v23 = vpop.f32.mrb[47].mxu1  ;;  %v8708_v47 = vpop.f32.mrb[87].mxu0 }
 0x8a5   : > { %v6646_v48 = vmul.f32 0.25, %v6365_v58  ;;  %v6650_v31 = vmul.f32 0.75, %v6365_v58  ;;  %7503 = vadd.xlane.f32.xlu0 %v7471_v38  ;;  %v14286_v26 = vsel %vm7408_vm10, %v7216_v40, %v14005_v17  ;;  %v14288_v13 = vmul.f32 0.25, %v6500_v24  ;;  %v14296_v47 = vpop.permute.xlu0 %7372  ;;  %v14298_v17 = vpop.permute.xlu1 %7375 }
 0x8a6   : > { %16214 = vst [vmem:[#allocation97_spill] sm:$0xff] %v14286_v26  ;;  %v6961_v2 = vmul.f32 %v13789_v50, %v6647_v3  ;;  %v6963_v14 = vmul.f32 %v13795_v30, %v6651_v10  ;;  %v6965_v61 = vmul.f32 %v13799_v55, %v6655_v62  ;;  %v6967_v41 = vmul.f32 %v13811_v49, %v6659_v46  ;;  %v16215_v49 = vld [vmem:[#allocation114_spill] sm:$0xff]  ;;  %v16218_v3 = vld [vmem:[#allocation36_spill] sm:$0xff]  ;;  %v16219_v62 = vld [vmem:[#allocation39_spill] sm:$0xff] }
 0x8a7   : > { %v6648_v35 = vadd.f32 %v6646_v48, %v6640_v63  ;;  %v6652_v23 = vadd.f32 %v6650_v31, %v6642_v8  ;;  %v6656_v58 = vadd.f32 %v14265_v43, %v6650_v31  ;;  %v6660_v38 = vadd.f32 %v14271_v57, %v6646_v48  ;;  %v16216_v63 = vld [vmem:[#allocation54_spill] sm:$0xff]  ;;  %v16220_v48 = vld [vmem:[#allocation109_spill] sm:$0xff] }
 0x8a8   : > { %v7217_v7 = vadd.f32 %v14014_v53, %v6961_v2  ;;  %v7219_v50 = vadd.f32 %v14082_v20, %v6963_v14  ;;  %v7221_v30 = vadd.f32 %v14030_v45, %v6965_v61  ;;  %v14304_v55 = vadd.f32 %v14114_v52, %v6967_v41  ;;  %v16217_v8 = vld [vmem:[#allocation42_spill] sm:$0xff] }
 0x8a9   : > { %vm7410_vm3 = vcmp.eq.s32.totalorder %v16215_v49, 1  ;;  %vm7413_vm4 = vcmp.eq.s32.totalorder %v16216_v63, 1  ;;  %v6962_v40 = vmul.f32 %v16217_v8, %v6648_v35  ;;  %v6964_v10 = vmul.f32 %v16218_v3, %v6652_v23  ;;  %v6452_v53 = vpop.f32.mrb[48].mxu1  ;;  %v14312_v2 = vpop.f32.mrb[88].mxu0 }
 0x8aa   : > { %v6966_v46 = vmul.f32 %v16219_v62, %v6656_v58  ;;  %v6968_v31 = vmul.f32 %v16220_v48, %v6660_v38  ;;  %v7472_v45 = vmul.f32 %v14286_v26, %v14286_v26  ;;  %v6661_v20 = vmul.f32 0.25, %v6452_v53  ;;  %v8701_v14 = vpop.f32.mrb[49].mxu1  ;;  %v8719_v41 = vpop.f32.mrb[89].mxu0  ;;  %v16254_v26 = vld [vmem:[#allocation15_spill] sm:$0xff] }
 0x8ab   : > { %v6665_v52 = vmul.f32 0.75, %v6452_v53  ;;  %v14316_v61 = vmul.f32 0.75, %v6500_v24  ;;  %v7218_v35 = vadd.f32 %v16221_v39, %v6962_v40  ;;  %v14320_v23 = vadd.f32 %v14098_v54, %v6964_v10  ;;  %v6455_v8 = vpop.f32.mrb[50].mxu1  ;;  %v6590_v3 = vpop.f32.mrb[90].mxu0  ;;  %v16228_v14 = vld [vmem:[#allocation94_spill] sm:$0xff]  ;;  %v16229_v41 = vld [vmem:[#allocation40_spill] sm:$0xff] }
 0x8ac   : > { %v14323_v58 = vadd.f32 %v14102_v28, %v6966_v46  ;;  %v14326_v38 = vadd.f32 %v14118_v32, %v6968_v31  ;;  %7505 = vadd.xlane.f32.xlu1 %v7472_v45  ;;  %v6663_v62 = vadd.f32 %v6661_v20, %v14256_v21  ;;  %v6675_v39 = vadd.f32 %v14277_v25, %v6661_v20  ;;  %v8702_v40 = vpop.f32.mrb[51].mxu1  ;;  %v8720_v54 = vpop.f32.mrb[91].mxu0  ;;  %v16222_v28 = vld [vmem:[#allocation51_spill] sm:$0xff]  ;;  %v16224_v46 = vld [vmem:[#allocation41_spill] sm:$0xff]  ;;  %v16226_v21 = vld [vmem:[#allocation116_spill] sm:$0xff] }
 0x8ad   : > { %v6667_v24 = vadd.f32 %v6665_v52, %v14254_v18  ;;  %v6671_v48 = vadd.f32 %v14275_v56, %v6665_v52  ;;  %v6662_v10 = vmul.f32 0.25, %v6455_v8  ;;  %v6666_v53 = vmul.f32 0.75, %v6455_v8  ;;  %v16227_v45 = vld [vmem:[#allocation110_spill] sm:$0xff] }
 0x8ae   : > { %v14335_v32 = vsel %vm7411_vm2, %v7219_v50, %v16222_v28  ;;  %v14340_v31 = vsel %vm7409_vm0, %v7217_v7, %v16224_v46  ;;  %v6969_v18 = vmul.f32 %v16226_v21, %v6663_v62  ;;  %v6975_v40 = vmul.f32 %v16229_v41, %v6675_v39  ;;  %v16231_v39 = vld [vmem:[#allocation61_spill] sm:$0xff]  ;;  %v16232_v28 = vld [vmem:[#allocation95_spill] sm:$0xff] }
 0x8af   : > { %16223 = vst [vmem:[#allocation99_spill] sm:$0xff] %v14335_v32  ;;  %16225 = vst [vmem:[#allocation100_spill] sm:$0xff] %v14340_v31  ;;  %v6971_v52 = vmul.f32 %v16227_v45, %v6667_v24  ;;  %v6973_v20 = vmul.f32 %v16228_v14, %v6671_v48  ;;  %v6664_v8 = vadd.f32 %v6662_v10, %v14271_v57  ;;  %v14362_v48 = vpop.permute.xlu0 %7378  ;;  %v16230_v57 = vld [vmem:[#allocation93_spill] sm:$0xff]  ;;  %vm7425_vm0 = vcmp.eq.s32.totalorder %v14249_v33, 1 }
 0x8b0   : > { %v6668_v54 = vadd.f32 %v6666_v53, %v14265_v43  ;;  %v6672_v51 = vadd.f32 %v14288_v13, %v6666_v53  ;;  %v6676_v50 = vadd.f32 %v14316_v61, %v6662_v10  ;;  %v14351_v15 = vadd.f32 %v14106_v44, %v6969_v18  ;;  %v16233_v46 = vld [vmem:[#allocation81_spill] sm:$0xff]  ;;  %v14368_v18 = vpop.permute.xlu1 %7381 }
 0x8b1   : > { %v14354_v7 = vadd.f32 %v14130_v9, %v6971_v52  ;;  %v14357_v62 = vadd.f32 %v14126_v22, %v6973_v20  ;;  %v14360_v24 = vadd.f32 %v14148_v27, %v6975_v40  ;;  %v6970_v43 = vmul.f32 %v16230_v57, %v6664_v8  ;;  %v6542_v21 = vpop.f32.mrb[52].mxu1  ;;  %16234 = vst [vmem:[#allocation50_spill] sm:$0xff] %v14368_v18  ;;  %v16235_v27 = vld [vmem:[#allocation17_spill] sm:$0xff]  ;;  %v16237_v52 = vld [vmem:[#allocation31_spill] sm:$0xff] }
 0x8b2   : > { %v6972_v53 = vmul.f32 %v16231_v39, %v6668_v54  ;;  %v6974_v10 = vmul.f32 %v16232_v28, %v6672_v51  ;;  %v6976_v44 = vmul.f32 %v16233_v46, %v6676_v50  ;;  %v7475_v22 = vmul.f32 %v14335_v32, %v14335_v32  ;;  %v8713_v20 = vpop.f32.mrb[53].mxu1  ;;  %v16239_v41 = vld [vmem:[#allocation53_spill] sm:$0xff]  ;;  %v16245_v50 = vld [vmem:[#allocation72_spill] sm:$0xff] }
 0x8b3   : > { %v7473_v9 = vmul.f32 %v14340_v31, %v14340_v31  ;;  %v14377_v45 = vsel %vm7410_vm3, %v7218_v35, %v16235_v27  ;;  %v14382_v14 = vsel %vm7413_vm4, %v7221_v30, %v16237_v52  ;;  %vm7412_vm7 = vcmp.eq.s32.totalorder %v16239_v41, 1  ;;  %v16240_v40 = vld [vmem:[#allocation113_spill] sm:$0xff]  ;;  %v16242_v35 = vld [vmem:[#allocation62_spill] sm:$0xff]  ;;  %v6545_v63 = vpop.f32.mrb[54].mxu1  ;;  %v16244_v30 = vld [vmem:[#allocation83_spill] sm:$0xff] }
 0x8b4   : > { %16236 = vst [vmem:[#allocation84_spill] sm:$0xff] %v14377_v45  ;;  %16238 = vst [vmem:[#allocation82_spill] sm:$0xff] %v14382_v14  ;;  %vm7415_vm12 = vcmp.eq.s32.totalorder %v16240_v40, 1  ;;  %v14387_v8 = vadd.f32 %v14122_v11, %v6970_v43  ;;  %v14390_v54 = vadd.f32 %v14134_v12, %v6972_v53  ;;  %v14393_v49 = vadd.f32 %v14138_v19, %v6974_v10  ;;  %v8714_v19 = vpop.f32.mrb[55].mxu1  ;;  %v16246_v27 = vld [vmem:[#allocation47_spill] sm:$0xff]  ;;  %v16247_v52 = vld [vmem:[#allocation22_spill] sm:$0xff] }
 0x8b5   : > { %v14396_v51 = vadd.f32 %v16242_v35, %v6976_v44  ;;  %vm7414_vm13 = vcmp.eq.s32.totalorder %v16244_v30, 1  ;;  %vm7417_vm9 = vcmp.eq.s32.totalorder %v16245_v50, 1  ;;  %7511 = vadd.xlane.f32.xlu1 %v7475_v22  ;;  %7507 = vadd.xlane.f32.xlu0 %v7473_v9  ;;  %v7474_v11 = vmul.f32 %v14377_v45, %v14377_v45  ;;  %v16248_v19 = vld [vmem:[#allocation46_spill] sm:$0xff]  ;;  %v16253_v32 = vld [vmem:[#allocation9_spill] sm:$0xff]  ;;  %v16267_v40 = vld [vmem:[#allocation20_spill] sm:$0xff] }
 0x8b6   : > { %16241 = vst [vmem:[#allocation13_spill] sm:$0xff] %v14393_v49  ;;  %v7477_v12 = vmul.f32 %v14382_v14, %v14382_v14  ;;  %v6677_v57 = vmul.f32 0.25, %v6542_v21  ;;  %v6681_v43 = vmul.f32 0.75, %v6542_v21  ;;  %v14405_v39 = vmul.f32 0.25, %v14312_v2  ;;  %v16251_v14 = vld [vmem:[#allocation68_spill] sm:$0xff]  ;;  %v16266_v41 = vld [vmem:[#allocation77_spill] sm:$0xff] }
 0x8b7   : > { %16243 = vst [vmem:[#allocation14_spill] sm:$0xff] %v14396_v51  ;;  %v6689_v53 = vmul.f32 0.75, %v14312_v2  ;;  %v6678_v28 = vmul.f32 0.25, %v6545_v63  ;;  %v6682_v10 = vmul.f32 0.75, %v6545_v63  ;;  %v14410_v22 = vmul.f32 0.25, %v6590_v3  ;;  %v14418_v63 = vpop.permute.xlu0 %7384  ;;  %v16255_v51 = vld [vmem:[#allocation118_spill] sm:$0xff] }
 0x8b8   : > { %v6679_v46 = vadd.f32 %v6677_v57, %v14277_v25  ;;  %v6683_v44 = vadd.f32 %v6681_v43, %v14275_v56  ;;  %v6690_v9 = vmul.f32 0.75, %v6590_v3  ;;  %vm7416_vm14 = vcmp.eq.s32.totalorder %v16246_v27, 1  ;;  %16249 = vst [vmem:[#allocation64_spill] sm:$0xff] %v14418_v63  ;;  %v14420_v25 = vpop.permute.xlu1 %7387  ;;  %v16250_v56 = vld [vmem:[#allocation52_spill] sm:$0xff]  ;;  %v16256_v63 = vld [vmem:[#allocation67_spill] sm:$0xff] }
 0x8b9   : > { %vm7418_vm5 = vcmp.eq.s32.totalorder %v16247_v52, 1  ;;  %v6687_v21 = vadd.f32 %v14405_v39, %v6681_v43  ;;  %v6691_v20 = vadd.f32 %v6689_v53, %v6677_v57  ;;  %v6680_v35 = vadd.f32 %v6678_v28, %v14316_v61  ;;  %7509 = vadd.xlane.f32.xlu0 %v7474_v11  ;;  %7515 = vadd.xlane.f32.xlu1 %v7477_v12  ;;  %v16252_v43 = vld [vmem:[#allocation8_spill] sm:$0xff]  ;;  %v6632_v49 = vpop.f32.mrb[56].mxu1  ;;  %v16275_v52 = vld [vmem:[#allocation26_spill] sm:$0xff] }
 0x8ba   : > { %v6684_v2 = vadd.f32 %v6682_v10, %v14288_v13  ;;  %vm7419_vm15 = vcmp.eq.s32.totalorder %v16248_v19, 1  ;;  %v6977_v3 = vmul.f32 %v16250_v56, %v6679_v46  ;;  %v6979_v45 = vmul.f32 %v16251_v14, %v6683_v44  ;;  %v16257_v46 = vld [vmem:[#allocation32_spill] sm:$0xff]  ;;  %v8725_v44 = vpop.f32.mrb[57].mxu1 }
 0x8bb   : > { %v6688_v31 = vadd.f32 %v14410_v22, %v6682_v10  ;;  %v6981_v57 = vmul.f32 %v16252_v43, %v6687_v21  ;;  %v6983_v61 = vmul.f32 %v16253_v32, %v6691_v20  ;;  %v6978_v13 = vmul.f32 %v16254_v26, %v6680_v35  ;;  %v16258_v10 = vld [vmem:[#allocation91_spill] sm:$0xff]  ;;  %v16259_v21 = vld [vmem:[#allocation76_spill] sm:$0xff]  ;;  %v16270_v44 = vld [vmem:[#allocation58_spill] sm:$0xff] }
 0x8bc   : > { %v6980_v4 = vmul.f32 %v16255_v51, %v6684_v2  ;;  %v14430_v18 = vadd.f32 %v16256_v63, %v6977_v3  ;;  %v14433_v11 = vadd.f32 %v14206_v42, %v6979_v45  ;;  %v6692_v12 = vadd.f32 %v6690_v9, %v6678_v28  ;;  %v16260_v32 = vld [vmem:[#allocation24_spill] sm:$0xff]  ;;  %v6635_v42 = vpop.f32.mrb[58].mxu1  ;;  %v16261_v45 = vld [vmem:[#allocation70_spill] sm:$0xff]  ;;  %v16262_v35 = vld [vmem:[#allocation59_spill] sm:$0xff] }
 0x8bd   : > { %v6982_v14 = vmul.f32 %v16257_v46, %v6688_v31  ;;  %vm7421_vm11 = vcmp.eq.s32.totalorder %v16258_v10, 1  ;;  %v14438_v56 = vadd.f32 %v16259_v21, %v6981_v57  ;;  %v14441_v26 = vadd.f32 %v14226_v29, %v6983_v61  ;;  %v16263_v29 = vld [vmem:[#allocation49_spill] sm:$0xff]  ;;  %v16265_v43 = vld [vmem:[#allocation56_spill] sm:$0xff]  ;;  %v14483_v57 = vpop.permute.xlu0 %7390  ;;  %v14485_v61 = vpop.permute.xlu1 %7393  ;;  %v16269_v46 = vld [vmem:[#allocation35_spill] sm:$0xff] }
 0x8be   : > { %v14444_v51 = vadd.f32 %v16260_v32, %v6978_v13  ;;  %v14447_v20 = vadd.f32 %v14210_v34, %v6980_v4  ;;  %v6984_v28 = vmul.f32 %v16261_v45, %v6692_v12  ;;  %v14457_v2 = vsel %vm7412_vm7, %v14320_v23, %v16262_v35  ;;  %v8726_v4 = vpop.f32.mrb[59].mxu1  ;;  %v16264_v34 = vld [vmem:[#allocation21_spill] sm:$0xff]  ;;  %v16272_v35 = vld [vmem:[#allocation87_spill] sm:$0xff] }
 0x8bf   : > { %v14451_v31 = vadd.f32 %v14214_v0, %v6982_v14  ;;  %v14463_v63 = vsel %vm7415_vm12, %v14304_v55, %v16263_v29  ;;  %vm7420_vm1 = vcmp.eq.s32.totalorder %v16264_v34, 1  ;;  %v7476_v3 = vmul.f32 %v14457_v2, %v14457_v2  ;;  %v16268_v12 = vld [vmem:[#allocation73_spill] sm:$0xff]  ;;  %v16289_v33 = vld [vmem:[#allocation64_spill] sm:$0xff] }
 0x8c0   : > { %v7479_v0 = vmul.f32 %v14463_v63, %v14463_v63  ;;  %v14474_v23 = vsel %vm7417_vm9, %v14351_v15, %v16265_v43  ;;  %v14480_v55 = vsel %vm7414_vm13, %v14323_v58, %v16266_v41  ;;  %vm7423_vm6 = vcmp.eq.s32.totalorder %v16267_v40, 1  ;;  %v16271_v45 = vld [vmem:[#allocation29_spill] sm:$0xff]  ;;  %v16288_v40 = vld [vmem:[#allocation14_spill] sm:$0xff] }
 0x8c1   : > { %v14488_v13 = vadd.f32 %v14235_v37, %v6984_v28  ;;  %v7481_v50 = vmul.f32 %v14474_v23, %v14474_v23  ;;  %v6693_v15 = vmul.f32 0.25, %v6632_v49  ;;  %vm7422_vm8 = vcmp.eq.s32.totalorder %v16268_v12, 1  ;;  %7513 = vadd.xlane.f32.xlu0 %v7476_v3  ;;  %v7397_v43 = vpop.permute.xlu0 %7396 }
 0x8c2   : > { %vm7424_vm10 = vcmp.eq.s32.totalorder %v16269_v46, 1  ;;  %7519 = vadd.xlane.f32.xlu1 %v7479_v0  ;;  %v6697_v58 = vmul.f32 0.75, %v6632_v49  ;;  %v6694_v30 = vmul.f32 0.25, %v6635_v42  ;;  %v6698_v14 = vmul.f32 0.75, %v6635_v42  ;;  %v16276_v0 = vld [vmem:[#allocation78_spill] sm:$0xff] }
 0x8c3   : > { %v14498_v21 = vsel %vm7419_vm15, %v14354_v7, %v16270_v44  ;;  %v7478_v37 = vmul.f32 %v14480_v55, %v14480_v55  ;;  %v6695_v32 = vadd.f32 %v6693_v15, %v6689_v53  ;;  %v14506_v28 = vsel %vm7416_vm14, %v14326_v38, %v16271_v45  ;;  %v16273_v53 = vld [vmem:[#allocation45_spill] sm:$0xff]  ;;  %v16279_v44 = vld [vmem:[#allocation55_spill] sm:$0xff] }
 0x8c4   : > { %v14512_v49 = vsel %vm7418_vm5, %v14387_v8, %v16272_v35  ;;  %v6699_v19 = vadd.f32 %v6697_v58, %v14405_v39  ;;  %v6701_v7 = vadd.f32 %v6697_v58, %v6693_v15  ;;  %v6696_v42 = vadd.f32 %v6694_v30, %v6690_v9  ;;  %v16274_v8 = vld [vmem:[#allocation90_spill] sm:$0xff]  ;;  %v16277_v15 = vld [vmem:[#allocation80_spill] sm:$0xff] }
 0x8c5   : > { %v6700_v29 = vadd.f32 %v6698_v14, %v14410_v22  ;;  %v6985_v4 = vmul.f32 %v16273_v53, %v6695_v32  ;;  %v6702_v3 = vadd.f32 %v6698_v14, %v6694_v30  ;;  %v7483_v38 = vmul.f32 %v14498_v21, %v14498_v21  ;;  %7517 = vadd.xlane.f32.xlu0 %v7478_v37  ;;  %v7400_v22 = vpop.permute.xlu1 %7399  ;;  %v16278_v30 = vld [vmem:[#allocation65_spill] sm:$0xff]  ;;  %v7403_v53 = vpop.permute.xlu0 %7402 }
 0x8c6   : > { %vm7426_vm2 = vcmp.eq.s32.totalorder %v14251_v60, 1  ;;  %7523 = vadd.xlane.f32.xlu1 %v7481_v50  ;;  %v6987_v27 = vmul.f32 %v16274_v8, %v6699_v19  ;;  %v6989_v39 = vmul.f32 %v16275_v52, %v6701_v7  ;;  %v6986_v9 = vmul.f32 %v16276_v0, %v6696_v42  ;;  %v16280_v7 = vld [vmem:[#allocation117_spill] sm:$0xff]  ;;  %v16294_v60 = vld [vmem:[#allocation23_spill] sm:$0xff] }
 0x8c7   : > { %v7241_v41 = vadd.f32 %v14218_v1, %v6985_v4  ;;  %v6988_v58 = vmul.f32 %v16277_v15, %v6700_v29  ;;  %v6990_v14 = vmul.f32 %v16278_v30, %v6702_v3  ;;  %v14531_v50 = vsel %vm7421_vm11, %v14357_v62, %v16279_v44  ;;  %v16281_v62 = vld [vmem:[#allocation11_spill] sm:$0xff]  ;;  %v16290_v29 = vld [vmem:[#allocation10_spill] sm:$0xff]  ;;  %v16291_v4 = vld [vmem:[#allocation85_spill] sm:$0xff] }
 0x8c8   : > { %v7243_v37 = vadd.f32 %v14239_v6, %v6987_v27  ;;  %v7245_v32 = vadd.f32 %v14243_v16, %v6989_v39  ;;  %v7242_v45 = vadd.f32 %v14230_v5, %v6986_v9  ;;  %v7480_v35 = vmul.f32 %v14506_v28, %v14506_v28  ;;  %v16282_v5 = vld [vmem:[#allocation16_spill] sm:$0xff]  ;;  %v16293_v27 = vld [vmem:[#allocation19_spill] sm:$0xff] }
 0x8c9   : > { %v7244_v1 = vadd.f32 %v14261_v36, %v6988_v58  ;;  %v7246_v19 = vadd.f32 %v14247_v59, %v6990_v14  ;;  %v14544_v10 = vsel %vm7420_vm1, %v14390_v54, %v16280_v7  ;;  %v14550_v6 = vsel %vm7423_vm6, %v14360_v24, %v16281_v62  ;;  %v16283_v59 = vld [vmem:[#allocation50_spill] sm:$0xff]  ;;  %v16284_v36 = vld [vmem:[#allocation89_spill] sm:$0xff]  ;;  %v7406_v46 = vpop.permute.xlu1 %7405  ;;  %v16298_v0 = vld [vmem:[#allocation75_spill] sm:$0xff] }
 0x8ca   : > { %vm7427_vm3 = vcmp.eq.s32.totalorder %v14296_v47, 1  ;;  %vm7428_vm4 = vcmp.eq.s32.totalorder %v14298_v17, 1  ;;  %vm7429_vm7 = vcmp.eq.s32.totalorder %v14362_v48, 1  ;;  %7527 = vadd.xlane.f32.xlu1 %v7483_v38  ;;  %7521 = vadd.xlane.f32.xlu0 %v7480_v35  ;;  %v14559_v16 = vsel %vm7425_vm0, %v14430_v18, %v16282_v5  ;;  %v16285_v54 = vld [vmem:[#allocation13_spill] sm:$0xff]  ;;  %v16286_v47 = vld [vmem:[#allocation12_spill] sm:$0xff]  ;;  %v16292_v38 = vld [vmem:[#allocation18_spill] sm:$0xff] }
 0x8cb   : > { %vm7430_vm12 = vcmp.eq.s32.totalorder %v16283_v59, 1  ;;  %v14566_v24 = vsel %vm7422_vm8, %v16285_v54, %v16284_v36  ;;  %v14570_v34 = vsel %vm7427_vm3, %v14433_v11, %v16286_v47  ;;  %v16287_v48 = vld [vmem:[#allocation60_spill] sm:$0xff]  ;;  %vm7431_vm13 = vcmp.eq.s32.totalorder %v16289_v33, 1 }
 0x8cc   : > { %v14576_v42 = vsel %vm7424_vm10, %v16288_v40, %v16287_v48  ;;  %v7482_v18 = vmul.f32 %v14512_v49, %v14512_v49  ;;  %v7485_v12 = vmul.f32 %v14531_v50, %v14531_v50  ;;  %v14587_v11 = vsel %vm7426_vm2, %v14444_v51, %v16290_v29  ;;  %v16296_v51 = vld [vmem:[#allocation103_spill] sm:$0xff] }
 0x8cd   : > { %vm7432_vm9 = vcmp.eq.s32.totalorder %v14420_v25, 1  ;;  %v14592_v3 = vsel %vm7429_vm7, %v14438_v56, %v16291_v4  ;;  %v14598_v8 = vsel %vm7428_vm4, %v14447_v20, %v16292_v38  ;;  %v14602_v52 = vsel %vm7431_vm13, %v14441_v26, %v16293_v27  ;;  %v16295_v56 = vld [vmem:[#allocation38_spill] sm:$0xff]  ;;  %v16297_v20 = vld [vmem:[#allocation79_spill] sm:$0xff] }
 0x8ce   : > { %vm7433_vm14 = vcmp.eq.s32.totalorder %v14483_v57, 1  ;;  %vm7434_vm5 = vcmp.eq.s32.totalorder %v14485_v61, 1  ;;  %vm7435_vm15 = vcmp.eq.s32.totalorder %v7397_v43, 1  ;;  %vm7436_vm11 = vcmp.eq.s32.totalorder %v7400_v22, 1  ;;  %7525 = vadd.xlane.f32.xlu0 %v7482_v18  ;;  %7531 = vadd.xlane.f32.xlu1 %v7485_v12  ;;  %v16300_v22 = vld [vmem:[#allocation104_spill] sm:$0xff]  ;;  %v16302_v12 = vld [vmem:[#allocation98_spill] sm:$0xff] }
 0x8cf   : > { %v14607_v25 = vsel %vm7433_vm14, %v7241_v41, %v16294_v60  ;;  %v14613_v17 = vsel %vm7430_vm12, %v14451_v31, %v16295_v56  ;;  %v14617_v26 = vsel %vm7432_vm9, %v14488_v13, %v16296_v51  ;;  %v14620_v57 = vsel %vm7435_vm15, %v7243_v37, %v16297_v20  ;;  %v16299_v31 = vld [vmem:[#allocation96_spill] sm:$0xff] }
 0x8d0   : > { %vm7437_vm1 = vcmp.eq.s32.totalorder %v7403_v53, 1  ;;  %vm7438_vm6 = vcmp.eq.s32.totalorder %v7406_v46, 1  ;;  %v7484_v61 = vmul.f32 %v14544_v10, %v14544_v10  ;;  %v7487_v39 = vmul.f32 %v14550_v6, %v14550_v6  ;;  %v16301_v41 = vld [vmem:[#allocation44_spill] sm:$0xff] }
 0x8d1   : > { %v14627_v9 = vsel %vm7434_vm5, %v7242_v45, %v16298_v0  ;;  %v14630_v43 = vsel %vm7437_vm1, %v7245_v32, %v16299_v31  ;;  %v14633_v13 = vsel %vm7436_vm11, %v7244_v1, %v16300_v22  ;;  %v14636_v15 = vsel %vm7438_vm6, %v7246_v19, %v16301_v41 }
 0x8d2   : > { %7529 = vadd.xlane.f32.xlu0 %v7484_v61  ;;  %7535 = vadd.xlane.f32.xlu1 %v7487_v39  ;;  %v7489_v58 = vmul.f32 %v14559_v16, %v14559_v16  ;;  %v7486_v30 = vmul.f32 %v14566_v24, %v14566_v24  ;;  %v7491_v14 = vmul.f32 %v14570_v34, %v14570_v34  ;;  %v16303_v61 = vld [vmem:[#allocation97_spill] sm:$0xff] }
 0x8d3   : > { %v7488_v44 = vmul.f32 %v14576_v42, %v14576_v42  ;;  %v7490_v37 = vmul.f32 %v14587_v11, %v14587_v11  ;;  %v7493_v32 = vmul.f32 %v14592_v3, %v14592_v3  ;;  %v7492_v45 = vmul.f32 %v14598_v8, %v14598_v8 }
 0x8d4   : > { %v7495_v35 = vmul.f32 %v14602_v52, %v14602_v52  ;;  %v7497_v1 = vmul.f32 %v14607_v25, %v14607_v25  ;;  %v7494_v19 = vmul.f32 %v14613_v17, %v14613_v17  ;;  %v7496_v7 = vmul.f32 %v14617_v26, %v14617_v26 }
 0x8d5   : > { %v7499_v62 = vmul.f32 %v14620_v57, %v14620_v57  ;;  %v7498_v5 = vmul.f32 %v14627_v9, %v14627_v9  ;;  %v7501_v59 = vmul.f32 %v14630_v43, %v14630_v43  ;;  %v7500_v36 = vmul.f32 %v14633_v13, %v14633_v13 }
 0x8d6   : > { %7539 = vadd.xlane.f32.xlu1 %v7489_v58  ;;  %7533 = vadd.xlane.f32.xlu0 %v7486_v30  ;;  %v7502_v54 = vmul.f32 %v14636_v15, %v14636_v15 }
 0x8da   : > { %7543 = vadd.xlane.f32.xlu1 %v7491_v14  ;;  %7537 = vadd.xlane.f32.xlu0 %v7488_v44  ;;  %v16304_v14 = vld [vmem:[#allocation99_spill] sm:$0xff] }
 0x8de   : > { %7541 = vadd.xlane.f32.xlu0 %v7490_v37  ;;  %7547 = vadd.xlane.f32.xlu1 %v7493_v32  ;;  %v16305_v37 = vld [vmem:[#allocation100_spill] sm:$0xff] }
 0x8e2   : > { %7545 = vadd.xlane.f32.xlu0 %v7492_v45  ;;  %7551 = vadd.xlane.f32.xlu1 %v7495_v35 }
 0x8e6   : > { %7555 = vadd.xlane.f32.xlu1 %v7497_v1  ;;  %7549 = vadd.xlane.f32.xlu0 %v7494_v19 }
 0x8ea   : > { %7553 = vadd.xlane.f32.xlu0 %v7496_v7  ;;  %7559 = vadd.xlane.f32.xlu1 %v7499_v62 }
 0x8ee   : > { %7557 = vadd.xlane.f32.xlu0 %v7498_v5  ;;  %7563 = vadd.xlane.f32.xlu1 %v7501_v59  ;;  %v16306_v5 = vld [vmem:[#allocation84_spill] sm:$0xff] }
 0x8f2   : > { %7561 = vadd.xlane.f32.xlu0 %v7500_v36  ;;  %v16307_v36 = vld [vmem:[#allocation82_spill] sm:$0xff] }
 0x8f6   : > { %7565 = vadd.xlane.f32.xlu0 %v7502_v54 }
 0x932   : > { %v7504_v47 = vpop.xlane.xlu0 %7503 }
 0x933   : > { %v7567_v48 = vmax.f32 %v7504_v47, 1e-24 }
 0x935   : > { %9047 = vrsqrt.f32 %v7567_v48 }
 0x939   : > { %v7506_v40 = vpop.xlane.xlu1 %7505 }
 0x93a   : > { %v7568_v33 = vmax.f32 %v7506_v40, 1e-24 }
 0x93c   : > { %9049 = vrsqrt.f32 %v7568_v33 }
 0x93f   : > { %v9048_v18 = vpop.eup %9047 }
 0x940   : > { %v7631_v29 = vmul.f32 %v9048_v18, %v16302_v12 }
 0x942   : > { %v7512_v53 = vpop.xlane.xlu1 %7511  ;;  %v7508_v46 = vpop.xlane.xlu0 %7507  ;;  %7663 = vst [vmem:[%s14674_s26] sm:$0xff] %v7631_v29 }
 0x943   : > { %v7571_v4 = vmax.f32 %v7512_v53, 1e-24  ;;  %v7569_v38 = vmax.f32 %v7508_v46, 1e-24 }
 0x945   : > { %9051 = vrsqrt.f32 %v7571_v4 }
 0x946   : > { %9053 = vrsqrt.f32 %v7569_v38  ;;  %v7510_v27 = vpop.xlane.xlu0 %7509  ;;  %v7516_v60 = vpop.xlane.xlu1 %7515 }
 0x947   : > { %v9050_v56 = vpop.eup %9049  ;;  %v7570_v51 = vmax.f32 %v7510_v27, 1e-24  ;;  %v7573_v20 = vmax.f32 %v7516_v60, 1e-24 }
 0x948   : > { %v7632_v39 = vmul.f32 %v9050_v56, %v16303_v61 }
 0x949   : > { %9055 = vrsqrt.f32 %v7570_v51 }
 0x94a   : > { %7664 = vst [vmem:[%s14674_s26 + $0x8] sm:$0xff] %v7632_v39  ;;  %9057 = vrsqrt.f32 %v7573_v20 }
 0x94e   : > { %v7514_v0 = vpop.xlane.xlu0 %7513 }
 0x94f   : > { %v7520_v31 = vpop.xlane.xlu1 %7519  ;;  %v7572_v22 = vmax.f32 %v7514_v0, 1e-24  ;;  %v9052_v58 = vpop.eup %9051 }
 0x950   : > { %v7575_v41 = vmax.f32 %v7520_v31, 1e-24  ;;  %v9054_v30 = vpop.eup %9053  ;;  %v7635_v44 = vmul.f32 %v9052_v58, %v16304_v14 }
 0x951   : > { %9059 = vrsqrt.f32 %v7572_v22  ;;  %v7633_v32 = vmul.f32 %v9054_v30, %v16305_v37 }
 0x952   : > { %9061 = vrsqrt.f32 %v7575_v41  ;;  %v7518_v35 = vpop.xlane.xlu0 %7517  ;;  %7667 = vst [vmem:[%s14674_s26 + $0x20] sm:$0xff] %v7635_v44 }
 0x953   : > { %v7524_v45 = vpop.xlane.xlu1 %7523  ;;  %v7574_v19 = vmax.f32 %v7518_v35, 1e-24  ;;  %v9056_v7 = vpop.eup %9055  ;;  %7665 = vst [vmem:[%s14674_s26 + $0x10] sm:$0xff] %v7633_v32 }
 0x954   : > { %v7577_v1 = vmax.f32 %v7524_v45, 1e-24  ;;  %v9058_v62 = vpop.eup %9057  ;;  %v7634_v59 = vmul.f32 %v9056_v7, %v16306_v5 }
 0x955   : > { %v7637_v54 = vmul.f32 %v9058_v62, %v16307_v36 }
 0x956   : > { %9063 = vrsqrt.f32 %v7577_v1  ;;  %7666 = vst [vmem:[%s14674_s26 + $0x18] sm:$0xff] %v7634_v59 }
 0x957   : > { %9065 = vrsqrt.f32 %v7574_v19  ;;  %v7528_v47 = vpop.xlane.xlu1 %7527  ;;  %v7522_v48 = vpop.xlane.xlu0 %7521  ;;  %7669 = vst [vmem:[%s14674_s26 + $0x30] sm:$0xff] %v7637_v54 }
 0x958   : > { %v7579_v40 = vmax.f32 %v7528_v47, 1e-24  ;;  %v7576_v33 = vmax.f32 %v7522_v48, 1e-24 }
 0x95a   : > { %9067 = vrsqrt.f32 %v7579_v40 }
 0x95b   : > { %9069 = vrsqrt.f32 %v7576_v33  ;;  %v7526_v18 = vpop.xlane.xlu0 %7525  ;;  %v7532_v12 = vpop.xlane.xlu1 %7531 }
 0x95c   : > { %v9060_v29 = vpop.eup %9059  ;;  %v7578_v53 = vmax.f32 %v7526_v18, 1e-24  ;;  %v7581_v46 = vmax.f32 %v7532_v12, 1e-24 }
 0x95d   : > { %v9062_v4 = vpop.eup %9061  ;;  %v7636_v38 = vmul.f32 %v9060_v29, %v14457_v2 }
 0x95e   : > { %v7639_v27 = vmul.f32 %v9062_v4, %v14463_v63  ;;  %9071 = vrsqrt.f32 %v7578_v53 }
 0x95f   : > { %7668 = vst [vmem:[%s14674_s26 + $0x28] sm:$0xff] %v7636_v38  ;;  %9073 = vrsqrt.f32 %v7581_v46  ;;  %v7530_v60 = vpop.xlane.xlu0 %7529  ;;  %v7536_v56 = vpop.xlane.xlu1 %7535 }
 0x960   : > { %v9064_v51 = vpop.eup %9063  ;;  %7671 = vst [vmem:[%s14674_s26 + $0x40] sm:$0xff] %v7639_v27  ;;  %v7580_v20 = vmax.f32 %v7530_v60, 1e-24  ;;  %v7583_v61 = vmax.f32 %v7536_v56, 1e-24 }
 0x961   : > { %v9066_v39 = vpop.eup %9065  ;;  %v7641_v0 = vmul.f32 %v9064_v51, %v14474_v23 }
 0x962   : > { %v7638_v31 = vmul.f32 %v9066_v39, %v14480_v55  ;;  %9075 = vrsqrt.f32 %v7580_v20 }
 0x963   : > { %7673 = vst [vmem:[%s14674_s26 + $0x50] sm:$0xff] %v7641_v0  ;;  %9077 = vrsqrt.f32 %v7583_v61  ;;  %v7540_v2 = vpop.xlane.xlu1 %7539  ;;  %v7534_v63 = vpop.xlane.xlu0 %7533 }
 0x964   : > { %v9068_v22 = vpop.eup %9067  ;;  %7670 = vst [vmem:[%s14674_s26 + $0x38] sm:$0xff] %v7638_v31  ;;  %v7585_v41 = vmax.f32 %v7540_v2, 1e-24  ;;  %v7582_v58 = vmax.f32 %v7534_v63, 1e-24 }
 0x965   : > { %v9070_v30 = vpop.eup %9069  ;;  %v7643_v14 = vmul.f32 %v9068_v22, %v14498_v21 }
 0x966   : > { %v7640_v44 = vmul.f32 %v9070_v30, %v14506_v28  ;;  %9079 = vrsqrt.f32 %v7585_v41 }
 0x967   : > { %7675 = vst [vmem:[%s14674_s26 + $0x60] sm:$0xff] %v7643_v14  ;;  %9081 = vrsqrt.f32 %v7582_v58  ;;  %v7544_v23 = vpop.xlane.xlu1 %7543  ;;  %v7538_v55 = vpop.xlane.xlu0 %7537 }
 0x968   : > { %v9072_v37 = vpop.eup %9071  ;;  %7672 = vst [vmem:[%s14674_s26 + $0x48] sm:$0xff] %v7640_v44  ;;  %v7587_v32 = vmax.f32 %v7544_v23, 1e-24  ;;  %v7584_v45 = vmax.f32 %v7538_v55, 1e-24 }
 0x969   : > { %v9074_v35 = vpop.eup %9073  ;;  %v7642_v1 = vmul.f32 %v9072_v37, %v14512_v49 }
 0x96a   : > { %v7645_v19 = vmul.f32 %v9074_v35, %v14531_v50  ;;  %9083 = vrsqrt.f32 %v7587_v32 }
 0x96b   : > { %7674 = vst [vmem:[%s14674_s26 + $0x58] sm:$0xff] %v7642_v1  ;;  %9085 = vrsqrt.f32 %v7584_v45  ;;  %v7542_v21 = vpop.xlane.xlu0 %7541  ;;  %v7548_v28 = vpop.xlane.xlu1 %7547 }
 0x96c   : > { %v9076_v7 = vpop.eup %9075  ;;  %7677 = vst [vmem:[%s14674_s26 + $0x70] sm:$0xff] %v7645_v19  ;;  %v7586_v62 = vmax.f32 %v7542_v21, 1e-24  ;;  %v7589_v5 = vmax.f32 %v7548_v28, 1e-24 }
 0x96d   : > { %v9078_v59 = vpop.eup %9077  ;;  %v7644_v36 = vmul.f32 %v9076_v7, %v14544_v10 }
 0x96e   : > { %v7647_v54 = vmul.f32 %v9078_v59, %v14550_v6  ;;  %9087 = vrsqrt.f32 %v7586_v62 }
 0x96f   : > { %7676 = vst [vmem:[%s14674_s26 + $0x68] sm:$0xff] %v7644_v36  ;;  %9089 = vrsqrt.f32 %v7589_v5  ;;  %v7546_v49 = vpop.xlane.xlu0 %7545  ;;  %v7552_v50 = vpop.xlane.xlu1 %7551 }
 0x970   : > { %v9080_v47 = vpop.eup %9079  ;;  %7679 = vst [vmem:[%s14674_s26 + $0x80] sm:$0xff] %v7647_v54  ;;  %v7588_v48 = vmax.f32 %v7546_v49, 1e-24  ;;  %v7591_v40 = vmax.f32 %v7552_v50, 1e-24 }
 0x971   : > { %v9082_v33 = vpop.eup %9081  ;;  %v7649_v18 = vmul.f32 %v9080_v47, %v14559_v16 }
 0x972   : > { %v7646_v12 = vmul.f32 %v9082_v33, %v14566_v24  ;;  %9091 = vrsqrt.f32 %v7588_v48 }
 0x973   : > { %7681 = vst [vmem:[%s14674_s26 + $0x90] sm:$0xff] %v7649_v18  ;;  %9093 = vrsqrt.f32 %v7591_v40  ;;  %v7556_v10 = vpop.xlane.xlu1 %7555  ;;  %v7550_v6 = vpop.xlane.xlu0 %7549 }
 0x974   : > { %v9084_v29 = vpop.eup %9083  ;;  %7678 = vst [vmem:[%s14674_s26 + $0x78] sm:$0xff] %v7646_v12  ;;  %v7593_v53 = vmax.f32 %v7556_v10, 1e-24  ;;  %v7590_v46 = vmax.f32 %v7550_v6, 1e-24 }
 0x975   : > { %v9086_v4 = vpop.eup %9085  ;;  %v7651_v38 = vmul.f32 %v9084_v29, %v14570_v34 }
 0x976   : > { %v7648_v27 = vmul.f32 %v9086_v4, %v14576_v42  ;;  %9095 = vrsqrt.f32 %v7593_v53 }
 0x977   : > { %7683 = vst [vmem:[%s14674_s26 + $0xa0] sm:$0xff] %v7651_v38  ;;  %9097 = vrsqrt.f32 %v7590_v46  ;;  %v7554_v16 = vpop.xlane.xlu0 %7553  ;;  %v7560_v24 = vpop.xlane.xlu1 %7559 }
 0x978   : > { %v9088_v60 = vpop.eup %9087  ;;  %7680 = vst [vmem:[%s14674_s26 + $0x88] sm:$0xff] %v7648_v27  ;;  %v7592_v56 = vmax.f32 %v7554_v16, 1e-24  ;;  %v7595_v51 = vmax.f32 %v7560_v24, 1e-24 }
 0x979   : > { %v9090_v20 = vpop.eup %9089  ;;  %v7650_v61 = vmul.f32 %v9088_v60, %v14587_v11 }
 0x97a   : > { %v7653_v39 = vmul.f32 %v9090_v20, %v14592_v3  ;;  %9099 = vrsqrt.f32 %v7592_v56 }
 0x97b   : > { %7682 = vst [vmem:[%s14674_s26 + $0x98] sm:$0xff] %v7650_v61  ;;  %9101 = vrsqrt.f32 %v7595_v51  ;;  %v7558_v34 = vpop.xlane.xlu0 %7557  ;;  %v7564_v42 = vpop.xlane.xlu1 %7563 }
 0x97c   : > { %v9092_v0 = vpop.eup %9091  ;;  %7685 = vst [vmem:[%s14674_s26 + $0xb0] sm:$0xff] %v7653_v39  ;;  %v7594_v31 = vmax.f32 %v7558_v34, 1e-24  ;;  %v7597_v2 = vmax.f32 %v7564_v42, 1e-24 }
 0x97d   : > { %v9094_v63 = vpop.eup %9093  ;;  %v7652_v22 = vmul.f32 %v9092_v0, %v14598_v8 }
 0x97e   : > { %v7655_v41 = vmul.f32 %v9094_v63, %v14602_v52  ;;  %9103 = vrsqrt.f32 %v7594_v31 }
 0x97f   : > { %7684 = vst [vmem:[%s14674_s26 + $0xa8] sm:$0xff] %v7652_v22  ;;  %9105 = vrsqrt.f32 %v7597_v2  ;;  %v7562_v11 = vpop.xlane.xlu0 %7561 }
 0x980   : > { %v9096_v3 = vpop.eup %9095  ;;  %7687 = vst [vmem:[%s14674_s26 + $0xc0] sm:$0xff] %v7655_v41  ;;  %v7596_v58 = vmax.f32 %v7562_v11, 1e-24 }
 0x981   : > { %v9098_v30 = vpop.eup %9097  ;;  %v7657_v14 = vmul.f32 %v9096_v3, %v14607_v25 }
 0x982   : > { %v7654_v44 = vmul.f32 %v9098_v30, %v14613_v17  ;;  %9107 = vrsqrt.f32 %v7596_v58 }
 0x983   : > { %7689 = vst [vmem:[%s14674_s26 + $0xd0] sm:$0xff] %v7657_v14  ;;  %v7566_v8 = vpop.xlane.xlu0 %7565 }
 0x984   : > { %v9100_v52 = vpop.eup %9099  ;;  %7686 = vst [vmem:[%s14674_s26 + $0xb8] sm:$0xff] %v7654_v44  ;;  %v7598_v23 = vmax.f32 %v7566_v8, 1e-24 }
 0x985   : > { %v9102_v55 = vpop.eup %9101  ;;  %v7656_v37 = vmul.f32 %v9100_v52, %v14617_v26 }
 0x986   : > { %v7659_v32 = vmul.f32 %v9102_v55, %v14620_v57  ;;  %9109 = vrsqrt.f32 %v7598_v23 }
 0x987   : > { %7688 = vst [vmem:[%s14674_s26 + $0xc8] sm:$0xff] %v7656_v37 }
 0x988   : > { %v9104_v25 = vpop.eup %9103  ;;  %7691 = vst [vmem:[%s14674_s26 + $0xe0] sm:$0xff] %v7659_v32 }
 0x989   : > { %v9106_v17 = vpop.eup %9105  ;;  %v7658_v45 = vmul.f32 %v9104_v25, %v14627_v9 }
 0x98a   : > { %v7661_v35 = vmul.f32 %v9106_v17, %v14630_v43 }
 0x98b   : > { %7690 = vst [vmem:[%s14674_s26 + $0xd8] sm:$0xff] %v7658_v45 }
 0x98c   : > { %v9108_v1 = vpop.eup %9107  ;;  %7693 = vst [vmem:[%s14674_s26 + $0xf0] sm:$0xff] %v7661_v35 }
 0x98d   : > { %v7660_v19 = vmul.f32 %v9108_v1, %v14633_v13 }
 0x98f   : > { %7692 = vst [vmem:[%s14674_s26 + $0xe8] sm:$0xff] %v7660_v19 }
 0x990   : > { %v9110_v26 = vpop.eup %9109 }
 0x991   : > { %v7662_v57 = vmul.f32 %v9110_v26, %v14636_v15 }
 0x993   : > { %7694 = vst [vmem:[%s14674_s26 + $0xf8] sm:$0xff] %v7662_v57 }
 0x994   : > { %9346 = shalt.err (!%p9343_p3)
}
 0x995   : > { %s9347_s27 = scalar_lea.hbm %s14742_s11, 4096  ;;  %s9351_s26 = scalar_lea.hbm %s14801_s10, 8192 }
 0x996   : > { %p9348_p4 = scmp.ne.s32.totalorder %s14742_s11, %s9347_s27  ;;  %p9352_p9 = scmp.lt.u32.totalorder %s14742_s11, %s14801_s10 }
 0x997   : > { %p9353_p10 = scmp.lt.u32.totalorder %s9351_s26, %s9347_s27  ;;  %p9355_p12 = scmp.lt.u32.totalorder %s9347_s27, %s14742_s11 }
 0x998   : > { %p9349_p7 = pnand %p9348_p4, %p9497_p5 }
 0x999   : > { %p9354_p11 = por %p9353_p10, %p9352_p9 }
 0x99a   : > { %p9350_p8 = pneg %p9349_p7 }
 0x99b   : > { %p9356_p13 = por %p9355_p12, %p9354_p11 }
 0x99d   : > { %p9357_p0 = pnand %p9356_p13, %p9350_p8 }
 0x99f   : > { %9360 = shalt.err (!%p9357_p0)
}
 0x9a0   : > { %s9402_s30 = smov 128   ;;  %s9403_s17 = smov 8  }
 0x9a1   : > { %8727 = dma.vmem_to_hbm [thread:$0]  (%p9497_p5), %s14744_s18, 4096, %s14742_s11, %s14750_s20, %s9402_s30, %s9402_s30, %s9403_s17  }
 0x9a2 PF: > { %p8733_p1 = scmp.ge.s32.totalorder %s9395_s16, 2  ;;  %s7724_s15 = sand.u32 1, %s9383_s13  }
 0x9a3   : > { %s7725_s21 = scalar_lea.sflag [#allocation3], %s7724_s15 }
 0x9a4   : > { %p8730_p2 = pnand %p8733_p1, %p9501_p6 }
 0x9a6   : > { %9378 = dma.done.wait (!%p8730_p2), %s7725_s21, 4096  }
 0x9a7   : > { %9380 = vsyncadd (!%p8730_p2), %s7725_s21, 4294963200  ;;  %s16308_s25 = sld [smem:[#allocation5_spill]]  ;;  %s16309_s15 = sld [smem:[#allocation6_spill]] }
 0x9a8   : > { %p20_p3 = scmp.ge.s32.totalorder %s9484_s19, 4   ;;  %s16310_s13 = smov %s9387_s14 }
 0x9a9   : > { %s16312_s16 = smov %s9484_s19 }
 0x9aa   :  { %22 = sbr.rel (!%p20_p3) target bundleno = 3 (0x3), region = 98 }
 0x9ad   : > { %s16311_s14 = smov %s16308_s25 }
 0x9b1   :  { %7730 = vsyncpa [#allocation3], 1 }
 0x9b2   :  { %7732 = vsyncpa [#allocation3 + $0x1], 1 }

</bundles_post_ra>
